<compile_context>
chip_gen: v6e
topology: v6e:2x2x1
jax: 0.10.0
libtpu: 0.0.40
codegen_flags: <defaults>
</compile_context>

<pallas_src>
import jax
import jax.numpy as jnp
from jax.experimental import pallas as pl
from jax.experimental.pallas import tpu as pltpu


def round_up(n, m):
    return ((n + m - 1) // m) * m


# ----------------------------------------------------------------------------
# Fused Block kernel: WSConv3x3 -> GroupNorm -> (*t, +c) -> SiLU [-> +residual]
# ----------------------------------------------------------------------------
def make_block_kernel(Wp, Q_pad, Cin_pad, C_pad, has_t, has_c, res_mode,
                      eps=1e-5):
    def kernel(*refs):
        it = iter(refs)
        xp_ref = next(it)   # (1, Pp_pad, Cin_pad) f32 zero-padded flat input
        w_ref = next(it)    # (9*Cin_pad, C_pad)   bf16 standardized conv weight
        b_ref = next(it)    # (1, C_pad)           f32 conv bias
        A_ref = next(it)    # (C_pad, C_pad)       f32 group-averaging matrix
        g_ref = next(it)    # (1, C_pad)           f32 GN gamma
        be_ref = next(it)   # (1, C_pad)           f32 GN beta
        m_ref = next(it)    # (Q_pad, 1)           f32 validity mask (1 = real pixel)
        t_ref = next(it) if has_t else None
        c_ref = next(it) if has_c else None
        if res_mode == "conv":
            xr_ref, wr_ref, br_ref = next(it), next(it), next(it)
        elif res_mode == "identity":
            xr_ref = next(it)
        o_ref = next(it)

        # ---- 3x3 conv: 9 shifted matmuls (bf16 MXU, f32 accumulation) ----
        acc = jnp.zeros((Q_pad, C_pad), jnp.float32)
        for k in range(9):
            dy, dx = divmod(k, 3)
            off = dy * Wp + dx
            xs = xp_ref[0, pl.ds(off, Q_pad), :].astype(jnp.bfloat16)
            wk = w_ref[pl.ds(k * Cin_pad, Cin_pad), :]
            acc = acc + jnp.dot(xs, wk, preferred_element_type=jnp.float32)
        h = acc + b_ref[...]

        mask = m_ref[...]                                   # (Q_pad, 1)

        # ---- GroupNorm: centered two-pass moments, all in f32 ----
        s = jnp.sum(h * mask, axis=0, keepdims=True)        # (1, C_pad)
        mean = jnp.dot(s, A_ref[...], preferred_element_type=jnp.float32)
        d = (h - mean) * mask
        ss = jnp.sum(d * d, axis=0, keepdims=True)
        var = jnp.dot(ss, A_ref[...], preferred_element_type=jnp.float32)
        rstd = jax.lax.rsqrt(var + eps)
        h = (h - mean) * rstd * g_ref[...] + be_ref[...]

        if has_t:
            h = h * t_ref[0]
        if has_c:
            h = h + c_ref[0]
        h = h * jax.nn.sigmoid(h)                           # SiLU

        # ---- fused residual (block2 only) ----
        if res_mode == "conv":
            xr = xr_ref[0, pl.ds(Wp + 1, Q_pad), :].astype(jnp.bfloat16)
            h = h + jnp.dot(xr, wr_ref[...], preferred_element_type=jnp.float32)
            h = h + br_ref[...]
        elif res_mode == "identity":
            h = h + xr_ref[0, pl.ds(Wp + 1, Q_pad), :]      # exact f32 add

        # Zero the stride-padding columns so the output can be re-framed into
        # the next conv's zero-padded input with a plain row shift.
        o_ref[0] = (h * mask).astype(o_ref.dtype)

    return kernel


# ----------------------------------------------------------------------------
# Pallas wrapper
# ----------------------------------------------------------------------------
_VMEM_LIMIT = 56 * 1024 * 1024  # leave headroom below v7x's 64 MiB physical VMEM


def run_block(xp, w9, bias, A, gamma, beta, mask, Wp, Q_pad, *,
              t_emb=None, c_emb=None, xres=None, w_res=None, b_res=None,
              res_mode=None, out_dtype=jnp.float32):
    B, Pp_pad, Cin_pad = xp.shape
    C_pad = w9.shape[-1]
    has_t = t_emb is not None
    has_c = c_emb is not None

    args = [xp, w9, bias, A, gamma, beta, mask]
    in_specs = [
        pl.BlockSpec((1, Pp_pad, Cin_pad), lambda b: (b, 0, 0)),
        pl.BlockSpec((9 * Cin_pad, C_pad), lambda b: (0, 0)),
        pl.BlockSpec((1, C_pad), lambda b: (0, 0)),
        pl.BlockSpec((C_pad, C_pad), lambda b: (0, 0)),
        pl.BlockSpec((1, C_pad), lambda b: (0, 0)),
        pl.BlockSpec((1, C_pad), lambda b: (0, 0)),
        pl.BlockSpec((Q_pad, 1), lambda b: (0, 0)),
    ]
    if has_t:
        args.append(t_emb)
        in_specs.append(pl.BlockSpec((1, 1, C_pad), lambda b: (b, 0, 0)))
    if has_c:
        args.append(c_emb)
        in_specs.append(pl.BlockSpec((1, 1, C_pad), lambda b: (b, 0, 0)))

    flops = 2 * B * Q_pad * (9 * Cin_pad) * C_pad
    if res_mode == "conv":
        rp, rc = xres.shape[1], xres.shape[2]
        args += [xres, w_res, b_res]
        in_specs += [pl.BlockSpec((1, rp, rc), lambda b: (b, 0, 0)),
                     pl.BlockSpec((rc, C_pad), lambda b: (0, 0)),
                     pl.BlockSpec((1, C_pad), lambda b: (0, 0))]
        flops += 2 * B * Q_pad * rc * C_pad
    elif res_mode == "identity":
        rp, rc = xres.shape[1], xres.shape[2]
        args.append(xres)
        in_specs.append(pl.BlockSpec((1, rp, rc), lambda b: (b, 0, 0)))

    bytes_accessed = sum(int(a.size) * a.dtype.itemsize for a in args)
    bytes_accessed += B * Q_pad * C_pad * jnp.dtype(out_dtype).itemsize

    kernel = make_block_kernel(Wp, Q_pad, Cin_pad, C_pad, has_t, has_c, res_mode)
    return pl.pallas_call(
        kernel,
        out_shape=jax.ShapeDtypeStruct((B, Q_pad, C_pad), out_dtype),
        grid=(B,),
        in_specs=in_specs,
        out_specs=pl.BlockSpec((1, Q_pad, C_pad), lambda b: (b, 0, 0)),
        compiler_params=pltpu.CompilerParams(
            dimension_semantics=("parallel",),
            vmem_limit_bytes=_VMEM_LIMIT),
        cost_estimate=pl.CostEstimate(
            flops=int(flops),
            transcendentals=int(B * Q_pad * C_pad),
            bytes_accessed=int(bytes_accessed)),
    )(*args)


# ----------------------------------------------------------------------------
# Plain-JAX glue (batch-invariant / tiny pieces, hoisted out of the kernels)
# ----------------------------------------------------------------------------
def prep_ws_weight(w, cin_pad, c_pad, eps=1e-5):
    """Weight standardization + (9*Cin_pad, C_pad) bf16 layout, slab k = tap
    (dy, dx) with k = dy*3 + dx."""
    cout, cin = w.shape[0], w.shape[1]
    wf = w.reshape(cout, -1).astype(jnp.float32)
    mean = jnp.mean(wf, axis=1, keepdims=True)
    var = jnp.mean((wf - mean) ** 2, axis=1, keepdims=True)    # unbiased=False
    wstd = ((wf - mean) * jax.lax.rsqrt(var + eps)).reshape(w.shape)
    wk = jnp.transpose(wstd, (2, 3, 1, 0)).reshape(9, cin, cout)
    wk = jnp.pad(wk, ((0, 0), (0, cin_pad - cin), (0, c_pad - cout)))
    return wk.reshape(9 * cin_pad, c_pad).astype(jnp.bfloat16)


def pad_row(v, c_pad):
    v = v.reshape(1, -1).astype(jnp.float32)
    return jnp.pad(v, ((0, 0), (0, c_pad - v.shape[1])))


def make_group_matrix(C, c_pad, groups, n_spatial):
    """A[i,j] = 1/(n_spatial*cpg) if channels i, j share a group (both < C).
    (channel sums) @ A -> per-channel (group-broadcast) means."""
    cpg = C // groups
    idx = jnp.arange(c_pad)
    same = (idx[:, None] // cpg) == (idx[None, :] // cpg)
    valid = (idx[:, None] < C) & (idx[None, :] < C)
    return jnp.where(same & valid, 1.0 / (n_spatial * cpg), 0.0).astype(jnp.float32)


def make_col_mask(H, W, q_pad):
    """1.0 on rows that map to a real pixel in the row-stride (W+2) layout."""
    Wp = W + 2
    q = jnp.arange(q_pad)
    valid = (q < H * Wp) & ((q % Wp) < W)
    return valid.astype(jnp.float32).reshape(q_pad, 1)


def pad_to_strided_flat(x_nhwc, cin_pad, pp_pad):
    """[B,H,W,C] -> zero-padded (H+2)x(W+2) frame, flattened and padded."""
    B, H, W, C = x_nhwc.shape
    xp = jnp.pad(x_nhwc, ((0, 0), (1, 1), (1, 1), (0, 0)))
    xp = xp.reshape(B, (H + 2) * (W + 2), C)
    return jnp.pad(xp, ((0, 0), (0, pp_pad - xp.shape[1]), (0, cin_pad - C))
                   ).astype(jnp.float32)


def cond_embed(v, w, b, c_pad):
    """nn.Sequential(SiLU(), Linear) in plain JAX, padded to (B, 1, C_pad)."""
    v = v.astype(jnp.float32)
    s = v * jax.nn.sigmoid(v)
    e = jnp.dot(s, w.astype(jnp.float32)) + b.astype(jnp.float32).reshape(1, -1)
    e = jnp.pad(e, ((0, 0), (0, c_pad - e.shape[1])))
    return e[:, None, :]


def block1_groups(inCh, outCh):
    return 8 if (inCh > 4 and inCh % 8 == 0 and outCh % 8 == 0) else 1


def block2_groups(outCh):
    return 8 if (outCh > 4 and outCh % 8 == 0) else 1


# ----------------------------------------------------------------------------
# Forward
# ----------------------------------------------------------------------------
def resnet_block_forward_nhwc(x_nhwc, t, c, params, inCh, outCh,
                              out_dtype=jnp.float32):
    B, H, W, _ = x_nhwc.shape
    Wp = W + 2
    P = H * W
    Q = H * Wp
    Q_pad = round_up(Q, 16)
    Pp_pad = round_up(Q_pad + 2 * Wp + 2, 16)
    C_pad = round_up(outCh, 128)
    Cin_pad = round_up(inCh, 128)
    g1, g2 = block1_groups(inCh, outCh), block2_groups(outCh)

    mask = make_col_mask(H, W, Q_pad)
    t_emb = cond_embed(t, params["t_w"], params["t_b"], C_pad) if t is not None else None
    c_emb = cond_embed(c, params["c_w"], params["c_b"], C_pad) if c is not None else None

    # ---- block 1: WSConv3x3 -> GN(g1) -> *t -> +c -> SiLU ----
    xp1 = pad_to_strided_flat(x_nhwc, Cin_pad, Pp_pad)
    h1 = run_block(
        xp1, prep_ws_weight(params["conv1_w"], Cin_pad, C_pad),
        pad_row(params["conv1_b"], C_pad), make_group_matrix(outCh, C_pad, g1, P),
        pad_row(params["gn1_gamma"], C_pad), pad_row(params["gn1_beta"], C_pad),
        mask, Wp, Q_pad, t_emb=t_emb, c_emb=c_emb, out_dtype=jnp.float32)

    # ---- block 2: WSConv3x3 -> GN(g2) -> SiLU, residual fused in-kernel ----
    # h1's stride-padding columns are already zero, so re-framing it as block2's
    # zero-padded conv input is just a row shift.
    xp2 = jnp.pad(h1, ((0, 0), (Wp + 1, Pp_pad - Q_pad - (Wp + 1)), (0, 0)))
    if inCh != outCh:
        w_res = jnp.pad(params["res_w"].reshape(outCh, inCh).T.astype(jnp.float32),
                        ((0, Cin_pad - inCh), (0, C_pad - outCh))).astype(jnp.bfloat16)
        res_kwargs = dict(xres=xp1, w_res=w_res,
                          b_res=pad_row(params["res_b"], C_pad), res_mode="conv")
    else:
        res_kwargs = dict(xres=xp1, res_mode="identity")    # no eye-matmul
    out = run_block(
        xp2, prep_ws_weight(params["conv2_w"], C_pad, C_pad),
        pad_row(params["conv2_b"], C_pad), make_group_matrix(outCh, C_pad, g2, P),
        pad_row(params["gn2_gamma"], C_pad), pad_row(params["gn2_beta"], C_pad),
        mask, Wp, Q_pad, out_dtype=out_dtype, **res_kwargs)

    return out[:, :Q, :].reshape(B, H, Wp, C_pad)[:, :, :W, :outCh]


def resnet_block_forward(x_nchw, t, c, params, inCh, outCh):
    """NCHW wrapper matching the PyTorch module.  When chaining blocks, call
    resnet_block_forward_nhwc directly to avoid per-block HBM permutes."""
    x_nhwc = jnp.transpose(x_nchw, (0, 2, 3, 1))
    out = resnet_block_forward_nhwc(x_nhwc, t, c, params, inCh, outCh,
                                    out_dtype=jnp.float32)
    return jnp.transpose(out, (0, 3, 1, 2))


# ----------------------------------------------------------------------------
# Pure-JAX reference (f32) for correctness checking
# ----------------------------------------------------------------------------
def reference_forward(x, t, c, params, inCh, outCh, eps=1e-5):
    def silu(v):
        return v * jax.nn.sigmoid(v)

    def ws_conv(xi, w, b):
        wf = w.reshape(w.shape[0], -1)
        m = wf.mean(1, keepdims=True)
        v = ((wf - m) ** 2).mean(1, keepdims=True)
        wn = ((wf - m) * jax.lax.rsqrt(v + eps)).reshape(w.shape)
        y = jax.lax.conv_general_dilated(
            xi, wn, (1, 1), "SAME", dimension_numbers=("NCHW", "OIHW", "NCHW"))
        return y + b.reshape(1, -1, 1, 1)

    def group_norm(xi, gamma, beta, G):
        B, C, H, W = xi.shape
        xg = xi.reshape(B, G, (C // G) * H * W)
        m = xg.mean(-1, keepdims=True)
        v = ((xg - m) ** 2).mean(-1, keepdims=True)
        xn = ((xg - m) * jax.lax.rsqrt(v + eps)).reshape(B, C, H, W)
        return xn * gamma.reshape(1, -1, 1, 1) + beta.reshape(1, -1, 1, 1)

    te = (silu(t) @ params["t_w"] + params["t_b"])[:, :, None, None]
    ce = (silu(c) @ params["c_w"] + params["c_b"])[:, :, None, None]
    g1, g2 = block1_groups(inCh, outCh), block2_groups(outCh)

    h = ws_conv(x, params["conv1_w"], params["conv1_b"])
    h = group_norm(h, params["gn1_gamma"], params["gn1_beta"], g1)
    h = silu(h * te + ce)
    h = ws_conv(h, params["conv2_w"], params["conv2_b"])
    h = group_norm(h, params["gn2_gamma"], params["gn2_beta"], g2)
    h = silu(h)
    if inCh != outCh:
        r = jax.lax.conv_general_dilated(
            x, params["res_w"], (1, 1), "SAME",
            dimension_numbers=("NCHW", "OIHW", "NCHW"))
        r = r + params["res_b"].reshape(1, -1, 1, 1)
    else:
        r = x
    return h + r


# ----------------------------------------------------------------------------
# Main
# ----------------------------------------------------------------------------
if __name__ == "__main__":
    B, inCh, outCh, H, W = 2, 4, 8, 16, 16
    t_dim, c_dim = 16, 12

    key = jax.random.PRNGKey(0)
    ks = jax.random.split(key, 16)

    def rand(k, shape, scale=0.1):
        return scale * jax.random.normal(k, shape, dtype=jnp.float32)

    params = {
        # t_mlp / c_mlp (Linear stored as [in, out])
        "t_w": rand(ks[0], (t_dim, outCh)),
        "t_b": rand(ks[1], (1, outCh)),
        "c_w": rand(ks[2], (c_dim, outCh)),
        "c_b": rand(ks[3], (1, outCh)),
        # block1: WeightStandardizedConv2d(inCh, outCh, 3) + GroupNorm
        "conv1_w": rand(ks[4], (outCh, inCh, 3, 3)),
        "conv1_b": rand(ks[5], (1, outCh)),
        "gn1_gamma": jnp.ones((1, outCh), jnp.float32) + rand(ks[6], (1, outCh)),
        "gn1_beta": rand(ks[7], (1, outCh)),
        # block2: WeightStandardizedConv2d(outCh, outCh, 3) + GroupNorm
        "conv2_w": rand(ks[8], (outCh, outCh, 3, 3)),
        "conv2_b": rand(ks[9], (1, outCh)),
        "gn2_gamma": jnp.ones((1, outCh), jnp.float32) + rand(ks[10], (1, outCh)),
        "gn2_beta": rand(ks[11], (1, outCh)),
        # res_conv: Conv2d(inCh, outCh, 1)
        "res_w": rand(ks[12], (outCh, inCh, 1, 1)),
        "res_b": rand(ks[13], (1, outCh)),
    }

    x = jax.random.normal(ks[14], (B, inCh, H, W), dtype=jnp.float32)
    t = jax.random.normal(ks[15], (B, t_dim), dtype=jnp.float32)
    c = jax.random.normal(jax.random.PRNGKey(1), (B, c_dim), dtype=jnp.float32)

    fwd = jax.jit(lambda x_, t_, c_, p_: resnet_block_forward(x_, t_, c_, p_,
                                                              inCh, outCh))
    out = jax.block_until_ready(fwd(x, t, c, params))
    assert out.shape == (B, outCh, H, W)
    assert bool(jnp.all(jnp.isfinite(out)))
    ref = reference_forward(x, t, c, params, inCh, outCh)
    assert float(jnp.max(jnp.abs(out - ref))) < 0.15   # bf16 MXU vs f32 reference

    # Also exercise the identity-residual fast path (inCh == outCh).
    params_id = dict(params)
    params_id["conv1_w"] = rand(jax.random.PRNGKey(2), (outCh, outCh, 3, 3))
    x_id = jax.random.normal(jax.random.PRNGKey(3), (B, outCh, H, W),
                             dtype=jnp.float32)
    out_id = jax.block_until_ready(
        resnet_block_forward(x_id, t, c, params_id, outCh, outCh))
    ref_id = reference_forward(x_id, t, c, params_id, outCh, outCh)
    assert out_id.shape == (B, outCh, H, W)
    assert bool(jnp.all(jnp.isfinite(out_id)))
    assert float(jnp.max(jnp.abs(out_id - ref_id))) < 0.15

    print("KERNEL_OK")
</pallas_src>

<mosaic_0001>
module attributes {stable_mosaic.version = 11 : i64} {
  func.func @kernel(%arg0: i32, %arg1: memref<1x336x128xf32, #tpu.memory_space<vmem>>, %arg2: memref<1152x128xbf16, #tpu.memory_space<vmem>>, %arg3: memref<1x128xf32, #tpu.memory_space<vmem>>, %arg4: memref<128x128xf32, #tpu.memory_space<vmem>>, %arg5: memref<1x128xf32, #tpu.memory_space<vmem>>, %arg6: memref<1x128xf32, #tpu.memory_space<vmem>>, %arg7: memref<288x1xf32, #tpu.memory_space<vmem>>, %arg8: memref<1x1x128xf32, #tpu.memory_space<vmem>>, %arg9: memref<1x1x128xf32, #tpu.memory_space<vmem>>, %arg10: memref<1x288x128xf32, #tpu.memory_space<vmem>>) attributes {dimension_semantics = [#tpu.dimension_semantics<parallel>], iteration_bounds = array<i64: 2>, scalar_prefetch = 0 : i64, scratch_operands = 0 : i64, tpu.core_type = #tpu.core_type<tc>, window_params = [{transform_indices = @transform_0, window_bounds = array<i64: 1, 336, 128>}, {pipeline_mode = #tpu.pipeline_mode<synchronous>, transform_indices = @transform_1, window_bounds = array<i64: 1152, 128>}, {pipeline_mode = #tpu.pipeline_mode<synchronous>, transform_indices = @transform_2, window_bounds = array<i64: 1, 128>}, {pipeline_mode = #tpu.pipeline_mode<synchronous>, transform_indices = @transform_3, window_bounds = array<i64: 128, 128>}, {pipeline_mode = #tpu.pipeline_mode<synchronous>, transform_indices = @transform_4, window_bounds = array<i64: 1, 128>}, {pipeline_mode = #tpu.pipeline_mode<synchronous>, transform_indices = @transform_5, window_bounds = array<i64: 1, 128>}, {pipeline_mode = #tpu.pipeline_mode<synchronous>, transform_indices = @transform_6, window_bounds = array<i64: 288, 1>}, {transform_indices = @transform_7, window_bounds = array<i64: 1, 1, 128>}, {transform_indices = @transform_8, window_bounds = array<i64: 1, 1, 128>}, {transform_indices = @transform_9, window_bounds = array<i64: 1, 288, 128>}]} {
    %cst = arith.constant 0.000000e+00 : f32
    %0 = vector.broadcast %cst : f32 to vector<288x128xf32>
    %c0 = arith.constant 0 : index
    %c0_0 = arith.constant 0 : index
    %c0_1 = arith.constant 0 : index
    %1 = vector.load %arg1[%c0, %c0_0, %c0_1] : memref<1x336x128xf32, #tpu.memory_space<vmem>>, vector<1x288x128xf32>
    %2 = vector.shape_cast %1 : vector<1x288x128xf32> to vector<288x128xf32>
    %3 = arith.truncf %2 : vector<288x128xf32> to vector<288x128xbf16>
    %c0_2 = arith.constant 0 : index
    %c0_3 = arith.constant 0 : index
    %4 = vector.load %arg2[%c0_2, %c0_3] : memref<1152x128xbf16, #tpu.memory_space<vmem>>, vector<128x128xbf16>
    %cst_4 = arith.constant dense<0.000000e+00> : vector<288x128xf32>
    %5 = tpu.matmul %3, %4, %cst_4 {dimension_numbers = #tpu.dot_dimension_numbers<[1], [0], [0], [1], [0, 0, 1, 1], [], []>} : vector<288x128xbf16>, vector<128x128xbf16>, vector<288x128xf32> -> vector<288x128xf32>
    %6 = arith.addf %0, %5 : vector<288x128xf32>
    %c0_5 = arith.constant 0 : index
    %c1 = arith.constant 1 : index
    %c0_6 = arith.constant 0 : index
    %7 = vector.load %arg1[%c0_5, %c1, %c0_6] : memref<1x336x128xf32, #tpu.memory_space<vmem>>, vector<1x288x128xf32>
    %8 = vector.shape_cast %7 : vector<1x288x128xf32> to vector<288x128xf32>
    %9 = arith.truncf %8 : vector<288x128xf32> to vector<288x128xbf16>
    %c128 = arith.constant 128 : index
    %c0_7 = arith.constant 0 : index
    %10 = vector.load %arg2[%c128, %c0_7] : memref<1152x128xbf16, #tpu.memory_space<vmem>>, vector<128x128xbf16>
    %cst_8 = arith.constant dense<0.000000e+00> : vector<288x128xf32>
    %11 = tpu.matmul %9, %10, %cst_8 {dimension_numbers = #tpu.dot_dimension_numbers<[1], [0], [0], [1], [0, 0, 1, 1], [], []>} : vector<288x128xbf16>, vector<128x128xbf16>, vector<288x128xf32> -> vector<288x128xf32>
    %12 = arith.addf %6, %11 : vector<288x128xf32>
    %c0_9 = arith.constant 0 : index
    %c2 = arith.constant 2 : index
    %c0_10 = arith.constant 0 : index
    %13 = vector.load %arg1[%c0_9, %c2, %c0_10] : memref<1x336x128xf32, #tpu.memory_space<vmem>>, vector<1x288x128xf32>
    %14 = vector.shape_cast %13 : vector<1x288x128xf32> to vector<288x128xf32>
    %15 = arith.truncf %14 : vector<288x128xf32> to vector<288x128xbf16>
    %c256 = arith.constant 256 : index
    %c0_11 = arith.constant 0 : index
    %16 = vector.load %arg2[%c256, %c0_11] : memref<1152x128xbf16, #tpu.memory_space<vmem>>, vector<128x128xbf16>
    %cst_12 = arith.constant dense<0.000000e+00> : vector<288x128xf32>
    %17 = tpu.matmul %15, %16, %cst_12 {dimension_numbers = #tpu.dot_dimension_numbers<[1], [0], [0], [1], [0, 0, 1, 1], [], []>} : vector<288x128xbf16>, vector<128x128xbf16>, vector<288x128xf32> -> vector<288x128xf32>
    %18 = arith.addf %12, %17 : vector<288x128xf32>
    %c0_13 = arith.constant 0 : index
    %c18 = arith.constant 18 : index
    %c0_14 = arith.constant 0 : index
    %19 = vector.load %arg1[%c0_13, %c18, %c0_14] : memref<1x336x128xf32, #tpu.memory_space<vmem>>, vector<1x288x128xf32>
    %20 = vector.shape_cast %19 : vector<1x288x128xf32> to vector<288x128xf32>
    %21 = arith.truncf %20 : vector<288x128xf32> to vector<288x128xbf16>
    %c384 = arith.constant 384 : index
    %c0_15 = arith.constant 0 : index
    %22 = vector.load %arg2[%c384, %c0_15] : memref<1152x128xbf16, #tpu.memory_space<vmem>>, vector<128x128xbf16>
    %cst_16 = arith.constant dense<0.000000e+00> : vector<288x128xf32>
    %23 = tpu.matmul %21, %22, %cst_16 {dimension_numbers = #tpu.dot_dimension_numbers<[1], [0], [0], [1], [0, 0, 1, 1], [], []>} : vector<288x128xbf16>, vector<128x128xbf16>, vector<288x128xf32> -> vector<288x128xf32>
    %24 = arith.addf %18, %23 : vector<288x128xf32>
    %c0_17 = arith.constant 0 : index
    %c19 = arith.constant 19 : index
    %c0_18 = arith.constant 0 : index
    %25 = vector.load %arg1[%c0_17, %c19, %c0_18] : memref<1x336x128xf32, #tpu.memory_space<vmem>>, vector<1x288x128xf32>
    %26 = vector.shape_cast %25 : vector<1x288x128xf32> to vector<288x128xf32>
    %27 = arith.truncf %26 : vector<288x128xf32> to vector<288x128xbf16>
    %c512 = arith.constant 512 : index
    %c0_19 = arith.constant 0 : index
    %28 = vector.load %arg2[%c512, %c0_19] : memref<1152x128xbf16, #tpu.memory_space<vmem>>, vector<128x128xbf16>
    %cst_20 = arith.constant dense<0.000000e+00> : vector<288x128xf32>
    %29 = tpu.matmul %27, %28, %cst_20 {dimension_numbers = #tpu.dot_dimension_numbers<[1], [0], [0], [1], [0, 0, 1, 1], [], []>} : vector<288x128xbf16>, vector<128x128xbf16>, vector<288x128xf32> -> vector<288x128xf32>
    %30 = arith.addf %24, %29 : vector<288x128xf32>
    %c0_21 = arith.constant 0 : index
    %c20 = arith.constant 20 : index
    %c0_22 = arith.constant 0 : index
    %31 = vector.load %arg1[%c0_21, %c20, %c0_22] : memref<1x336x128xf32, #tpu.memory_space<vmem>>, vector<1x288x128xf32>
    %32 = vector.shape_cast %31 : vector<1x288x128xf32> to vector<288x128xf32>
    %33 = arith.truncf %32 : vector<288x128xf32> to vector<288x128xbf16>
    %c640 = arith.constant 640 : index
    %c0_23 = arith.constant 0 : index
    %34 = vector.load %arg2[%c640, %c0_23] : memref<1152x128xbf16, #tpu.memory_space<vmem>>, vector<128x128xbf16>
    %cst_24 = arith.constant dense<0.000000e+00> : vector<288x128xf32>
    %35 = tpu.matmul %33, %34, %cst_24 {dimension_numbers = #tpu.dot_dimension_numbers<[1], [0], [0], [1], [0, 0, 1, 1], [], []>} : vector<288x128xbf16>, vector<128x128xbf16>, vector<288x128xf32> -> vector<288x128xf32>
    %36 = arith.addf %30, %35 : vector<288x128xf32>
    %c0_25 = arith.constant 0 : index
    %c36 = arith.constant 36 : index
    %c0_26 = arith.constant 0 : index
    %37 = vector.load %arg1[%c0_25, %c36, %c0_26] : memref<1x336x128xf32, #tpu.memory_space<vmem>>, vector<1x288x128xf32>
    %38 = vector.shape_cast %37 : vector<1x288x128xf32> to vector<288x128xf32>
    %39 = arith.truncf %38 : vector<288x128xf32> to vector<288x128xbf16>
    %c768 = arith.constant 768 : index
    %c0_27 = arith.constant 0 : index
    %40 = vector.load %arg2[%c768, %c0_27] : memref<1152x128xbf16, #tpu.memory_space<vmem>>, vector<128x128xbf16>
    %cst_28 = arith.constant dense<0.000000e+00> : vector<288x128xf32>
    %41 = tpu.matmul %39, %40, %cst_28 {dimension_numbers = #tpu.dot_dimension_numbers<[1], [0], [0], [1], [0, 0, 1, 1], [], []>} : vector<288x128xbf16>, vector<128x128xbf16>, vector<288x128xf32> -> vector<288x128xf32>
    %42 = arith.addf %36, %41 : vector<288x128xf32>
    %c0_29 = arith.constant 0 : index
    %c37 = arith.constant 37 : index
    %c0_30 = arith.constant 0 : index
    %43 = vector.load %arg1[%c0_29, %c37, %c0_30] : memref<1x336x128xf32, #tpu.memory_space<vmem>>, vector<1x288x128xf32>
    %44 = vector.shape_cast %43 : vector<1x288x128xf32> to vector<288x128xf32>
    %45 = arith.truncf %44 : vector<288x128xf32> to vector<288x128xbf16>
    %c896 = arith.constant 896 : index
    %c0_31 = arith.constant 0 : index
    %46 = vector.load %arg2[%c896, %c0_31] : memref<1152x128xbf16, #tpu.memory_space<vmem>>, vector<128x128xbf16>
    %cst_32 = arith.constant dense<0.000000e+00> : vector<288x128xf32>
    %47 = tpu.matmul %45, %46, %cst_32 {dimension_numbers = #tpu.dot_dimension_numbers<[1], [0], [0], [1], [0, 0, 1, 1], [], []>} : vector<288x128xbf16>, vector<128x128xbf16>, vector<288x128xf32> -> vector<288x128xf32>
    %48 = arith.addf %42, %47 : vector<288x128xf32>
    %c0_33 = arith.constant 0 : index
    %c38 = arith.constant 38 : index
    %c0_34 = arith.constant 0 : index
    %49 = vector.load %arg1[%c0_33, %c38, %c0_34] : memref<1x336x128xf32, #tpu.memory_space<vmem>>, vector<1x288x128xf32>
    %50 = vector.shape_cast %49 : vector<1x288x128xf32> to vector<288x128xf32>
    %51 = arith.truncf %50 : vector<288x128xf32> to vector<288x128xbf16>
    %c1024 = arith.constant 1024 : index
    %c0_35 = arith.constant 0 : index
    %52 = vector.load %arg2[%c1024, %c0_35] : memref<1152x128xbf16, #tpu.memory_space<vmem>>, vector<128x128xbf16>
    %cst_36 = arith.constant dense<0.000000e+00> : vector<288x128xf32>
    %53 = tpu.matmul %51, %52, %cst_36 {dimension_numbers = #tpu.dot_dimension_numbers<[1], [0], [0], [1], [0, 0, 1, 1], [], []>} : vector<288x128xbf16>, vector<128x128xbf16>, vector<288x128xf32> -> vector<288x128xf32>
    %54 = arith.addf %48, %53 : vector<288x128xf32>
    %c0_37 = arith.constant 0 : index
    %c0_38 = arith.constant 0 : index
    %55 = vector.load %arg3[%c0_37, %c0_38] : memref<1x128xf32, #tpu.memory_space<vmem>>, vector<1x128xf32>
    %56 = vector.broadcast %55 : vector<1x128xf32> to vector<288x128xf32>
    %57 = arith.addf %54, %56 : vector<288x128xf32>
    %c0_39 = arith.constant 0 : index
    %c0_40 = arith.constant 0 : index
    %58 = vector.load %arg7[%c0_39, %c0_40] : memref<288x1xf32, #tpu.memory_space<vmem>>, vector<288x1xf32>
    %59 = vector.broadcast %58 : vector<288x1xf32> to vector<288x128xf32>
    %60 = arith.mulf %57, %59 : vector<288x128xf32>
    %cst_41 = arith.constant dense<0.000000e+00> : vector<128xf32>
    %61 = vector.multi_reduction <add>, %60, %cst_41 [0] : vector<288x128xf32> to vector<128xf32>
    %62 = vector.shape_cast %61 : vector<128xf32> to vector<1x128xf32>
    %c0_42 = arith.constant 0 : index
    %c0_43 = arith.constant 0 : index
    %63 = vector.load %arg4[%c0_42, %c0_43] : memref<128x128xf32, #tpu.memory_space<vmem>>, vector<128x128xf32>
    %cst_44 = arith.constant dense<0.000000e+00> : vector<1x128xf32>
    %64 = tpu.matmul %62, %63, %cst_44 {dimension_numbers = #tpu.dot_dimension_numbers<[1], [0], [0], [1], [0, 0, 1, 1], [], []>} : vector<1x128xf32>, vector<128x128xf32>, vector<1x128xf32> -> vector<1x128xf32>
    %65 = vector.broadcast %64 : vector<1x128xf32> to vector<288x128xf32>
    %66 = arith.subf %57, %65 : vector<288x128xf32>
    %67 = vector.broadcast %58 : vector<288x1xf32> to vector<288x128xf32>
    %68 = arith.mulf %66, %67 : vector<288x128xf32>
    %69 = arith.mulf %68, %68 : vector<288x128xf32>
    %cst_45 = arith.constant dense<0.000000e+00> : vector<128xf32>
    %70 = vector.multi_reduction <add>, %69, %cst_45 [0] : vector<288x128xf32> to vector<128xf32>
    %71 = vector.shape_cast %70 : vector<128xf32> to vector<1x128xf32>
    %c0_46 = arith.constant 0 : index
    %c0_47 = arith.constant 0 : index
    %72 = vector.load %arg4[%c0_46, %c0_47] : memref<128x128xf32, #tpu.memory_space<vmem>>, vector<128x128xf32>
    %cst_48 = arith.constant dense<0.000000e+00> : vector<1x128xf32>
    %73 = tpu.matmul %71, %72, %cst_48 {dimension_numbers = #tpu.dot_dimension_numbers<[1], [0], [0], [1], [0, 0, 1, 1], [], []>} : vector<1x128xf32>, vector<128x128xf32>, vector<1x128xf32> -> vector<1x128xf32>
    %cst_49 = arith.constant 9.99999974E-6 : f32
    %74 = vector.broadcast %cst_49 : f32 to vector<1x128xf32>
    %75 = arith.addf %73, %74 : vector<1x128xf32>
    %76 = math.rsqrt %75 : vector<1x128xf32>
    %77 = vector.broadcast %64 : vector<1x128xf32> to vector<288x128xf32>
    %78 = arith.subf %57, %77 : vector<288x128xf32>
    %79 = vector.broadcast %76 : vector<1x128xf32> to vector<288x128xf32>
    %80 = arith.mulf %78, %79 : vector<288x128xf32>
    %c0_50 = arith.constant 0 : index
    %c0_51 = arith.constant 0 : index
    %81 = vector.load %arg5[%c0_50, %c0_51] : memref<1x128xf32, #tpu.memory_space<vmem>>, vector<1x128xf32>
    %82 = vector.broadcast %81 : vector<1x128xf32> to vector<288x128xf32>
    %83 = arith.mulf %80, %82 : vector<288x128xf32>
    %c0_52 = arith.constant 0 : index
    %c0_53 = arith.constant 0 : index
    %84 = vector.load %arg6[%c0_52, %c0_53] : memref<1x128xf32, #tpu.memory_space<vmem>>, vector<1x128xf32>
    %85 = vector.broadcast %84 : vector<1x128xf32> to vector<288x128xf32>
    %86 = arith.addf %83, %85 : vector<288x128xf32>
    %c0_54 = arith.constant 0 : index
    %c0_55 = arith.constant 0 : index
    %c0_56 = arith.constant 0 : index
    %87 = vector.load %arg8[%c0_54, %c0_55, %c0_56] : memref<1x1x128xf32, #tpu.memory_space<vmem>>, vector<1x1x128xf32>
    %88 = vector.shape_cast %87 : vector<1x1x128xf32> to vector<1x128xf32>
    %89 = vector.broadcast %88 : vector<1x128xf32> to vector<288x128xf32>
    %90 = arith.mulf %86, %89 : vector<288x128xf32>
    %c0_57 = arith.constant 0 : index
    %c0_58 = arith.constant 0 : index
    %c0_59 = arith.constant 0 : index
    %91 = vector.load %arg9[%c0_57, %c0_58, %c0_59] : memref<1x1x128xf32, #tpu.memory_space<vmem>>, vector<1x1x128xf32>
    %92 = vector.shape_cast %91 : vector<1x1x128xf32> to vector<1x128xf32>
    %93 = vector.broadcast %92 : vector<1x128xf32> to vector<288x128xf32>
    %94 = arith.addf %90, %93 : vector<288x128xf32>
    %95 = arith.negf %94 : vector<288x128xf32>
    %96 = math.exp %95 : vector<288x128xf32>
    %cst_60 = arith.constant 1.000000e+00 : f32
    %97 = vector.broadcast %cst_60 : f32 to vector<288x128xf32>
    %98 = arith.addf %97, %96 : vector<288x128xf32>
    %99 = arith.divf %97, %98 : vector<288x128xf32>
    %100 = arith.mulf %94, %99 : vector<288x128xf32>
    %101 = vector.broadcast %58 : vector<288x1xf32> to vector<288x128xf32>
    %102 = arith.mulf %100, %101 : vector<288x128xf32>
    %c0_61 = arith.constant 0 : index
    %c0_62 = arith.constant 0 : index
    %c0_63 = arith.constant 0 : index
    %103 = vector.load %arg10[%c0_61, %c0_62, %c0_63] : memref<1x288x128xf32, #tpu.memory_space<vmem>>, vector<1x288x128xf32>
    %104 = vector.shape_cast %103 : vector<1x288x128xf32> to vector<288x128xf32>
    %105 = vector.shape_cast %102 : vector<288x128xf32> to vector<1x288x128xf32>
    tpu.vector_store %arg10[%c0_61, %c0_62, %c0_63], %105 {strides = array<i32>} : memref<1x288x128xf32, #tpu.memory_space<vmem>>, vector<1x288x128xf32>,
    return
  }
  func.func @transform_0(%arg0: i32) -> (i32, i32, i32) {
    %c0_i32 = arith.constant 0 : i32
    %c0_i32_0 = arith.constant 0 : i32
    %c0_i32_1 = arith.constant 0 : i32
    return %arg0, %c0_i32, %c0_i32_0 : i32, i32, i32
  }
  func.func @transform_1(%arg0: i32) -> (i32, i32) {
    %c0_i32 = arith.constant 0 : i32
    %c0_i32_0 = arith.constant 0 : i32
    %c0_i32_1 = arith.constant 0 : i32
    return %c0_i32, %c0_i32_0 : i32, i32
  }
  func.func @transform_2(%arg0: i32) -> (i32, i32) {
    %c0_i32 = arith.constant 0 : i32
    %c0_i32_0 = arith.constant 0 : i32
    %c0_i32_1 = arith.constant 0 : i32
    return %c0_i32, %c0_i32_0 : i32, i32
  }
  func.func @transform_3(%arg0: i32) -> (i32, i32) {
    %c0_i32 = arith.constant 0 : i32
    %c0_i32_0 = arith.constant 0 : i32
    %c0_i32_1 = arith.constant 0 : i32
    return %c0_i32, %c0_i32_0 : i32, i32
  }
  func.func @transform_4(%arg0: i32) -> (i32, i32) {
    %c0_i32 = arith.constant 0 : i32
    %c0_i32_0 = arith.constant 0 : i32
    %c0_i32_1 = arith.constant 0 : i32
    return %c0_i32, %c0_i32_0 : i32, i32
  }
  func.func @transform_5(%arg0: i32) -> (i32, i32) {
    %c0_i32 = arith.constant 0 : i32
    %c0_i32_0 = arith.constant 0 : i32
    %c0_i32_1 = arith.constant 0 : i32
    return %c0_i32, %c0_i32_0 : i32, i32
  }
  func.func @transform_6(%arg0: i32) -> (i32, i32) {
    %c0_i32 = arith.constant 0 : i32
    %c0_i32_0 = arith.constant 0 : i32
    %c0_i32_1 = arith.constant 0 : i32
    return %c0_i32, %c0_i32_0 : i32, i32
  }
  func.func @transform_7(%arg0: i32) -> (i32, i32, i32) {
    %c0_i32 = arith.constant 0 : i32
    %c0_i32_0 = arith.constant 0 : i32
    %c0_i32_1 = arith.constant 0 : i32
    return %arg0, %c0_i32, %c0_i32_0 : i32, i32, i32
  }
  func.func @transform_8(%arg0: i32) -> (i32, i32, i32) {
    %c0_i32 = arith.constant 0 : i32
    %c0_i32_0 = arith.constant 0 : i32
    %c0_i32_1 = arith.constant 0 : i32
    return %arg0, %c0_i32, %c0_i32_0 : i32, i32, i32
  }
  func.func @transform_9(%arg0: i32) -> (i32, i32, i32) {
    %c0_i32 = arith.constant 0 : i32
    %c0_i32_0 = arith.constant 0 : i32
    %c0_i32_1 = arith.constant 0 : i32
    return %arg0, %c0_i32, %c0_i32_0 : i32, i32, i32
  }
}

module attributes {stable_mosaic.version = 11 : i64} {
  func.func @kernel(%arg0: i32, %arg1: memref<1x336x128xf32, #tpu.memory_space<vmem>>, %arg2: memref<1152x128xbf16, #tpu.memory_space<vmem>>, %arg3: memref<1x128xf32, #tpu.memory_space<vmem>>, %arg4: memref<128x128xf32, #tpu.memory_space<vmem>>, %arg5: memref<1x128xf32, #tpu.memory_space<vmem>>, %arg6: memref<1x128xf32, #tpu.memory_space<vmem>>, %arg7: memref<288x1xf32, #tpu.memory_space<vmem>>, %arg8: memref<1x336x128xf32, #tpu.memory_space<vmem>>, %arg9: memref<128x128xbf16, #tpu.memory_space<vmem>>, %arg10: memref<1x128xf32, #tpu.memory_space<vmem>>, %arg11: memref<1x288x128xf32, #tpu.memory_space<vmem>>) attributes {dimension_semantics = [#tpu.dimension_semantics<parallel>], iteration_bounds = array<i64: 2>, scalar_prefetch = 0 : i64, scratch_operands = 0 : i64, tpu.core_type = #tpu.core_type<tc>, window_params = [{transform_indices = @transform_0, window_bounds = array<i64: 1, 336, 128>}, {pipeline_mode = #tpu.pipeline_mode<synchronous>, transform_indices = @transform_1, window_bounds = array<i64: 1152, 128>}, {pipeline_mode = #tpu.pipeline_mode<synchronous>, transform_indices = @transform_2, window_bounds = array<i64: 1, 128>}, {pipeline_mode = #tpu.pipeline_mode<synchronous>, transform_indices = @transform_3, window_bounds = array<i64: 128, 128>}, {pipeline_mode = #tpu.pipeline_mode<synchronous>, transform_indices = @transform_4, window_bounds = array<i64: 1, 128>}, {pipeline_mode = #tpu.pipeline_mode<synchronous>, transform_indices = @transform_5, window_bounds = array<i64: 1, 128>}, {pipeline_mode = #tpu.pipeline_mode<synchronous>, transform_indices = @transform_6, window_bounds = array<i64: 288, 1>}, {transform_indices = @transform_7, window_bounds = array<i64: 1, 336, 128>}, {pipeline_mode = #tpu.pipeline_mode<synchronous>, transform_indices = @transform_8, window_bounds = array<i64: 128, 128>}, {pipeline_mode = #tpu.pipeline_mode<synchronous>, transform_indices = @transform_9, window_bounds = array<i64: 1, 128>}, {transform_indices = @transform_10, window_bounds = array<i64: 1, 288, 128>}]} {
    %cst = arith.constant 0.000000e+00 : f32
    %0 = vector.broadcast %cst : f32 to vector<288x128xf32>
    %c0 = arith.constant 0 : index
    %c0_0 = arith.constant 0 : index
    %c0_1 = arith.constant 0 : index
    %1 = vector.load %arg1[%c0, %c0_0, %c0_1] : memref<1x336x128xf32, #tpu.memory_space<vmem>>, vector<1x288x128xf32>
    %2 = vector.shape_cast %1 : vector<1x288x128xf32> to vector<288x128xf32>
    %3 = arith.truncf %2 : vector<288x128xf32> to vector<288x128xbf16>
    %c0_2 = arith.constant 0 : index
    %c0_3 = arith.constant 0 : index
    %4 = vector.load %arg2[%c0_2, %c0_3] : memref<1152x128xbf16, #tpu.memory_space<vmem>>, vector<128x128xbf16>
    %cst_4 = arith.constant dense<0.000000e+00> : vector<288x128xf32>
    %5 = tpu.matmul %3, %4, %cst_4 {dimension_numbers = #tpu.dot_dimension_numbers<[1], [0], [0], [1], [0, 0, 1, 1], [], []>} : vector<288x128xbf16>, vector<128x128xbf16>, vector<288x128xf32> -> vector<288x128xf32>
    %6 = arith.addf %0, %5 : vector<288x128xf32>
    %c0_5 = arith.constant 0 : index
    %c1 = arith.constant 1 : index
    %c0_6 = arith.constant 0 : index
    %7 = vector.load %arg1[%c0_5, %c1, %c0_6] : memref<1x336x128xf32, #tpu.memory_space<vmem>>, vector<1x288x128xf32>
    %8 = vector.shape_cast %7 : vector<1x288x128xf32> to vector<288x128xf32>
    %9 = arith.truncf %8 : vector<288x128xf32> to vector<288x128xbf16>
    %c128 = arith.constant 128 : index
    %c0_7 = arith.constant 0 : index
    %10 = vector.load %arg2[%c128, %c0_7] : memref<1152x128xbf16, #tpu.memory_space<vmem>>, vector<128x128xbf16>
    %cst_8 = arith.constant dense<0.000000e+00> : vector<288x128xf32>
    %11 = tpu.matmul %9, %10, %cst_8 {dimension_numbers = #tpu.dot_dimension_numbers<[1], [0], [0], [1], [0, 0, 1, 1], [], []>} : vector<288x128xbf16>, vector<128x128xbf16>, vector<288x128xf32> -> vector<288x128xf32>
    %12 = arith.addf %6, %11 : vector<288x128xf32>
    %c0_9 = arith.constant 0 : index
    %c2 = arith.constant 2 : index
    %c0_10 = arith.constant 0 : index
    %13 = vector.load %arg1[%c0_9, %c2, %c0_10] : memref<1x336x128xf32, #tpu.memory_space<vmem>>, vector<1x288x128xf32>
    %14 = vector.shape_cast %13 : vector<1x288x128xf32> to vector<288x128xf32>
    %15 = arith.truncf %14 : vector<288x128xf32> to vector<288x128xbf16>
    %c256 = arith.constant 256 : index
    %c0_11 = arith.constant 0 : index
    %16 = vector.load %arg2[%c256, %c0_11] : memref<1152x128xbf16, #tpu.memory_space<vmem>>, vector<128x128xbf16>
    %cst_12 = arith.constant dense<0.000000e+00> : vector<288x128xf32>
    %17 = tpu.matmul %15, %16, %cst_12 {dimension_numbers = #tpu.dot_dimension_numbers<[1], [0], [0], [1], [0, 0, 1, 1], [], []>} : vector<288x128xbf16>, vector<128x128xbf16>, vector<288x128xf32> -> vector<288x128xf32>
    %18 = arith.addf %12, %17 : vector<288x128xf32>
    %c0_13 = arith.constant 0 : index
    %c18 = arith.constant 18 : index
    %c0_14 = arith.constant 0 : index
    %19 = vector.load %arg1[%c0_13, %c18, %c0_14] : memref<1x336x128xf32, #tpu.memory_space<vmem>>, vector<1x288x128xf32>
    %20 = vector.shape_cast %19 : vector<1x288x128xf32> to vector<288x128xf32>
    %21 = arith.truncf %20 : vector<288x128xf32> to vector<288x128xbf16>
    %c384 = arith.constant 384 : index
    %c0_15 = arith.constant 0 : index
    %22 = vector.load %arg2[%c384, %c0_15] : memref<1152x128xbf16, #tpu.memory_space<vmem>>, vector<128x128xbf16>
    %cst_16 = arith.constant dense<0.000000e+00> : vector<288x128xf32>
    %23 = tpu.matmul %21, %22, %cst_16 {dimension_numbers = #tpu.dot_dimension_numbers<[1], [0], [0], [1], [0, 0, 1, 1], [], []>} : vector<288x128xbf16>, vector<128x128xbf16>, vector<288x128xf32> -> vector<288x128xf32>
    %24 = arith.addf %18, %23 : vector<288x128xf32>
    %c0_17 = arith.constant 0 : index
    %c19 = arith.constant 19 : index
    %c0_18 = arith.constant 0 : index
    %25 = vector.load %arg1[%c0_17, %c19, %c0_18] : memref<1x336x128xf32, #tpu.memory_space<vmem>>, vector<1x288x128xf32>
    %26 = vector.shape_cast %25 : vector<1x288x128xf32> to vector<288x128xf32>
    %27 = arith.truncf %26 : vector<288x128xf32> to vector<288x128xbf16>
    %c512 = arith.constant 512 : index
    %c0_19 = arith.constant 0 : index
    %28 = vector.load %arg2[%c512, %c0_19] : memref<1152x128xbf16, #tpu.memory_space<vmem>>, vector<128x128xbf16>
    %cst_20 = arith.constant dense<0.000000e+00> : vector<288x128xf32>
    %29 = tpu.matmul %27, %28, %cst_20 {dimension_numbers = #tpu.dot_dimension_numbers<[1], [0], [0], [1], [0, 0, 1, 1], [], []>} : vector<288x128xbf16>, vector<128x128xbf16>, vector<288x128xf32> -> vector<288x128xf32>
    %30 = arith.addf %24, %29 : vector<288x128xf32>
    %c0_21 = arith.constant 0 : index
    %c20 = arith.constant 20 : index
    %c0_22 = arith.constant 0 : index
    %31 = vector.load %arg1[%c0_21, %c20, %c0_22] : memref<1x336x128xf32, #tpu.memory_space<vmem>>, vector<1x288x128xf32>
    %32 = vector.shape_cast %31 : vector<1x288x128xf32> to vector<288x128xf32>
    %33 = arith.truncf %32 : vector<288x128xf32> to vector<288x128xbf16>
    %c640 = arith.constant 640 : index
    %c0_23 = arith.constant 0 : index
    %34 = vector.load %arg2[%c640, %c0_23] : memref<1152x128xbf16, #tpu.memory_space<vmem>>, vector<128x128xbf16>
    %cst_24 = arith.constant dense<0.000000e+00> : vector<288x128xf32>
    %35 = tpu.matmul %33, %34, %cst_24 {dimension_numbers = #tpu.dot_dimension_numbers<[1], [0], [0], [1], [0, 0, 1, 1], [], []>} : vector<288x128xbf16>, vector<128x128xbf16>, vector<288x128xf32> -> vector<288x128xf32>
    %36 = arith.addf %30, %35 : vector<288x128xf32>
    %c0_25 = arith.constant 0 : index
    %c36 = arith.constant 36 : index
    %c0_26 = arith.constant 0 : index
    %37 = vector.load %arg1[%c0_25, %c36, %c0_26] : memref<1x336x128xf32, #tpu.memory_space<vmem>>, vector<1x288x128xf32>
    %38 = vector.shape_cast %37 : vector<1x288x128xf32> to vector<288x128xf32>
    %39 = arith.truncf %38 : vector<288x128xf32> to vector<288x128xbf16>
    %c768 = arith.constant 768 : index
    %c0_27 = arith.constant 0 : index
    %40 = vector.load %arg2[%c768, %c0_27] : memref<1152x128xbf16, #tpu.memory_space<vmem>>, vector<128x128xbf16>
    %cst_28 = arith.constant dense<0.000000e+00> : vector<288x128xf32>
    %41 = tpu.matmul %39, %40, %cst_28 {dimension_numbers = #tpu.dot_dimension_numbers<[1], [0], [0], [1], [0, 0, 1, 1], [], []>} : vector<288x128xbf16>, vector<128x128xbf16>, vector<288x128xf32> -> vector<288x128xf32>
    %42 = arith.addf %36, %41 : vector<288x128xf32>
    %c0_29 = arith.constant 0 : index
    %c37 = arith.constant 37 : index
    %c0_30 = arith.constant 0 : index
    %43 = vector.load %arg1[%c0_29, %c37, %c0_30] : memref<1x336x128xf32, #tpu.memory_space<vmem>>, vector<1x288x128xf32>
    %44 = vector.shape_cast %43 : vector<1x288x128xf32> to vector<288x128xf32>
    %45 = arith.truncf %44 : vector<288x128xf32> to vector<288x128xbf16>
    %c896 = arith.constant 896 : index
    %c0_31 = arith.constant 0 : index
    %46 = vector.load %arg2[%c896, %c0_31] : memref<1152x128xbf16, #tpu.memory_space<vmem>>, vector<128x128xbf16>
    %cst_32 = arith.constant dense<0.000000e+00> : vector<288x128xf32>
    %47 = tpu.matmul %45, %46, %cst_32 {dimension_numbers = #tpu.dot_dimension_numbers<[1], [0], [0], [1], [0, 0, 1, 1], [], []>} : vector<288x128xbf16>, vector<128x128xbf16>, vector<288x128xf32> -> vector<288x128xf32>
    %48 = arith.addf %42, %47 : vector<288x128xf32>
    %c0_33 = arith.constant 0 : index
    %c38 = arith.constant 38 : index
    %c0_34 = arith.constant 0 : index
    %49 = vector.load %arg1[%c0_33, %c38, %c0_34] : memref<1x336x128xf32, #tpu.memory_space<vmem>>, vector<1x288x128xf32>
    %50 = vector.shape_cast %49 : vector<1x288x128xf32> to vector<288x128xf32>
    %51 = arith.truncf %50 : vector<288x128xf32> to vector<288x128xbf16>
    %c1024 = arith.constant 1024 : index
    %c0_35 = arith.constant 0 : index
    %52 = vector.load %arg2[%c1024, %c0_35] : memref<1152x128xbf16, #tpu.memory_space<vmem>>, vector<128x128xbf16>
    %cst_36 = arith.constant dense<0.000000e+00> : vector<288x128xf32>
    %53 = tpu.matmul %51, %52, %cst_36 {dimension_numbers = #tpu.dot_dimension_numbers<[1], [0], [0], [1], [0, 0, 1, 1], [], []>} : vector<288x128xbf16>, vector<128x128xbf16>, vector<288x128xf32> -> vector<288x128xf32>
    %54 = arith.addf %48, %53 : vector<288x128xf32>
    %c0_37 = arith.constant 0 : index
    %c0_38 = arith.constant 0 : index
    %55 = vector.load %arg3[%c0_37, %c0_38] : memref<1x128xf32, #tpu.memory_space<vmem>>, vector<1x128xf32>
    %56 = vector.broadcast %55 : vector<1x128xf32> to vector<288x128xf32>
    %57 = arith.addf %54, %56 : vector<288x128xf32>
    %c0_39 = arith.constant 0 : index
    %c0_40 = arith.constant 0 : index
    %58 = vector.load %arg7[%c0_39, %c0_40] : memref<288x1xf32, #tpu.memory_space<vmem>>, vector<288x1xf32>
    %59 = vector.broadcast %58 : vector<288x1xf32> to vector<288x128xf32>
    %60 = arith.mulf %57, %59 : vector<288x128xf32>
    %cst_41 = arith.constant dense<0.000000e+00> : vector<128xf32>
    %61 = vector.multi_reduction <add>, %60, %cst_41 [0] : vector<288x128xf32> to vector<128xf32>
    %62 = vector.shape_cast %61 : vector<128xf32> to vector<1x128xf32>
    %c0_42 = arith.constant 0 : index
    %c0_43 = arith.constant 0 : index
    %63 = vector.load %arg4[%c0_42, %c0_43] : memref<128x128xf32, #tpu.memory_space<vmem>>, vector<128x128xf32>
    %cst_44 = arith.constant dense<0.000000e+00> : vector<1x128xf32>
    %64 = tpu.matmul %62, %63, %cst_44 {dimension_numbers = #tpu.dot_dimension_numbers<[1], [0], [0], [1], [0, 0, 1, 1], [], []>} : vector<1x128xf32>, vector<128x128xf32>, vector<1x128xf32> -> vector<1x128xf32>
    %65 = vector.broadcast %64 : vector<1x128xf32> to vector<288x128xf32>
    %66 = arith.subf %57, %65 : vector<288x128xf32>
    %67 = vector.broadcast %58 : vector<288x1xf32> to vector<288x128xf32>
    %68 = arith.mulf %66, %67 : vector<288x128xf32>
    %69 = arith.mulf %68, %68 : vector<288x128xf32>
    %cst_45 = arith.constant dense<0.000000e+00> : vector<128xf32>
    %70 = vector.multi_reduction <add>, %69, %cst_45 [0] : vector<288x128xf32> to vector<128xf32>
    %71 = vector.shape_cast %70 : vector<128xf32> to vector<1x128xf32>
    %c0_46 = arith.constant 0 : index
    %c0_47 = arith.constant 0 : index
    %72 = vector.load %arg4[%c0_46, %c0_47] : memref<128x128xf32, #tpu.memory_space<vmem>>, vector<128x128xf32>
    %cst_48 = arith.constant dense<0.000000e+00> : vector<1x128xf32>
    %73 = tpu.matmul %71, %72, %cst_48 {dimension_numbers = #tpu.dot_dimension_numbers<[1], [0], [0], [1], [0, 0, 1, 1], [], []>} : vector<1x128xf32>, vector<128x128xf32>, vector<1x128xf32> -> vector<1x128xf32>
    %cst_49 = arith.constant 9.99999974E-6 : f32
    %74 = vector.broadcast %cst_49 : f32 to vector<1x128xf32>
    %75 = arith.addf %73, %74 : vector<1x128xf32>
    %76 = math.rsqrt %75 : vector<1x128xf32>
    %77 = vector.broadcast %64 : vector<1x128xf32> to vector<288x128xf32>
    %78 = arith.subf %57, %77 : vector<288x128xf32>
    %79 = vector.broadcast %76 : vector<1x128xf32> to vector<288x128xf32>
    %80 = arith.mulf %78, %79 : vector<288x128xf32>
    %c0_50 = arith.constant 0 : index
    %c0_51 = arith.constant 0 : index
    %81 = vector.load %arg5[%c0_50, %c0_51] : memref<1x128xf32, #tpu.memory_space<vmem>>, vector<1x128xf32>
    %82 = vector.broadcast %81 : vector<1x128xf32> to vector<288x128xf32>
    %83 = arith.mulf %80, %82 : vector<288x128xf32>
    %c0_52 = arith.constant 0 : index
    %c0_53 = arith.constant 0 : index
    %84 = vector.load %arg6[%c0_52, %c0_53] : memref<1x128xf32, #tpu.memory_space<vmem>>, vector<1x128xf32>
    %85 = vector.broadcast %84 : vector<1x128xf32> to vector<288x128xf32>
    %86 = arith.addf %83, %85 : vector<288x128xf32>
    %87 = arith.negf %86 : vector<288x128xf32>
    %88 = math.exp %87 : vector<288x128xf32>
    %cst_54 = arith.constant 1.000000e+00 : f32
    %89 = vector.broadcast %cst_54 : f32 to vector<288x128xf32>
    %90 = arith.addf %89, %88 : vector<288x128xf32>
    %91 = arith.divf %89, %90 : vector<288x128xf32>
    %92 = arith.mulf %86, %91 : vector<288x128xf32>
    %c0_55 = arith.constant 0 : index
    %c19_56 = arith.constant 19 : index
    %c0_57 = arith.constant 0 : index
    %93 = vector.load %arg8[%c0_55, %c19_56, %c0_57] : memref<1x336x128xf32, #tpu.memory_space<vmem>>, vector<1x288x128xf32>
    %94 = vector.shape_cast %93 : vector<1x288x128xf32> to vector<288x128xf32>
    %95 = arith.truncf %94 : vector<288x128xf32> to vector<288x128xbf16>
    %c0_58 = arith.constant 0 : index
    %c0_59 = arith.constant 0 : index
    %96 = vector.load %arg9[%c0_58, %c0_59] : memref<128x128xbf16, #tpu.memory_space<vmem>>, vector<128x128xbf16>
    %cst_60 = arith.constant dense<0.000000e+00> : vector<288x128xf32>
    %97 = tpu.matmul %95, %96, %cst_60 {dimension_numbers = #tpu.dot_dimension_numbers<[1], [0], [0], [1], [0, 0, 1, 1], [], []>} : vector<288x128xbf16>, vector<128x128xbf16>, vector<288x128xf32> -> vector<288x128xf32>
    %98 = arith.addf %92, %97 : vector<288x128xf32>
    %c0_61 = arith.constant 0 : index
    %c0_62 = arith.constant 0 : index
    %99 = vector.load %arg10[%c0_61, %c0_62] : memref<1x128xf32, #tpu.memory_space<vmem>>, vector<1x128xf32>
    %100 = vector.broadcast %99 : vector<1x128xf32> to vector<288x128xf32>
    %101 = arith.addf %98, %100 : vector<288x128xf32>
    %102 = vector.broadcast %58 : vector<288x1xf32> to vector<288x128xf32>
    %103 = arith.mulf %101, %102 : vector<288x128xf32>
    %c0_63 = arith.constant 0 : index
    %c0_64 = arith.constant 0 : index
    %c0_65 = arith.constant 0 : index
    %104 = vector.load %arg11[%c0_63, %c0_64, %c0_65] : memref<1x288x128xf32, #tpu.memory_space<vmem>>, vector<1x288x128xf32>
    %105 = vector.shape_cast %104 : vector<1x288x128xf32> to vector<288x128xf32>
    %106 = vector.shape_cast %103 : vector<288x128xf32> to vector<1x288x128xf32>
    tpu.vector_store %arg11[%c0_63, %c0_64, %c0_65], %106 {strides = array<i32>} : memref<1x288x128xf32, #tpu.memory_space<vmem>>, vector<1x288x128xf32>,
    return
  }
  func.func @transform_0(%arg0: i32) -> (i32, i32, i32) {
    %c0_i32 = arith.constant 0 : i32
    %c0_i32_0 = arith.constant 0 : i32
    %c0_i32_1 = arith.constant 0 : i32
    return %arg0, %c0_i32, %c0_i32_0 : i32, i32, i32
  }
  func.func @transform_1(%arg0: i32) -> (i32, i32) {
    %c0_i32 = arith.constant 0 : i32
    %c0_i32_0 = arith.constant 0 : i32
    %c0_i32_1 = arith.constant 0 : i32
    return %c0_i32, %c0_i32_0 : i32, i32
  }
  func.func @transform_2(%arg0: i32) -> (i32, i32) {
    %c0_i32 = arith.constant 0 : i32
    %c0_i32_0 = arith.constant 0 : i32
    %c0_i32_1 = arith.constant 0 : i32
    return %c0_i32, %c0_i32_0 : i32, i32
  }
  func.func @transform_3(%arg0: i32) -> (i32, i32) {
    %c0_i32 = arith.constant 0 : i32
    %c0_i32_0 = arith.constant 0 : i32
    %c0_i32_1 = arith.constant 0 : i32
    return %c0_i32, %c0_i32_0 : i32, i32
  }
  func.func @transform_4(%arg0: i32) -> (i32, i32) {
    %c0_i32 = arith.constant 0 : i32
    %c0_i32_0 = arith.constant 0 : i32
    %c0_i32_1 = arith.constant 0 : i32
    return %c0_i32, %c0_i32_0 : i32, i32
  }
  func.func @transform_5(%arg0: i32) -> (i32, i32) {
    %c0_i32 = arith.constant 0 : i32
    %c0_i32_0 = arith.constant 0 : i32
    %c0_i32_1 = arith.constant 0 : i32
    return %c0_i32, %c0_i32_0 : i32, i32
  }
  func.func @transform_6(%arg0: i32) -> (i32, i32) {
    %c0_i32 = arith.constant 0 : i32
    %c0_i32_0 = arith.constant 0 : i32
    %c0_i32_1 = arith.constant 0 : i32
    return %c0_i32, %c0_i32_0 : i32, i32
  }
  func.func @transform_7(%arg0: i32) -> (i32, i32, i32) {
    %c0_i32 = arith.constant 0 : i32
    %c0_i32_0 = arith.constant 0 : i32
    %c0_i32_1 = arith.constant 0 : i32
    return %arg0, %c0_i32, %c0_i32_0 : i32, i32, i32
  }
  func.func @transform_8(%arg0: i32) -> (i32, i32) {
    %c0_i32 = arith.constant 0 : i32
    %c0_i32_0 = arith.constant 0 : i32
    %c0_i32_1 = arith.constant 0 : i32
    return %c0_i32, %c0_i32_0 : i32, i32
  }
  func.func @transform_9(%arg0: i32) -> (i32, i32) {
    %c0_i32 = arith.constant 0 : i32
    %c0_i32_0 = arith.constant 0 : i32
    %c0_i32_1 = arith.constant 0 : i32
    return %c0_i32, %c0_i32_0 : i32, i32
  }
  func.func @transform_10(%arg0: i32) -> (i32, i32, i32) {
    %c0_i32 = arith.constant 0 : i32
    %c0_i32_0 = arith.constant 0 : i32
    %c0_i32_1 = arith.constant 0 : i32
    return %arg0, %c0_i32, %c0_i32_0 : i32, i32, i32
  }
}

</mosaic_0001>

<bundles_post_ra>
// kernel: _lambda_.2
= control target key start
LH: loop header
LB: loop body
LE: loop exit
PB: predicated region body
PF: predicated region fallthrough
CT: control target
= control target key end

     0   :  { %s5746_s30 = smov 0   ;;  %s8109_s0 = inlined_call_operand.vmem [shape: f32[2,336,128], index: 0, kind: input, shape index: {}]   ;;  %s8110_s1 = inlined_call_operand.vmem [shape: bf16[1152,128], index: 1, kind: input, shape index: {}]   ;;  %s8111_s2 = inlined_call_operand.vmem [shape: f32[1,128], index: 2, kind: input, shape index: {}]   ;;  %s8112_s3 = inlined_call_operand.vmem [shape: f32[128,128], index: 3, kind: input, shape index: {}]   ;;  %s8113_s4 = inlined_call_operand.vmem [shape: f32[1,128], index: 4, kind: input, shape index: {}]   ;;  %s8114_s5 = inlined_call_operand.vmem [shape: f32[1,128], index: 5, kind: input, shape index: {}]   ;;  %s8115_s6 = inlined_call_operand.vmem [shape: f32[288,1], index: 6, kind: input, shape index: {}]   ;;  %s8116_s7 = inlined_call_operand.vmem [shape: f32[2,1,128], index: 7, kind: input, shape index: {}]   ;;  %s8117_s8 = inlined_call_operand.vmem [shape: f32[2,1,128], index: 8, kind: input, shape index: {}]   ;;  %s8118_s9 = inlined_call_operand.vmem [shape: f32[2,288,128], index: 9, kind: output, shape index: {}]  }
   0x1 LB: > { %s4524_s10 = sadd.s32 4294967295, %s5691_s30   ;;  %p4528_p0 = scmp.ge.s32.totalorder %s5691_s30, 1  ;;  %s5691_s30 = sphi %s5746_s30, %s19_s30  }
   0x2   : > { %p303_p1 = scmp.lt.s32.totalorder %s5691_s30, 3 }
   0x4   : > { %p304_p2 = pnand %p4528_p0, %p303_p1 }
   0x6   : > { %307 = sbr.rel (%p304_p2) target bundleno = 1236 (0x4d4), region = 56 }
   0xb   : > { %v5467_v0 = vld [vmem:[%s8110_s1 + $0x78] sm:$0xff]   ;;  %p345_p3 = scmp.lt.s32.totalorder %s4524_s10, 1  ;;  %v5469_v2 = vld [vmem:[%s8110_s1 + $0x70] sm:$0xff]   ;;  %v5471_v4 = vld [vmem:[%s8110_s1 + $0x68] sm:$0xff]   ;;  %vm5695_vm0 = vmmov 0  }
   0xc   : > { %v5468_v1 = vld [vmem:[%s8110_s1 + $0x38] sm:$0xff]   ;;  %4914 = vmatprep.subr.bf16.mxu0 %v5467_v0  ;;  %v5470_v3 = vld [vmem:[%s8110_s1 + $0x30] sm:$0xff]   ;;  %v5472_v5 = vld [vmem:[%s8110_s1 + $0x28] sm:$0xff]  }
   0xd   : > { %4966 = vmatprep.subr.bf16.mxu1 %v5468_v1  ;;  %4915 = vmatpush3.bf16.msra.mxu0 %v5467_v0  ;;  %s8386_s10 = smov (!%p345_p3, %s4524_s10), 1  ;;  %v5473_v6 = vld [vmem:[%s8110_s1 + $0x60] sm:$0xff]   ;;  %v5475_v8 = vld [vmem:[%s8110_s1 + $0x58] sm:$0xff]   ;;  %v5477_v10 = vld [vmem:[%s8110_s1 + $0x50] sm:$0xff]  }
   0xe   : > { %4967 = vmatpush3.bf16.msra.mxu1 %v5468_v1  ;;  %4916 = vmatprep.subr.bf16.mxu0 %v5469_v2  ;;  %v5474_v7 = vld [vmem:[%s8110_s1 + $0x20] sm:$0xff]   ;;  %s5452_s27 = smul.u32 336, %s8386_s10  ;;  %v5476_v9 = vld [vmem:[%s8110_s1 + $0x18] sm:$0xff]   ;;  %v5478_v14 = vld [vmem:[%s8110_s1 + $0x10] sm:$0xff]   ;;  %s352_s14 = scalar_lea.vmem %s8116_s7, %s8386_s10 }
   0xf   : > { %4968 = vmatprep.subr.bf16.mxu1 %v5470_v3  ;;  %v5479_v18 = vld [vmem:[%s8110_s1 + $0x48] sm:$0xff]   ;;  %v5481_v20 = vld [vmem:[%s8110_s1 + $0x40] sm:$0xff]   ;;  %v5483_v26 = vld [vmem:[%s8110_s1 + $0xb8] sm:$0xff]   ;;  %s355_s18 = scalar_lea.vmem %s8117_s8, %s8386_s10  ;;  %s5453_s19 = smul.u32 288, %s8386_s10 }
  0x10   : > { %s5790_s15 = scalar_lea.vmem %s8109_s0, %s5452_s27  ;;  %v5480_v19 = vld [vmem:[%s8110_s1 + $0x8] sm:$0xff]   ;;  %v5482_v21 = vld [vmem:[%s8110_s1] sm:$0xff]   ;;  %v5484_v35 = vld [vmem:[%s8110_s1 + $0xb0] sm:$0xff]  }
  0x11   : > { %4917 = vmatpush3.bf16.msra.mxu0 %v5469_v2  ;;  %v432_v11 = vld [vmem:[%s5790_s15 + $0x1] sm:$0xff]  ;;  %v433_v12 = vld [vmem:[%s5790_s15 + $0x9] sm:$0xff]  ;;  %v434_v22 = vld [vmem:[%s5790_s15 + $0x11] sm:$0xff]  ;;  %s7982_s22 = scalar_lea.vmem %s8118_s9, %s5453_s19 }
  0x12   : > { %4969 = vmatpush3.bf16.msra.mxu1 %v5470_v3  ;;  %4918 = vmatprep.subr.bf16.mxu0 %v5471_v4  ;;  %v362_v13 = vld [vmem:[%s5790_s15] sm:$0xff]  ;;  %v468_v15 = vpack.c.bf16 %v433_v12, %v432_v11  ;;  %v363_v16 = vld [vmem:[%s5790_s15 + $0x8] sm:$0xff]  ;;  %v364_v24 = vld [vmem:[%s5790_s15 + $0x10] sm:$0xff] }
  0x13   : > { %4970 = vmatprep.subr.bf16.mxu1 %v5472_v5  ;;  %v398_v17 = vpack.c.bf16 %v363_v16, %v362_v13  ;;  %v435_v23 = vld [vmem:[%s5790_s15 + $0x19] sm:$0xff]  ;;  %v436_v27 = vld [vmem:[%s5790_s15 + $0x21] sm:$0xff]  ;;  %v437_v28 = vld [vmem:[%s5790_s15 + $0x29] sm:$0xff] }
  0x14   : > { %4930 = vmatprep.mubr.bf16.mxu0 %v468_v15  ;;  %v365_v25 = vld [vmem:[%s5790_s15 + $0x18] sm:$0xff]  ;;  %v366_v29 = vld [vmem:[%s5790_s15 + $0x20] sm:$0xff]  ;;  %v367_v30 = vld [vmem:[%s5790_s15 + $0x28] sm:$0xff]  ;;  %v469_v31 = vpack.c.bf16 %v435_v23, %v434_v22  ;;  %v470_v33 = vpack.c.bf16 %v437_v28, %v436_v27 }
  0x15   : > { %4919 = vmatpush3.bf16.msra.mxu0 %v5471_v4  ;;  %4982 = vmatprep.mubr.bf16.mxu1 %v398_v17  ;;  %v399_v32 = vpack.c.bf16 %v365_v25, %v364_v24  ;;  %v400_v34 = vpack.c.bf16 %v367_v30, %v366_v29  ;;  %v438_v36 = vld [vmem:[%s5790_s15 + $0x31] sm:$0xff]  ;;  %v439_v37 = vld [vmem:[%s5790_s15 + $0x39] sm:$0xff]  ;;  %v440_v40 = vld [vmem:[%s5790_s15 + $0x41] sm:$0xff] }
  0x16   : > { %4971 = vmatpush3.bf16.msra.mxu1 %v5472_v5  ;;  %4920 = vmatprep.subr.bf16.mxu0 %v5473_v6  ;;  %v368_v38 = vld [vmem:[%s5790_s15 + $0x30] sm:$0xff]  ;;  %v369_v39 = vld [vmem:[%s5790_s15 + $0x38] sm:$0xff]  ;;  %v370_v42 = vld [vmem:[%s5790_s15 + $0x40] sm:$0xff]  ;;  %v471_v46 = vpack.c.bf16 %v439_v37, %v438_v36 }
  0x17   : > { %4972 = vmatprep.subr.bf16.mxu1 %v5474_v7  ;;  %v441_v41 = vld [vmem:[%s5790_s15 + $0x49] sm:$0xff]  ;;  %v5488_v45 = vld [vmem:[%s8110_s1 + $0xf8] sm:$0xff]   ;;  %v401_v47 = vpack.c.bf16 %v369_v39, %v368_v38  ;;  %v5486_v53 = vld [vmem:[%s8110_s1 + $0xa0] sm:$0xff]  }
  0x18   : > { %v371_v43 = vld [vmem:[%s5790_s15 + $0x48] sm:$0xff]  ;;  %v472_v48 = vpack.c.bf16 %v441_v41, %v440_v40  ;;  %v5490_v49 = vld [vmem:[%s8110_s1 + $0xf0] sm:$0xff]   ;;  %v443_v52 = vld [vmem:[%s5790_s15 + $0x59] sm:$0xff] }
  0x19   : > { %4921 = vmatpush3.bf16.msra.mxu0 %v5473_v6  ;;  %v5485_v44 = vld [vmem:[%s8110_s1 + $0xa8] sm:$0xff]   ;;  %v402_v50 = vpack.c.bf16 %v371_v43, %v370_v42  ;;  %v442_v51 = vld [vmem:[%s5790_s15 + $0x51] sm:$0xff]  ;;  %v374_v59 = vld [vmem:[%s5790_s15 + $0x60] sm:$0xff] }
  0x1a   : > { %4973 = vmatpush3.bf16.msra.mxu1 %v5474_v7  ;;  %4922 = vmatprep.subr.bf16.mxu0 %v5475_v8  ;;  %v372_v54 = vld [vmem:[%s5790_s15 + $0x50] sm:$0xff]  ;;  %v373_v55 = vld [vmem:[%s5790_s15 + $0x58] sm:$0xff]  ;;  %v444_v56 = vld [vmem:[%s5790_s15 + $0x61] sm:$0xff]  ;;  %v473_v62 = vpack.c.bf16 %v443_v52, %v442_v51 }
  0x1b   : > { %4974 = vmatprep.subr.bf16.mxu1 %v5476_v9  ;;  %v445_v57 = vld [vmem:[%s5790_s15 + $0x69] sm:$0xff]  ;;  %v5487_v61 = vld [vmem:[%s8110_s1 + $0x98] sm:$0xff]   ;;  %v5493_v63 = vld [vmem:[%s8110_s1 + $0xe0] sm:$0xff]   ;;  %v403_v0 = vpack.c.bf16 %v373_v55, %v372_v54 }
  0x1c   : > { %v5491_v58 = vld [vmem:[%s8110_s1 + $0xe8] sm:$0xff]   ;;  %v474_v1 = vpack.c.bf16 %v445_v57, %v444_v56  ;;  %v5489_v3 = vld [vmem:[%s8110_s1 + $0x90] sm:$0xff]   ;;  %v447_v5 = vld [vmem:[%s5790_s15 + $0x79] sm:$0xff] }
  0x1d   : > { %4923 = vmatpush3.bf16.msra.mxu0 %v5475_v8  ;;  %v375_v60 = vld [vmem:[%s5790_s15 + $0x68] sm:$0xff]  ;;  %v446_v4 = vld [vmem:[%s5790_s15 + $0x71] sm:$0xff]  ;;  %v378_v11 = vld [vmem:[%s5790_s15 + $0x80] sm:$0xff] }
  0x1e   : > { %4975 = vmatpush3.bf16.msra.mxu1 %v5476_v9  ;;  %4924 = vmatprep.subr.bf16.mxu0 %v5477_v10  ;;  %v404_v2 = vpack.c.bf16 %v375_v60, %v374_v59  ;;  %v5494_v6 = vld [vmem:[%s8110_s1 + $0xd8] sm:$0xff]   ;;  %v376_v7 = vld [vmem:[%s5790_s15 + $0x70] sm:$0xff]  ;;  %v448_v9 = vld [vmem:[%s5790_s15 + $0x81] sm:$0xff] }
  0x1f   : > { %4976 = vmatprep.subr.bf16.mxu1 %v5478_v14  ;;  %v377_v8 = vld [vmem:[%s5790_s15 + $0x78] sm:$0xff]  ;;  %v379_v12 = vld [vmem:[%s5790_s15 + $0x88] sm:$0xff]  ;;  %v5495_v15 = vld [vmem:[%s8110_s1 + $0xd0] sm:$0xff]  }
  0x20   : > { %v5492_v13 = vld [vmem:[%s8110_s1 + $0x88] sm:$0xff]   ;;  %v405_v16 = vpack.c.bf16 %v377_v8, %v376_v7  ;;  %v380_v23 = vld [vmem:[%s5790_s15 + $0x90] sm:$0xff]  ;;  %v381_v24 = vld [vmem:[%s5790_s15 + $0x98] sm:$0xff] }
  0x21   : > { %4925 = vmatpush3.bf16.msra.mxu0 %v5477_v10  ;;  %v449_v10 = vld [vmem:[%s5790_s15 + $0x89] sm:$0xff]  ;;  %v452_v25 = vld [vmem:[%s5790_s15 + $0xa1] sm:$0xff]  ;;  %v5902_v29 = vld [vmem:[%s8110_s1 + $0x138] sm:$0xff]  }
  0x22   : > { %4977 = vmatpush3.bf16.msra.mxu1 %v5478_v14  ;;  %4926 = vmatprep.subr.bf16.mxu0 %v5479_v18  ;;  %v475_v14 = vpack.c.bf16 %v447_v5, %v446_v4  ;;  %v476_v17 = vpack.c.bf16 %v449_v10, %v448_v9  ;;  %v5497_v22 = vld [vmem:[%s8110_s1 + $0xc8] sm:$0xff]   ;;  %v382_v27 = vld [vmem:[%s5790_s15 + $0xa0] sm:$0xff]  ;;  %v384_v37 = vld [vmem:[%s5790_s15 + $0xb0] sm:$0xff] }
  0x23   : > { %4978 = vmatprep.subr.bf16.mxu1 %v5480_v19  ;;  %v383_v28 = vld [vmem:[%s5790_s15 + $0xa8] sm:$0xff]  ;;  %v455_v36 = vld [vmem:[%s5790_s15 + $0xb9] sm:$0xff]  ;;  %v462_v60 = vld [vmem:[%s5790_s15 + $0xf1] sm:$0xff] }
  0x24   : > { %v385_v38 = vld [vmem:[%s5790_s15 + $0xb8] sm:$0xff]  ;;  %v456_v39 = vld [vmem:[%s5790_s15 + $0xc1] sm:$0xff]  ;;  %v457_v40 = vld [vmem:[%s5790_s15 + $0xc9] sm:$0xff] }
  0x25   : > { %4927 = vmatpush3.bf16.msra.mxu0 %v5479_v18  ;;  %v406_v18 = vpack.c.bf16 %v379_v12, %v378_v11  ;;  %v386_v41 = vld [vmem:[%s5790_s15 + $0xc0] sm:$0xff]  ;;  %v387_v42 = vld [vmem:[%s5790_s15 + $0xc8] sm:$0xff]  ;;  %v389_v51 = vld [vmem:[%s5790_s15 + $0xd8] sm:$0xff] }
  0x26   : > { %4979 = vmatpush3.bf16.msra.mxu1 %v5480_v19  ;;  %4928 = vmatprep.subr.bf16.mxu0 %v5481_v20  ;;  %v5496_v19 = vld [vmem:[%s8110_s1 + $0x80] sm:$0xff]   ;;  %v391_v55 = vld [vmem:[%s5790_s15 + $0xe8] sm:$0xff]  ;;  %v466_v8 = vld [vmem:[%s5790_s15 + $0x111] sm:$0xff] }
  0x27   : > { %4980 = vmatprep.subr.bf16.mxu1 %v5482_v21  ;;  %v460_v52 = vld [vmem:[%s5790_s15 + $0xe1] sm:$0xff]  ;;  %v467_v9 = vld [vmem:[%s5790_s15 + $0x119] sm:$0xff]  ;;  %v396_v10 = vld [vmem:[%s5790_s15 + $0x110] sm:$0xff] }
  0x28   : > { %v390_v54 = vld [vmem:[%s5790_s15 + $0xe0] sm:$0xff]  ;;  %v397_v11 = vld [vmem:[%s5790_s15 + $0x118] sm:$0xff] }
  0x29   : > { %4929 = vmatpush3.bf16.msra.mxu0 %v5481_v20  ;;  %v450_v20 = vld [vmem:[%s5790_s15 + $0x91] sm:$0xff]  ;;  %v412_v59 = vpack.c.bf16 %v391_v55, %v390_v54  ;;  %v952_v12 = vld [vmem:[%s5790_s15 + $0x2] sm:$0xff] }
  0x2a   : > { %4981 = vmatpush3.bf16.msra.mxu1 %v5482_v21  ;;  %5018 = vmatprep.subr.bf16.mxu0 %v5483_v26  ;;  %v451_v21 = vld [vmem:[%s5790_s15 + $0x99] sm:$0xff] }
  0x2b   : > { %5070 = vmatprep.subr.bf16.mxu1 %v5488_v45  ;;  %v477_v30 = vpack.c.bf16 %v451_v21, %v450_v20  ;;  %v1285_v20 = vld [vmem:[%s5790_s15 + $0x22] sm:$0xff]  ;;  %v1286_v21 = vld [vmem:[%s5790_s15 + $0x2a] sm:$0xff] }
  0x2c   : > { %4931 = vmatmul.mubr.bf16.vlgmr.msra.gmra.mxu0 %v469_v31  ;;  %v5498_v31 = vld [vmem:[%s8110_s1 + $0xc0] sm:$0xff]  }
  0x2d   : > { %4983 = vmatmul.mubr.bf16.vlgmr.msra.gmra.mxu1 %v399_v32  ;;  %5019 = vmatpush3.bf16.msra.mxu0 %v5483_v26  ;;  %v453_v26 = vld [vmem:[%s5790_s15 + $0xa9] sm:$0xff]  ;;  %v407_v32 = vpack.c.bf16 %v381_v24, %v380_v23  ;;  %v959_v23 = vld [vmem:[%s5790_s15 + $0x3a] sm:$0xff]  ;;  %v1320_v24 = vpack.c.bf16 %v1286_v21, %v1285_v20 }
  0x2e   : > { %4934 = vmatprep.mubr.bf16.mxu0 %v470_v33  ;;  %4986 = vmatprep.mubr.bf16.mxu1 %v400_v34  ;;  %v478_v33 = vpack.c.bf16 %v453_v26, %v452_v25  ;;  %v408_v34 = vpack.c.bf16 %v383_v28, %v382_v27  ;;  %v5500_v26 = vld [vmem:[%s8110_s1 + $0x130] sm:$0xff]   ;;  %v1289_v28 = vld [vmem:[%s5790_s15 + $0x42] sm:$0xff] }
  0x2f   : > { %5020 = vmatprep.subr.bf16.mxu0 %v5484_v35  ;;  %5071 = vmatpush3.bf16.msra.mxu1 %v5488_v45  ;;  %v409_v45 = vpack.c.bf16 %v385_v38, %v384_v37  ;;  %v5506_v27 = vld [vmem:[%s8110_s1 + $0x170] sm:$0xff]   ;;  %v5509_v37 = vld [vmem:[%s8110_s1 + $0x160] sm:$0xff]  }
  0x30   : > { %5072 = vmatprep.subr.bf16.mxu1 %v5490_v49  ;;  %v1293_v38 = vld [vmem:[%s5790_s15 + $0x62] sm:$0xff]  ;;  %v1318_v21 = vld [vmem:[%s5790_s15 + $0x12a] sm:$0xff] }
  0x31   : > { %5021 = vmatpush3.bf16.msra.mxu0 %v5484_v35  ;;  %v454_v35 = vld [vmem:[%s5790_s15 + $0xb1] sm:$0xff]  ;;  %v1317_v20 = vld [vmem:[%s5790_s15 + $0x122] sm:$0xff] }
  0x32   : > { %5022 = vmatprep.subr.bf16.mxu0 %v5485_v44  ;;  %v479_v43 = vpack.c.bf16 %v455_v36, %v454_v35  ;;  %v5502_v36 = vld [vmem:[%s8110_s1 + $0x120] sm:$0xff]  }
  0x33   : > { %5073 = vmatpush3.bf16.msra.mxu1 %v5490_v49  ;;  %v459_v49 = vld [vmem:[%s5790_s15 + $0xd9] sm:$0xff] }
  0x34   : > { %4935 = vmatmul.mubr.bf16.gmra.mxu0 %v471_v46  ;;  %5074 = vmatprep.subr.bf16.mxu1 %v5491_v58  ;;  %v480_v46 = vpack.c.bf16 %v457_v40, %v456_v39  ;;  %v1294_v39 = vld [vmem:[%s5790_s15 + $0x6a] sm:$0xff]  ;;  %v966_v40 = vld [vmem:[%s5790_s15 + $0x72] sm:$0xff] }
  0x35   : > { %4987 = vmatmul.mubr.bf16.gmra.mxu1 %v401_v47  ;;  %4938 = vmatprep.mubr.bf16.mxu0 %v472_v48  ;;  %v410_v47 = vpack.c.bf16 %v387_v42, %v386_v41  ;;  %v458_v48 = vld [vmem:[%s5790_s15 + $0xd1] sm:$0xff]  ;;  %v967_v41 = vld [vmem:[%s5790_s15 + $0x7a] sm:$0xff] }
  0x36   : > { %4990 = vmatprep.mubr.bf16.mxu1 %v402_v50  ;;  %5023 = vmatpush3.bf16.msra.mxu0 %v5485_v44  ;;  %v5919_v44 = vld [vmem:[%s8110_s1 + $0x178] sm:$0xff]   ;;  %v388_v50 = vld [vmem:[%s5790_s15 + $0xd0] sm:$0xff]  ;;  %v481_v56 = vpack.c.bf16 %v459_v49, %v458_v48 }
  0x37   : > { %5024 = vmatprep.subr.bf16.mxu0 %v5486_v53  ;;  %5075 = vmatpush3.bf16.msra.mxu1 %v5491_v58  ;;  %v411_v57 = vpack.c.bf16 %v389_v51, %v388_v50  ;;  %v5503_v42 = vld [vmem:[%s8110_s1 + $0x118] sm:$0xff]   ;;  %v5511_v48 = vld [vmem:[%s8110_s1 + $0x150] sm:$0xff]  }
  0x38   : > { %5076 = vmatprep.subr.bf16.mxu1 %v5493_v63  ;;  %v1298_v49 = vld [vmem:[%s5790_s15 + $0x8a] sm:$0xff]  ;;  %v970_v50 = vld [vmem:[%s5790_s15 + $0x92] sm:$0xff]  ;;  %v971_v51 = vld [vmem:[%s5790_s15 + $0x9a] sm:$0xff] }
  0x39   : > { %v997_v55 = vpack.c.bf16 %v971_v51, %v970_v50  ;;  %v1953_v50 = vld [vmem:[%s5790_s15 + $0x54] sm:$0xff]  ;;  %v1954_v51 = vld [vmem:[%s5790_s15 + $0x5c] sm:$0xff] }
  0x3a   : > { %5025 = vmatpush3.bf16.msra.mxu0 %v5486_v53  ;;  %v461_v53 = vld [vmem:[%s5790_s15 + $0xe9] sm:$0xff] }
  0x3b   : > { %5026 = vmatprep.subr.bf16.mxu0 %v5487_v61  ;;  %5077 = vmatpush3.bf16.msra.mxu1 %v5493_v63  ;;  %v482_v58 = vpack.c.bf16 %v461_v53, %v460_v52  ;;  %v393_v63 = vld [vmem:[%s5790_s15 + $0xf8] sm:$0xff]  ;;  %v5508_v52 = vld [vmem:[%s8110_s1 + $0x108] sm:$0xff]  }
  0x3c   : > { %4939 = vmatmul.mubr.bf16.gmra.mxu0 %v473_v62  ;;  %5078 = vmatprep.subr.bf16.mxu1 %v5494_v6  ;;  %v392_v62 = vld [vmem:[%s5790_s15 + $0xf0] sm:$0xff]  ;;  %v5513_v53 = vld [vmem:[%s8110_s1 + $0x148] sm:$0xff]  }
  0x3d   : > { %4991 = vmatmul.mubr.bf16.gmra.mxu1 %v403_v0  ;;  %4942 = vmatprep.mubr.bf16.mxu0 %v474_v1  ;;  %v464_v0 = vld [vmem:[%s5790_s15 + $0x101] sm:$0xff]  ;;  %v465_v1 = vld [vmem:[%s5790_s15 + $0x109] sm:$0xff]  ;;  %v413_v5 = vpack.c.bf16 %v393_v63, %v392_v62  ;;  %v6013_v62 = vld [vmem:[%s8110_s1 + $0x1b8] sm:$0xff]  }
  0x3e   : > { %4994 = vmatprep.mubr.bf16.mxu1 %v404_v2  ;;  %5027 = vmatpush3.bf16.msra.mxu0 %v5487_v61  ;;  %v463_v61 = vld [vmem:[%s5790_s15 + $0xf9] sm:$0xff] }
  0x3f   : > { %5028 = vmatprep.subr.bf16.mxu0 %v5489_v3  ;;  %5079 = vmatpush3.bf16.msra.mxu1 %v5494_v6  ;;  %v394_v2 = vld [vmem:[%s5790_s15 + $0x100] sm:$0xff]  ;;  %v483_v4 = vpack.c.bf16 %v463_v61, %v462_v60  ;;  %v484_v6 = vpack.c.bf16 %v465_v1, %v464_v0  ;;  %v974_v60 = vld [vmem:[%s5790_s15 + $0xb2] sm:$0xff] }
  0x40   : > { %5080 = vmatprep.subr.bf16.mxu1 %v5495_v15  ;;  %v975_v61 = vld [vmem:[%s5790_s15 + $0xba] sm:$0xff] }
  0x41   : > { %v6018_v63 = vld [vmem:[%s8110_s1 + $0x1f8] sm:$0xff]   ;;  %v999_v1 = vpack.c.bf16 %v975_v61, %v974_v60  ;;  %v1625_v60 = vld [vmem:[%s5790_s15 + $0x6b] sm:$0xff] }
  0x42   : > { %5029 = vmatpush3.bf16.msra.mxu0 %v5489_v3  ;;  %v395_v3 = vld [vmem:[%s5790_s15 + $0x108] sm:$0xff] }
  0x43   : > { %5030 = vmatprep.subr.bf16.mxu0 %v5492_v13  ;;  %5081 = vmatpush3.bf16.msra.mxu1 %v5495_v15  ;;  %v414_v7 = vpack.c.bf16 %v395_v3, %v394_v2  ;;  %v955_v15 = vld [vmem:[%s5790_s15 + $0x1a] sm:$0xff]  ;;  %v1305_v2 = vld [vmem:[%s5790_s15 + $0xc2] sm:$0xff]  ;;  %v1306_v3 = vld [vmem:[%s5790_s15 + $0xca] sm:$0xff] }
  0x44   : > { %4943 = vmatmul.mubr.bf16.gmra.mxu0 %v475_v14  ;;  %5082 = vmatprep.subr.bf16.mxu1 %v5497_v22  ;;  %v954_v14 = vld [vmem:[%s5790_s15 + $0x12] sm:$0xff]  ;;  %v1955_v61 = vld [vmem:[%s5790_s15 + $0x64] sm:$0xff] }
  0x45   : > { %4995 = vmatmul.mubr.bf16.gmra.mxu1 %v405_v16  ;;  %4946 = vmatprep.mubr.bf16.mxu0 %v476_v17  ;;  %v485_v16 = vpack.c.bf16 %v467_v9, %v466_v8  ;;  %v415_v17 = vpack.c.bf16 %v397_v11, %v396_v10  ;;  %v1309_v8 = vld [vmem:[%s5790_s15 + $0xe2] sm:$0xff]  ;;  %v1310_v9 = vld [vmem:[%s5790_s15 + $0xea] sm:$0xff]  ;;  %v982_v10 = vld [vmem:[%s5790_s15 + $0xf2] sm:$0xff] }
  0x46   : > { %4998 = vmatprep.mubr.bf16.mxu1 %v406_v18  ;;  %5031 = vmatpush3.bf16.msra.mxu0 %v5492_v13  ;;  %v953_v13 = vld [vmem:[%s5790_s15 + $0xa] sm:$0xff]  ;;  %v983_v11 = vld [vmem:[%s5790_s15 + $0xfa] sm:$0xff] }
  0x47   : > { %5032 = vmatprep.subr.bf16.mxu0 %v5496_v19  ;;  %5083 = vmatpush3.bf16.msra.mxu1 %v5497_v22  ;;  %v988_v18 = vpack.c.bf16 %v953_v13, %v952_v12  ;;  %v958_v22 = vld [vmem:[%s5790_s15 + $0x32] sm:$0xff]  ;;  %v1332_v12 = vpack.c.bf16 %v1310_v9, %v1309_v8  ;;  %v1003_v13 = vpack.c.bf16 %v983_v11, %v982_v10  ;;  %v1628_v11 = vld [vmem:[%s5790_s15 + $0x83] sm:$0xff] }
  0x48   : > { %5084 = vmatprep.subr.bf16.mxu1 %v5498_v31  ;;  %v991_v25 = vpack.c.bf16 %v959_v23, %v958_v22  ;;  %v1614_v22 = vld [vmem:[%s5790_s15 + $0x13] sm:$0xff]  ;;  %v1615_v23 = vld [vmem:[%s5790_s15 + $0x1b] sm:$0xff] }
  0x49   : > { %v5521_v9 = vld [vmem:[%s8110_s1 + $0x190] sm:$0xff]  }
  0x4a   : > { %5033 = vmatpush3.bf16.msra.mxu0 %v5496_v19  ;;  %v989_v19 = vpack.c.bf16 %v955_v15, %v954_v14  ;;  %v1313_v14 = vld [vmem:[%s5790_s15 + $0x102] sm:$0xff]  ;;  %v1314_v15 = vld [vmem:[%s5790_s15 + $0x10a] sm:$0xff] }
  0x4b   : > { %5122 = vmatprep.subr.bf16.mxu0 %v5902_v29  ;;  %5085 = vmatpush3.bf16.msra.mxu1 %v5498_v31  ;;  %v5501_v31 = vld [vmem:[%s8110_s1 + $0x128] sm:$0xff]   ;;  %v5527_v10 = vld [vmem:[%s8110_s1 + $0x1d0] sm:$0xff]  }
  0x4c   : > { %4947 = vmatmul.mubr.bf16.gmra.mxu0 %v477_v30  ;;  %5174 = vmatprep.subr.bf16.mxu1 %v5919_v44  ;;  %v1290_v30 = vld [vmem:[%s5790_s15 + $0x4a] sm:$0xff] }
  0x4d   : > { %4999 = vmatmul.mubr.bf16.gmra.mxu1 %v407_v32  ;;  %4950 = vmatprep.mubr.bf16.mxu0 %v478_v33  ;;  %v962_v32 = vld [vmem:[%s5790_s15 + $0x52] sm:$0xff]  ;;  %v963_v33 = vld [vmem:[%s5790_s15 + $0x5a] sm:$0xff] }
  0x4e   : > { %5002 = vmatprep.mubr.bf16.mxu1 %v408_v34  ;;  %v1322_v34 = vpack.c.bf16 %v1290_v30, %v1289_v28  ;;  %v993_v35 = vpack.c.bf16 %v963_v33, %v962_v32  ;;  %v1616_v30 = vld [vmem:[%s5790_s15 + $0x23] sm:$0xff]  ;;  %v1948_v33 = vld [vmem:[%s5790_s15 + $0x2c] sm:$0xff] }
  0x4f   : > { %v1947_v32 = vld [vmem:[%s5790_s15 + $0x24] sm:$0xff] }
  0x54   : > { %4951 = vmatmul.mubr.bf16.gmra.mxu0 %v479_v43  ;;  %v5510_v43 = vld [vmem:[%s8110_s1 + $0x158] sm:$0xff]  }
  0x55   : > { %5003 = vmatmul.mubr.bf16.gmra.mxu1 %v409_v45  ;;  %4954 = vmatprep.mubr.bf16.mxu0 %v480_v46  ;;  %v995_v45 = vpack.c.bf16 %v967_v41, %v966_v40  ;;  %v5505_v46 = vld [vmem:[%s8110_s1 + $0x110] sm:$0xff]  }
  0x56   : > { %5006 = vmatprep.mubr.bf16.mxu1 %v410_v47  ;;  %v1297_v47 = vld [vmem:[%s5790_s15 + $0x82] sm:$0xff]  ;;  %v5516_v41 = vld [vmem:[%s8110_s1 + $0x1b0] sm:$0xff]  }
  0x57   : > { %v1326_v54 = vpack.c.bf16 %v1298_v49, %v1297_v47  ;;  %v1622_v47 = vld [vmem:[%s5790_s15 + $0x53] sm:$0xff]  ;;  %v5517_v49 = vld [vmem:[%s8110_s1 + $0x1a8] sm:$0xff]  }
  0x5c   : > { %4955 = vmatmul.mubr.bf16.gmra.mxu0 %v481_v56  ;;  %v5512_v56 = vld [vmem:[%s8110_s1 + $0x100] sm:$0xff]  }
  0x5d   : > { %5007 = vmatmul.mubr.bf16.gmra.mxu1 %v411_v57  ;;  %4958 = vmatprep.mubr.bf16.mxu0 %v482_v58  ;;  %v1301_v57 = vld [vmem:[%s5790_s15 + $0xa2] sm:$0xff]  ;;  %v1302_v58 = vld [vmem:[%s5790_s15 + $0xaa] sm:$0xff] }
  0x5e   : > { %5010 = vmatprep.mubr.bf16.mxu1 %v412_v59  ;;  %v5514_v59 = vld [vmem:[%s8110_s1 + $0x140] sm:$0xff]   ;;  %v1328_v0 = vpack.c.bf16 %v1302_v58, %v1301_v57 }
  0x5f   : > { %v5518_v57 = vld [vmem:[%s8110_s1 + $0x1a0] sm:$0xff]  }
  0x60   : > { %v5525_v58 = vld [vmem:[%s8110_s1 + $0x1e0] sm:$0xff]  }
  0x64   : > { %4959 = vmatmul.mubr.bf16.gmra.mxu0 %v483_v4  ;;  %v978_v4 = vld [vmem:[%s5790_s15 + $0xd2] sm:$0xff] }
  0x65   : > { %5011 = vmatmul.mubr.bf16.gmra.mxu1 %v413_v5  ;;  %4962 = vmatprep.mubr.bf16.mxu0 %v484_v6  ;;  %v979_v5 = vld [vmem:[%s5790_s15 + $0xda] sm:$0xff]  ;;  %v1330_v6 = vpack.c.bf16 %v1306_v3, %v1305_v2 }
  0x66   : > { %5014 = vmatprep.mubr.bf16.mxu1 %v414_v7  ;;  %v1001_v7 = vpack.c.bf16 %v979_v5, %v978_v4  ;;  %v1958_v2 = vld [vmem:[%s5790_s15 + $0x7c] sm:$0xff] }
  0x67   : > { %v5519_v3 = vld [vmem:[%s8110_s1 + $0x198] sm:$0xff]  }
  0x68   : > { %v5526_v5 = vld [vmem:[%s8110_s1 + $0x1d8] sm:$0xff]  }
  0x6c   : > { %4963 = vmatmul.mubr.bf16.gmra.mxu0 %v485_v16  ;;  %v986_v16 = vld [vmem:[%s5790_s15 + $0x112] sm:$0xff] }
  0x6d   : > { %5015 = vmatmul.mubr.bf16.gmra.mxu1 %v415_v17  ;;  %5034 = vmatprep.mubr.bf16.mxu0 %v988_v18  ;;  %v987_v17 = vld [vmem:[%s5790_s15 + $0x11a] sm:$0xff]  ;;  %v1334_v18 = vpack.c.bf16 %v1314_v15, %v1313_v14  ;;  %v1960_v14 = vld [vmem:[%s5790_s15 + $0x8c] sm:$0xff] }
  0x6e   : > { %5086 = vmatprep.mubr.bf16.mxu1 %v989_v19  ;;  %v1630_v15 = vld [vmem:[%s5790_s15 + $0x93] sm:$0xff] }
  0x74   : > { %5035 = vmatmul.mubr.bf16.vlgmr.msra.gmra.mxu0 %v989_v19  ;;  %v1005_v19 = vpack.c.bf16 %v987_v17, %v986_v16  ;;  %v1631_v16 = vld [vmem:[%s5790_s15 + $0x9b] sm:$0xff] }
  0x75   : > { %5123 = vmatpush3.bf16.msra.mxu0 %v5902_v29  ;;  %5087 = vmatmul.mubr.bf16.vlgmr.msra.gmra.mxu1 %v1320_v24  ;;  %v5507_v29 = vld [vmem:[%s8110_s1 + $0x168] sm:$0xff]   ;;  %v1961_v17 = vld [vmem:[%s5790_s15 + $0x94] sm:$0xff] }
  0x76   : > { %5038 = vmatprep.mubr.bf16.mxu0 %v1320_v24  ;;  %5090 = vmatprep.mubr.bf16.mxu1 %v991_v25  ;;  %v1945_v24 = vld [vmem:[%s5790_s15 + $0x14] sm:$0xff] }
  0x77   : > { %5124 = vmatprep.subr.bf16.mxu0 %v5500_v26  ;;  %5175 = vmatpush3.bf16.msra.mxu1 %v5919_v44  ;;  %v1324_v44 = vpack.c.bf16 %v1294_v39, %v1293_v38  ;;  %v6048_v38 = vpack.c.bf16 %v1948_v33, %v1947_v32  ;;  %v1634_v32 = vld [vmem:[%s5790_s15 + $0xb3] sm:$0xff]  ;;  %v1635_v33 = vld [vmem:[%s5790_s15 + $0xbb] sm:$0xff] }
  0x78   : > { %5176 = vmatprep.subr.bf16.mxu1 %v5506_v27 }
  0x79   : > { %5125 = vmatpush3.bf16.msra.mxu0 %v5500_v26  ;;  %v1336_v26 = vpack.c.bf16 %v1318_v21, %v1317_v20  ;;  %v5529_v21 = vld [vmem:[%s8110_s1 + $0x1c8] sm:$0xff]  }
  0x7a   : > { %5126 = vmatprep.subr.bf16.mxu0 %v5501_v31 }
  0x7b   : > { %5177 = vmatpush3.bf16.msra.mxu1 %v5506_v27  ;;  %v1650_v27 = vpack.c.bf16 %v1615_v23, %v1614_v22  ;;  %v1658_v23 = vpack.c.bf16 %v1631_v16, %v1630_v15 }
  0x7c   : > { %5039 = vmatmul.mubr.bf16.gmra.mxu0 %v991_v25  ;;  %5178 = vmatprep.subr.bf16.mxu1 %v5507_v29  ;;  %v1946_v25 = vld [vmem:[%s5790_s15 + $0x1c] sm:$0xff] }
  0x7d   : > { %5091 = vmatmul.mubr.bf16.gmra.mxu1 %v1322_v34  ;;  %5042 = vmatprep.mubr.bf16.mxu0 %v1322_v34  ;;  %v1981_v28 = vpack.c.bf16 %v1946_v25, %v1945_v24  ;;  %v1619_v34 = vld [vmem:[%s5790_s15 + $0x3b] sm:$0xff] }
  0x7e   : > { %5094 = vmatprep.mubr.bf16.mxu1 %v993_v35  ;;  %5127 = vmatpush3.bf16.msra.mxu0 %v5501_v31  ;;  %v1617_v31 = vld [vmem:[%s5790_s15 + $0x2b] sm:$0xff]  ;;  %v5528_v25 = vld [vmem:[%s8110_s1 + $0x180] sm:$0xff]  }
  0x7f   : > { %5128 = vmatprep.subr.bf16.mxu0 %v5502_v36  ;;  %5179 = vmatpush3.bf16.msra.mxu1 %v5507_v29  ;;  %v1618_v29 = vld [vmem:[%s5790_s15 + $0x33] sm:$0xff] }
  0x80   : > { %5180 = vmatprep.subr.bf16.mxu1 %v5509_v37  ;;  %v1652_v39 = vpack.c.bf16 %v1619_v34, %v1618_v29  ;;  %v1965_v29 = vld [vmem:[%s5790_s15 + $0xb4] sm:$0xff]  ;;  %v3312_v34 = vld [vmem:[%s8115_s6] sm:$0xff] }
  0x82   : > { %5129 = vmatpush3.bf16.msra.mxu0 %v5502_v36  ;;  %v1950_v36 = vld [vmem:[%s5790_s15 + $0x3c] sm:$0xff] }
  0x83   : > { %5130 = vmatprep.subr.bf16.mxu0 %v5503_v42  ;;  %5181 = vmatpush3.bf16.msra.mxu1 %v5509_v37  ;;  %v1651_v37 = vpack.c.bf16 %v1617_v31, %v1616_v30  ;;  %v1963_v30 = vld [vmem:[%s5790_s15 + $0xa4] sm:$0xff]  ;;  %v1964_v31 = vld [vmem:[%s5790_s15 + $0xac] sm:$0xff] }
  0x84   : > { %5043 = vmatmul.mubr.bf16.gmra.mxu0 %v993_v35  ;;  %5182 = vmatprep.subr.bf16.mxu1 %v5510_v43  ;;  %v1949_v35 = vld [vmem:[%s5790_s15 + $0x34] sm:$0xff] }
  0x85   : > { %5095 = vmatmul.mubr.bf16.gmra.mxu1 %v1324_v44  ;;  %5046 = vmatprep.mubr.bf16.mxu0 %v1324_v44  ;;  %v6050_v40 = vpack.c.bf16 %v1950_v36, %v1949_v35  ;;  %v1621_v44 = vld [vmem:[%s5790_s15 + $0x4b] sm:$0xff]  ;;  %v1966_v35 = vld [vmem:[%s5790_s15 + $0xbc] sm:$0xff] }
  0x86   : > { %5098 = vmatprep.mubr.bf16.mxu1 %v995_v45  ;;  %5131 = vmatpush3.bf16.msra.mxu0 %v5503_v42  ;;  %v1620_v42 = vld [vmem:[%s5790_s15 + $0x43] sm:$0xff]  ;;  %v6154_v36 = vld [vmem:[%s8110_s1 + $0x238] sm:$0xff]  }
  0x87   : > { %5132 = vmatprep.subr.bf16.mxu0 %v5505_v46  ;;  %5183 = vmatpush3.bf16.msra.mxu1 %v5510_v43  ;;  %v5522_v43 = vld [vmem:[%s8110_s1 + $0x1f0] sm:$0xff]  }
  0x88   : > { %5184 = vmatprep.subr.bf16.mxu1 %v5511_v48 }
  0x8a   : > { %5133 = vmatpush3.bf16.msra.mxu0 %v5505_v46  ;;  %v1952_v46 = vld [vmem:[%s5790_s15 + $0x4c] sm:$0xff] }
  0x8b   : > { %5134 = vmatprep.subr.bf16.mxu0 %v5508_v52  ;;  %5185 = vmatpush3.bf16.msra.mxu1 %v5511_v48  ;;  %v1623_v48 = vld [vmem:[%s5790_s15 + $0x5b] sm:$0xff] }
  0x8c   : > { %5047 = vmatmul.mubr.bf16.gmra.mxu0 %v995_v45  ;;  %5186 = vmatprep.subr.bf16.mxu1 %v5513_v53  ;;  %v1951_v45 = vld [vmem:[%s5790_s15 + $0x44] sm:$0xff] }
  0x8d   : > { %5099 = vmatmul.mubr.bf16.gmra.mxu1 %v1326_v54  ;;  %5050 = vmatprep.mubr.bf16.mxu0 %v1326_v54  ;;  %v6076_v54 = vpack.c.bf16 %v1952_v46, %v1951_v45  ;;  %v3313_v45 = vld [vmem:[%s8115_s6 + $0x8] sm:$0xff]  ;;  %v3315_v46 = vld [vmem:[%s8115_s6 + $0x18] sm:$0xff] }
  0x8e   : > { %5102 = vmatprep.mubr.bf16.mxu1 %v997_v55  ;;  %5135 = vmatpush3.bf16.msra.mxu0 %v5508_v52  ;;  %v1653_v52 = vpack.c.bf16 %v1621_v44, %v1620_v42  ;;  %v6159_v42 = vpack.c.bf16 %v1964_v31, %v1963_v30  ;;  %v6161_v44 = vpack.c.bf16 %v1966_v35, %v1965_v29  ;;  %v1646_v30 = vld [vmem:[%s5790_s15 + $0x113] sm:$0xff]  ;;  %v1647_v31 = vld [vmem:[%s5790_s15 + $0x11b] sm:$0xff] }
  0x8f   : > { %5136 = vmatprep.subr.bf16.mxu0 %v5512_v56  ;;  %5187 = vmatpush3.bf16.msra.mxu1 %v5513_v53  ;;  %v5523_v53 = vld [vmem:[%s8110_s1 + $0x1e8] sm:$0xff]   ;;  %v1978_v29 = vld [vmem:[%s5790_s15 + $0x11c] sm:$0xff] }
  0x90   : > { %5188 = vmatprep.subr.bf16.mxu1 %v5514_v59 }
  0x92   : > { %5137 = vmatpush3.bf16.msra.mxu0 %v5512_v56  ;;  %v6078_v56 = vpack.c.bf16 %v1954_v51, %v1953_v50  ;;  %v1968_v50 = vld [vmem:[%s5790_s15 + $0xcc] sm:$0xff] }
  0x93   : > { %5189 = vmatpush3.bf16.msra.mxu1 %v5514_v59  ;;  %5226 = vmatprep.subr.bf16.mxu0 %v6013_v62  ;;  %v1624_v59 = vld [vmem:[%s5790_s15 + $0x63] sm:$0xff]  ;;  %v1638_v51 = vld [vmem:[%s5790_s15 + $0xd3] sm:$0xff] }
  0x94   : > { %5051 = vmatmul.mubr.bf16.gmra.mxu0 %v997_v55  ;;  %5278 = vmatprep.subr.bf16.mxu1 %v6018_v63  ;;  %v1654_v55 = vpack.c.bf16 %v1623_v48, %v1622_v47  ;;  %v1655_v4 = vpack.c.bf16 %v1625_v60, %v1624_v59  ;;  %v1636_v47 = vld [vmem:[%s5790_s15 + $0xc3] sm:$0xff]  ;;  %v1637_v48 = vld [vmem:[%s5790_s15 + $0xcb] sm:$0xff] }
  0x95   : > { %5103 = vmatmul.mubr.bf16.gmra.mxu1 %v1328_v0  ;;  %5054 = vmatprep.mubr.bf16.mxu0 %v1328_v0  ;;  %v1627_v0 = vld [vmem:[%s5790_s15 + $0x7b] sm:$0xff]  ;;  %v3317_v59 = vld [vmem:[%s8115_s6 + $0x28] sm:$0xff] }
  0x96   : > { %5106 = vmatprep.mubr.bf16.mxu1 %v999_v1 }
  0x9c   : > { %5055 = vmatmul.mubr.bf16.gmra.mxu0 %v999_v1  ;;  %v1957_v1 = vld [vmem:[%s5790_s15 + $0x74] sm:$0xff] }
  0x9d   : > { %5107 = vmatmul.mubr.bf16.gmra.mxu1 %v1330_v6  ;;  %5058 = vmatprep.mubr.bf16.mxu0 %v1330_v6  ;;  %v6104_v8 = vpack.c.bf16 %v1958_v2, %v1957_v1  ;;  %v1640_v1 = vld [vmem:[%s5790_s15 + $0xe3] sm:$0xff]  ;;  %v1641_v2 = vld [vmem:[%s5790_s15 + $0xeb] sm:$0xff] }
  0x9e   : > { %5110 = vmatprep.mubr.bf16.mxu1 %v1001_v7 }
  0xa4   : > { %5059 = vmatmul.mubr.bf16.gmra.mxu0 %v1001_v7 }
  0xa5   : > { %5111 = vmatmul.mubr.bf16.gmra.mxu1 %v1332_v12  ;;  %5062 = vmatprep.mubr.bf16.mxu0 %v1332_v12  ;;  %v1629_v12 = vld [vmem:[%s5790_s15 + $0x8b] sm:$0xff] }
  0xa6   : > { %5114 = vmatprep.mubr.bf16.mxu1 %v1003_v13  ;;  %v1657_v20 = vpack.c.bf16 %v1629_v12, %v1628_v11  ;;  %v3320_v11 = vld [vmem:[%s8115_s6 + $0x40] sm:$0xff]  ;;  %v1663_v12 = vpack.c.bf16 %v1641_v2, %v1640_v1  ;;  %v1980_v1 = vld [vmem:[%s5790_s15 + $0x12c] sm:$0xff] }
  0xac   : > { %5063 = vmatmul.mubr.bf16.gmra.mxu0 %v1003_v13  ;;  %v1959_v13 = vld [vmem:[%s5790_s15 + $0x84] sm:$0xff] }
  0xad   : > { %5115 = vmatmul.mubr.bf16.gmra.mxu1 %v1334_v18  ;;  %5066 = vmatprep.mubr.bf16.mxu0 %v1334_v18  ;;  %v1962_v18 = vld [vmem:[%s5790_s15 + $0x9c] sm:$0xff]  ;;  %v6128_v22 = vpack.c.bf16 %v1960_v14, %v1959_v13  ;;  %v3321_v13 = vld [vmem:[%s8115_s6 + $0x48] sm:$0xff] }
  0xae   : > { %5118 = vmatprep.mubr.bf16.mxu1 %v1005_v19  ;;  %v6130_v24 = vpack.c.bf16 %v1962_v18, %v1961_v17  ;;  %v3322_v17 = vld [vmem:[%s8115_s6 + $0x50] sm:$0xff] }
  0xb4   : > { %5067 = vmatmul.mubr.bf16.gmra.mxu0 %v1005_v19  ;;  %v5524_v19 = vld [vmem:[%s8110_s1 + $0x188] sm:$0xff]  }
  0xb5   : > { %5119 = vmatmul.mubr.bf16.gmra.mxu1 %v1336_v26  ;;  %5138 = vmatprep.mubr.bf16.mxu0 %v1650_v27  ;;  %v1632_v26 = vld [vmem:[%s5790_s15 + $0xa3] sm:$0xff]  ;;  %v1633_v27 = vld [vmem:[%s5790_s15 + $0xab] sm:$0xff] }
  0xb6   : > { %5190 = vmatprep.mubr.bf16.mxu1 %v1981_v28  ;;  %v5530_v28 = vld [vmem:[%s8110_s1 + $0x1c0] sm:$0xff]  }
  0xbc   : > { %5139 = vmatmul.mubr.bf16.vlgmr.msra.gmra.mxu0 %v1651_v37  ;;  %v3314_v37 = vld [vmem:[%s8115_s6 + $0x10] sm:$0xff] }
  0xbd   : > { %5227 = vmatpush3.bf16.msra.mxu0 %v6013_v62  ;;  %5191 = vmatmul.mubr.bf16.vlgmr.msra.gmra.mxu1 %v6048_v38  ;;  %v1956_v62 = vld [vmem:[%s5790_s15 + $0x6c] sm:$0xff] }
  0xbe   : > { %5142 = vmatprep.mubr.bf16.mxu0 %v1652_v39  ;;  %5194 = vmatprep.mubr.bf16.mxu1 %v6050_v40  ;;  %v6102_v6 = vpack.c.bf16 %v1956_v62, %v1955_v61  ;;  %v1659_v39 = vpack.c.bf16 %v1633_v27, %v1632_v26 }
  0xbf   : > { %5228 = vmatprep.subr.bf16.mxu0 %v5516_v41  ;;  %5279 = vmatpush3.bf16.msra.mxu1 %v6018_v63  ;;  %v1626_v63 = vld [vmem:[%s5790_s15 + $0x73] sm:$0xff] }
  0xc0   : > { %5280 = vmatprep.subr.bf16.mxu1 %v5522_v43  ;;  %v1656_v7 = vpack.c.bf16 %v1627_v0, %v1626_v63  ;;  %v3318_v63 = vld [vmem:[%s8115_s6 + $0x30] sm:$0xff]  ;;  %v3319_v0 = vld [vmem:[%s8115_s6 + $0x38] sm:$0xff] }
  0xc1   : > { %5229 = vmatpush3.bf16.msra.mxu0 %v5516_v41  ;;  %v5693_v41 = vmov 0  }
  0xc2   : > { %5230 = vmatprep.subr.bf16.mxu0 %v5517_v49  ;;  %5465 = vset.pattern.permute.xlu0 %v5693_v41 }
  0xc3   : > { %5281 = vmatpush3.bf16.msra.mxu1 %v5522_v43  ;;  %v1660_v43 = vpack.c.bf16 %v1635_v33, %v1634_v32  ;;  %3350 = vperm.xlu0 %5465, %v3312_v34   ;;  %v1977_v33 = vld [vmem:[%s5790_s15 + $0x114] sm:$0xff]  ;;  %v3324_v34 = vld [vmem:[%s8115_s6 + $0x60] sm:$0xff] }
  0xc4   : > { %5143 = vmatmul.mubr.bf16.gmra.mxu0 %v1653_v52  ;;  %5282 = vmatprep.subr.bf16.mxu1 %v5523_v53  ;;  %v1639_v52 = vld [vmem:[%s5790_s15 + $0xdb] sm:$0xff] }
  0xc5   : > { %5195 = vmatmul.mubr.bf16.gmra.mxu1 %v6076_v54  ;;  %5146 = vmatprep.mubr.bf16.mxu0 %v1654_v55  ;;  %v1970_v55 = vld [vmem:[%s5790_s15 + $0xdc] sm:$0xff]  ;;  %v1662_v61 = vpack.c.bf16 %v1639_v52, %v1638_v51  ;;  %v3326_v51 = vld [vmem:[%s8115_s6 + $0x70] sm:$0xff] }
  0xc6   : > { %5198 = vmatprep.mubr.bf16.mxu1 %v6078_v56  ;;  %5231 = vmatpush3.bf16.msra.mxu0 %v5517_v49  ;;  %v1967_v49 = vld [vmem:[%s5790_s15 + $0xc4] sm:$0xff] }
  0xc7   : > { %5232 = vmatprep.subr.bf16.mxu0 %v5518_v57  ;;  %5283 = vmatpush3.bf16.msra.mxu1 %v5523_v53  ;;  %v1969_v53 = vld [vmem:[%s5790_s15 + $0xd4] sm:$0xff]  ;;  %v6186_v60 = vpack.c.bf16 %v1968_v50, %v1967_v49  ;;  %v6246_v49 = vpack.c.bf16 %v1978_v29, %v1977_v33  ;;  %v2611_v29 = vld [vmem:[%s5790_s15 + $0x45] sm:$0xff] }
  0xc8   : > { %5284 = vmatprep.subr.bf16.mxu1 %v5525_v58  ;;  %5466 = vset.pattern.permute.xlu1 %v5693_v41  ;;  %v6188_v62 = vpack.c.bf16 %v1970_v55, %v1969_v53  ;;  %v3325_v41 = vld [vmem:[%s8115_s6 + $0x68] sm:$0xff]  ;;  %v3327_v55 = vld [vmem:[%s8115_s6 + $0x78] sm:$0xff] }
  0xc9   : > { %3360 = vperm.xlu1 %5466, %v3314_v37   ;;  %3355 = vperm.xlu0 %5465, %v3313_v45  }
  0xca   : > { %5233 = vmatpush3.bf16.msra.mxu0 %v5518_v57  ;;  %v3316_v57 = vld [vmem:[%s8115_s6 + $0x20] sm:$0xff] }
  0xcb   : > { %5234 = vmatprep.subr.bf16.mxu0 %v5519_v3  ;;  %5285 = vmatpush3.bf16.msra.mxu1 %v5525_v58  ;;  %v1661_v58 = vpack.c.bf16 %v1637_v48, %v1636_v47 }
  0xcc   : > { %5147 = vmatmul.mubr.bf16.gmra.mxu0 %v1655_v4  ;;  %5286 = vmatprep.subr.bf16.mxu1 %v5526_v5  ;;  %v1972_v4 = vld [vmem:[%s5790_s15 + $0xec] sm:$0xff] }
  0xcd   : > { %5199 = vmatmul.mubr.bf16.gmra.mxu1 %v6102_v6  ;;  %5150 = vmatprep.mubr.bf16.mxu0 %v1656_v7  ;;  %v1643_v7 = vld [vmem:[%s5790_s15 + $0xfb] sm:$0xff] }
  0xce   : > { %5202 = vmatprep.mubr.bf16.mxu1 %v6104_v8  ;;  %5235 = vmatpush3.bf16.msra.mxu0 %v5519_v3  ;;  %v1971_v3 = vld [vmem:[%s5790_s15 + $0xe4] sm:$0xff] }
  0xcf   : > { %5236 = vmatprep.subr.bf16.mxu0 %v5521_v9  ;;  %5287 = vmatpush3.bf16.msra.mxu1 %v5526_v5  ;;  %v1642_v5 = vld [vmem:[%s5790_s15 + $0xf3] sm:$0xff]  ;;  %v6212_v14 = vpack.c.bf16 %v1972_v4, %v1971_v3  ;;  %v2607_v3 = vld [vmem:[%s5790_s15 + $0x25] sm:$0xff] }
  0xd0   : > { %5288 = vmatprep.subr.bf16.mxu1 %v5527_v10  ;;  %3365 = vperm.xlu1 %5466, %v3315_v46   ;;  %v1664_v15 = vpack.c.bf16 %v1643_v7, %v1642_v5  ;;  %v1666_v46 = vpack.c.bf16 %v1647_v31, %v1646_v30  ;;  %v2608_v4 = vld [vmem:[%s5790_s15 + $0x2d] sm:$0xff]  ;;  %v3328_v5 = vld [vmem:[%s8115_s6 + $0x80] sm:$0xff]  ;;  %v2609_v31 = vld [vmem:[%s5790_s15 + $0x35] sm:$0xff] }
  0xd1   : > { %3370 = vperm.xlu0 %5465, %v3316_v57  }
  0xd2   : > { %5237 = vmatpush3.bf16.msra.mxu0 %v5521_v9  ;;  %v1973_v9 = vld [vmem:[%s5790_s15 + $0xf4] sm:$0xff] }
  0xd3   : > { %5238 = vmatprep.subr.bf16.mxu0 %v5524_v19  ;;  %5289 = vmatpush3.bf16.msra.mxu1 %v5527_v10  ;;  %v1974_v10 = vld [vmem:[%s5790_s15 + $0xfc] sm:$0xff] }
  0xd4   : > { %5151 = vmatmul.mubr.bf16.gmra.mxu0 %v1657_v20  ;;  %5290 = vmatprep.subr.bf16.mxu1 %v5529_v21  ;;  %v6214_v16 = vpack.c.bf16 %v1974_v10, %v1973_v9 }
  0xd5   : > { %5203 = vmatmul.mubr.bf16.gmra.mxu1 %v6128_v22  ;;  %5154 = vmatprep.mubr.bf16.mxu0 %v1658_v23  ;;  %v1645_v23 = vld [vmem:[%s5790_s15 + $0x10b] sm:$0xff] }
  0xd6   : > { %5206 = vmatprep.mubr.bf16.mxu1 %v6130_v24  ;;  %5239 = vmatpush3.bf16.msra.mxu0 %v5524_v19  ;;  %v3323_v19 = vld [vmem:[%s8115_s6 + $0x58] sm:$0xff] }
  0xd7   : > { %5240 = vmatprep.subr.bf16.mxu0 %v5528_v25  ;;  %5291 = vmatpush3.bf16.msra.mxu1 %v5529_v21  ;;  %v1644_v21 = vld [vmem:[%s5790_s15 + $0x103] sm:$0xff] }
  0xd8   : > { %5292 = vmatprep.subr.bf16.mxu1 %v5530_v28  ;;  %3375 = vperm.xlu1 %5466, %v3317_v59   ;;  %v1649_v59 = vld [vmem:[%s5790_s15 + $0x12b] sm:$0xff] }
  0xd9   : > { %3380 = vperm.xlu0 %5465, %v3318_v63  }
  0xda   : > { %5241 = vmatpush3.bf16.msra.mxu0 %v5528_v25  ;;  %v1975_v25 = vld [vmem:[%s5790_s15 + $0x104] sm:$0xff] }
  0xdb   : > { %5293 = vmatpush3.bf16.msra.mxu1 %v5530_v28  ;;  %5330 = vmatprep.subr.bf16.mxu0 %v6154_v36  ;;  %v1976_v28 = vld [vmem:[%s5790_s15 + $0x10c] sm:$0xff] }
  0xdc   : > { %5155 = vmatmul.mubr.bf16.gmra.mxu0 %v1659_v39  ;;  %3385 = vperm.xlu1 %5466, %v3319_v0   ;;  %v1665_v39 = vpack.c.bf16 %v1645_v23, %v1644_v21  ;;  %v6242_v45 = vpack.c.bf16 %v1976_v28, %v1975_v25  ;;  %v1979_v0 = vld [vmem:[%s5790_s15 + $0x124] sm:$0xff]  ;;  %v3331_v25 = vld [vmem:[%s8115_s6 + $0x98] sm:$0xff] }
  0xdd   : > { %5207 = vmatmul.mubr.bf16.gmra.mxu1 %v6159_v42  ;;  %5158 = vmatprep.mubr.bf16.mxu0 %v1660_v43 }
  0xde   : > { %5210 = vmatprep.mubr.bf16.mxu1 %v6161_v44  ;;  %3390 = vperm.xlu0 %5465, %v3320_v11   ;;  %v3329_v11 = vld [vmem:[%s8115_s6 + $0x88] sm:$0xff] }
  0xe0   : > { %3395 = vperm.xlu1 %5466, %v3321_v13   ;;  %v6274_v13 = vpack.c.bf16 %v1980_v1, %v1979_v0  ;;  %v3335_v0 = vld [vmem:[%s8115_s6 + $0xb8] sm:$0xff] }
  0xe2   : > { %3400 = vperm.xlu0 %5465, %v3322_v17  }
  0xe4   : > { %5159 = vmatmul.mubr.bf16.gmra.mxu0 %v1661_v58  ;;  %3405 = vperm.xlu1 %5466, %v3323_v19   ;;  %v1648_v58 = vld [vmem:[%s5790_s15 + $0x123] sm:$0xff] }
  0xe5   : > { %5211 = vmatmul.mubr.bf16.gmra.mxu1 %v6186_v60  ;;  %5162 = vmatprep.mubr.bf16.mxu0 %v1662_v61  ;;  %v1667_v10 = vpack.c.bf16 %v1649_v59, %v1648_v58  ;;  %v3334_v59 = vld [vmem:[%s8115_s6 + $0xb0] sm:$0xff] }
  0xe6   : > { %5214 = vmatprep.mubr.bf16.mxu1 %v6188_v62  ;;  %3410 = vperm.xlu0 %5465, %v3324_v34   ;;  %v2612_v34 = vld [vmem:[%s5790_s15 + $0x4d] sm:$0xff] }
  0xe8   : > { %3415 = vperm.xlu1 %5466, %v3325_v41  }
  0xea   : > { %3420 = vperm.xlu0 %5465, %v3326_v51   ;;  %v2645_v51 = vpack.c.bf16 %v2612_v34, %v2611_v29  ;;  %v3339_v29 = vld [vmem:[%s8115_s6 + $0xd8] sm:$0xff] }
  0xec   : > { %v4932_v18 = vpop.f32.mrf.mxu0  ;;  %5163 = vmatmul.mubr.bf16.gmra.mxu0 %v1663_v12  ;;  %3425 = vperm.xlu1 %5466, %v3327_v55   ;;  %v5532_v55 = vld [vmem:[%s8110_s1 + $0x230] sm:$0xff]  }
  0xed   : > { %v4984_v20 = vpop.f32.mrf.mxu1  ;;  %5215 = vmatmul.mubr.bf16.gmra.mxu1 %v6212_v14  ;;  %5166 = vmatprep.mubr.bf16.mxu0 %v1664_v15 }
  0xee   : > { %v6226_v26 = vadd.f32 %v4984_v20, %v4932_v18  ;;  %v584_v27 = vpop.f32.mrf.mxu0  ;;  %5218 = vmatprep.mubr.bf16.mxu1 %v6214_v16  ;;  %v2643_v18 = vpack.c.bf16 %v2608_v4, %v2607_v3  ;;  %3430 = vperm.xlu0 %5465, %v3328_v5   ;;  %v3330_v20 = vld [vmem:[%s8115_s6 + $0x90] sm:$0xff]  ;;  %v2614_v3 = vld [vmem:[%s5790_s15 + $0x5d] sm:$0xff]  ;;  %v5533_v4 = vld [vmem:[%s8110_s1 + $0x228] sm:$0xff]  }
  0xef   : > { %v809_v32 = vpop.f32.mrf.mxu1 }
  0xf0   : > { %v6237_v35 = vadd.f32 %v809_v32, %v584_v27  ;;  %v4933_v37 = vpop.f32.mrf.mxu0  ;;  %3435 = vperm.xlu1 %5466, %v3329_v11   ;;  %v2610_v32 = vld [vmem:[%s5790_s15 + $0x3d] sm:$0xff] }
  0xf1   : > { %v4985_v43 = vpop.f32.mrf.mxu1 }
  0xf2   : > { %v6244_v47 = vadd.f32 %v4985_v43, %v4933_v37  ;;  %v587_v48 = vpop.f32.mrf.mxu0  ;;  %3440 = vperm.xlu0 %5465, %v3330_v20   ;;  %v3332_v37 = vld [vmem:[%s8115_s6 + $0xa0] sm:$0xff] }
  0xf3   : > { %v812_v50 = vpop.f32.mrf.mxu1 }
  0xf4   : > { %v6251_v52 = vadd.f32 %v812_v50, %v587_v48  ;;  %v4936_v53 = vpop.f32.mrf.mxu0  ;;  %5167 = vmatmul.mubr.bf16.gmra.mxu0 %v1665_v39  ;;  %3445 = vperm.xlu1 %5466, %v3331_v25  }
  0xf5   : > { %v4988_v57 = vpop.f32.mrf.mxu1  ;;  %5219 = vmatmul.mubr.bf16.gmra.mxu1 %v6242_v45  ;;  %5170 = vmatprep.mubr.bf16.mxu0 %v1666_v46  ;;  %v2644_v46 = vpack.c.bf16 %v2610_v32, %v2609_v31  ;;  %v3338_v32 = vld [vmem:[%s8115_s6 + $0xd0] sm:$0xff] }
  0xf6   : > { %v6259_v61 = vadd.f32 %v4988_v57, %v4936_v53  ;;  %v600_v63 = vpop.f32.mrf.mxu0  ;;  %5222 = vmatprep.mubr.bf16.mxu1 %v6246_v49  ;;  %3450 = vperm.xlu0 %5465, %v3332_v37  }
  0xf7   : > { %v825_v2 = vpop.f32.mrf.mxu1 }
  0xf8   : > { %v6269_v7 = vadd.f32 %v825_v2, %v600_v63  ;;  %v4937_v9 = vpop.f32.mrf.mxu0 }
  0xf9   : > { %v4989_v12 = vpop.f32.mrf.mxu1 }
  0xfa   : > { %v6276_v15 = vadd.f32 %v4989_v12, %v4937_v9  ;;  %v603_v17 = vpop.f32.mrf.mxu0  ;;  %v2616_v9 = vld [vmem:[%s5790_s15 + $0x6d] sm:$0xff]  ;;  %3460 = vperm.xlu0 %5465, %v3334_v59  }
  0xfb   : > { %v828_v19 = vpop.f32.mrf.mxu1  ;;  %v3341_v59 = vld [vmem:[%s8115_s6 + $0xe8] sm:$0xff] }
  0xfc   : > { %v6281_v21 = vadd.f32 %v828_v19, %v603_v17  ;;  %v4940_v23 = vpop.f32.mrf.mxu0  ;;  %5171 = vmatmul.mubr.bf16.gmra.mxu0 %v1667_v10 }
  0xfd   : > { %v4992_v27 = vpop.f32.mrf.mxu1  ;;  %5223 = vmatmul.mubr.bf16.gmra.mxu1 %v6274_v13  ;;  %5242 = vmatprep.mubr.bf16.mxu0 %v6048_v38  ;;  %v3333_v38 = vld [vmem:[%s8115_s6 + $0xa8] sm:$0xff] }
  0xfe   : > { %v6288_v28 = vadd.f32 %v4992_v27, %v4940_v23  ;;  %v616_v30 = vpop.f32.mrf.mxu0  ;;  %5294 = vmatprep.mubr.bf16.mxu1 %v2643_v18  ;;  %3455 = vperm.xlu1 %5466, %v3333_v38   ;;  %v3337_v18 = vld [vmem:[%s8115_s6 + $0xc8] sm:$0xff]  ;;  %v5534_v27 = vld [vmem:[%s8110_s1 + $0x220] sm:$0xff]  }
  0xff   : > { %v841_v33 = vpop.f32.mrf.mxu1  ;;  %v2618_v38 = vld [vmem:[%s5790_s15 + $0x7d] sm:$0xff] }
 0x100   : > { %v6297_v39 = vadd.f32 %v841_v33, %v616_v30  ;;  %v4941_v41 = vpop.f32.mrf.mxu0 }
 0x101   : > { %v4993_v43 = vpop.f32.mrf.mxu1 }
 0x102   : > { %v6302_v48 = vadd.f32 %v4993_v43, %v4941_v41  ;;  %v619_v50 = vpop.f32.mrf.mxu0  ;;  %3465 = vperm.xlu1 %5466, %v3335_v0   ;;  %v2617_v41 = vld [vmem:[%s5790_s15 + $0x75] sm:$0xff]  ;;  %v2619_v43 = vld [vmem:[%s5790_s15 + $0x85] sm:$0xff] }
 0x103   : > { %v844_v53 = vpop.f32.mrf.mxu1 }
 0x104   : > { %v6307_v57 = vadd.f32 %v844_v53, %v619_v50  ;;  %v4944_v58 = vpop.f32.mrf.mxu0  ;;  %5243 = vmatmul.mubr.bf16.vlgmr.msra.gmra.mxu0 %v6050_v40  ;;  %v2613_v40 = vld [vmem:[%s5790_s15 + $0x55] sm:$0xff]  ;;  %v3340_v53 = vld [vmem:[%s8115_s6 + $0xe0] sm:$0xff] }
 0x105   : > { %v4996_v63 = vpop.f32.mrf.mxu1  ;;  %5331 = vmatpush3.bf16.msra.mxu0 %v6154_v36  ;;  %5295 = vmatmul.mubr.bf16.vlgmr.msra.gmra.mxu1 %v2644_v46  ;;  %v2615_v36 = vld [vmem:[%s5790_s15 + $0x65] sm:$0xff]  ;;  %v2646_v17 = vpack.c.bf16 %v2614_v3, %v2613_v40  ;;  %v2620_v46 = vld [vmem:[%s5790_s15 + $0x8d] sm:$0xff]  ;;  %v5535_v50 = vld [vmem:[%s8110_s1 + $0x218] sm:$0xff]  }
 0x106   : > { %v6317_v1 = vadd.f32 %v4996_v63, %v4944_v58  ;;  %v632_v2 = vpop.f32.mrf.mxu0  ;;  %5246 = vmatprep.mubr.bf16.mxu0 %v6076_v54  ;;  %5298 = vmatprep.mubr.bf16.mxu1 %v2645_v51  ;;  %v3336_v54 = vld [vmem:[%s8115_s6 + $0xc0] sm:$0xff]  ;;  %v2647_v23 = vpack.c.bf16 %v2616_v9, %v2615_v36  ;;  %v2648_v58 = vpack.c.bf16 %v2618_v38, %v2617_v41  ;;  %v5536_v3 = vld [vmem:[%s8110_s1 + $0x210] sm:$0xff]  }
 0x107   : > { %v857_v5 = vpop.f32.mrf.mxu1  ;;  %5332 = vmatprep.subr.bf16.mxu0 %v5532_v55  ;;  %3470 = vperm.xlu0 %5465, %v3336_v54   ;;  %v3342_v36 = vld [vmem:[%s8115_s6 + $0xf0] sm:$0xff] }
 0x108   : > { %v6327_v10 = vadd.f32 %v857_v5, %v632_v2  ;;  %v4945_v11 = vpop.f32.mrf.mxu0  ;;  %3475 = vperm.xlu1 %5466, %v3337_v18   ;;  %v2649_v2 = vpack.c.bf16 %v2620_v46, %v2619_v43  ;;  %v2622_v18 = vld [vmem:[%s5790_s15 + $0x9d] sm:$0xff] }
 0x109   : > { %v4997_v12 = vpop.f32.mrf.mxu1  ;;  %5333 = vmatpush3.bf16.msra.mxu0 %v5532_v55  ;;  %v5538_v43 = vld [vmem:[%s8110_s1 + $0x200] sm:$0xff]  }
 0x10a   : > { %v6335_v19 = vadd.f32 %v4997_v12, %v4945_v11  ;;  %v635_v20 = vpop.f32.mrf.mxu0  ;;  %5334 = vmatprep.subr.bf16.mxu0 %v5533_v4  ;;  %v3343_v11 = vld [vmem:[%s8115_s6 + $0xf8] sm:$0xff] }
 0x10b   : > { %v860_v25 = vpop.f32.mrf.mxu1  ;;  %3480 = vperm.xlu0 %5465, %v3338_v32  }
 0x10c   : > { %v6340_v30 = vadd.f32 %v860_v25, %v635_v20  ;;  %v4948_v31 = vpop.f32.mrf.mxu0  ;;  %5247 = vmatmul.mubr.bf16.gmra.mxu0 %v6078_v56  ;;  %3485 = vperm.xlu1 %5466, %v3339_v29   ;;  %v2623_v20 = vld [vmem:[%s5790_s15 + $0xa5] sm:$0xff] }
 0x10d   : > { %v5000_v33 = vpop.f32.mrf.mxu1  ;;  %5299 = vmatmul.mubr.bf16.gmra.mxu1 %v2646_v17  ;;  %5250 = vmatprep.mubr.bf16.mxu0 %v6102_v6  ;;  %v2621_v17 = vld [vmem:[%s5790_s15 + $0x95] sm:$0xff]  ;;  %v5537_v25 = vld [vmem:[%s8110_s1 + $0x208] sm:$0xff]  }
 0x10e   : > { %v6350_v34 = vadd.f32 %v5000_v33, %v4948_v31  ;;  %v648_v37 = vpop.f32.mrf.mxu0  ;;  %5302 = vmatprep.mubr.bf16.mxu1 %v2647_v23  ;;  %5335 = vmatpush3.bf16.msra.mxu0 %v5533_v4  ;;  %v2624_v23 = vld [vmem:[%s5790_s15 + $0xad] sm:$0xff]  ;;  %v3344_v31 = vld [vmem:[%s8115_s6 + $0x100] sm:$0xff]  ;;  %v2650_v33 = vpack.c.bf16 %v2622_v18, %v2621_v17 }
 0x10f   : > { %v873_v56 = vpop.f32.mrf.mxu1  ;;  %5336 = vmatprep.subr.bf16.mxu0 %v5534_v27  ;;  %3490 = vperm.xlu0 %5465, %v3340_v53   ;;  %v3345_v29 = vld [vmem:[%s8115_s6 + $0x108] sm:$0xff]  ;;  %v2651_v38 = vpack.c.bf16 %v2624_v23, %v2623_v20 }
 0x110   : > { %v6359_v6 = vadd.f32 %v873_v56, %v648_v37  ;;  %v4949_v51 = vpop.f32.mrf.mxu0  ;;  %3495 = vperm.xlu1 %5466, %v3341_v59  }
 0x111   : > { %v5001_v55 = vpop.f32.mrf.mxu1 }
 0x112   : > { %v6367_v63 = vadd.f32 %v5001_v55, %v4949_v51  ;;  %v651_v0 = vpop.f32.mrf.mxu0  ;;  %5337 = vmatpush3.bf16.msra.mxu0 %v5534_v27  ;;  %v3346_v51 = vld [vmem:[%s8115_s6 + $0x110] sm:$0xff]  ;;  %v3347_v55 = vld [vmem:[%s8115_s6 + $0x118] sm:$0xff] }
 0x113   : > { %v876_v40 = vpop.f32.mrf.mxu1  ;;  %5338 = vmatprep.subr.bf16.mxu0 %v5535_v50  ;;  %3500 = vperm.xlu0 %5465, %v3342_v36  }
 0x114   : > { %v6372_v4 = vadd.f32 %v876_v40, %v651_v0  ;;  %v4952_v5 = vpop.f32.mrf.mxu0  ;;  %5251 = vmatmul.mubr.bf16.gmra.mxu0 %v6104_v8  ;;  %3505 = vperm.xlu1 %5466, %v3343_v11   ;;  %v2625_v0 = vld [vmem:[%s5790_s15 + $0xb5] sm:$0xff]  ;;  %v2627_v40 = vld [vmem:[%s5790_s15 + $0xc5] sm:$0xff] }
 0x115   : > { %v5004_v9 = vpop.f32.mrf.mxu1  ;;  %5303 = vmatmul.mubr.bf16.gmra.mxu1 %v2648_v58  ;;  %5254 = vmatprep.mubr.bf16.mxu0 %v6128_v22 }
 0x116   : > { %v6382_v54 = vadd.f32 %v5004_v9, %v4952_v5  ;;  %v664_v12 = vpop.f32.mrf.mxu0  ;;  %5306 = vmatprep.mubr.bf16.mxu1 %v2649_v2  ;;  %5339 = vmatpush3.bf16.msra.mxu0 %v5535_v50  ;;  %v2626_v2 = vld [vmem:[%s5790_s15 + $0xbd] sm:$0xff] }
 0x117   : > { %v889_v8 = vpop.f32.mrf.mxu1  ;;  %5340 = vmatprep.subr.bf16.mxu0 %v5536_v3  ;;  %3510 = vperm.xlu0 %5465, %v3344_v31   ;;  %v2652_v9 = vpack.c.bf16 %v2626_v2, %v2625_v0  ;;  %v2629_v31 = vld [vmem:[%s5790_s15 + $0xd5] sm:$0xff] }
 0x118   : > { %v6391_v22 = vadd.f32 %v889_v8, %v664_v12  ;;  %v4953_v27 = vpop.f32.mrf.mxu0  ;;  %3515 = vperm.xlu1 %5466, %v3345_v29   ;;  %v2631_v29 = vld [vmem:[%s5790_s15 + $0xe5] sm:$0xff] }
 0x119   : > { %v5005_v32 = vpop.f32.mrf.mxu1 }
 0x11a   : > { %v6399_v37 = vadd.f32 %v5005_v32, %v4953_v27  ;;  %v667_v41 = vpop.f32.mrf.mxu0  ;;  %5341 = vmatpush3.bf16.msra.mxu0 %v5536_v3  ;;  %v2628_v3 = vld [vmem:[%s5790_s15 + $0xcd] sm:$0xff]  ;;  %v2630_v32 = vld [vmem:[%s5790_s15 + $0xdd] sm:$0xff] }
 0x11b   : > { %v892_v56 = vpop.f32.mrf.mxu1  ;;  %5342 = vmatprep.subr.bf16.mxu0 %v5537_v25  ;;  %3520 = vperm.xlu0 %5465, %v3346_v51   ;;  %v2653_v17 = vpack.c.bf16 %v2628_v3, %v2627_v40  ;;  %v2633_v40 = vld [vmem:[%s5790_s15 + $0xf5] sm:$0xff]  ;;  %v2634_v3 = vld [vmem:[%s5790_s15 + $0xfd] sm:$0xff] }
 0x11c   : > { %v6404_v46 = vadd.f32 %v892_v56, %v667_v41  ;;  %v4956_v50 = vpop.f32.mrf.mxu0  ;;  %5255 = vmatmul.mubr.bf16.gmra.mxu0 %v6130_v24  ;;  %3525 = vperm.xlu1 %5466, %v3347_v55   ;;  %v2632_v41 = vld [vmem:[%s5790_s15 + $0xed] sm:$0xff] }
 0x11d   : > { %v5008_v53 = vpop.f32.mrf.mxu1  ;;  %5307 = vmatmul.mubr.bf16.gmra.mxu1 %v2650_v33  ;;  %5258 = vmatprep.mubr.bf16.mxu0 %v6159_v42  ;;  %v2655_v51 = vpack.c.bf16 %v2632_v41, %v2631_v29  ;;  %v2637_v29 = vld [vmem:[%s5790_s15 + $0x115] sm:$0xff]  ;;  %v2638_v41 = vld [vmem:[%s5790_s15 + $0x11d] sm:$0xff] }
 0x11e   : > { %v6414_v58 = vadd.f32 %v5008_v53, %v4956_v50  ;;  %v680_v59 = vpop.f32.mrf.mxu0  ;;  %5310 = vmatprep.mubr.bf16.mxu1 %v2651_v38  ;;  %5343 = vmatpush3.bf16.msra.mxu0 %v5537_v25 }
 0x11f   : > { %v905_v24 = vpop.f32.mrf.mxu1  ;;  %5344 = vmatprep.subr.bf16.mxu0 %v5538_v43 }
 0x120   : > { %v6420_v5 = vadd.f32 %v905_v24, %v680_v59  ;;  %v4957_v36 = vpop.f32.mrf.mxu0 }
 0x121   : > { %v5009_v42 = vpop.f32.mrf.mxu1 }
 0x122   : > { %v6422_v11 = vadd.f32 %v5009_v42, %v4957_v36  ;;  %v683_v12 = vpop.f32.mrf.mxu0  ;;  %5345 = vmatpush3.bf16.msra.mxu0 %v5538_v43  ;;  %v2635_v42 = vld [vmem:[%s5790_s15 + $0x105] sm:$0xff] }
 0x123   : > { %v908_v18 = vpop.f32.mrf.mxu1 }
 0x124   : > { %v6424_v8 = vadd.f32 %v908_v18, %v683_v12  ;;  %v4960_v20 = vpop.f32.mrf.mxu0  ;;  %5259 = vmatmul.mubr.bf16.gmra.mxu0 %v6161_v44  ;;  %v2654_v44 = vpack.c.bf16 %v2630_v32, %v2629_v31 }
 0x125   : > { %v5012_v23 = vpop.f32.mrf.mxu1  ;;  %5311 = vmatmul.mubr.bf16.gmra.mxu1 %v2652_v9  ;;  %5262 = vmatprep.mubr.bf16.mxu0 %v6186_v60  ;;  %v2636_v9 = vld [vmem:[%s5790_s15 + $0x10d] sm:$0xff] }
 0x126   : > { %v6428_v25 = vadd.f32 %v5012_v23, %v4960_v20  ;;  %v696_v27 = vpop.f32.mrf.mxu0  ;;  %5314 = vmatprep.mubr.bf16.mxu1 %v2653_v17 }
 0x127   : > { %v921_v33 = vpop.f32.mrf.mxu1 }
 0x128   : > { %v6434_v38 = vadd.f32 %v921_v33, %v696_v27  ;;  %v4961_v56 = vpop.f32.mrf.mxu0 }
 0x129   : > { %v5013_v43 = vpop.f32.mrf.mxu1 }
 0x12a   : > { %v6436_v50 = vadd.f32 %v5013_v43, %v4961_v56  ;;  %v699_v60 = vpop.f32.mrf.mxu0 }
 0x12b   : > { %v924_v53 = vpop.f32.mrf.mxu1 }
 0x12c   : > { %v6438_v55 = vadd.f32 %v924_v53, %v699_v60  ;;  %v4964_v59 = vpop.f32.mrf.mxu0  ;;  %5263 = vmatmul.mubr.bf16.gmra.mxu0 %v6188_v62  ;;  %v2656_v62 = vpack.c.bf16 %v2634_v3, %v2633_v40  ;;  %v2639_v60 = vld [vmem:[%s5790_s15 + $0x125] sm:$0xff] }
 0x12d   : > { %v5016_v0 = vpop.f32.mrf.mxu1  ;;  %5315 = vmatmul.mubr.bf16.gmra.mxu1 %v2654_v44  ;;  %5266 = vmatprep.mubr.bf16.mxu0 %v6212_v14  ;;  %v2657_v14 = vpack.c.bf16 %v2636_v9, %v2635_v42 }
 0x12e   : > { %v6442_v2 = vadd.f32 %v5016_v0, %v4964_v59  ;;  %v6444_v24 = vpop.f32.mrf.mxu0  ;;  %5318 = vmatprep.mubr.bf16.mxu1 %v2655_v51  ;;  %v2640_v51 = vld [vmem:[%s5790_s15 + $0x12d] sm:$0xff] }
 0x12f   : > { %v6448_v36 = vpop.f32.mrf.mxu1  ;;  %v2659_v40 = vpack.c.bf16 %v2640_v51, %v2639_v60 }
 0x130   : > { %v4965_v12 = vpop.f32.mrf.mxu0 }
 0x131   : > { %v5017_v17 = vpop.f32.mrf.mxu1 }
 0x132   : > { %v6452_v18 = vadd.f32 %v5017_v17, %v4965_v12  ;;  %v6454_v20 = vpop.f32.mrf.mxu0 }
 0x133   : > { %v6456_v23 = vpop.f32.mrf.mxu1 }
 0x134   : > { %v5036_v27 = vpop.f32.mrf.mxu0  ;;  %5267 = vmatmul.mubr.bf16.gmra.mxu0 %v6214_v16 }
 0x135   : > { %v1249_v31 = vadd.f32 %v5036_v27, %v6226_v26  ;;  %v5088_v32 = vpop.f32.mrf.mxu1  ;;  %5319 = vmatmul.mubr.bf16.gmra.mxu1 %v2656_v62  ;;  %5270 = vmatprep.mubr.bf16.mxu0 %v6242_v45  ;;  %v2658_v45 = vpack.c.bf16 %v2638_v41, %v2637_v29  ;;  %v2310_v62 = vld [vmem:[%s5790_s15 + $0x134] sm:$0xff] }
 0x136   : > { %v1104_v33 = vpop.f32.mrf.mxu0  ;;  %5322 = vmatprep.mubr.bf16.mxu1 %v2657_v14  ;;  %v2311_v14 = vld [vmem:[%s5790_s15 + $0x13c] sm:$0xff] }
 0x137   : > { %v1247_v56 = vadd.f32 %v1104_v33, %v6237_v35  ;;  %v6464_v43 = vadd.f32 %v5088_v32, %v1249_v31  ;;  %v1435_v44 = vpop.f32.mrf.mxu1  ;;  %v2641_v27 = vld [vmem:[%s5790_s15 + $0x135] sm:$0xff]  ;;  %v2642_v31 = vld [vmem:[%s5790_s15 + $0x13d] sm:$0xff]  ;;  %v2938_v32 = vld [vmem:[%s5790_s15 + $0x26] sm:$0xff] }
 0x138   : > { %v5037_v53 = vpop.f32.mrf.mxu0  ;;  %v2939_v33 = vld [vmem:[%s5790_s15 + $0x2e] sm:$0xff]  ;;  %v2660_v51 = vpack.c.bf16 %v2642_v31, %v2641_v27 }
 0x139   : > { %v1250_v16 = vadd.f32 %v5037_v53, %v6244_v47  ;;  %v6469_v26 = vadd.f32 %v1435_v44, %v1247_v56  ;;  %v5089_v59 = vpop.f32.mrf.mxu1  ;;  %v2329_v56 = vpack.c.bf16 %v2311_v14, %v2310_v62  ;;  %v2974_v53 = vpack.c.bf16 %v2939_v33, %v2938_v32  ;;  %v2943_v62 = vld [vmem:[%s5790_s15 + $0x4e] sm:$0xff] }
 0x13a   : > { %v1107_v0 = vpop.f32.mrf.mxu0 }
 0x13b   : > { %v1248_v35 = vadd.f32 %v1107_v0, %v6251_v52  ;;  %v6472_v3 = vadd.f32 %v5089_v59, %v1250_v16  ;;  %v1438_v42 = vpop.f32.mrf.mxu1 }
 0x13c   : > { %v5040_v9 = vpop.f32.mrf.mxu0  ;;  %5271 = vmatmul.mubr.bf16.gmra.mxu0 %v6246_v49 }
 0x13d   : > { %v1253_v47 = vadd.f32 %v5040_v9, %v6259_v61  ;;  %v6476_v12 = vadd.f32 %v1438_v42, %v1248_v35  ;;  %v5092_v17 = vpop.f32.mrf.mxu1  ;;  %5323 = vmatmul.mubr.bf16.gmra.mxu1 %v2658_v45  ;;  %5274 = vmatprep.mubr.bf16.mxu0 %v6274_v13  ;;  %v2940_v42 = vld [vmem:[%s5790_s15 + $0x36] sm:$0xff]  ;;  %v2941_v9 = vld [vmem:[%s5790_s15 + $0x3e] sm:$0xff] }
 0x13e   : > { %v1120_v52 = vpop.f32.mrf.mxu0  ;;  %5326 = vmatprep.mubr.bf16.mxu1 %v2659_v40  ;;  %v2975_v31 = vpack.c.bf16 %v2941_v9, %v2940_v42 }
 0x13f   : > { %v1251_v29 = vadd.f32 %v1120_v52, %v6269_v7  ;;  %v6486_v41 = vadd.f32 %v5092_v17, %v1253_v47  ;;  %v1451_v49 = vpop.f32.mrf.mxu1  ;;  %v2942_v17 = vld [vmem:[%s5790_s15 + $0x46] sm:$0xff] }
 0x140   : > { %v5041_v61 = vpop.f32.mrf.mxu0 }
 0x141   : > { %v1254_v44 = vadd.f32 %v5041_v61, %v6276_v15  ;;  %v6489_v60 = vadd.f32 %v1451_v49, %v1251_v29  ;;  %v5093_v13 = vpop.f32.mrf.mxu1  ;;  %v2976_v29 = vpack.c.bf16 %v2943_v62, %v2942_v17 }
 0x142   : > { %v1123_v16 = vpop.f32.mrf.mxu0 }
 0x143   : > { %v1252_v59 = vadd.f32 %v1123_v16, %v6281_v21  ;;  %v6492_v7 = vadd.f32 %v5093_v13, %v1254_v44  ;;  %v1454_v45 = vpop.f32.mrf.mxu1  ;;  %v2945_v16 = vld [vmem:[%s5790_s15 + $0x5e] sm:$0xff] }
 0x144   : > { %v5044_v0 = vpop.f32.mrf.mxu0  ;;  %5275 = vmatmul.mubr.bf16.gmra.mxu0 %v2329_v56 }
 0x145   : > { %v1257_v40 = vadd.f32 %v5044_v0, %v6288_v28  ;;  %v6495_v15 = vadd.f32 %v1454_v45, %v1252_v59  ;;  %v5096_v35 = vpop.f32.mrf.mxu1  ;;  %5327 = vmatmul.mubr.bf16.gmra.mxu1 %v2660_v51  ;;  %5346 = vmatprep.mubr.bf16.mxu0 %v2974_v53  ;;  %v2946_v45 = vld [vmem:[%s5790_s15 + $0x66] sm:$0xff]  ;;  %v2947_v0 = vld [vmem:[%s5790_s15 + $0x6e] sm:$0xff] }
 0x146   : > { %v1136_v47 = vpop.f32.mrf.mxu0  ;;  %v2978_v62 = vpack.c.bf16 %v2947_v0, %v2946_v45 }
 0x147   : > { %v1255_v14 = vadd.f32 %v1136_v47, %v6297_v39  ;;  %v6502_v21 = vadd.f32 %v5096_v35, %v1257_v40  ;;  %v1467_v27 = vpop.f32.mrf.mxu1 }
 0x148   : > { %v5045_v52 = vpop.f32.mrf.mxu0 }
 0x149   : > { %v1258_v28 = vadd.f32 %v5045_v52, %v6302_v48  ;;  %v6505_v32 = vadd.f32 %v1467_v27, %v1255_v14  ;;  %v5097_v33 = vpop.f32.mrf.mxu1  ;;  %v2944_v48 = vld [vmem:[%s5790_s15 + $0x56] sm:$0xff] }
 0x14a   : > { %v1139_v49 = vpop.f32.mrf.mxu0  ;;  %v2977_v9 = vpack.c.bf16 %v2945_v16, %v2944_v48 }
 0x14b   : > { %v1256_v61 = vadd.f32 %v1139_v49, %v6307_v57  ;;  %v6508_v56 = vadd.f32 %v5097_v33, %v1258_v28  ;;  %v1470_v39 = vpop.f32.mrf.mxu1  ;;  %v2949_v49 = vld [vmem:[%s5790_s15 + $0x7e] sm:$0xff] }
 0x14c   : > { %v5048_v44 = vpop.f32.mrf.mxu0  ;;  %5347 = vmatmul.mubr.bf16.vlgmr.msra.gmra.mxu0 %v2975_v31 }
 0x14d   : > { %v1261_v13 = vadd.f32 %v5048_v44, %v6317_v1  ;;  %v6511_v51 = vadd.f32 %v1470_v39, %v1256_v61  ;;  %v5100_v53 = vpop.f32.mrf.mxu1  ;;  %5350 = vmatprep.mubr.bf16.mxu0 %v2976_v29  ;;  %v2950_v39 = vld [vmem:[%s5790_s15 + $0x86] sm:$0xff]  ;;  %v2951_v44 = vld [vmem:[%s5790_s15 + $0x8e] sm:$0xff] }
 0x14e   : > { %v1152_v59 = vpop.f32.mrf.mxu0  ;;  %v2980_v0 = vpack.c.bf16 %v2951_v44, %v2950_v39 }
 0x14f   : > { %v1259_v40 = vadd.f32 %v1152_v59, %v6327_v10  ;;  %v6518_v35 = vadd.f32 %v5100_v53, %v1261_v13  ;;  %v1483_v57 = vpop.f32.mrf.mxu1 }
 0x150   : > { %v5049_v42 = vpop.f32.mrf.mxu0 }
 0x151   : > { %v1262_v1 = vadd.f32 %v5049_v42, %v6335_v19  ;;  %v6521_v47 = vadd.f32 %v1483_v57, %v1259_v40  ;;  %v5101_v17 = vpop.f32.mrf.mxu1  ;;  %v2948_v19 = vld [vmem:[%s5790_s15 + $0x76] sm:$0xff] }
 0x152   : > { %v1155_v14 = vpop.f32.mrf.mxu0  ;;  %v2979_v16 = vpack.c.bf16 %v2949_v49, %v2948_v19 }
 0x153   : > { %v1260_v27 = vadd.f32 %v1155_v14, %v6340_v30  ;;  %v6524_v52 = vadd.f32 %v5101_v17, %v1262_v1  ;;  %v1486_v10 = vpop.f32.mrf.mxu1  ;;  %v2953_v14 = vld [vmem:[%s5790_s15 + $0x9e] sm:$0xff] }
 0x154   : > { %v5052_v31 = vpop.f32.mrf.mxu0  ;;  %5351 = vmatmul.mubr.bf16.gmra.mxu0 %v2977_v9 }
 0x155   : > { %v1265_v28 = vadd.f32 %v5052_v31, %v6350_v34  ;;  %v6527_v33 = vadd.f32 %v1486_v10, %v1260_v27  ;;  %v5104_v29 = vpop.f32.mrf.mxu1  ;;  %5354 = vmatprep.mubr.bf16.mxu0 %v2978_v62  ;;  %v2954_v10 = vld [vmem:[%s5790_s15 + $0xa6] sm:$0xff]  ;;  %v2955_v31 = vld [vmem:[%s5790_s15 + $0xae] sm:$0xff] }
 0x156   : > { %v1168_v61 = vpop.f32.mrf.mxu0  ;;  %v2982_v44 = vpack.c.bf16 %v2955_v31, %v2954_v10 }
 0x157   : > { %v1263_v13 = vadd.f32 %v1168_v61, %v6359_v6  ;;  %v6534_v53 = vadd.f32 %v5104_v29, %v1265_v28  ;;  %v1499_v30 = vpop.f32.mrf.mxu1 }
 0x158   : > { %v5053_v48 = vpop.f32.mrf.mxu0 }
 0x159   : > { %v1266_v34 = vadd.f32 %v5053_v48, %v6367_v63  ;;  %v6537_v59 = vadd.f32 %v1499_v30, %v1263_v13  ;;  %v5105_v45 = vpop.f32.mrf.mxu1  ;;  %v2952_v63 = vld [vmem:[%s5790_s15 + $0x96] sm:$0xff] }
 0x15a   : > { %v1171_v40 = vpop.f32.mrf.mxu0  ;;  %v2981_v49 = vpack.c.bf16 %v2953_v14, %v2952_v63 }
 0x15b   : > { %v1264_v57 = vadd.f32 %v1171_v40, %v6372_v4  ;;  %v6540_v42 = vadd.f32 %v5105_v45, %v1266_v34  ;;  %v1502_v6 = vpop.f32.mrf.mxu1  ;;  %v2957_v40 = vld [vmem:[%s5790_s15 + $0xbe] sm:$0xff] }
 0x15c   : > { %v5056_v9 = vpop.f32.mrf.mxu0  ;;  %5355 = vmatmul.mubr.bf16.gmra.mxu0 %v2979_v16 }
 0x15d   : > { %v1269_v1 = vadd.f32 %v5056_v9, %v6382_v54  ;;  %v6543_v17 = vadd.f32 %v1502_v6, %v1264_v57  ;;  %v5108_v62 = vpop.f32.mrf.mxu1  ;;  %5358 = vmatprep.mubr.bf16.mxu0 %v2980_v0  ;;  %v2958_v6 = vld [vmem:[%s5790_s15 + $0xc6] sm:$0xff]  ;;  %v2959_v9 = vld [vmem:[%s5790_s15 + $0xce] sm:$0xff] }
 0x15e   : > { %v1184_v27 = vpop.f32.mrf.mxu0  ;;  %v2984_v31 = vpack.c.bf16 %v2959_v9, %v2958_v6 }
 0x15f   : > { %v1267_v28 = vadd.f32 %v1184_v27, %v6391_v22  ;;  %v6550_v29 = vadd.f32 %v5108_v62, %v1269_v1  ;;  %v1515_v4 = vpop.f32.mrf.mxu1 }
 0x160   : > { %v5057_v19 = vpop.f32.mrf.mxu0 }
 0x161   : > { %v1270_v54 = vadd.f32 %v5057_v19, %v6399_v37  ;;  %v6553_v61 = vadd.f32 %v1515_v4, %v1267_v28  ;;  %v5109_v39 = vpop.f32.mrf.mxu1  ;;  %v2956_v37 = vld [vmem:[%s5790_s15 + $0xb6] sm:$0xff] }
 0x162   : > { %v1187_v13 = vpop.f32.mrf.mxu0  ;;  %v2983_v14 = vpack.c.bf16 %v2957_v40, %v2956_v37 }
 0x163   : > { %v1268_v30 = vadd.f32 %v1187_v13, %v6404_v46  ;;  %v6556_v48 = vadd.f32 %v5109_v39, %v1270_v54  ;;  %v1518_v22 = vpop.f32.mrf.mxu1  ;;  %v2961_v13 = vld [vmem:[%s5790_s15 + $0xde] sm:$0xff] }
 0x164   : > { %v5060_v16 = vpop.f32.mrf.mxu0  ;;  %5359 = vmatmul.mubr.bf16.gmra.mxu0 %v2981_v49 }
 0x165   : > { %v1273_v34 = vadd.f32 %v5060_v16, %v6414_v58  ;;  %v6559_v45 = vadd.f32 %v1518_v22, %v1268_v30  ;;  %v5112_v0 = vpop.f32.mrf.mxu1  ;;  %5362 = vmatprep.mubr.bf16.mxu0 %v2982_v44  ;;  %v2962_v22 = vld [vmem:[%s5790_s15 + $0xe6] sm:$0xff]  ;;  %v2963_v16 = vld [vmem:[%s5790_s15 + $0xee] sm:$0xff] }
 0x166   : > { %v1200_v57 = vpop.f32.mrf.mxu0  ;;  %v2986_v9 = vpack.c.bf16 %v2963_v16, %v2962_v22 }
 0x167   : > { %v1271_v1 = vadd.f32 %v1200_v57, %v6420_v5  ;;  %v6566_v62 = vadd.f32 %v5112_v0, %v1273_v34  ;;  %v1531_v46 = vpop.f32.mrf.mxu1 }
 0x168   : > { %v5061_v63 = vpop.f32.mrf.mxu0 }
 0x169   : > { %v1274_v58 = vadd.f32 %v5061_v63, %v6422_v11  ;;  %v6569_v27 = vadd.f32 %v1531_v46, %v1271_v1  ;;  %v5113_v10 = vpop.f32.mrf.mxu1  ;;  %v2960_v11 = vld [vmem:[%s5790_s15 + $0xd6] sm:$0xff] }
 0x16a   : > { %v1203_v28 = vpop.f32.mrf.mxu0  ;;  %v2985_v40 = vpack.c.bf16 %v2961_v13, %v2960_v11 }
 0x16b   : > { %v1272_v4 = vadd.f32 %v1203_v28, %v6424_v8  ;;  %v6572_v19 = vadd.f32 %v5113_v10, %v1274_v58  ;;  %v1534_v5 = vpop.f32.mrf.mxu1  ;;  %v938_v58 = vadd.f32 %v6448_v36, %v6444_v24  ;;  %v2964_v28 = vld [vmem:[%s5790_s15 + $0xf6] sm:$0xff]  ;;  %v941_v24 = vadd.f32 %v6456_v23, %v6454_v20 }
 0x16c   : > { %v5064_v49 = vpop.f32.mrf.mxu0  ;;  %5363 = vmatmul.mubr.bf16.gmra.mxu0 %v2983_v14 }
 0x16d   : > { %v1277_v54 = vadd.f32 %v5064_v49, %v6428_v25  ;;  %v6575_v39 = vadd.f32 %v1534_v5, %v1272_v4  ;;  %v5116_v44 = vpop.f32.mrf.mxu1  ;;  %5366 = vmatprep.mubr.bf16.mxu0 %v2984_v31  ;;  %v2965_v4 = vld [vmem:[%s5790_s15 + $0xfe] sm:$0xff]  ;;  %v2966_v49 = vld [vmem:[%s5790_s15 + $0x106] sm:$0xff] }
 0x16e   : > { %v1216_v30 = vpop.f32.mrf.mxu0 }
 0x16f   : > { %v1275_v34 = vadd.f32 %v1216_v30, %v6434_v38  ;;  %v6582_v0 = vadd.f32 %v5116_v44, %v1277_v54  ;;  %v1547_v8 = vpop.f32.mrf.mxu1  ;;  %v2967_v54 = vld [vmem:[%s5790_s15 + $0x10e] sm:$0xff]  ;;  %v2987_v30 = vpack.c.bf16 %v2965_v4, %v2964_v28 }
 0x170   : > { %v5065_v37 = vpop.f32.mrf.mxu0  ;;  %v2988_v16 = vpack.c.bf16 %v2967_v54, %v2966_v49 }
 0x171   : > { %v1278_v57 = vadd.f32 %v5065_v37, %v6436_v50  ;;  %v6585_v25 = vadd.f32 %v1547_v8, %v1275_v34  ;;  %v5117_v6 = vpop.f32.mrf.mxu1 }
 0x172   : > { %v1219_v1 = vpop.f32.mrf.mxu0 }
 0x173   : > { %v1276_v46 = vadd.f32 %v1219_v1, %v6438_v55  ;;  %v6588_v63 = vadd.f32 %v5117_v6, %v1278_v57  ;;  %v1550_v38 = vpop.f32.mrf.mxu1 }
 0x174   : > { %v5068_v14 = vpop.f32.mrf.mxu0  ;;  %5367 = vmatmul.mubr.bf16.gmra.mxu0 %v2985_v40 }
 0x175   : > { %v1281_v50 = vadd.f32 %v5068_v14, %v6442_v2  ;;  %v6593_v10 = vadd.f32 %v1550_v38, %v1276_v46  ;;  %v5120_v31 = vpop.f32.mrf.mxu1  ;;  %5370 = vmatprep.mubr.bf16.mxu0 %v2986_v9  ;;  %v2969_v9 = vld [vmem:[%s5790_s15 + $0x11e] sm:$0xff]  ;;  %v2970_v46 = vld [vmem:[%s5790_s15 + $0x126] sm:$0xff]  ;;  %v2971_v38 = vld [vmem:[%s5790_s15 + $0x12e] sm:$0xff] }
 0x176   : > { %v1232_v5 = vpop.f32.mrf.mxu0  ;;  %v2990_v49 = vpack.c.bf16 %v2971_v38, %v2970_v46 }
 0x177   : > { %v1279_v55 = vadd.f32 %v1232_v5, %v938_v58  ;;  %v6599_v44 = vadd.f32 %v5120_v31, %v1281_v50  ;;  %v1563_v11 = vpop.f32.mrf.mxu1 }
 0x178   : > { %v5069_v13 = vpop.f32.mrf.mxu0 }
 0x179   : > { %v1282_v2 = vadd.f32 %v5069_v13, %v6452_v18  ;;  %v6604_v36 = vadd.f32 %v1563_v11, %v1279_v55  ;;  %v5121_v22 = vpop.f32.mrf.mxu1  ;;  %v2968_v18 = vld [vmem:[%s5790_s15 + $0x116] sm:$0xff] }
 0x17a   : > { %v1235_v34 = vpop.f32.mrf.mxu0  ;;  %v2989_v28 = vpack.c.bf16 %v2969_v9, %v2968_v18 }
 0x17b   : > { %v1280_v8 = vadd.f32 %v1235_v34, %v941_v24  ;;  %v6606_v37 = vadd.f32 %v5121_v22, %v1282_v2  ;;  %v1566_v40 = vpop.f32.mrf.mxu1  ;;  %v2972_v22 = vld [vmem:[%s5790_s15 + $0x136] sm:$0xff] }
 0x17c   : > { %v5140_v57 = vpop.f32.mrf.mxu0  ;;  %5371 = vmatmul.mubr.bf16.gmra.mxu0 %v2987_v30 }
 0x17d   : > { %v6608_v6 = vadd.f32 %v1566_v40, %v1280_v8  ;;  %v1911_v20 = vadd.f32 %v5140_v57, %v6464_v43  ;;  %v5192_v23 = vpop.f32.mrf.mxu1  ;;  %5374 = vmatprep.mubr.bf16.mxu0 %v2988_v16 }
 0x17e   : > { %v1766_v1 = vpop.f32.mrf.mxu0 }
 0x17f   : > { %v1909_v14 = vadd.f32 %v1766_v1, %v6469_v26  ;;  %v6616_v58 = vadd.f32 %v5192_v23, %v1911_v20  ;;  %v2097_v50 = vpop.f32.mrf.mxu1 }
 0x180   : > { %v5141_v31 = vpop.f32.mrf.mxu0 }
 0x181   : > { %v1912_v4 = vadd.f32 %v5141_v31, %v6472_v3  ;;  %v6619_v5 = vadd.f32 %v2097_v50, %v1909_v14  ;;  %v5193_v43 = vpop.f32.mrf.mxu1  ;;  %v2973_v3 = vld [vmem:[%s5790_s15 + $0x13e] sm:$0xff] }
 0x182   : > { %v1769_v54 = vpop.f32.mrf.mxu0  ;;  %v2991_v57 = vpack.c.bf16 %v2973_v3, %v2972_v22 }
 0x183   : > { %v1910_v55 = vadd.f32 %v1769_v54, %v6476_v12  ;;  %v6622_v11 = vadd.f32 %v5193_v43, %v1912_v4  ;;  %v2100_v13 = vpop.f32.mrf.mxu1 }
 0x184   : > { %v5144_v26 = vpop.f32.mrf.mxu0  ;;  %5375 = vmatmul.mubr.bf16.gmra.mxu0 %v2989_v28 }
 0x185   : > { %v1915_v30 = vadd.f32 %v5144_v26, %v6486_v41  ;;  %v6625_v24 = vadd.f32 %v2100_v13, %v1910_v55  ;;  %v5196_v2 = vpop.f32.mrf.mxu1  ;;  %5378 = vmatprep.mubr.bf16.mxu0 %v2990_v49 }
 0x186   : > { %v1782_v16 = vpop.f32.mrf.mxu0 }
 0x187   : > { %v1913_v34 = vadd.f32 %v1782_v16, %v6489_v60  ;;  %v6630_v8 = vadd.f32 %v5196_v2, %v1915_v30  ;;  %v2113_v40 = vpop.f32.mrf.mxu1 }
 0x188   : > { %v5145_v12 = vpop.f32.mrf.mxu0 }
 0x189   : > { %v1916_v20 = vadd.f32 %v5145_v12, %v6492_v7  ;;  %v6633_v23 = vadd.f32 %v2113_v40, %v1913_v34  ;;  %v5197_v18 = vpop.f32.mrf.mxu1 }
 0x18a   : > { %v1785_v41 = vpop.f32.mrf.mxu0 }
 0x18b   : > { %v1914_v9 = vadd.f32 %v1785_v41, %v6495_v15  ;;  %v6636_v1 = vadd.f32 %v5197_v18, %v1916_v20  ;;  %v2116_v46 = vpop.f32.mrf.mxu1 }
 0x18c   : > { %v5148_v38 = vpop.f32.mrf.mxu0  ;;  %5379 = vmatmul.mubr.bf16.gmra.mxu0 %v2991_v57 }
 0x18d   : > { %v1919_v60 = vadd.f32 %v5148_v38, %v6502_v21  ;;  %v6639_v14 = vadd.f32 %v2116_v46, %v1914_v9  ;;  %v5200_v50 = vpop.f32.mrf.mxu1 }
 0x18e   : > { %v1798_v31 = vpop.f32.mrf.mxu0 }
 0x18f   : > { %v1917_v28 = vadd.f32 %v1798_v31, %v6505_v32  ;;  %v6642_v7 = vadd.f32 %v5200_v50, %v1919_v60  ;;  %v2129_v4 = vpop.f32.mrf.mxu1 }
 0x190   : > { %v5149_v43 = vpop.f32.mrf.mxu0 }
 0x191   : > { %v1920_v49 = vadd.f32 %v5149_v43, %v6508_v56  ;;  %v6645_v15 = vadd.f32 %v2129_v4, %v1917_v28  ;;  %v5201_v54 = vpop.f32.mrf.mxu1 }
 0x192   : > { %v1801_v55 = vpop.f32.mrf.mxu0 }
 0x193   : > { %v1918_v13 = vadd.f32 %v1801_v55, %v6511_v51  ;;  %v6648_v26 = vadd.f32 %v5201_v54, %v1920_v49  ;;  %v2132_v21 = vpop.f32.mrf.mxu1 }
 0x194   : > { %v5152_v30 = vpop.f32.mrf.mxu0 }
 0x195   : > { %v1923_v2 = vadd.f32 %v5152_v30, %v6518_v35  ;;  %v6651_v22 = vadd.f32 %v2132_v21, %v1918_v13  ;;  %v5204_v32 = vpop.f32.mrf.mxu1 }
 0x196   : > { %v1814_v3 = vpop.f32.mrf.mxu0 }
 0x197   : > { %v1921_v16 = vadd.f32 %v1814_v3, %v6521_v47  ;;  %v6654_v34 = vadd.f32 %v5204_v32, %v1923_v2  ;;  %v2145_v56 = vpop.f32.mrf.mxu1 }
 0x198   : > { %v5153_v40 = vpop.f32.mrf.mxu0 }
 0x199   : > { %v1924_v12 = vadd.f32 %v5153_v40, %v6524_v52  ;;  %v6657_v57 = vadd.f32 %v2145_v56, %v1921_v16  ;;  %v5205_v51 = vpop.f32.mrf.mxu1 }
 0x19a   : > { %v1817_v20 = vpop.f32.mrf.mxu0 }
 0x19b   : > { %v1922_v18 = vadd.f32 %v1817_v20, %v6527_v33  ;;  %v6660_v41 = vadd.f32 %v5205_v51, %v1924_v12  ;;  %v2148_v35 = vpop.f32.mrf.mxu1 }
 0x19c   : > { %v5156_v9 = vpop.f32.mrf.mxu0 }
 0x19d   : > { %v1927_v46 = vadd.f32 %v5156_v9, %v6534_v53  ;;  %v6663_v38 = vadd.f32 %v2148_v35, %v1922_v18  ;;  %v5208_v47 = vpop.f32.mrf.mxu1  ;;  %v6689_v18 = vld [vmem:[%s8112_s3 + $0x78] sm:$0xff]  ;;  %v8129_v35 = vmov 0.0  }
 0x19e   : > { %v1830_v60 = vpop.f32.mrf.mxu0  ;;  %8205 = vst [vmem:[#allocation2_spill] sm:$0xff] %v6689_v18  ;;  %5382 = vmatprep.subr.mxu1 %v8129_v35  ;;  %5414 = vmatprep.mubr.msk.f32.mxu1 %vm5695_vm0, %v8129_v35 }
 0x19f   : > { %v1925_v50 = vadd.f32 %v1830_v60, %v6537_v59  ;;  %v6666_v31 = vadd.f32 %v5208_v47, %v1927_v46  ;;  %v2161_v52 = vpop.f32.mrf.mxu1  ;;  %5383 = vmatpush3.msra.mxu1 %v6689_v18 }
 0x1a0   : > { %v5157_v28 = vpop.f32.mrf.mxu0  ;;  %5384 = vmatprep.subr.mxu1 %v8129_v35 }
 0x1a1   : > { %v1928_v4 = vadd.f32 %v5157_v28, %v6540_v42  ;;  %v6669_v43 = vadd.f32 %v2161_v52, %v1925_v50  ;;  %v5209_v33 = vpop.f32.mrf.mxu1  ;;  %v6703_v52 = vld [vmem:[%s8112_s3 + $0x70] sm:$0xff] }
 0x1a2   : > { %v1833_v49 = vpop.f32.mrf.mxu0  ;;  %8206 = vst [vmem:[#allocation3_spill] sm:$0xff] %v6703_v52  ;;  %5385 = vmatpush3.msra.mxu1 %v6703_v52 }
 0x1a3   : > { %v1926_v54 = vadd.f32 %v1833_v49, %v6543_v17  ;;  %v6672_v55 = vadd.f32 %v5209_v33, %v1928_v4  ;;  %v2164_v53 = vpop.f32.mrf.mxu1  ;;  %5386 = vmatprep.subr.mxu1 %v8129_v35 }
 0x1a4   : > { %v5160_v13 = vpop.f32.mrf.mxu0 }
 0x1a5   : > { %v1931_v21 = vadd.f32 %v5160_v13, %v6550_v29  ;;  %v6675_v30 = vadd.f32 %v2164_v53, %v1926_v54  ;;  %v5212_v59 = vpop.f32.mrf.mxu1  ;;  %v6716_v13 = vld [vmem:[%s8112_s3 + $0x68] sm:$0xff] }
 0x1a6   : > { %v1846_v2 = vpop.f32.mrf.mxu0  ;;  %8207 = vst [vmem:[#allocation4_spill] sm:$0xff] %v6716_v13  ;;  %5387 = vmatpush3.msra.mxu1 %v6716_v13 }
 0x1a7   : > { %v1929_v32 = vadd.f32 %v1846_v2, %v6553_v61  ;;  %v6678_v3 = vadd.f32 %v5212_v59, %v1931_v21  ;;  %v2177_v42 = vpop.f32.mrf.mxu1  ;;  %5388 = vmatprep.subr.mxu1 %v8129_v35 }
 0x1a8   : > { %v5161_v16 = vpop.f32.mrf.mxu0 }
 0x1a9   : > { %v1932_v56 = vadd.f32 %v5161_v16, %v6556_v48  ;;  %v6681_v40 = vadd.f32 %v2177_v42, %v1929_v32  ;;  %v5213_v17 = vpop.f32.mrf.mxu1 }
 0x1aa   : > { %v1849_v12 = vpop.f32.mrf.mxu0 }
 0x1ab   : > { %v1930_v51 = vadd.f32 %v1849_v12, %v6559_v45  ;;  %v6684_v20 = vadd.f32 %v5213_v17, %v1932_v56  ;;  %v2180_v29 = vpop.f32.mrf.mxu1 }
 0x1ac   : > { %v5164_v61 = vpop.f32.mrf.mxu0 }
 0x1ad   : > { %v1935_v48 = vadd.f32 %v5164_v61, %v6566_v62  ;;  %v6693_v9 = vadd.f32 %v2180_v29, %v1930_v51  ;;  %v5216_v46 = vpop.f32.mrf.mxu1 }
 0x1ae   : > { %v1862_v45 = vpop.f32.mrf.mxu0 }
 0x1af   : > { %v1933_v47 = vadd.f32 %v1862_v45, %v6569_v27  ;;  %v6698_v60 = vadd.f32 %v5216_v46, %v1935_v48  ;;  %v2193_v50 = vpop.f32.mrf.mxu1  ;;  %v6735_v46 = vld [vmem:[%s8112_s3 + $0x60] sm:$0xff] }
 0x1b0   : > { %v5165_v28 = vpop.f32.mrf.mxu0  ;;  %8208 = vst [vmem:[#allocation5_spill] sm:$0xff] %v6735_v46  ;;  %5389 = vmatpush3.msra.mxu1 %v6735_v46 }
 0x1b1   : > { %v1936_v62 = vadd.f32 %v5165_v28, %v6572_v19  ;;  %v6707_v4 = vadd.f32 %v2193_v50, %v1933_v47  ;;  %v5217_v33 = vpop.f32.mrf.mxu1  ;;  %5390 = vmatprep.subr.mxu1 %v8129_v35 }
 0x1b2   : > { %v1865_v49 = vpop.f32.mrf.mxu0 }
 0x1b3   : > { %v1934_v27 = vadd.f32 %v1865_v49, %v6575_v39  ;;  %v6711_v54 = vadd.f32 %v5217_v33, %v1936_v62  ;;  %v2196_v53 = vpop.f32.mrf.mxu1  ;;  %v6748_v33 = vld [vmem:[%s8112_s3 + $0x58] sm:$0xff] }
 0x1b4   : > { %v5168_v21 = vpop.f32.mrf.mxu0  ;;  %8209 = vst [vmem:[#allocation6_spill] sm:$0xff] %v6748_v33  ;;  %5391 = vmatpush3.msra.mxu1 %v6748_v33 }
 0x1b5   : > { %v1939_v19 = vadd.f32 %v5168_v21, %v6582_v0  ;;  %v6720_v59 = vadd.f32 %v2196_v53, %v1934_v27  ;;  %v5220_v2 = vpop.f32.mrf.mxu1  ;;  %5392 = vmatprep.subr.mxu1 %v8129_v35 }
 0x1b6   : > { %v1878_v32 = vpop.f32.mrf.mxu0 }
 0x1b7   : > { %v1937_v39 = vadd.f32 %v1878_v32, %v6585_v25  ;;  %v6724_v42 = vadd.f32 %v5220_v2, %v1939_v19  ;;  %v2209_v16 = vpop.f32.mrf.mxu1  ;;  %v6761_v32 = vld [vmem:[%s8112_s3 + $0x50] sm:$0xff] }
 0x1b8   : > { %v5169_v56 = vpop.f32.mrf.mxu0  ;;  %8210 = vst [vmem:[#allocation7_spill] sm:$0xff] %v6761_v32  ;;  %5393 = vmatpush3.msra.mxu1 %v6761_v32  ;;  %v6939_v32 = vpop.permute.xlu1 %3360 }
 0x1b9   : > { %v1940_v17 = vadd.f32 %v5169_v56, %v6588_v63  ;;  %v6727_v12 = vadd.f32 %v2209_v16, %v1937_v39  ;;  %v5221_v51 = vpop.f32.mrf.mxu1  ;;  %5394 = vmatprep.subr.mxu1 %v8129_v35  ;;  %8224 = vst [vmem:[#allocation21_spill] sm:$0xff] %v6939_v32 }
 0x1ba   : > { %v1881_v29 = vpop.f32.mrf.mxu0 }
 0x1bb   : > { %v1938_v0 = vadd.f32 %v1881_v29, %v6593_v10  ;;  %v6730_v61 = vadd.f32 %v5221_v51, %v1940_v17  ;;  %v2212_v48 = vpop.f32.mrf.mxu1  ;;  %v6780_v29 = vld [vmem:[%s8112_s3 + $0x48] sm:$0xff] }
 0x1bc   : > { %v5172_v25 = vpop.f32.mrf.mxu0  ;;  %8211 = vst [vmem:[#allocation8_spill] sm:$0xff] %v6780_v29  ;;  %5395 = vmatpush3.msra.mxu1 %v6780_v29 }
 0x1bd   : > { %v1943_v45 = vadd.f32 %v5172_v25, %v6599_v44  ;;  %v6739_v63 = vadd.f32 %v2212_v48, %v1938_v0  ;;  %v5224_v47 = vpop.f32.mrf.mxu1  ;;  %5396 = vmatprep.subr.mxu1 %v8129_v35 }
 0x1be   : > { %v1894_v50 = vpop.f32.mrf.mxu0 }
 0x1bf   : > { %v1941_v10 = vadd.f32 %v1894_v50, %v6604_v36  ;;  %v6743_v28 = vadd.f32 %v5224_v47, %v1943_v45  ;;  %v2225_v62 = vpop.f32.mrf.mxu1  ;;  %v6795_v45 = vld [vmem:[%s8112_s3 + $0x40] sm:$0xff] }
 0x1c0   : > { %v5173_v49 = vpop.f32.mrf.mxu0  ;;  %8212 = vst [vmem:[#allocation9_spill] sm:$0xff] %v6795_v45  ;;  %5397 = vmatpush3.msra.mxu1 %v6795_v45 }
 0x1c1   : > { %v1944_v44 = vadd.f32 %v5173_v49, %v6606_v37  ;;  %v6752_v27 = vadd.f32 %v2225_v62, %v1941_v10  ;;  %v5225_v53 = vpop.f32.mrf.mxu1  ;;  %5398 = vmatprep.subr.mxu1 %v8129_v35 }
 0x1c2   : > { %v1897_v21 = vpop.f32.mrf.mxu0 }
 0x1c3   : > { %v1942_v36 = vadd.f32 %v1897_v21, %v6608_v6  ;;  %v6756_v19 = vadd.f32 %v5225_v53, %v1944_v44  ;;  %v2228_v2 = vpop.f32.mrf.mxu1 }
 0x1c4   : > { %v5244_v39 = vpop.f32.mrf.mxu0 }
 0x1c5   : > { %v6764_v37 = vadd.f32 %v2228_v2, %v1942_v36  ;;  %v6767_v16 = vadd.f32 %v5244_v39, %v6616_v58  ;;  %v6769_v56 = vpop.f32.mrf.mxu1 }
 0x1c6   : > { %v2428_v6 = vpop.f32.mrf.mxu0 }
 0x1c7   : > { %v6773_v17 = vadd.f32 %v2428_v6, %v6619_v5  ;;  %v6775_v51 = vpop.f32.mrf.mxu1 }
 0x1c8   : > { %v5245_v0 = vpop.f32.mrf.mxu0 }
 0x1c9   : > { %v6784_v58 = vadd.f32 %v5245_v0, %v6622_v11  ;;  %v6786_v48 = vpop.f32.mrf.mxu1 }
 0x1ca   : > { %v2431_v25 = vpop.f32.mrf.mxu0 }
 0x1cb   : > { %v6790_v5 = vadd.f32 %v2431_v25, %v6625_v24  ;;  %v6801_v11 = vpop.f32.mrf.mxu1  ;;  %v6810_v24 = vld [vmem:[%s8112_s3 + $0x38] sm:$0xff] }
 0x1cc   : > { %v5248_v47 = vpop.f32.mrf.mxu0  ;;  %8213 = vst [vmem:[#allocation10_spill] sm:$0xff] %v6810_v24  ;;  %5399 = vmatpush3.msra.mxu1 %v6810_v24 }
 0x1cd   : > { %v6799_v50 = vadd.f32 %v5248_v47, %v6630_v8  ;;  %v6813_v44 = vpop.f32.mrf.mxu1  ;;  %5400 = vmatprep.subr.mxu1 %v8129_v35 }
 0x1ce   : > { %v2444_v10 = vpop.f32.mrf.mxu0 }
 0x1cf   : > { %v6805_v62 = vadd.f32 %v2444_v10, %v6633_v23  ;;  %v6825_v23 = vld [vmem:[%s8112_s3 + $0x30] sm:$0xff]  ;;  %v6828_v2 = vpop.f32.mrf.mxu1 }
 0x1d0   : > { %v5249_v49 = vpop.f32.mrf.mxu0  ;;  %8214 = vst [vmem:[#allocation11_spill] sm:$0xff] %v6825_v23  ;;  %5401 = vmatpush3.msra.mxu1 %v6825_v23 }
 0x1d1   : > { %v6816_v8 = vadd.f32 %v5249_v49, %v6636_v1  ;;  %5402 = vmatprep.subr.mxu1 %v8129_v35  ;;  %v6843_v25 = vpop.f32.mrf.mxu1 }
 0x1d2   : > { %v2447_v53 = vpop.f32.mrf.mxu0 }
 0x1d3   : > { %v6820_v21 = vadd.f32 %v2447_v53, %v6639_v14  ;;  %v6840_v14 = vld [vmem:[%s8112_s3 + $0x28] sm:$0xff]  ;;  %v6852_v49 = vpop.f32.mrf.mxu1 }
 0x1d4   : > { %v5252_v36 = vpop.f32.mrf.mxu0  ;;  %8215 = vst [vmem:[#allocation12_spill] sm:$0xff] %v6840_v14  ;;  %5403 = vmatpush3.msra.mxu1 %v6840_v14 }
 0x1d5   : > { %v6831_v39 = vadd.f32 %v5252_v36, %v6642_v7  ;;  %5404 = vmatprep.subr.mxu1 %v8129_v35  ;;  %v6860_v23 = vpop.f32.mrf.mxu1 }
 0x1d6   : > { %v2460_v1 = vpop.f32.mrf.mxu0 }
 0x1d7   : > { %v6835_v6 = vadd.f32 %v2460_v1, %v6645_v15 }
 0x1d8   : > { %v5253_v0 = vpop.f32.mrf.mxu0 }
 0x1d9   : > { %v6846_v47 = vadd.f32 %v5253_v0, %v6648_v26 }
 0x1da   : > { %v2463_v7 = vpop.f32.mrf.mxu0 }
 0x1db   : > { %v6850_v10 = vadd.f32 %v2463_v7, %v6651_v22  ;;  %v6868_v22 = vld [vmem:[%s8112_s3 + $0x20] sm:$0xff] }
 0x1dc   : > { %v5256_v15 = vpop.f32.mrf.mxu0  ;;  %8216 = vst [vmem:[#allocation13_spill] sm:$0xff] %v6868_v22  ;;  %5405 = vmatpush3.msra.mxu1 %v6868_v22 }
 0x1dd   : > { %v6855_v53 = vadd.f32 %v5256_v15, %v6654_v34  ;;  %5406 = vmatprep.subr.mxu1 %v8129_v35 }
 0x1de   : > { %v2476_v36 = vpop.f32.mrf.mxu0 }
 0x1df   : > { %v6858_v1 = vadd.f32 %v2476_v36, %v6657_v57  ;;  %v6878_v57 = vld [vmem:[%s8112_s3 + $0x18] sm:$0xff] }
 0x1e0   : > { %v5257_v14 = vpop.f32.mrf.mxu0  ;;  %8217 = vst [vmem:[#allocation14_spill] sm:$0xff] %v6878_v57  ;;  %5407 = vmatpush3.msra.mxu1 %v6878_v57 }
 0x1e1   : > { %v6863_v26 = vadd.f32 %v5257_v14, %v6660_v41  ;;  %v6880_v41 = vpop.f32.mrf.mxu1  ;;  %5408 = vmatprep.subr.mxu1 %v8129_v35 }
 0x1e2   : > { %v2479_v0 = vpop.f32.mrf.mxu0 }
 0x1e3   : > { %v6871_v7 = vadd.f32 %v2479_v0, %v6663_v38  ;;  %v6890_v38 = vld [vmem:[%s8112_s3 + $0x10] sm:$0xff] }
 0x1e4   : > { %v5260_v34 = vpop.f32.mrf.mxu0  ;;  %8218 = vst [vmem:[#allocation15_spill] sm:$0xff] %v6890_v38  ;;  %5409 = vmatpush3.msra.mxu1 %v6890_v38 }
 0x1e5   : > { %v6883_v14 = vadd.f32 %v5260_v34, %v6666_v31  ;;  %5410 = vmatprep.subr.mxu1 %v8129_v35  ;;  %v6900_v31 = vld [vmem:[%s8112_s3 + $0x8] sm:$0xff]  ;;  %v6902_v34 = vpop.f32.mrf.mxu1 }
 0x1e6   : > { %v2492_v15 = vpop.f32.mrf.mxu0  ;;  %8219 = vst [vmem:[#allocation16_spill] sm:$0xff] %v6900_v31  ;;  %5411 = vmatpush3.msra.mxu1 %v6900_v31 }
 0x1e7   : > { %v6893_v36 = vadd.f32 %v2492_v15, %v6669_v43  ;;  %v6911_v43 = vld [vmem:[%s8112_s3] sm:$0xff]  ;;  %5412 = vmatprep.subr.mxu1 %v8129_v35 }
 0x1e8   : > { %v5261_v0 = vpop.f32.mrf.mxu0  ;;  %8220 = vst [vmem:[#allocation17_spill] sm:$0xff] %v6911_v43  ;;  %5413 = vmatpush3.msra.mxu1 %v6911_v43 }
 0x1e9   : > { %v6905_v57 = vadd.f32 %v5261_v0, %v6672_v55  ;;  %5417 = vmatprep.subr.mxu1 %v8129_v35  ;;  %v6921_v0 = vpop.f32.mrf.mxu1 }
 0x1ea   : > { %v2495_v15 = vpop.f32.mrf.mxu0 }
 0x1eb   : > { %v6917_v38 = vadd.f32 %v2495_v15, %v6675_v30  ;;  %v6929_v29 = vpop.f32.mrf.mxu1  ;;  %v6934_v15 = vpop.permute.xlu0 %3350 }
 0x1ec   : > { %v5264_v55 = vpop.f32.mrf.mxu0  ;;  %8222 = vst [vmem:[#allocation19_spill] sm:$0xff] %v6934_v15 }
 0x1ed   : > { %v6924_v31 = vadd.f32 %v5264_v55, %v6678_v3  ;;  %v6941_v55 = vpop.f32.mrf.mxu1 }
 0x1ee   : > { %v2508_v22 = vpop.f32.mrf.mxu0 }
 0x1ef   : > { %v6927_v24 = vadd.f32 %v2508_v22, %v6681_v40  ;;  %v6951_v46 = vpop.f32.mrf.mxu1 }
 0x1f0   : > { %v5265_v45 = vpop.f32.mrf.mxu0 }
 0x1f1   : > { %v6932_v30 = vadd.f32 %v5265_v45, %v6684_v20  ;;  %v6949_v20 = vpop.permute.xlu0 %3355 }
 0x1f2   : > { %v2511_v43 = vpop.f32.mrf.mxu0  ;;  %8227 = vst [vmem:[#allocation24_spill] sm:$0xff] %v6949_v20 }
 0x1f3   : > { %8221 = vst [vmem:[#allocation18_spill] sm:$0xff] %v6932_v30  ;;  %v6937_v35 = vadd.f32 %v2511_v43, %v6693_v9  ;;  %v6956_v43 = vpop.permute.xlu1 %3365 }
 0x1f4   : > { %v5268_v3 = vpop.f32.mrf.mxu0  ;;  %8229 = vst [vmem:[#allocation26_spill] sm:$0xff] %v6956_v43 }
 0x1f5   : > { %8223 = vst [vmem:[#allocation20_spill] sm:$0xff] %v6937_v35  ;;  %v6944_v40 = vadd.f32 %v5268_v3, %v6698_v60  ;;  %v6961_v3 = vpop.f32.mrf.mxu1 }
 0x1f6   : > { %v2524_v22 = vpop.f32.mrf.mxu0 }
 0x1f7   : > { %8225 = vst [vmem:[#allocation22_spill] sm:$0xff] %v6944_v40  ;;  %v6947_v33 = vadd.f32 %v2524_v22, %v6707_v4  ;;  %v6966_v22 = vpop.permute.xlu0 %3370 }
 0x1f8   : > { %v5269_v45 = vpop.f32.mrf.mxu0  ;;  %8232 = vst [vmem:[#allocation29_spill] sm:$0xff] %v6966_v22 }
 0x1f9   : > { %8226 = vst [vmem:[#allocation23_spill] sm:$0xff] %v6947_v33  ;;  %v6954_v9 = vadd.f32 %v5269_v45, %v6711_v54  ;;  %v6971_v54 = vpop.permute.xlu1 %3375 }
 0x1fa   : > { %v2527_v13 = vpop.f32.mrf.mxu0 }
 0x1fb   : > { %8228 = vst [vmem:[#allocation25_spill] sm:$0xff] %v6954_v9  ;;  %v6959_v52 = vadd.f32 %v2527_v13, %v6720_v59  ;;  %v6973_v9 = vpop.f32.mrf.mxu1 }
 0x1fc   : > { %v5272_v60 = vpop.f32.mrf.mxu0 }
 0x1fd   : > { %8230 = vst [vmem:[#allocation27_spill] sm:$0xff] %v6959_v52  ;;  %v6964_v4 = vadd.f32 %v5272_v60, %v6724_v42  ;;  %v6981_v42 = vpop.permute.xlu0 %3380 }
 0x1fe   : > { %v2540_v18 = vpop.f32.mrf.mxu0 }
 0x1ff   : > { %8231 = vst [vmem:[#allocation28_spill] sm:$0xff] %v6964_v4  ;;  %v6969_v40 = vadd.f32 %v2540_v18, %v6727_v12  ;;  %v6983_v4 = vpop.f32.mrf.mxu1  ;;  %v6988_v12 = vpop.permute.xlu1 %3385 }
 0x200   : > { %v5273_v45 = vpop.f32.mrf.mxu0  ;;  %8237 = vst [vmem:[#allocation34_spill] sm:$0xff] %v6988_v12 }
 0x201   : > { %8233 = vst [vmem:[#allocation30_spill] sm:$0xff] %v6969_v40  ;;  %v6976_v13 = vadd.f32 %v5273_v45, %v6730_v61  ;;  %v6993_v45 = vpop.f32.mrf.mxu1 }
 0x202   : > { %v2543_v59 = vpop.f32.mrf.mxu0 }
 0x203   : > { %8234 = vst [vmem:[#allocation31_spill] sm:$0xff] %v6976_v13  ;;  %v6979_v52 = vadd.f32 %v2543_v59, %v6739_v63  ;;  %v6998_v59 = vpop.permute.xlu0 %3390 }
 0x204   : > { %v5276_v60 = vpop.f32.mrf.mxu0 }
 0x205   : > { %8235 = vst [vmem:[#allocation32_spill] sm:$0xff] %v6979_v52  ;;  %v6986_v18 = vadd.f32 %v5276_v60, %v6743_v28  ;;  %v7003_v28 = vpop.permute.xlu1 %3395 }
 0x206   : > { %v2556_v40 = vpop.f32.mrf.mxu0  ;;  %8241 = vst [vmem:[#allocation38_spill] sm:$0xff] %v7003_v28 }
 0x207   : > { %8236 = vst [vmem:[#allocation33_spill] sm:$0xff] %v6986_v18  ;;  %v6991_v33 = vadd.f32 %v2556_v40, %v6752_v27  ;;  %v2902_v18 = vadd.f32 %v6775_v51, %v6773_v17  ;;  %v7007_v27 = vpop.f32.mrf.mxu1  ;;  %v7024_v51 = vld [vmem:[%s8111_s2] ss:$0 sm:$0xff] }
 0x208   : > { %v5277_v61 = vpop.f32.mrf.mxu0 }
 0x209   : > { %8238 = vst [vmem:[#allocation35_spill] sm:$0xff] %v6991_v33  ;;  %v6996_v63 = vadd.f32 %v5277_v61, %v6756_v19  ;;  %v2904_v33 = vadd.f32 %v6769_v56, %v6767_v16  ;;  %v7011_v61 = vpop.permute.xlu0 %3400  ;;  %v7019_v17 = vpop.permute.xlu1 %3405 }
 0x20a   : > { %v2559_v52 = vpop.f32.mrf.mxu0  ;;  %8242 = vst [vmem:[#allocation39_spill] sm:$0xff] %v7011_v61  ;;  %8243 = vst [vmem:[#allocation40_spill] sm:$0xff] %v7019_v17 }
 0x20b   : > { %8239 = vst [vmem:[#allocation36_spill] sm:$0xff] %v6996_v63  ;;  %v7001_v13 = vadd.f32 %v2559_v52, %v6764_v37  ;;  %v2905_v52 = vadd.f32 %v6786_v48, %v6784_v58  ;;  %v2903_v37 = vadd.f32 %v6801_v11, %v6790_v5  ;;  %v2906_v48 = vadd.f32 %v6828_v2, %v6805_v62 }
 0x20c   : > { %v5348_v60 = vpop.f32.mrf.mxu0  ;;  %v2909_v2 = vadd.f32 %v6843_v25, %v6816_v8 }
 0x20d   : > { %8240 = vst [vmem:[#allocation37_spill] sm:$0xff] %v7001_v13  ;;  %v7017_v13 = vpop.f32.mrf.mxu1  ;;  %v3235_v35 = vadd.f32 %v5348_v60, %v2904_v33  ;;  %v2908_v60 = vadd.f32 %v6813_v44, %v6799_v50  ;;  %v7041_v30 = vpop.permute.xlu0 %3410 }
 0x20e   : > { %v3090_v40 = vpop.f32.mrf.mxu0  ;;  %8246 = vst [vmem:[#allocation43_spill] sm:$0xff] %v7041_v30  ;;  %v7054_v50 = vpop.permute.xlu1 %3415 }
 0x20f   : > { %v3233_v19 = vadd.f32 %v3090_v40, %v2902_v18  ;;  %v7031_v5 = vpop.f32.mrf.mxu1  ;;  %v7034_v33 = vadd.f32 %v7024_v51, %v3235_v35  ;;  %8247 = vst [vmem:[#allocation44_spill] sm:$0xff] %v7054_v50 }
 0x210   : > { %v5349_v63 = vpop.f32.mrf.mxu0 }
 0x211   : > { %v7027_v56 = vadd.f32 %v7024_v51, %v3233_v19  ;;  %v3236_v18 = vadd.f32 %v5349_v63, %v2905_v52 }
 0x212   : > { %v3093_v16 = vpop.f32.mrf.mxu0 }
 0x213   : > { %8244 = vst [vmem:[#allocation41_spill] sm:$0xff] %v7027_v56  ;;  %v3234_v40 = vadd.f32 %v3093_v16, %v2903_v37  ;;  %v3528_v63 = vmul.f32 %v6934_v15, %v7027_v56  ;;  %v7046_v52 = vadd.f32 %v7024_v51, %v3236_v18  ;;  %v2907_v37 = vadd.f32 %v6852_v49, %v6820_v21  ;;  %v7056_v16 = vpop.f32.mrf.mxu1 }
 0x214   : > { %v5352_v58 = vpop.f32.mrf.mxu0  ;;  %8248 = vst [vmem:[#allocation45_spill] sm:$0xff] %v7056_v16  ;;  %v2910_v49 = vadd.f32 %v6880_v41, %v6835_v6 }
 0x215   : > { %v7037_v11 = vadd.f32 %v7024_v51, %v3234_v40  ;;  %v3530_v40 = vmul.f32 %v6939_v32, %v7034_v33  ;;  %v3239_v15 = vadd.f32 %v5352_v58, %v2908_v60  ;;  %v3531_v8 = vmul.f32 %v6956_v43, %v7046_v52  ;;  %v7069_v16 = vpop.f32.mrf.mxu1 }
 0x216   : > { %v3106_v19 = vpop.f32.mrf.mxu0 }
 0x217   : > { %8245 = vst [vmem:[#allocation42_spill] sm:$0xff] %v7037_v11  ;;  %v3529_v62 = vmul.f32 %v6949_v20, %v7037_v11  ;;  %v3237_v35 = vadd.f32 %v3106_v19, %v2906_v48  ;;  %v7067_v20 = vpop.permute.xlu0 %3420  ;;  %v7072_v58 = vadd.f32 %v7024_v51, %v3239_v15 }
 0x218   : > { %v5353_v44 = vpop.f32.mrf.mxu0  ;;  %8249 = vst [vmem:[#allocation46_spill] sm:$0xff] %v7067_v20 }
 0x219   : > { %v3564_v18 = vadd.f32 %v3529_v62, %v3528_v63  ;;  %v7061_v56 = vadd.f32 %v7024_v51, %v3237_v35  ;;  %v3240_v19 = vadd.f32 %v5353_v44, %v2909_v2  ;;  %v2912_v35 = vadd.f32 %v6860_v23, %v6831_v39  ;;  %v7081_v2 = vpop.permute.xlu1 %3425 }
 0x21a   : > { %v3109_v48 = vpop.f32.mrf.mxu0  ;;  %8250 = vst [vmem:[#allocation47_spill] sm:$0xff] %v7081_v2  ;;  %v3534_v23 = vmul.f32 %v6981_v42, %v7072_v58 }
 0x21b   : > { %v3565_v25 = vadd.f32 %v3564_v18, %v3530_v40  ;;  %v3238_v21 = vadd.f32 %v3109_v48, %v2907_v37  ;;  %v3532_v60 = vmul.f32 %v6966_v22, %v7061_v56  ;;  %v7084_v37 = vadd.f32 %v7024_v51, %v3240_v19 }
 0x21c   : > { %v5356_v11 = vpop.f32.mrf.mxu0  ;;  %v2913_v40 = vadd.f32 %v6902_v34, %v6846_v47  ;;  %v2911_v18 = vadd.f32 %v6921_v0, %v6850_v10  ;;  %v2914_v0 = vadd.f32 %v6941_v55, %v6858_v1 }
 0x21d   : > { %v3566_v63 = vadd.f32 %v3565_v25, %v3531_v8  ;;  %v7077_v62 = vadd.f32 %v7024_v51, %v3238_v21  ;;  %v7092_v8 = vpop.f32.mrf.mxu1  ;;  %v3243_v25 = vadd.f32 %v5356_v11, %v2912_v35  ;;  %v7099_v21 = vpop.permute.xlu0 %3430  ;;  %v3535_v47 = vmul.f32 %v6988_v12, %v7084_v37 }
 0x21e   : > { %v3122_v6 = vpop.f32.mrf.mxu0  ;;  %8251 = vst [vmem:[#allocation48_spill] sm:$0xff] %v7099_v21 }
 0x21f   : > { %v3567_v41 = vadd.f32 %v3566_v63, %v3532_v60  ;;  %v3533_v15 = vmul.f32 %v6971_v54, %v7077_v62  ;;  %v3241_v44 = vadd.f32 %v3122_v6, %v2910_v49  ;;  %v7105_v63 = vpop.permute.xlu1 %3435  ;;  %v7110_v11 = vadd.f32 %v7024_v51, %v3243_v25 }
 0x220   : > { %v5357_v48 = vpop.f32.mrf.mxu0  ;;  %8252 = vst [vmem:[#allocation49_spill] sm:$0xff] %v7105_v63  ;;  %v2915_v25 = vadd.f32 %v6961_v3, %v6871_v7 }
 0x221   : > { %v3568_v39 = vadd.f32 %v3567_v41, %v3533_v15  ;;  %v7097_v19 = vadd.f32 %v7024_v51, %v3241_v44  ;;  %v3244_v60 = vadd.f32 %v5357_v48, %v2913_v40  ;;  %v7107_v41 = vpop.f32.mrf.mxu1  ;;  %v2916_v40 = vadd.f32 %v6929_v29, %v6855_v53 }
 0x222   : > { %v3125_v49 = vpop.f32.mrf.mxu0  ;;  %v3538_v29 = vmul.f32 %v7011_v61, %v7110_v11 }
 0x223   : > { %v3569_v34 = vadd.f32 %v3568_v39, %v3534_v23  ;;  %v3242_v10 = vadd.f32 %v3125_v49, %v2911_v18  ;;  %v3536_v35 = vmul.f32 %v6998_v59, %v7097_v19  ;;  %v7120_v55 = vadd.f32 %v7024_v51, %v3244_v60  ;;  %v7128_v49 = vpop.permute.xlu0 %3440 }
 0x224   : > { %v5360_v6 = vpop.f32.mrf.mxu0  ;;  %v2917_v39 = vadd.f32 %v6951_v46, %v6863_v26  ;;  %8253 = vst [vmem:[#allocation50_spill] sm:$0xff] %v7128_v49 }
 0x225   : > { %v3570_v15 = vadd.f32 %v3569_v34, %v3535_v47  ;;  %v7115_v44 = vadd.f32 %v7024_v51, %v3242_v10  ;;  %v7130_v34 = vpop.f32.mrf.mxu1  ;;  %v3247_v60 = vadd.f32 %v5360_v6, %v2916_v40  ;;  %v3539_v46 = vmul.f32 %v7019_v17, %v7120_v55 }
 0x226   : > { %v3138_v18 = vpop.f32.mrf.mxu0 }
 0x227   : > { %v3571_v1 = vadd.f32 %v3570_v15, %v3536_v35  ;;  %v3537_v48 = vmul.f32 %v7003_v28, %v7115_v44  ;;  %v3245_v23 = vadd.f32 %v3138_v18, %v2914_v0  ;;  %v7137_v0 = vpop.permute.xlu1 %3445  ;;  %v2918_v15 = vadd.f32 %v6983_v4, %v6893_v36  ;;  %v7143_v28 = vpop.f32.mrf.mxu1 }
 0x228   : > { %v5361_v47 = vpop.f32.mrf.mxu0  ;;  %8254 = vst [vmem:[#allocation51_spill] sm:$0xff] %v7137_v0  ;;  %v7146_v6 = vadd.f32 %v7024_v51, %v3247_v60  ;;  %v2919_v60 = vadd.f32 %v7007_v27, %v6917_v38  ;;  %v2922_v27 = vadd.f32 %v7031_v5, %v6927_v24 }
 0x229   : > { %v3572_v53 = vadd.f32 %v3571_v1, %v3537_v48  ;;  %v7135_v10 = vadd.f32 %v7024_v51, %v3245_v23  ;;  %v3248_v7 = vadd.f32 %v5361_v47, %v2917_v39  ;;  %v2920_v23 = vadd.f32 %v6973_v9, %v6883_v14  ;;  %v7155_v39 = vpop.permute.xlu0 %3450  ;;  %v7168_v9 = vpop.f32.mrf.mxu1 }
 0x22a   : > { %v3141_v35 = vpop.f32.mrf.mxu0  ;;  %8255 = vst [vmem:[#allocation52_spill] sm:$0xff] %v7155_v39 }
 0x22b   : > { %v3573_v26 = vadd.f32 %v3572_v53, %v3538_v29  ;;  %v3246_v3 = vadd.f32 %v3141_v35, %v2915_v25  ;;  %v3540_v40 = vmul.f32 %v7041_v30, %v7135_v10  ;;  %v7158_v4 = vadd.f32 %v7024_v51, %v3248_v7  ;;  %v7166_v35 = vpop.permute.xlu1 %3455 }
 0x22c   : > { %v5364_v18 = vpop.f32.mrf.mxu0  ;;  %v2921_v53 = vadd.f32 %v6993_v45, %v6905_v57  ;;  %8256 = vst [vmem:[#allocation53_spill] sm:$0xff] %v7166_v35 }
 0x22d   : > { %v3574_v1 = vadd.f32 %v3573_v26, %v3539_v46  ;;  %v7151_v48 = vadd.f32 %v7024_v51, %v3246_v3  ;;  %v3542_v46 = vmul.f32 %v7067_v20, %v7146_v6  ;;  %v3251_v7 = vadd.f32 %v5364_v18, %v2920_v23 }
 0x22e   : > { %v3154_v25 = vpop.f32.mrf.mxu0  ;;  %v3543_v57 = vmul.f32 %v7081_v2, %v7158_v4 }
 0x22f   : > { %v3575_v36 = vadd.f32 %v3574_v1, %v3540_v40  ;;  %v3541_v47 = vmul.f32 %v7054_v50, %v7151_v48  ;;  %v3249_v29 = vadd.f32 %v3154_v25, %v2918_v15  ;;  %v7179_v1 = vpop.permute.xlu0 %3460  ;;  %v2871_v50 = vpop.f32.mrf.mxu1 }
 0x230   : > { %v5365_v14 = vpop.f32.mrf.mxu0  ;;  %8257 = vst [vmem:[#allocation54_spill] sm:$0xff] %v7179_v1 }
 0x231   : > { %v3576_v26 = vadd.f32 %v3575_v36, %v3541_v47  ;;  %v7173_v3 = vadd.f32 %v7024_v51, %v3249_v29  ;;  %v3252_v40 = vadd.f32 %v5365_v14, %v2921_v53  ;;  %v7182_v36 = vadd.f32 %v7024_v51, %v3251_v7  ;;  %v7191_v53 = vpop.permute.xlu1 %3465  ;;  %v8260_v7 = vld [vmem:[#allocation45_spill] sm:$0xff] }
 0x232   : > { %v3157_v15 = vpop.f32.mrf.mxu0  ;;  %v2924_v29 = vadd.f32 %v7017_v13, %v6924_v31  ;;  %8258 = vst [vmem:[#allocation55_spill] sm:$0xff] %v7191_v53 }
 0x233   : > { %v3577_v45 = vadd.f32 %v3576_v26, %v3542_v46  ;;  %v3250_v38 = vadd.f32 %v3157_v15, %v2919_v60  ;;  %v3544_v18 = vmul.f32 %v7099_v21, %v7173_v3  ;;  %v7194_v60 = vadd.f32 %v7024_v51, %v3252_v40  ;;  %v8259_v26 = vld [vmem:[#allocation18_spill] sm:$0xff]  ;;  %v5325_v21 = vpop.f32.mrf.mxu1 }
 0x234   : > { %v5368_v25 = vpop.f32.mrf.mxu0  ;;  %v2925_v15 = vadd.f32 %v8260_v7, %v8259_v26  ;;  %v3546_v31 = vmul.f32 %v7128_v49, %v7182_v36 }
 0x235   : > { %v3578_v23 = vadd.f32 %v3577_v45, %v3543_v57  ;;  %v7187_v47 = vadd.f32 %v7024_v51, %v3250_v38  ;;  %v8261_v57 = vld [vmem:[#allocation20_spill] sm:$0xff]  ;;  %v7213_v2 = vpop.permute.xlu1 %3475 }
 0x236   : > { %v3170_v24 = vpop.f32.mrf.mxu0  ;;  %v2923_v45 = vadd.f32 %v7069_v16, %v8261_v57  ;;  %v8264_v16 = vld [vmem:[#allocation23_spill] sm:$0xff]  ;;  %8265 = vst [vmem:[#allocation20_spill] sm:$0xff] %v7213_v2 }
 0x237   : > { %v3579_v5 = vadd.f32 %v3578_v23, %v3544_v18  ;;  %v3545_v14 = vmul.f32 %v7105_v63, %v7187_v47  ;;  %v3253_v46 = vadd.f32 %v3170_v24, %v2922_v27  ;;  %v3255_v18 = vadd.f32 %v5368_v25, %v2924_v29  ;;  %v7207_v23 = vpop.permute.xlu0 %3470 }
 0x238   : > { %v5369_v38 = vpop.f32.mrf.mxu0  ;;  %8263 = vst [vmem:[#allocation45_spill] sm:$0xff] %v7207_v23  ;;  %v3547_v27 = vmul.f32 %v7137_v0, %v7194_v60  ;;  %v2926_v57 = vadd.f32 %v7107_v41, %v8264_v16 }
 0x239   : > { %v3580_v13 = vadd.f32 %v3579_v5, %v3545_v14  ;;  %v7205_v40 = vadd.f32 %v7024_v51, %v3253_v46  ;;  %v3256_v26 = vadd.f32 %v5369_v38, %v2925_v15  ;;  %v2874_v5 = vpop.f32.mrf.mxu1  ;;  %v7216_v25 = vadd.f32 %v7024_v51, %v3255_v18  ;;  %v8268_v18 = vld [vmem:[#allocation25_spill] sm:$0xff] }
 0x23a   : > { %v3173_v63 = vpop.f32.mrf.mxu0  ;;  %v2929_v16 = vadd.f32 %v7130_v34, %v8268_v18  ;;  %v8272_v18 = vld [vmem:[#allocation30_spill] sm:$0xff] }
 0x23b   : > { %8262 = vst [vmem:[#allocation18_spill] sm:$0xff] %v7205_v40  ;;  %v3581_v24 = vadd.f32 %v3580_v13, %v3546_v31  ;;  %v3254_v7 = vadd.f32 %v3173_v63, %v2923_v45  ;;  %v3548_v29 = vmul.f32 %v7155_v39, %v7205_v40  ;;  %v8267_v31 = vld [vmem:[#allocation22_spill] sm:$0xff]  ;;  %v7226_v41 = vadd.f32 %v7024_v51, %v3256_v26  ;;  %v8269_v39 = vld [vmem:[#allocation27_spill] sm:$0xff]  ;;  %v5328_v0 = vpop.f32.mrf.mxu1 }
 0x23c   : > { %v5372_v49 = vpop.f32.mrf.mxu0  ;;  %v2928_v63 = vadd.f32 %v7092_v8, %v8267_v31  ;;  %v3550_v8 = vmul.f32 %v7179_v1, %v7216_v25  ;;  %v7241_v31 = vpop.permute.xlu1 %3485 }
 0x23d   : > { %v3582_v14 = vadd.f32 %v3581_v24, %v3547_v27  ;;  %v7221_v46 = vadd.f32 %v7024_v51, %v3254_v7  ;;  %v2927_v27 = vadd.f32 %v7143_v28, %v8269_v39  ;;  %v7234_v24 = vpop.permute.xlu0 %3480  ;;  %8271 = vst [vmem:[#allocation25_spill] sm:$0xff] %v7241_v31  ;;  %v3551_v34 = vmul.f32 %v7191_v53, %v7226_v41  ;;  %v2887_v40 = vpop.f32.mrf.mxu1 }
 0x23e   : > { %v3186_v15 = vpop.f32.mrf.mxu0  ;;  %8270 = vst [vmem:[#allocation22_spill] sm:$0xff] %v7234_v24  ;;  %v3259_v26 = vadd.f32 %v5372_v49, %v2928_v63 }
 0x23f   : > { %8266 = vst [vmem:[#allocation23_spill] sm:$0xff] %v7221_v46  ;;  %v3583_v45 = vadd.f32 %v3582_v14, %v3548_v29  ;;  %v3549_v38 = vmul.f32 %v7166_v35, %v7221_v46  ;;  %v3257_v13 = vadd.f32 %v3186_v15, %v2926_v57  ;;  %v2930_v35 = vadd.f32 %v2871_v50, %v8272_v18 }
 0x240   : > { %v5373_v7 = vpop.f32.mrf.mxu0  ;;  %v7247_v1 = vadd.f32 %v7024_v51, %v3259_v26  ;;  %v8276_v26 = vld [vmem:[#allocation31_spill] sm:$0xff] }
 0x241   : > { %v3584_v29 = vadd.f32 %v3583_v45, %v3549_v38  ;;  %v7239_v14 = vadd.f32 %v7024_v51, %v3257_v13  ;;  %v3260_v28 = vadd.f32 %v5373_v7, %v2929_v16  ;;  %v8274_v38 = vld [vmem:[#allocation28_spill] sm:$0xff] }
 0x242   : > { %v3189_v57 = vpop.f32.mrf.mxu0  ;;  %v2932_v13 = vadd.f32 %v7168_v9, %v8274_v38  ;;  %v3554_v9 = vmul.f32 %v7234_v24, %v7247_v1 }
 0x243   : > { %v3585_v15 = vadd.f32 %v3584_v29, %v3550_v8  ;;  %v3258_v39 = vadd.f32 %v3189_v57, %v2927_v27  ;;  %v3552_v49 = vmul.f32 %v7207_v23, %v7239_v14  ;;  %v7256_v8 = vpop.permute.xlu0 %3490  ;;  %v7259_v50 = vadd.f32 %v7024_v51, %v3260_v28  ;;  %v5329_v23 = vpop.f32.mrf.mxu1 }
 0x244   : > { %v5376_v46 = vpop.f32.mrf.mxu0  ;;  %8275 = vst [vmem:[#allocation30_spill] sm:$0xff] %v7256_v8  ;;  %v2933_v57 = vadd.f32 %v5325_v21, %v8276_v26 }
 0x245   : > { %v3586_v63 = vadd.f32 %v3585_v15, %v3551_v34  ;;  %v7252_v45 = vadd.f32 %v7024_v51, %v3258_v39  ;;  %v8277_v34 = vld [vmem:[#allocation32_spill] sm:$0xff]  ;;  %v7265_v39 = vpop.permute.xlu1 %3495 }
 0x246   : > { %v3202_v16 = vpop.f32.mrf.mxu0  ;;  %v2931_v15 = vadd.f32 %v2874_v5, %v8277_v34  ;;  %8278 = vst [vmem:[#allocation28_spill] sm:$0xff] %v7265_v39  ;;  %v8279_v5 = vld [vmem:[#allocation35_spill] sm:$0xff] }
 0x247   : > { %8273 = vst [vmem:[#allocation27_spill] sm:$0xff] %v7252_v45  ;;  %v3587_v27 = vadd.f32 %v3586_v63, %v3552_v49  ;;  %v3553_v7 = vmul.f32 %v7213_v2, %v7252_v45  ;;  %v3261_v29 = vadd.f32 %v3202_v16, %v2930_v35  ;;  %v3263_v49 = vadd.f32 %v5376_v46, %v2932_v13  ;;  %v7275_v2 = vpop.permute.xlu0 %3500  ;;  %v2890_v45 = vpop.f32.mrf.mxu1 }
 0x248   : > { %v5377_v18 = vpop.f32.mrf.mxu0  ;;  %v3555_v35 = vmul.f32 %v7241_v31, %v7259_v50  ;;  %v2934_v34 = vadd.f32 %v2887_v40, %v8279_v5  ;;  %8280 = vst [vmem:[#allocation31_spill] sm:$0xff] %v7275_v2  ;;  %v8284_v5 = vld [vmem:[#allocation37_spill] sm:$0xff] }
 0x249   : > { %v3588_v38 = vadd.f32 %v3587_v27, %v3553_v7  ;;  %v7270_v28 = vadd.f32 %v7024_v51, %v3261_v29  ;;  %v3264_v21 = vadd.f32 %v5377_v18, %v2933_v57  ;;  %v7278_v24 = vadd.f32 %v7024_v51, %v3263_v49  ;;  %v8281_v7 = vld [vmem:[#allocation33_spill] sm:$0xff]  ;;  %v7286_v57 = vpop.permute.xlu1 %3505  ;;  %v8283_v49 = vld [vmem:[#allocation36_spill] sm:$0xff] }
 0x24a   : > { %v3205_v63 = vpop.f32.mrf.mxu0  ;;  %v2936_v29 = vadd.f32 %v5328_v0, %v8281_v7  ;;  %8282 = vst [vmem:[#allocation32_spill] sm:$0xff] %v7286_v57 }
 0x24b   : > { %v3589_v16 = vadd.f32 %v3588_v38, %v3554_v9  ;;  %v3262_v26 = vadd.f32 %v3205_v63, %v2931_v15  ;;  %v3556_v46 = vmul.f32 %v7256_v8, %v7270_v28  ;;  %v7289_v18 = vadd.f32 %v7024_v51, %v3264_v21 }
 0x24c   : > { %v5380_v53 = vpop.f32.mrf.mxu0  ;;  %v2937_v63 = vadd.f32 %v5329_v23, %v8283_v49 }
 0x24d   : > { %v3590_v13 = vadd.f32 %v3589_v16, %v3555_v35  ;;  %v7283_v27 = vadd.f32 %v7024_v51, %v3262_v26  ;;  %v2935_v35 = vadd.f32 %v2890_v45, %v8284_v5  ;;  %v3558_v26 = vmul.f32 %v7275_v2, %v7278_v24  ;;  %v7304_v49 = vpop.permute.xlu1 %3515 }
 0x24e   : > { %v3218_v15 = vpop.f32.mrf.mxu0  ;;  %v3267_v7 = vadd.f32 %v5380_v53, %v2936_v29  ;;  %8286 = vst [vmem:[#allocation33_spill] sm:$0xff] %v7304_v49 }
 0x24f   : > { %v3591_v40 = vadd.f32 %v3590_v13, %v3556_v46  ;;  %v3557_v9 = vmul.f32 %v7265_v39, %v7283_v27  ;;  %v3265_v38 = vadd.f32 %v3218_v15, %v2934_v34  ;;  %v7300_v46 = vpop.permute.xlu0 %3510  ;;  %v3559_v13 = vmul.f32 %v7286_v57, %v7289_v18 }
 0x250   : > { %v5381_v16 = vpop.f32.mrf.mxu0  ;;  %8285 = vst [vmem:[#allocation35_spill] sm:$0xff] %v7300_v46  ;;  %v7307_v45 = vadd.f32 %v7024_v51, %v3267_v7 }
 0x251   : > { %v3592_v0 = vadd.f32 %v3591_v40, %v3557_v9  ;;  %v7298_v8 = vadd.f32 %v7024_v51, %v3265_v38  ;;  %v3268_v15 = vadd.f32 %v5381_v16, %v2937_v63 }
 0x252   : > { %v3221_v21 = vpop.f32.mrf.mxu0 }
 0x253   : > { %v3593_v34 = vadd.f32 %v3592_v0, %v3558_v26  ;;  %v3266_v23 = vadd.f32 %v3221_v21, %v2935_v35  ;;  %v3560_v53 = vmul.f32 %v7300_v46, %v7298_v8  ;;  %v7315_v38 = vadd.f32 %v7024_v51, %v3268_v15  ;;  %v7319_v5 = vpop.permute.xlu0 %3520  ;;  %v7323_v26 = vpop.permute.xlu1 %3525 }
 0x254   : > { %8287 = vst [vmem:[#allocation36_spill] sm:$0xff] %v7319_v5  ;;  %v3562_v35 = vmul.f32 %v7319_v5, %v7307_v45  ;;  %8288 = vst [vmem:[#allocation37_spill] sm:$0xff] %v7323_v26 }
 0x255   : > { %v3594_v29 = vadd.f32 %v3593_v34, %v3559_v13  ;;  %v7312_v40 = vadd.f32 %v7024_v51, %v3266_v23  ;;  %v3563_v0 = vmul.f32 %v7323_v26, %v7315_v38 }
 0x257   : > { %v3595_v9 = vadd.f32 %v3594_v29, %v3560_v53  ;;  %v3561_v63 = vmul.f32 %v7304_v49, %v7312_v40  ;;  %v8289_v29 = vld [vmem:[#allocation2_spill] sm:$0xff]  ;;  %v8290_v49 = vmov 0.0  }
 0x259   : > { %v3596_v16 = vadd.f32 %v3595_v9, %v3561_v63  ;;  %v8291_v9 = vld [vmem:[#allocation3_spill] sm:$0xff]  ;;  %v8292_v63 = vld [vmem:[#allocation4_spill] sm:$0xff] }
 0x25b   : > { %v3597_v7 = vadd.f32 %v3596_v16, %v3562_v35  ;;  %v8293_v35 = vld [vmem:[#allocation5_spill] sm:$0xff]  ;;  %v8294_v16 = vld [vmem:[#allocation6_spill] sm:$0xff] }
 0x25d   : > { %v3598_v21 = vadd.f32 %v3597_v7, %v3563_v0  ;;  %v8295_v0 = vld [vmem:[#allocation7_spill] sm:$0xff]  ;;  %v8296_v7 = vld [vmem:[#allocation8_spill] sm:$0xff] }
 0x25f   : > { %v3599_v13 = vrot.slane %v3598_v21, 4 }
 0x261   : > { %v3600_v34 = vadd.f32 %v3599_v13, %v3598_v21  ;;  %v8297_v21 = vld [vmem:[#allocation9_spill] sm:$0xff]  ;;  %v8298_v13 = vld [vmem:[#allocation10_spill] sm:$0xff] }
 0x263   : > { %v3601_v51 = vrot.slane %v3600_v34, 2 }
 0x265   : > { %v3602_v15 = vadd.f32 %v3601_v51, %v3600_v34  ;;  %v8299_v34 = vld [vmem:[#allocation11_spill] sm:$0xff]  ;;  %v8300_v51 = vld [vmem:[#allocation12_spill] sm:$0xff] }
 0x267   : > { %v3603_v23 = vrot.slane %v3602_v15, 1 }
 0x269   : > { %v3604_v53 = vadd.f32 %v3603_v23, %v3602_v15  ;;  %v8301_v15 = vld [vmem:[#allocation13_spill] sm:$0xff]  ;;  %v8302_v23 = vld [vmem:[#allocation14_spill] sm:$0xff] }
 0x26b   : > { %5415 = vmatmul.mubr.f32.vlgmr.msra.gmra.mxu1 %v3604_v53  ;;  %v8303_v53 = vld [vmem:[#allocation15_spill] sm:$0xff] }
 0x26c   : > { %5418 = vmatpush3.msra.mxu1 %v8289_v29  ;;  %5449 = vmatprep.mubr.msk.f32.mxu1 %vm5695_vm0, %v8290_v49  ;;  %v8304_v29 = vld [vmem:[#allocation16_spill] sm:$0xff] }
 0x26d   : > { %5419 = vmatprep.subr.mxu1 %v8290_v49 }
 0x26e   : > { %5420 = vmatpush3.msra.mxu1 %v8291_v9  ;;  %v8305_v9 = vld [vmem:[#allocation17_spill] sm:$0xff] }
 0x26f   : > { %5421 = vmatprep.subr.mxu1 %v8290_v49 }
 0x270   : > { %5422 = vmatpush3.msra.mxu1 %v8292_v63 }
 0x271   : > { %5423 = vmatprep.subr.mxu1 %v8290_v49 }
 0x272   : > { %5424 = vmatpush3.msra.mxu1 %v8293_v35  ;;  %v3691_v35 = vlaneseq }
 0x273   : > { %5425 = vmatprep.subr.mxu1 %v8290_v49 }
 0x274   : > { %5426 = vmatpush3.msra.mxu1 %v8294_v16 }
 0x275   : > { %5427 = vmatprep.subr.mxu1 %v8290_v49 }
 0x276   : > { %5428 = vmatpush3.msra.mxu1 %v8295_v0  ;;  %v7360_v0 = vshrl.u32 %v3691_v35, 7 }
 0x277   : > { %5429 = vmatprep.subr.mxu1 %v8290_v49 }
 0x278   : > { %5430 = vmatpush3.msra.mxu1 %v8296_v7  ;;  %v8178_v7 = vsub.s32 0, %v7360_v0 }
 0x279   : > { %5431 = vmatprep.subr.mxu1 %v8290_v49 }
 0x27a   : > { %5432 = vmatpush3.msra.mxu1 %v8297_v21 }
 0x27b   : > { %5433 = vmatprep.subr.mxu1 %v8290_v49 }
 0x27c   : > { %5434 = vmatpush3.msra.mxu1 %v8298_v13  ;;  %v8306_v13 = vld [vmem:[#allocation41_spill] sm:$0xff] }
 0x27d   : > { %5435 = vmatprep.subr.mxu1 %v8290_v49 }
 0x27e   : > { %5436 = vmatpush3.msra.mxu1 %v8299_v34 }
 0x27f   : > { %5437 = vmatprep.subr.mxu1 %v8290_v49 }
 0x280   : > { %5438 = vmatpush3.msra.mxu1 %v8300_v51  ;;  %v8307_v51 = vld [vmem:[#allocation42_spill] sm:$0xff] }
 0x281   : > { %5439 = vmatprep.subr.mxu1 %v8290_v49 }
 0x282   : > { %5440 = vmatpush3.msra.mxu1 %v8301_v15 }
 0x283   : > { %5441 = vmatprep.subr.mxu1 %v8290_v49 }
 0x284   : > { %5442 = vmatpush3.msra.mxu1 %v8302_v23  ;;  %v8308_v23 = vld [vmem:[#allocation19_spill] sm:$0xff] }
 0x285   : > { %5443 = vmatprep.subr.mxu1 %v8290_v49 }
 0x286   : > { %5444 = vmatpush3.msra.mxu1 %v8303_v53 }
 0x287   : > { %5445 = vmatprep.subr.mxu1 %v8290_v49 }
 0x288   : > { %5446 = vmatpush3.msra.mxu1 %v8304_v29  ;;  %v8309_v29 = vld [vmem:[#allocation24_spill] sm:$0xff] }
 0x289   : > { %5447 = vmatprep.subr.mxu1 %v8290_v49 }
 0x28a   : > { %5448 = vmatpush3.msra.mxu1 %v8305_v9 }
 0x32b   : > { %v3687_v63 = vpop.f32.mrf.mxu1 }
 0x32c   : > { %v7365_v21 = vrot.slane %v3687_v63, %v8178_v7 }
 0x32d   : > { %v5416_v16 = vpop.f32.mrf.mxu1 }
 0x32e   : > { %v7369_v34 = vsub.f32 %v8306_v13, %v7365_v21  ;;  %v7373_v49 = vsub.f32 %v8307_v51, %v7365_v21  ;;  %v7377_v15 = vsub.f32 %v7034_v33, %v7365_v21  ;;  %v7385_v63 = vsub.f32 %v7046_v52, %v7365_v21 }
 0x32f   : > { %v7389_v35 = vsub.f32 %v7061_v56, %v7365_v21  ;;  %v7395_v51 = vsub.f32 %v7077_v62, %v7365_v21  ;;  %v7401_v52 = vsub.f32 %v7072_v58, %v7365_v21 }
 0x330   : > { %v3731_v53 = vmul.f32 %v7369_v34, %v8308_v23  ;;  %v3732_v9 = vmul.f32 %v7373_v49, %v8309_v29  ;;  %8310 = vst [vmem:[#allocation2_spill] sm:$0xff] %v7385_v63  ;;  %v3733_v16 = vmul.f32 %v7377_v15, %v6939_v32  ;;  %v3734_v7 = vmul.f32 %v7385_v63, %v6956_v43 }
 0x331   : > { %v3735_v56 = vmul.f32 %v7389_v35, %v6966_v22  ;;  %v3736_v62 = vmul.f32 %v7395_v51, %v6971_v54  ;;  %v7413_v43 = vsub.f32 %v7097_v19, %v7365_v21  ;;  %v3737_v58 = vmul.f32 %v7401_v52, %v6981_v42 }
 0x332   : > { %v3767_v13 = vmul.f32 %v3731_v53, %v3731_v53  ;;  %v3768_v33 = vmul.f32 %v3732_v9, %v3732_v9  ;;  %v3769_v29 = vmul.f32 %v3733_v16, %v3733_v16  ;;  %v7407_v53 = vsub.f32 %v7084_v37, %v7365_v21 }
 0x333   : > { %v3770_v9 = vmul.f32 %v3734_v7, %v3734_v7  ;;  %v3771_v63 = vmul.f32 %v3735_v56, %v3735_v56  ;;  %v7419_v16 = vsub.f32 %v7115_v44, %v7365_v21  ;;  %v7425_v7 = vsub.f32 %v7110_v11, %v7365_v21  ;;  %v8311_v44 = vld [vmem:[#allocation38_spill] sm:$0xff] }
 0x334   : > { %v3803_v23 = vadd.f32 %v3768_v33, %v3767_v13  ;;  %v3738_v37 = vmul.f32 %v7407_v53, %v6988_v12  ;;  %v3772_v13 = vmul.f32 %v3736_v62, %v3736_v62  ;;  %v3739_v19 = vmul.f32 %v7413_v43, %v6998_v59 }
 0x335   : > { %v3740_v56 = vmul.f32 %v7419_v16, %v8311_v44  ;;  %v3741_v11 = vmul.f32 %v7425_v7, %v7011_v61 }
 0x336   : > { %v3804_v32 = vadd.f32 %v3803_v23, %v3769_v29  ;;  %v3773_v23 = vmul.f32 %v3737_v58, %v3737_v58  ;;  %v7443_v58 = vsub.f32 %v7151_v48, %v7365_v21  ;;  %v8312_v48 = vld [vmem:[#allocation44_spill] sm:$0xff] }
 0x338   : > { %v3805_v22 = vadd.f32 %v3804_v32, %v3770_v9  ;;  %v7431_v32 = vsub.f32 %v7120_v55, %v7365_v21  ;;  %v3774_v9 = vmul.f32 %v3738_v37, %v3738_v37  ;;  %v7449_v37 = vsub.f32 %v7146_v6, %v7365_v21 }
 0x33a   : > { %v3806_v33 = vadd.f32 %v3805_v22, %v3771_v63  ;;  %v7437_v22 = vsub.f32 %v7135_v10, %v7365_v21  ;;  %v3775_v63 = vmul.f32 %v3739_v19, %v3739_v19  ;;  %v3742_v55 = vmul.f32 %v7431_v32, %v7019_v17 }
 0x33b   : > { %v3744_v19 = vmul.f32 %v7443_v58, %v8312_v48  ;;  %v3745_v6 = vmul.f32 %v7449_v37, %v7067_v20 }
 0x33c   : > { %v3807_v29 = vadd.f32 %v3806_v33, %v3772_v13  ;;  %v3776_v13 = vmul.f32 %v3740_v56, %v3740_v56  ;;  %v3743_v10 = vmul.f32 %v7437_v22, %v7041_v30  ;;  %v7461_v56 = vsub.f32 %v7173_v3, %v7365_v21  ;;  %v8314_v3 = vld [vmem:[#allocation48_spill] sm:$0xff] }
 0x33e   : > { %v3808_v12 = vadd.f32 %v3807_v29, %v3773_v23  ;;  %v3777_v23 = vmul.f32 %v3741_v11, %v3741_v11  ;;  %v7467_v11 = vsub.f32 %v7187_v47, %v7365_v21  ;;  %v8315_v47 = vld [vmem:[#allocation49_spill] sm:$0xff] }
 0x340   : > { %v3809_v62 = vadd.f32 %v3808_v12, %v3774_v9  ;;  %v7455_v12 = vsub.f32 %v7158_v4, %v7365_v21  ;;  %v3778_v9 = vmul.f32 %v3742_v55, %v3742_v55  ;;  %v8313_v4 = vld [vmem:[#allocation47_spill] sm:$0xff]  ;;  %v7473_v55 = vsub.f32 %v7182_v36, %v7365_v21  ;;  %v8317_v36 = vld [vmem:[#allocation50_spill] sm:$0xff] }
 0x342   : > { %v3810_v33 = vadd.f32 %v3809_v62, %v3775_v63  ;;  %v3779_v63 = vmul.f32 %v3743_v10, %v3743_v10  ;;  %v3748_v10 = vmul.f32 %v7467_v11, %v8315_v47 }
 0x344   : > { %v3811_v29 = vadd.f32 %v3810_v33, %v3776_v13  ;;  %v3746_v13 = vmul.f32 %v7455_v12, %v8313_v4  ;;  %v3780_v33 = vmul.f32 %v3744_v19, %v3744_v19  ;;  %v8316_v19 = vld [vmem:[#allocation18_spill] sm:$0xff]  ;;  %v3784_v61 = vmul.f32 %v3748_v10, %v3748_v10 }
 0x346   : > { %v3812_v17 = vadd.f32 %v3811_v29, %v3777_v23  ;;  %v3747_v23 = vmul.f32 %v7461_v56, %v8314_v3  ;;  %v3781_v29 = vmul.f32 %v3745_v6, %v3745_v6 }
 0x348   : > { %v3813_v62 = vadd.f32 %v3812_v17, %v3778_v9  ;;  %v7479_v17 = vsub.f32 %v7194_v60, %v7365_v21  ;;  %v3782_v9 = vmul.f32 %v3746_v13, %v3746_v13  ;;  %v3783_v30 = vmul.f32 %v3747_v23, %v3747_v23  ;;  %v8319_v60 = vld [vmem:[#allocation51_spill] sm:$0xff]  ;;  %v8320_v13 = vld [vmem:[#allocation52_spill] sm:$0xff]  ;;  %v8321_v23 = vld [vmem:[#allocation53_spill] sm:$0xff] }
 0x34a   : > { %v3814_v48 = vadd.f32 %v3813_v62, %v3779_v63  ;;  %v7485_v63 = vsub.f32 %v8316_v19, %v7365_v21  ;;  %v3749_v62 = vmul.f32 %v7473_v55, %v8317_v36 }
 0x34c   : > { %v3815_v20 = vadd.f32 %v3814_v48, %v3780_v33  ;;  %v8318_v48 = vld [vmem:[#allocation23_spill] sm:$0xff]  ;;  %v3750_v33 = vmul.f32 %v7479_v17, %v8319_v60  ;;  %v3785_v19 = vmul.f32 %v3749_v62, %v3749_v62 }
 0x34d   : > { %v7491_v6 = vsub.f32 %v8318_v48, %v7365_v21 }
 0x34e   : > { %v3816_v4 = vadd.f32 %v3815_v20, %v3781_v29  ;;  %v7497_v20 = vsub.f32 %v7216_v25, %v7365_v21  ;;  %v3751_v29 = vmul.f32 %v7485_v63, %v8320_v13  ;;  %v3786_v48 = vmul.f32 %v3750_v33, %v3750_v33  ;;  %v8322_v25 = vld [vmem:[#allocation54_spill] sm:$0xff] }
 0x350   : > { %v3817_v3 = vadd.f32 %v3816_v4, %v3782_v9  ;;  %v7503_v4 = vsub.f32 %v7226_v41, %v7365_v21  ;;  %v3752_v9 = vmul.f32 %v7491_v6, %v8321_v23  ;;  %v3787_v10 = vmul.f32 %v3751_v29, %v3751_v29  ;;  %v8324_v41 = vld [vmem:[#allocation55_spill] sm:$0xff]  ;;  %v8326_v29 = vld [vmem:[#allocation20_spill] sm:$0xff] }
 0x352   : > { %v3818_v47 = vadd.f32 %v3817_v3, %v3783_v30  ;;  %v7509_v30 = vsub.f32 %v7239_v14, %v7365_v21  ;;  %v3753_v3 = vmul.f32 %v7497_v20, %v8322_v25  ;;  %v3754_v62 = vmul.f32 %v7503_v4, %v8324_v41  ;;  %v8325_v14 = vld [vmem:[#allocation45_spill] sm:$0xff] }
 0x353   : > { %v3788_v44 = vmul.f32 %v3752_v9, %v3752_v9 }
 0x354   : > { %v3819_v36 = vadd.f32 %v3818_v47, %v3784_v61  ;;  %v8323_v61 = vld [vmem:[#allocation27_spill] sm:$0xff]  ;;  %v3755_v33 = vmul.f32 %v7509_v30, %v8325_v14 }
 0x355   : > { %v7515_v47 = vsub.f32 %v8323_v61, %v7365_v21  ;;  %v3790_v61 = vmul.f32 %v3754_v62, %v3754_v62 }
 0x356   : > { %v3820_v60 = vadd.f32 %v3819_v36, %v3785_v19  ;;  %v7521_v36 = vsub.f32 %v7247_v1, %v7365_v21  ;;  %v3789_v19 = vmul.f32 %v3753_v3, %v3753_v3  ;;  %v8327_v1 = vld [vmem:[#allocation22_spill] sm:$0xff] }
 0x358   : > { %v3821_v13 = vadd.f32 %v3820_v60, %v3786_v48  ;;  %v7527_v60 = vsub.f32 %v7259_v50, %v7365_v21  ;;  %v3756_v48 = vmul.f32 %v7515_v47, %v8326_v29  ;;  %v3757_v9 = vmul.f32 %v7521_v36, %v8327_v1 }
 0x35a   : > { %v3822_v23 = vadd.f32 %v3821_v13, %v3787_v10  ;;  %v7533_v13 = vsub.f32 %v7270_v28, %v7365_v21  ;;  %v3791_v10 = vmul.f32 %v3755_v33, %v3755_v33  ;;  %v3758_v50 = vmul.f32 %v7527_v60, %v7241_v31  ;;  %v8328_v28 = vld [vmem:[#allocation30_spill] sm:$0xff] }
 0x35c   : > { %v3823_v25 = vadd.f32 %v3822_v23, %v3788_v44  ;;  %v7539_v44 = vsub.f32 %v7283_v27, %v7365_v21  ;;  %v3792_v23 = vmul.f32 %v3756_v48, %v3756_v48  ;;  %v3759_v62 = vmul.f32 %v7533_v13, %v8328_v28 }
 0x35d   : > { %v3794_v33 = vmul.f32 %v3758_v50, %v3758_v50 }
 0x35e   : > { %v3824_v41 = vadd.f32 %v3823_v25, %v3789_v19  ;;  %v7545_v25 = vsub.f32 %v7278_v24, %v7365_v21  ;;  %v3793_v19 = vmul.f32 %v3757_v9, %v3757_v9  ;;  %v3760_v27 = vmul.f32 %v7539_v44, %v7265_v39 }
 0x35f   : > { %v3795_v48 = vmul.f32 %v3759_v62, %v3759_v62  ;;  %v7563_v9 = vsub.f32 %v7312_v40, %v7365_v21  ;;  %v7575_v62 = vsub.f32 %v7315_v38, %v7365_v21  ;;  %v8329_v40 = vld [vmem:[#allocation33_spill] sm:$0xff] }
 0x360   : > { %v3825_v14 = vadd.f32 %v3824_v41, %v3790_v61  ;;  %v7551_v41 = vsub.f32 %v7289_v18, %v7365_v21  ;;  %v3761_v24 = vmul.f32 %v7545_v25, %v7275_v2 }
 0x362   : > { %v3826_v3 = vadd.f32 %v3825_v14, %v3791_v10  ;;  %v7557_v14 = vsub.f32 %v7298_v8, %v7365_v21  ;;  %v3762_v18 = vmul.f32 %v7551_v41, %v7286_v57  ;;  %v3797_v50 = vmul.f32 %v3761_v24, %v3761_v24 }
 0x364   : > { %v3827_v1 = vadd.f32 %v3826_v3, %v3792_v23  ;;  %v3796_v23 = vmul.f32 %v3760_v27, %v3760_v27  ;;  %v3763_v8 = vmul.f32 %v7557_v14, %v7300_v46 }
 0x366   : > { %v3828_v61 = vadd.f32 %v3827_v1, %v3793_v19  ;;  %v7569_v1 = vsub.f32 %v7307_v45, %v7365_v21 }
 0x368   : > { %v3829_v10 = vadd.f32 %v3828_v61, %v3794_v33  ;;  %v3764_v33 = vmul.f32 %v7563_v9, %v8329_v40  ;;  %v3798_v61 = vmul.f32 %v3762_v18, %v3762_v18  ;;  %v3765_v27 = vmul.f32 %v7569_v1, %v7319_v5 }
 0x36a   : > { %v3830_v3 = vadd.f32 %v3829_v10, %v3795_v48  ;;  %v3799_v48 = vmul.f32 %v3763_v8, %v3763_v8  ;;  %v3766_v10 = vmul.f32 %v7575_v62, %v7323_v26  ;;  %v3800_v46 = vmul.f32 %v3764_v33, %v3764_v33 }
 0x36b   : > { %v8330_v33 = vsub.s32 0, %v7360_v0 }
 0x36c   : > { %v3831_v19 = vadd.f32 %v3830_v3, %v3796_v23  ;;  %v3801_v23 = vmul.f32 %v3765_v27, %v3765_v27  ;;  %v3802_v2 = vmul.f32 %v3766_v10, %v3766_v10 }
 0x36e   : > { %v3832_v57 = vadd.f32 %v3831_v19, %v3797_v50 }
 0x370   : > { %v3833_v45 = vadd.f32 %v3832_v57, %v3798_v61 }
 0x372   : > { %v3834_v24 = vadd.f32 %v3833_v45, %v3799_v48 }
 0x374   : > { %v3835_v3 = vadd.f32 %v3834_v24, %v3800_v46 }
 0x376   : > { %v3836_v38 = vadd.f32 %v3835_v3, %v3801_v23 }
 0x378   : > { %v3837_v21 = vadd.f32 %v3836_v38, %v3802_v2 }
 0x37a   : > { %v3838_v39 = vrot.slane %v3837_v21, 4 }
 0x37c   : > { %v3839_v28 = vadd.f32 %v3838_v39, %v3837_v21  ;;  %v8331_v39 = vld [vmem:[#allocation2_spill] sm:$0xff] }
 0x37e   : > { %v3840_v40 = vrot.slane %v3839_v28, 2 }
 0x380   : > { %v3841_v18 = vadd.f32 %v3840_v40, %v3839_v28 }
 0x382   : > { %v3842_v50 = vrot.slane %v3841_v18, 1 }
 0x384   : > { %v3843_v19 = vadd.f32 %v3842_v50, %v3841_v18 }
 0x386   : > { %5450 = vmatmul.mubr.f32.vlgmr.msra.gmra.mxu1 %v3843_v19 }
 0x446   : > { %v3910_v5 = vpop.f32.mrf.mxu1 }
 0x447   : > { %v3911_v57 = vadd.f32 1e-05, %v3910_v5 }
 0x448   : > { %v5451_v8 = vpop.f32.mrf.mxu1 }
 0x449   : > { %5539 = vrsqrt.f32 %v3911_v57 }
 0x456   : > { %v5540_v61 = vpop.eup %5539 }
 0x457   : > { %v3918_v48 = vrot.slane %v5540_v61, %v8330_v33 }
 0x459   : > { %v3919_v46 = vmul.f32 %v3918_v48, %v7369_v34  ;;  %v3920_v27 = vmul.f32 %v3918_v48, %v7373_v49  ;;  %v3921_v2 = vmul.f32 %v3918_v48, %v7377_v15  ;;  %v3922_v45 = vmul.f32 %v3918_v48, %v8331_v39 }
 0x45a   : > { %v3923_v28 = vmul.f32 %v3918_v48, %v7389_v35  ;;  %v3924_v40 = vmul.f32 %v3918_v48, %v7395_v51  ;;  %v3925_v10 = vmul.f32 %v3918_v48, %v7401_v52  ;;  %v3926_v5 = vmul.f32 %v3918_v48, %v7407_v53 }
 0x45b   : > { %v3927_v24 = vmul.f32 %v3918_v48, %v7413_v43  ;;  %v3928_v0 = vmul.f32 %v3918_v48, %v7419_v16  ;;  %v3929_v34 = vmul.f32 %v3918_v48, %v7425_v7  ;;  %v3930_v49 = vmul.f32 %v3918_v48, %v7431_v32 }
 0x45c   : > { %v3931_v15 = vmul.f32 %v3918_v48, %v7437_v22  ;;  %v3932_v23 = vmul.f32 %v3918_v48, %v7443_v58  ;;  %v3933_v35 = vmul.f32 %v3918_v48, %v7449_v37  ;;  %v3934_v51 = vmul.f32 %v3918_v48, %v7455_v12 }
 0x45d   : > { %v3935_v52 = vmul.f32 %v3918_v48, %v7461_v56  ;;  %v3936_v53 = vmul.f32 %v3918_v48, %v7467_v11  ;;  %v3937_v43 = vmul.f32 %v3918_v48, %v7473_v55  ;;  %v3938_v16 = vmul.f32 %v3918_v48, %v7479_v17  ;;  %v4604_v55 = vld [vmem:[%s8113_s4] ss:$0 sm:$0xff] }
 0x45e   : > { %v3939_v7 = vmul.f32 %v3918_v48, %v7485_v63  ;;  %v3940_v32 = vmul.f32 %v3918_v48, %v7491_v6  ;;  %v3941_v22 = vmul.f32 %v3918_v48, %v7497_v20  ;;  %v3942_v58 = vmul.f32 %v3918_v48, %v7503_v4 }
 0x45f   : > { %v3943_v37 = vmul.f32 %v3918_v48, %v7509_v30  ;;  %v3944_v12 = vmul.f32 %v3918_v48, %v7515_v47  ;;  %v3945_v56 = vmul.f32 %v3918_v48, %v7521_v36  ;;  %v3946_v11 = vmul.f32 %v3918_v48, %v7527_v60 }
 0x460   : > { %v3947_v17 = vmul.f32 %v3918_v48, %v7533_v13  ;;  %v3948_v63 = vmul.f32 %v3918_v48, %v7539_v44  ;;  %v3949_v6 = vmul.f32 %v3918_v48, %v7545_v25  ;;  %v3950_v20 = vmul.f32 %v3918_v48, %v7551_v41 }
 0x461   : > { %v3951_v4 = vmul.f32 %v3918_v48, %v7557_v14  ;;  %v3952_v30 = vmul.f32 %v3918_v48, %v7563_v9  ;;  %v3953_v47 = vmul.f32 %v3918_v48, %v7569_v1  ;;  %v3954_v36 = vmul.f32 %v3918_v48, %v7575_v62 }
 0x462   : > { %v3962_v60 = vmul.f32 %v4604_v55, %v3919_v46  ;;  %v3963_v3 = vmul.f32 %v4604_v55, %v3920_v27  ;;  %v3964_v38 = vmul.f32 %v4604_v55, %v3921_v2  ;;  %v3965_v21 = vmul.f32 %v4604_v55, %v3922_v45 }
 0x463   : > { %v3966_v18 = vmul.f32 %v4604_v55, %v3923_v28  ;;  %v3967_v13 = vmul.f32 %v4604_v55, %v3924_v40  ;;  %v3968_v50 = vmul.f32 %v4604_v55, %v3925_v10  ;;  %v3969_v44 = vmul.f32 %v4604_v55, %v3926_v5  ;;  %v7627_v5 = vld [vmem:[%s8114_s5] ss:$0 sm:$0xff] }
 0x464   : > { %v3970_v19 = vmul.f32 %v4604_v55, %v3927_v24  ;;  %v3971_v25 = vmul.f32 %v4604_v55, %v3928_v0  ;;  %v3972_v8 = vmul.f32 %v4604_v55, %v3929_v34  ;;  %v3973_v41 = vmul.f32 %v4604_v55, %v3930_v49 }
 0x465   : > { %v3974_v57 = vmul.f32 %v4604_v55, %v3931_v15  ;;  %v3975_v14 = vmul.f32 %v4604_v55, %v3932_v23  ;;  %v3976_v61 = vmul.f32 %v4604_v55, %v3933_v35  ;;  %v3977_v9 = vmul.f32 %v4604_v55, %v3934_v51 }
 0x466   : > { %v3978_v33 = vmul.f32 %v4604_v55, %v3935_v52  ;;  %v3979_v1 = vmul.f32 %v4604_v55, %v3936_v53  ;;  %v3980_v62 = vmul.f32 %v4604_v55, %v3937_v43  ;;  %v3981_v48 = vmul.f32 %v4604_v55, %v3938_v16 }
 0x467   : > { %v3982_v46 = vmul.f32 %v4604_v55, %v3939_v7  ;;  %v3983_v27 = vmul.f32 %v4604_v55, %v3940_v32  ;;  %v3984_v2 = vmul.f32 %v4604_v55, %v3941_v22  ;;  %v3985_v39 = vmul.f32 %v4604_v55, %v3942_v58 }
 0x468   : > { %v3986_v45 = vmul.f32 %v4604_v55, %v3943_v37  ;;  %v3987_v28 = vmul.f32 %v4604_v55, %v3944_v12  ;;  %v3988_v40 = vmul.f32 %v4604_v55, %v3945_v56  ;;  %v3989_v10 = vmul.f32 %v4604_v55, %v3946_v11 }
 0x469   : > { %v3990_v24 = vmul.f32 %v4604_v55, %v3947_v17  ;;  %v3991_v0 = vmul.f32 %v4604_v55, %v3948_v63  ;;  %v3992_v34 = vmul.f32 %v4604_v55, %v3949_v6  ;;  %v3993_v49 = vmul.f32 %v4604_v55, %v3950_v20 }
 0x46a   : > { %v3994_v15 = vmul.f32 %v4604_v55, %v3951_v4  ;;  %v3995_v23 = vmul.f32 %v4604_v55, %v3952_v30  ;;  %v3996_v35 = vmul.f32 %v4604_v55, %v3953_v47  ;;  %v3997_v51 = vmul.f32 %v4604_v55, %v3954_v36  ;;  %v7645_v55 = vld [vmem:[%s352_s14] ss:$0 sm:$0xff] }
 0x46b   : > { %v4005_v52 = vadd.f32 %v7627_v5, %v3962_v60  ;;  %v4006_v53 = vadd.f32 %v7627_v5, %v3963_v3  ;;  %v4007_v43 = vadd.f32 %v7627_v5, %v3964_v38  ;;  %v4008_v16 = vadd.f32 %v7627_v5, %v3965_v21 }
 0x46c   : > { %v4009_v7 = vadd.f32 %v7627_v5, %v3966_v18  ;;  %v4010_v32 = vadd.f32 %v7627_v5, %v3967_v13  ;;  %v4011_v22 = vadd.f32 %v7627_v5, %v3968_v50  ;;  %v4012_v58 = vadd.f32 %v7627_v5, %v3969_v44 }
 0x46d   : > { %v4013_v37 = vadd.f32 %v7627_v5, %v3970_v19  ;;  %v4014_v12 = vadd.f32 %v7627_v5, %v3971_v25  ;;  %v4015_v56 = vadd.f32 %v7627_v5, %v3972_v8  ;;  %v4016_v11 = vadd.f32 %v7627_v5, %v3973_v41  ;;  %v7681_v19 = vld [vmem:[%s355_s18] ss:$0 sm:$0xff] }
 0x46e   : > { %v4017_v17 = vadd.f32 %v7627_v5, %v3974_v57  ;;  %v4018_v63 = vadd.f32 %v7627_v5, %v3975_v14  ;;  %v4019_v6 = vadd.f32 %v7627_v5, %v3976_v61  ;;  %v4020_v20 = vadd.f32 %v7627_v5, %v3977_v9 }
 0x46f   : > { %v4021_v4 = vadd.f32 %v7627_v5, %v3978_v33  ;;  %v7657_v30 = vadd.f32 %v7627_v5, %v3979_v1  ;;  %v7660_v47 = vadd.f32 %v7627_v5, %v3980_v62  ;;  %v7663_v36 = vadd.f32 %v7627_v5, %v3981_v48 }
 0x470   : > { %v7666_v60 = vadd.f32 %v7627_v5, %v3982_v46  ;;  %v4048_v3 = vmul.f32 %v7645_v55, %v4005_v52  ;;  %v4049_v38 = vmul.f32 %v7645_v55, %v4006_v53  ;;  %v4050_v21 = vmul.f32 %v7645_v55, %v4007_v43 }
 0x471   : > { %v7672_v18 = vadd.f32 %v7627_v5, %v3983_v27  ;;  %v7675_v13 = vadd.f32 %v7627_v5, %v3984_v2  ;;  %v7678_v50 = vadd.f32 %v7627_v5, %v3985_v39  ;;  %v4051_v44 = vmul.f32 %v7645_v55, %v4008_v16 }
 0x472   : > { %v7684_v25 = vadd.f32 %v7627_v5, %v3986_v45  ;;  %v7687_v8 = vadd.f32 %v7627_v5, %v3987_v28  ;;  %v7690_v41 = vadd.f32 %v7627_v5, %v3988_v40  ;;  %v4052_v57 = vmul.f32 %v7645_v55, %v4009_v7 }
 0x473   : > { %v7694_v14 = vadd.f32 %v7627_v5, %v3989_v10  ;;  %v7697_v61 = vadd.f32 %v7627_v5, %v3990_v24  ;;  %v7700_v9 = vadd.f32 %v7627_v5, %v3991_v0  ;;  %v4053_v33 = vmul.f32 %v7645_v55, %v4010_v32 }
 0x474   : > { %v4054_v1 = vmul.f32 %v7645_v55, %v4011_v22  ;;  %v7705_v62 = vadd.f32 %v7681_v19, %v4048_v3  ;;  %v7708_v48 = vadd.f32 %v7681_v19, %v4049_v38  ;;  %v7711_v46 = vadd.f32 %v7681_v19, %v4050_v21 }
 0x475   : > { %v7714_v27 = vadd.f32 %v7627_v5, %v3992_v34  ;;  %v7717_v2 = vadd.f32 %v7627_v5, %v3993_v49  ;;  %v4055_v39 = vmul.f32 %v7645_v55, %v4012_v58  ;;  %v7721_v45 = vadd.f32 %v7681_v19, %v4051_v44 }
 0x476   : > { %v7724_v28 = vadd.f32 %v7627_v5, %v3994_v15  ;;  %v7727_v40 = vadd.f32 %v7627_v5, %v3995_v23  ;;  %v4056_v10 = vmul.f32 %v7645_v55, %v4013_v37  ;;  %v7731_v24 = vadd.f32 %v7681_v19, %v4052_v57 }
 0x477   : > { %v7734_v0 = vadd.f32 %v7627_v5, %v3996_v35  ;;  %v4057_v34 = vmul.f32 %v7645_v55, %v4014_v12  ;;  %v4058_v49 = vmul.f32 %v7645_v55, %v4015_v56  ;;  %v7739_v52 = vadd.f32 %v7681_v19, %v4053_v33 }
 0x478   : > { %v7742_v15 = vadd.f32 %v7681_v19, %v4054_v1  ;;  %v4608_v23 = vmul.f32 -1.442695, %v7705_v62  ;;  %v4609_v53 = vmul.f32 -1.442695, %v7708_v48  ;;  %v4610_v43 = vmul.f32 -1.442695, %v7711_v46 }
 0x479   : > { %v7748_v16 = vadd.f32 %v7627_v5, %v3997_v51  ;;  %v4059_v35 = vmul.f32 %v7645_v55, %v4016_v11  ;;  %v7752_v7 = vadd.f32 %v7681_v19, %v4055_v39  ;;  %v4611_v32 = vmul.f32 -1.442695, %v7721_v45 }
 0x47a   : > { %v4060_v22 = vmul.f32 %v7645_v55, %v4017_v17  ;;  %v7757_v58 = vadd.f32 %v7681_v19, %v4056_v10  ;;  %5541 = vpow2.f32 %v4608_v23  ;;  %v4612_v37 = vmul.f32 -1.442695, %v7731_v24 }
 0x47b   : > { %v4061_v12 = vmul.f32 %v7645_v55, %v4018_v63  ;;  %v7762_v5 = vadd.f32 %v7681_v19, %v4057_v34  ;;  %5543 = vpow2.f32 %v4609_v53  ;;  %v4613_v51 = vmul.f32 -1.442695, %v7739_v52 }
 0x47c   : > { %v4062_v56 = vmul.f32 %v7645_v55, %v4019_v6  ;;  %v7767_v11 = vadd.f32 %v7681_v19, %v4058_v49  ;;  %5545 = vpow2.f32 %v4610_v43  ;;  %v4614_v17 = vmul.f32 -1.442695, %v7742_v15 }
 0x47d   : > { %v4063_v3 = vmul.f32 %v7645_v55, %v4020_v20  ;;  %v7772_v38 = vadd.f32 %v7681_v19, %v4059_v35  ;;  %5547 = vpow2.f32 %v4611_v32  ;;  %v4615_v63 = vmul.f32 -1.442695, %v7752_v7 }
 0x47e   : > { %v4064_v21 = vmul.f32 %v7645_v55, %v4021_v4  ;;  %v7777_v44 = vadd.f32 %v7681_v19, %v4060_v22  ;;  %5549 = vpow2.f32 %v4612_v37  ;;  %v4616_v6 = vmul.f32 -1.442695, %v7757_v58 }
 0x47f   : > { %v4065_v57 = vmul.f32 %v7645_v55, %v7657_v30  ;;  %v7783_v33 = vadd.f32 %v7681_v19, %v4061_v12  ;;  %5551 = vpow2.f32 %v4613_v51  ;;  %v4617_v20 = vmul.f32 -1.442695, %v7762_v5 }
 0x480   : > { %v4066_v1 = vmul.f32 %v7645_v55, %v7660_v47  ;;  %v7789_v4 = vadd.f32 %v7681_v19, %v4062_v56  ;;  %5553 = vpow2.f32 %v4614_v17  ;;  %v4618_v39 = vmul.f32 -1.442695, %v7767_v11 }
 0x481   : > { %v4067_v10 = vmul.f32 %v7645_v55, %v7663_v36  ;;  %v7795_v30 = vadd.f32 %v7681_v19, %v4063_v3  ;;  %5555 = vpow2.f32 %v4615_v63  ;;  %v4619_v34 = vmul.f32 -1.442695, %v7772_v38 }
 0x482   : > { %v4068_v49 = vmul.f32 %v7645_v55, %v7666_v60  ;;  %v7801_v47 = vadd.f32 %v7681_v19, %v4064_v21  ;;  %5557 = vpow2.f32 %v4616_v6  ;;  %v4620_v23 = vmul.f32 -1.442695, %v7777_v44 }
 0x483   : > { %v4069_v53 = vmul.f32 %v7645_v55, %v7672_v18  ;;  %v7807_v36 = vadd.f32 %v7681_v19, %v4065_v57  ;;  %5559 = vpow2.f32 %v4617_v20  ;;  %v4621_v43 = vmul.f32 -1.442695, %v7783_v33 }
 0x484   : > { %v4070_v35 = vmul.f32 %v7645_v55, %v7675_v13  ;;  %v7813_v60 = vadd.f32 %v7681_v19, %v4066_v1  ;;  %5561 = vpow2.f32 %v4618_v39  ;;  %v4622_v32 = vmul.f32 -1.442695, %v7789_v4 }
 0x485   : > { %v4071_v22 = vmul.f32 %v7645_v55, %v7678_v50  ;;  %v7819_v18 = vadd.f32 %v7681_v19, %v4067_v10  ;;  %5563 = vpow2.f32 %v4619_v34  ;;  %v4623_v37 = vmul.f32 -1.442695, %v7795_v30 }
 0x486   : > { %v4072_v12 = vmul.f32 %v7645_v55, %v7684_v25  ;;  %v7825_v13 = vadd.f32 %v7681_v19, %v4068_v49  ;;  %5565 = vpow2.f32 %v4620_v23  ;;  %v4624_v51 = vmul.f32 -1.442695, %v7801_v47 }
 0x487   : > { %v7828_v56 = vpop.eup %5541  ;;  %v4073_v50 = vmul.f32 %v7645_v55, %v7687_v8  ;;  %v7833_v17 = vadd.f32 %v7681_v19, %v4069_v53  ;;  %5567 = vpow2.f32 %v4621_v43  ;;  %v4625_v3 = vmul.f32 -1.442695, %v7807_v36 }
 0x488   : > { %v7836_v63 = vpop.eup %5543  ;;  %v4074_v25 = vmul.f32 %v7645_v55, %v7690_v41  ;;  %v7841_v21 = vadd.f32 %v7681_v19, %v4070_v35  ;;  %5569 = vpow2.f32 %v4622_v32  ;;  %v4626_v6 = vmul.f32 -1.442695, %v7813_v60 }
 0x489   : > { %v7844_v57 = vpop.eup %5545  ;;  %v4075_v8 = vmul.f32 %v7645_v55, %v7694_v14  ;;  %v7849_v20 = vadd.f32 %v7681_v19, %v4071_v22  ;;  %5571 = vpow2.f32 %v4623_v37  ;;  %v4627_v1 = vmul.f32 -1.442695, %v7819_v18 }
 0x48a   : > { %v7852_v39 = vpop.eup %5547  ;;  %v4076_v41 = vmul.f32 %v7645_v55, %v7697_v61  ;;  %v7857_v10 = vadd.f32 %v7681_v19, %v4072_v12  ;;  %5573 = vpow2.f32 %v4624_v51  ;;  %v4628_v34 = vmul.f32 -1.442695, %v7825_v13 }
 0x48b   : > { %v7860_v49 = vpop.eup %5549  ;;  %v4077_v14 = vmul.f32 %v7645_v55, %v7700_v9  ;;  %v7865_v23 = vadd.f32 %v7681_v19, %v4073_v50  ;;  %5575 = vpow2.f32 %v4625_v3  ;;  %v4629_v53 = vmul.f32 -1.442695, %v7833_v17 }
 0x48c   : > { %v7868_v43 = vpop.eup %5551  ;;  %v4078_v61 = vmul.f32 %v7645_v55, %v7714_v27  ;;  %v7873_v35 = vadd.f32 %v7681_v19, %v4074_v25  ;;  %5577 = vpow2.f32 %v4626_v6  ;;  %v4630_v32 = vmul.f32 -1.442695, %v7841_v21 }
 0x48d   : > { %v7876_v22 = vpop.eup %5553  ;;  %v4079_v9 = vmul.f32 %v7645_v55, %v7717_v2  ;;  %v7881_v37 = vadd.f32 %v7681_v19, %v4075_v8  ;;  %5579 = vpow2.f32 %v4627_v1  ;;  %v4631_v12 = vmul.f32 -1.442695, %v7849_v20 }
 0x48e   : > { %8332 = vst [vmem:[#allocation3_spill] sm:$0xff] %v7873_v35  ;;  %v7884_v51 = vpop.eup %5555  ;;  %v4080_v27 = vmul.f32 %v7645_v55, %v7724_v28  ;;  %v7889_v50 = vadd.f32 %v7681_v19, %v4076_v41  ;;  %5581 = vpow2.f32 %v4628_v34  ;;  %v4632_v3 = vmul.f32 -1.442695, %v7857_v10 }
 0x48f   : > { %8333 = vst [vmem:[#allocation4_spill] sm:$0xff] %v7881_v37  ;;  %v7892_v25 = vpop.eup %5557  ;;  %v4081_v2 = vmul.f32 %v7645_v55, %v7727_v40  ;;  %v7897_v6 = vadd.f32 %v7681_v19, %v4077_v14  ;;  %5583 = vpow2.f32 %v4629_v53  ;;  %v4633_v8 = vmul.f32 -1.442695, %v7865_v23 }
 0x490   : > { %8334 = vst [vmem:[#allocation5_spill] sm:$0xff] %v7889_v50  ;;  %v7900_v1 = vpop.eup %5559  ;;  %v4082_v28 = vmul.f32 %v7645_v55, %v7734_v0  ;;  %v7905_v41 = vadd.f32 %v7681_v19, %v4078_v61  ;;  %5585 = vpow2.f32 %v4630_v32  ;;  %v4634_v34 = vmul.f32 -1.442695, %v7873_v35 }
 0x491   : > { %8335 = vst [vmem:[#allocation6_spill] sm:$0xff] %v7897_v6  ;;  %v7908_v26 = vpop.eup %5561  ;;  %v4083_v40 = vmul.f32 %v7645_v55, %v7748_v16  ;;  %v7913_v14 = vadd.f32 %v7681_v19, %v4079_v9  ;;  %5587 = vpow2.f32 %v4631_v12  ;;  %v4635_v53 = vmul.f32 -1.442695, %v7881_v37 }
 0x492   : > { %8336 = vst [vmem:[#allocation7_spill] sm:$0xff] %v7905_v41  ;;  %v5564_v31 = vpop.eup %5563  ;;  %v7917_v0 = vadd.f32 %v7681_v19, %v4080_v27  ;;  %5589 = vpow2.f32 %v4632_v3  ;;  %v4636_v61 = vmul.f32 -1.442695, %v7889_v50  ;;  %v7921_v29 = vadd.f32 %v7681_v19, %v4081_v2 }
 0x493   : > { %8337 = vst [vmem:[#allocation8_spill] sm:$0xff] %v7913_v14  ;;  %v5566_v32 = vpop.eup %5565  ;;  %5591 = vpow2.f32 %v4633_v8  ;;  %v4637_v55 = vmul.f32 -1.442695, %v7897_v6  ;;  %v7925_v9 = vadd.f32 %v7681_v19, %v4082_v28  ;;  %v4638_v12 = vmul.f32 -1.442695, %v7905_v41 }
 0x494   : > { %8338 = vst [vmem:[#allocation9_spill] sm:$0xff] %v7917_v0  ;;  %8339 = vst [vmem:[#allocation10_spill] sm:$0xff] %v7921_v29  ;;  %v5568_v16 = vpop.eup %5567  ;;  %5593 = vpow2.f32 %v4634_v34  ;;  %v7929_v27 = vadd.f32 %v7681_v19, %v4083_v40  ;;  %v4639_v3 = vmul.f32 -1.442695, %v7913_v14  ;;  %v4640_v2 = vmul.f32 -1.442695, %v7917_v0 }
 0x495   : > { %8340 = vst [vmem:[#allocation11_spill] sm:$0xff] %v7925_v9  ;;  %v5570_v37 = vpop.eup %5569  ;;  %5595 = vpow2.f32 %v4635_v53  ;;  %v4641_v6 = vmul.f32 -1.442695, %v7921_v29  ;;  %v4642_v34 = vmul.f32 -1.442695, %v7925_v9  ;;  %v4235_v53 = vadd.f32 1.0, %v7828_v56 }
 0x496   : > { %8341 = vst [vmem:[#allocation12_spill] sm:$0xff] %v7929_v27  ;;  %v5572_v50 = vpop.eup %5571  ;;  %5597 = vpow2.f32 %v4636_v61  ;;  %v4643_v19 = vmul.f32 -1.442695, %v7929_v27  ;;  %v4236_v61 = vadd.f32 1.0, %v7836_v63  ;;  %v4247_v27 = vadd.f32 1.0, %v5566_v32 }
 0x497   : > { %v5574_v8 = vpop.eup %5573  ;;  %5599 = vpow2.f32 %v4637_v55  ;;  %v4237_v55 = vadd.f32 1.0, %v7844_v57 }
 0x498   : > { %v5576_v28 = vpop.eup %5575  ;;  %5601 = vpow2.f32 %v4638_v12 }
 0x499   : > { %v5578_v41 = vpop.eup %5577  ;;  %5603 = vpow2.f32 %v4639_v3  ;;  %v4238_v3 = vadd.f32 1.0, %v7852_v39  ;;  %v4252_v32 = vadd.f32 1.0, %v5576_v28 }
 0x49a   : > { %v5580_v40 = vpop.eup %5579  ;;  %5605 = vpow2.f32 %v4640_v2  ;;  %v4239_v2 = vadd.f32 1.0, %v7860_v49  ;;  %v4243_v49 = vadd.f32 1.0, %v7892_v25  ;;  %v4253_v35 = vadd.f32 1.0, %v5578_v41  ;;  %v8342_v41 = vld [vmem:[#allocation19_spill] sm:$0xff] }
 0x49b   : > { %v5582_v14 = vpop.eup %5581  ;;  %5607 = vpow2.f32 %v4641_v6  ;;  %v4240_v6 = vadd.f32 1.0, %v7868_v43  ;;  %v4244_v43 = vadd.f32 1.0, %v7900_v1 }
 0x49c   : > { %v7938_v0 = vpop.eup %5583  ;;  %5609 = vpow2.f32 %v4642_v34  ;;  %v4241_v34 = vadd.f32 1.0, %v7876_v22  ;;  %v4245_v22 = vadd.f32 1.0, %v7908_v26  ;;  %v4250_v26 = vadd.f32 1.0, %v5572_v50 }
 0x49d   : > { %v7941_v12 = vpop.eup %5585  ;;  %5611 = vpow2.f32 %v4643_v19  ;;  %v4242_v19 = vadd.f32 1.0, %v7884_v51  ;;  %v4246_v51 = vadd.f32 1.0, %v5564_v31  ;;  %v4251_v31 = vadd.f32 1.0, %v5574_v8 }
 0x49e   : > { %v7944_v9 = vpop.eup %5587  ;;  %5613 = vrcp.f32 %v4235_v53  ;;  %v4255_v8 = vadd.f32 1.0, %v5582_v14 }
 0x49f   : > { %v7947_v56 = vpop.eup %5589  ;;  %5615 = vrcp.f32 %v4236_v61 }
 0x4a0   : > { %v7950_v63 = vpop.eup %5591  ;;  %5617 = vrcp.f32 %v4237_v55 }
 0x4a1   : > { %v7953_v57 = vpop.eup %5593  ;;  %5619 = vrcp.f32 %v4238_v3 }
 0x4a2   : > { %v7956_v39 = vpop.eup %5595  ;;  %5621 = vrcp.f32 %v4239_v2  ;;  %v4248_v2 = vadd.f32 1.0, %v5568_v16 }
 0x4a3   : > { %v7959_v53 = vpop.eup %5597  ;;  %5623 = vrcp.f32 %v4240_v6  ;;  %v4249_v6 = vadd.f32 1.0, %v5570_v37  ;;  %v4254_v37 = vadd.f32 1.0, %v5580_v40 }
 0x4a4   : > { %v7962_v61 = vpop.eup %5599  ;;  %5625 = vrcp.f32 %v4241_v34 }
 0x4a5   : > { %v7965_v55 = vpop.eup %5601  ;;  %5627 = vrcp.f32 %v4242_v19 }
 0x4a6   : > { %v7967_v3 = vpop.eup %5603  ;;  %5629 = vrcp.f32 %v4243_v49 }
 0x4a7   : > { %v7969_v25 = vpop.eup %5605  ;;  %5631 = vrcp.f32 %v4244_v43 }
 0x4a8   : > { %v7971_v1 = vpop.eup %5607  ;;  %5633 = vrcp.f32 %v4245_v22 }
 0x4a9   : > { %v7973_v29 = vpop.eup %5609  ;;  %5635 = vrcp.f32 %v4246_v51 }
 0x4aa   : > { %v7976_v34 = vpop.eup %5611  ;;  %5637 = vrcp.f32 %v4247_v27 }
 0x4ab   : > { %v5614_v19 = vpop.eup %5613  ;;  %5639 = vrcp.f32 %v4248_v2 }
 0x4ac   : > { %v5616_v49 = vpop.eup %5615  ;;  %5641 = vrcp.f32 %v4249_v6  ;;  %v4343_v16 = vmul.f32 %v5614_v19, %v7705_v62  ;;  %v4256_v62 = vadd.f32 1.0, %v7938_v0  ;;  %v8343_v6 = vld [vmem:[#allocation24_spill] sm:$0xff] }
 0x4ad   : > { %v5618_v43 = vpop.eup %5617  ;;  %5643 = vrcp.f32 %v4250_v26  ;;  %v4344_v50 = vmul.f32 %v5616_v49, %v7708_v48  ;;  %v4257_v48 = vadd.f32 1.0, %v7941_v12  ;;  %v4258_v49 = vadd.f32 1.0, %v7944_v9 }
 0x4ae   : > { %v5620_v27 = vpop.eup %5619  ;;  %5645 = vrcp.f32 %v4251_v31  ;;  %v4345_v28 = vmul.f32 %v5618_v43, %v7711_v46  ;;  %v4379_v22 = vmul.f32 %v4343_v16, %v8342_v41  ;;  %v8344_v31 = vld [vmem:[#allocation21_spill] sm:$0xff]  ;;  %v4259_v12 = vadd.f32 1.0, %v7947_v56  ;;  %v8347_v41 = vld [vmem:[#allocation34_spill] sm:$0xff] }
 0x4af   : > { %v5622_v51 = vpop.eup %5621  ;;  %5647 = vrcp.f32 %v4252_v32  ;;  %v4346_v2 = vmul.f32 %v5620_v27, %v7721_v45  ;;  %v4380_v40 = vmul.f32 %v4344_v50, %v8343_v6  ;;  %v8345_v45 = vld [vmem:[#allocation26_spill] sm:$0xff]  ;;  %v4260_v9 = vadd.f32 1.0, %v7950_v63 }
 0x4b0   : > { %v5624_v26 = vpop.eup %5623  ;;  %5649 = vrcp.f32 %v4253_v35  ;;  %v4347_v14 = vmul.f32 %v5622_v51, %v7731_v24  ;;  %v4381_v46 = vmul.f32 %v4345_v28, %v8344_v31  ;;  %4415 = vst [vmem:[%s7982_s22] sm:$0xff] %v4379_v22  ;;  %v8346_v35 = vld [vmem:[#allocation29_spill] sm:$0xff]  ;;  %v4261_v56 = vadd.f32 1.0, %v7953_v57 }
 0x4b1   : > { %v5626_v19 = vpop.eup %5625  ;;  %5651 = vrcp.f32 %v4254_v37  ;;  %v4348_v0 = vmul.f32 %v5624_v26, %v7739_v52  ;;  %v4382_v32 = vmul.f32 %v4346_v2, %v8345_v45  ;;  %4416 = vst [vmem:[%s7982_s22 + $0x8] sm:$0xff] %v4380_v40  ;;  %v4262_v63 = vadd.f32 1.0, %v7956_v39  ;;  %v8349_v40 = vld [vmem:[#allocation39_spill] sm:$0xff] }
 0x4b2   : > { %v5628_v16 = vpop.eup %5627  ;;  %5653 = vrcp.f32 %v4255_v8  ;;  %v4349_v24 = vmul.f32 %v5626_v19, %v7742_v15  ;;  %v4383_v43 = vmul.f32 %v4347_v14, %v8346_v35  ;;  %4417 = vst [vmem:[%s7982_s22 + $0x10] sm:$0xff] %v4381_v46  ;;  %v4263_v57 = vadd.f32 1.0, %v7959_v53  ;;  %v8351_v46 = vld [vmem:[#allocation43_spill] sm:$0xff] }
 0x4b3   : > { %v5630_v50 = vpop.eup %5629  ;;  %5655 = vrcp.f32 %v4256_v62  ;;  %v4350_v52 = vmul.f32 %v5628_v16, %v7752_v7  ;;  %v4384_v37 = vmul.f32 %v4348_v0, %v6971_v54  ;;  %4418 = vst [vmem:[%s7982_s22 + $0x18] sm:$0xff] %v4382_v32  ;;  %v4264_v39 = vadd.f32 1.0, %v7962_v61  ;;  %v8348_v62 = vld [vmem:[#allocation38_spill] sm:$0xff]  ;;  %v8352_v0 = vld [vmem:[#allocation44_spill] sm:$0xff]  ;;  %v8354_v35 = vld [vmem:[#allocation47_spill] sm:$0xff] }
 0x4b4   : > { %v5632_v27 = vpop.eup %5631  ;;  %5657 = vrcp.f32 %v4257_v48  ;;  %v4351_v15 = vmul.f32 %v5630_v50, %v7757_v58  ;;  %v4385_v8 = vmul.f32 %v4349_v24, %v6981_v42  ;;  %4419 = vst [vmem:[%s7982_s22 + $0x20] sm:$0xff] %v4383_v43  ;;  %v4265_v53 = vadd.f32 1.0, %v7965_v55  ;;  %v8350_v48 = vld [vmem:[#allocation40_spill] sm:$0xff]  ;;  %v8353_v16 = vld [vmem:[#allocation46_spill] sm:$0xff] }
 0x4b5   : > { %v5634_v28 = vpop.eup %5633  ;;  %5659 = vrcp.f32 %v4258_v49  ;;  %v4352_v7 = vmul.f32 %v5632_v27, %v7762_v5  ;;  %v4386_v54 = vmul.f32 %v4350_v52, %v8347_v41  ;;  %4420 = vst [vmem:[%s7982_s22 + $0x28] sm:$0xff] %v4384_v37  ;;  %v4266_v61 = vadd.f32 1.0, %v7967_v3 }
 0x4b6   : > { %v5636_v22 = vpop.eup %5635  ;;  %5661 = vrcp.f32 %v4259_v12  ;;  %v4353_v58 = vmul.f32 %v5634_v28, %v7767_v11  ;;  %v4387_v42 = vmul.f32 %v4351_v15, %v6998_v59  ;;  %4421 = vst [vmem:[%s7982_s22 + $0x30] sm:$0xff] %v4385_v8  ;;  %v4267_v55 = vadd.f32 1.0, %v7969_v25  ;;  %v8357_v15 = vld [vmem:[#allocation50_spill] sm:$0xff] }
 0x4b7   : > { %v5638_v51 = vpop.eup %5637  ;;  %5663 = vrcp.f32 %v4260_v9  ;;  %v4354_v5 = vmul.f32 %v5636_v22, %v7772_v38  ;;  %v4388_v2 = vmul.f32 %v4352_v7, %v8348_v62  ;;  %4422 = vst [vmem:[%s7982_s22 + $0x38] sm:$0xff] %v4386_v54  ;;  %v4268_v3 = vadd.f32 1.0, %v7971_v1  ;;  %v8355_v9 = vld [vmem:[#allocation48_spill] sm:$0xff] }
 0x4b8   : > { %v5640_v6 = vpop.eup %5639  ;;  %5665 = vrcp.f32 %v4261_v56  ;;  %v4355_v11 = vmul.f32 %v5638_v51, %v7777_v44  ;;  %v4389_v59 = vmul.f32 %v4353_v58, %v8349_v40  ;;  %4423 = vst [vmem:[%s7982_s22 + $0x40] sm:$0xff] %v4387_v42  ;;  %v4269_v25 = vadd.f32 1.0, %v7973_v29  ;;  %v8359_v54 = vld [vmem:[#allocation52_spill] sm:$0xff]  ;;  %v8360_v58 = vld [vmem:[#allocation53_spill] sm:$0xff] }
 0x4b9   : > { %v5642_v26 = vpop.eup %5641  ;;  %5667 = vrcp.f32 %v4262_v63  ;;  %v4356_v38 = vmul.f32 %v5640_v6, %v7783_v33  ;;  %v4390_v14 = vmul.f32 %v4354_v5, %v8350_v48  ;;  %4424 = vst [vmem:[%s7982_s22 + $0x48] sm:$0xff] %v4388_v2  ;;  %v4270_v1 = vadd.f32 1.0, %v7976_v34  ;;  %v8356_v34 = vld [vmem:[#allocation49_spill] sm:$0xff]  ;;  %v8358_v63 = vld [vmem:[#allocation51_spill] sm:$0xff] }
 0x4ba   : > { %v5644_v31 = vpop.eup %5643  ;;  %5669 = vrcp.f32 %v4263_v57  ;;  %v4357_v44 = vmul.f32 %v5642_v26, %v7789_v4  ;;  %v4391_v19 = vmul.f32 %v4355_v11, %v8351_v46  ;;  %4425 = vst [vmem:[%s7982_s22 + $0x50] sm:$0xff] %v4389_v59  ;;  %v8362_v2 = vld [vmem:[#allocation55_spill] sm:$0xff]  ;;  %v8364_v40 = vld [vmem:[#allocation45_spill] sm:$0xff] }
 0x4bb   : > { %v5646_v49 = vpop.eup %5645  ;;  %5671 = vrcp.f32 %v4264_v39  ;;  %v4358_v33 = vmul.f32 %v5644_v31, %v7795_v30  ;;  %v4392_v45 = vmul.f32 %v4356_v38, %v8352_v0  ;;  %4426 = vst [vmem:[%s7982_s22 + $0x58] sm:$0xff] %v4390_v14  ;;  %v8361_v39 = vld [vmem:[#allocation54_spill] sm:$0xff]  ;;  %v8366_v38 = vld [vmem:[#allocation20_spill] sm:$0xff] }
 0x4bc   : > { %v5648_v32 = vpop.eup %5647  ;;  %5673 = vrcp.f32 %v4265_v53  ;;  %v4359_v4 = vmul.f32 %v5646_v49, %v7801_v47  ;;  %v4393_v12 = vmul.f32 %v4357_v44, %v8353_v16  ;;  %4427 = vst [vmem:[%s7982_s22 + $0x60] sm:$0xff] %v4391_v19  ;;  %v8369_v19 = vld [vmem:[#allocation6_spill] sm:$0xff] }
 0x4bd   : > { %v5650_v24 = vpop.eup %5649  ;;  %5675 = vrcp.f32 %v4266_v61  ;;  %v4360_v30 = vmul.f32 %v5648_v32, %v7807_v36  ;;  %v4394_v43 = vmul.f32 %v4358_v33, %v8354_v35  ;;  %4428 = vst [vmem:[%s7982_s22 + $0x68] sm:$0xff] %v4392_v45  ;;  %v8371_v45 = vld [vmem:[#allocation7_spill] sm:$0xff] }
 0x4be   : > { %v5652_v50 = vpop.eup %5651  ;;  %5677 = vrcp.f32 %v4267_v55  ;;  %v4361_v29 = vmul.f32 %v5650_v24, %v7813_v60  ;;  %v4395_v47 = vmul.f32 %v4359_v4, %v8355_v9  ;;  %4429 = vst [vmem:[%s7982_s22 + $0x70] sm:$0xff] %v4393_v12  ;;  %v8368_v55 = vld [vmem:[#allocation22_spill] sm:$0xff]  ;;  %v8373_v12 = vld [vmem:[#allocation8_spill] sm:$0xff] }
 0x4bf   : > { %v5654_v52 = vpop.eup %5653  ;;  %5679 = vrcp.f32 %v4268_v3  ;;  %v4362_v37 = vmul.f32 %v5652_v50, %v7819_v18  ;;  %v4396_v27 = vmul.f32 %v4360_v30, %v8356_v34  ;;  %4430 = vst [vmem:[%s7982_s22 + $0x78] sm:$0xff] %v4394_v43  ;;  %v8370_v3 = vld [vmem:[#allocation25_spill] sm:$0xff]  ;;  %v8378_v34 = vld [vmem:[#allocation32_spill] sm:$0xff] }
 0x4c0   : > { %v5656_v36 = vpop.eup %5655  ;;  %5681 = vrcp.f32 %v4269_v25  ;;  %v4363_v56 = vmul.f32 %v5654_v52, %v7825_v13  ;;  %v4397_v8 = vmul.f32 %v4361_v29, %v8357_v15  ;;  %4431 = vst [vmem:[%s7982_s22 + $0x80] sm:$0xff] %v4395_v47  ;;  %v8372_v25 = vld [vmem:[#allocation30_spill] sm:$0xff]  ;;  %v8375_v43 = vld [vmem:[#allocation9_spill] sm:$0xff]  ;;  %v8376_v29 = vld [vmem:[#allocation31_spill] sm:$0xff] }
 0x4c1   : > { %v5658_v60 = vpop.eup %5657  ;;  %5683 = vrcp.f32 %v4270_v1  ;;  %v4364_v28 = vmul.f32 %v5656_v36, %v7833_v17  ;;  %v4398_v7 = vmul.f32 %v4362_v37, %v8358_v63  ;;  %4432 = vst [vmem:[%s7982_s22 + $0x88] sm:$0xff] %v4396_v27  ;;  %v8374_v1 = vld [vmem:[#allocation28_spill] sm:$0xff]  ;;  %v8377_v52 = vld [vmem:[#allocation10_spill] sm:$0xff] }
 0x4c2   : > { %v5660_v18 = vpop.eup %5659  ;;  %v4365_v41 = vmul.f32 %v5658_v60, %v7841_v21  ;;  %v4399_v22 = vmul.f32 %v4363_v56, %v8359_v54  ;;  %4433 = vst [vmem:[%s7982_s22 + $0x90] sm:$0xff] %v4397_v8  ;;  %v8379_v56 = vld [vmem:[#allocation11_spill] sm:$0xff] }
 0x4c3   : > { %v5662_v13 = vpop.eup %5661  ;;  %v4366_v57 = vmul.f32 %v5660_v18, %v7849_v20  ;;  %v4400_v42 = vmul.f32 %v4364_v28, %v8360_v58  ;;  %4434 = vst [vmem:[%s7982_s22 + $0x98] sm:$0xff] %v4398_v7  ;;  %v8363_v20 = vld [vmem:[#allocation3_spill] sm:$0xff]  ;;  %v8381_v28 = vld [vmem:[#allocation12_spill] sm:$0xff]  ;;  %v8382_v7 = vld [vmem:[#allocation33_spill] sm:$0xff] }
 0x4c4   : > { %v5664_v51 = vpop.eup %5663  ;;  %v4367_v17 = vmul.f32 %v5662_v13, %v7857_v10  ;;  %v4401_v5 = vmul.f32 %v4365_v41, %v8361_v39  ;;  %4435 = vst [vmem:[%s7982_s22 + $0xa0] sm:$0xff] %v4399_v22  ;;  %v8365_v10 = vld [vmem:[#allocation4_spill] sm:$0xff]  ;;  %v8380_v8 = vld [vmem:[#allocation35_spill] sm:$0xff]  ;;  %v8384_v22 = vld [vmem:[#allocation37_spill] sm:$0xff] }
 0x4c5   : > { %v5666_v62 = vpop.eup %5665  ;;  %v4368_v21 = vmul.f32 %v5664_v51, %v7865_v23  ;;  %v4402_v6 = vmul.f32 %v4366_v57, %v8362_v2  ;;  %4436 = vst [vmem:[%s7982_s22 + $0xa8] sm:$0xff] %v4400_v42  ;;  %v8367_v23 = vld [vmem:[#allocation5_spill] sm:$0xff]  ;;  %v8383_v41 = vld [vmem:[#allocation36_spill] sm:$0xff] }
 0x4c6   : > { %v5668_v53 = vpop.eup %5667  ;;  %v4369_v11 = vmul.f32 %v5666_v62, %v8363_v20  ;;  %v4403_v59 = vmul.f32 %v4367_v17, %v8364_v40  ;;  %4437 = vst [vmem:[%s7982_s22 + $0xb0] sm:$0xff] %v4401_v5 }
 0x4c7   : > { %v5670_v26 = vpop.eup %5669  ;;  %v4370_v61 = vmul.f32 %v5668_v53, %v8365_v10  ;;  %v4404_v48 = vmul.f32 %v4368_v21, %v8366_v38  ;;  %4438 = vst [vmem:[%s7982_s22 + $0xb8] sm:$0xff] %v4402_v6 }
 0x4c8   : > { %v5672_v14 = vpop.eup %5671  ;;  %v4371_v31 = vmul.f32 %v5670_v26, %v8367_v23  ;;  %v4405_v44 = vmul.f32 %v4369_v11, %v8368_v55  ;;  %4439 = vst [vmem:[%s7982_s22 + $0xc0] sm:$0xff] %v4403_v59 }
 0x4c9   : > { %v5674_v46 = vpop.eup %5673  ;;  %v4372_v49 = vmul.f32 %v5672_v14, %v8369_v19  ;;  %v4406_v33 = vmul.f32 %v4370_v61, %v8370_v3  ;;  %4440 = vst [vmem:[%s7982_s22 + $0xc8] sm:$0xff] %v4404_v48 }
 0x4ca   : > { %v5676_v0 = vpop.eup %5675  ;;  %v4373_v32 = vmul.f32 %v5674_v46, %v8371_v45  ;;  %v4407_v4 = vmul.f32 %v4371_v31, %v8372_v25  ;;  %4441 = vst [vmem:[%s7982_s22 + $0xd0] sm:$0xff] %v4405_v44 }
 0x4cb   : > { %v5678_v16 = vpop.eup %5677  ;;  %v4374_v24 = vmul.f32 %v5676_v0, %v8373_v12  ;;  %v4408_v30 = vmul.f32 %v4372_v49, %v8374_v1  ;;  %4442 = vst [vmem:[%s7982_s22 + $0xd8] sm:$0xff] %v4406_v33 }
 0x4cc   : > { %v5680_v35 = vpop.eup %5679  ;;  %v4375_v50 = vmul.f32 %v5678_v16, %v8375_v43  ;;  %v4409_v9 = vmul.f32 %v4373_v32, %v8376_v29  ;;  %4443 = vst [vmem:[%s7982_s22 + $0xe0] sm:$0xff] %v4407_v4 }
 0x4cd   : > { %v5682_v47 = vpop.eup %5681  ;;  %v4376_v37 = vmul.f32 %v5680_v35, %v8377_v52  ;;  %v4410_v27 = vmul.f32 %v4374_v24, %v8378_v34  ;;  %4444 = vst [vmem:[%s7982_s22 + $0xe8] sm:$0xff] %v4408_v30 }
 0x4ce   : > { %v5684_v36 = vpop.eup %5683  ;;  %v4377_v15 = vmul.f32 %v5682_v47, %v8379_v56  ;;  %v4411_v60 = vmul.f32 %v4375_v50, %v8380_v8  ;;  %4445 = vst [vmem:[%s7982_s22 + $0xf0] sm:$0xff] %v4409_v9 }
 0x4cf   : > { %v4378_v63 = vmul.f32 %v5684_v36, %v8381_v28  ;;  %v4412_v18 = vmul.f32 %v4376_v37, %v8382_v7  ;;  %4446 = vst [vmem:[%s7982_s22 + $0xf8] sm:$0xff] %v4410_v27 }
 0x4d0   : > { %v4413_v54 = vmul.f32 %v4377_v15, %v8383_v41  ;;  %4447 = vst [vmem:[%s7982_s22 + $0x100] sm:$0xff] %v4411_v60 }
 0x4d1   : > { %v4414_v13 = vmul.f32 %v4378_v63, %v8384_v22  ;;  %4448 = vst [vmem:[%s7982_s22 + $0x108] sm:$0xff] %v4412_v18 }
 0x4d2   : > { %4449 = vst [vmem:[%s7982_s22 + $0x110] sm:$0xff] %v4413_v54 }
 0x4d3   : > { %4450 = vst [vmem:[%s7982_s22 + $0x118] sm:$0xff] %v4414_v13 }
 0x4d4 PF: > { %s19_s30 = sadd.s32 1, %s5691_s30  }
 0x4d5   : > { %p16_p4 = scmp.ge.s32.totalorder %s19_s30, 4  }
 0x4d7   :  { %18 = sbr.rel (!%p16_p4) target bundleno = 1 (0x1), region = 92 }

// kernel: _lambda_.3
= control target key start
LH: loop header
LB: loop body
LE: loop exit
PB: predicated region body
PF: predicated region fallthrough
CT: control target
= control target key end

     0   :  { %s6162_s13 = smov 0   ;;  %s8988_s0 = inlined_call_operand.vmem [shape: f32[2,336,128], index: 0, kind: input, shape index: {}]   ;;  %s8989_s1 = inlined_call_operand.vmem [shape: bf16[1152,128], index: 1, kind: input, shape index: {}]   ;;  %s8990_s2 = inlined_call_operand.vmem [shape: f32[1,128], index: 2, kind: input, shape index: {}]   ;;  %s8991_s3 = inlined_call_operand.vmem [shape: f32[128,128], index: 3, kind: input, shape index: {}]   ;;  %s8992_s4 = inlined_call_operand.vmem [shape: f32[1,128], index: 4, kind: input, shape index: {}]   ;;  %s8993_s5 = inlined_call_operand.vmem [shape: f32[1,128], index: 5, kind: input, shape index: {}]   ;;  %s8994_s6 = inlined_call_operand.vmem [shape: f32[288,1], index: 6, kind: input, shape index: {}]   ;;  %s8995_s7 = inlined_call_operand.vmem [shape: f32[2,336,128], index: 7, kind: input, shape index: {}]   ;;  %s8996_s8 = inlined_call_operand.vmem [shape: bf16[128,128], index: 8, kind: input, shape index: {}]   ;;  %s8997_s9 = inlined_call_operand.vmem [shape: f32[1,128], index: 9, kind: input, shape index: {}]   ;;  %s8998_s10 = inlined_call_operand.vmem [shape: f32[2,288,128], index: 10, kind: output, shape index: {}]  }
   0x1 LB: > { %s4825_s14 = sadd.s32 4294967295, %s6102_s13   ;;  %p4829_p0 = scmp.ge.s32.totalorder %s6102_s13, 1  ;;  %s6102_s13 = sphi %s6162_s13, %s20_s13  }
   0x2   : > { %p322_p1 = scmp.lt.s32.totalorder %s6102_s13, 3 }
   0x4   : > { %p323_p2 = pnand %p4829_p0, %p322_p1 }
   0x6   : > { %326 = sbr.rel (%p323_p2) target bundleno = 1259 (0x4eb), region = 60 }
   0xb   : > { %v5870_v0 = vld [vmem:[%s8989_s1 + $0x78] sm:$0xff]   ;;  %p365_p3 = scmp.lt.s32.totalorder %s4825_s14, 1  ;;  %v5871_v1 = vld [vmem:[%s8989_s1 + $0x70] sm:$0xff]   ;;  %v5872_v2 = vld [vmem:[%s8989_s1 + $0x68] sm:$0xff]   ;;  %vm6106_vm0 = vmmov 0  }
   0xc   : > { %5249 = vmatprep.subr.bf16.mxu0 %v5870_v0  ;;  %v5873_v3 = vld [vmem:[%s8989_s1 + $0x60] sm:$0xff]   ;;  %v5878_v7 = vld [vmem:[%s8989_s1 + $0x38] sm:$0xff]   ;;  %v5879_v8 = vld [vmem:[%s8989_s1 + $0x30] sm:$0xff]  }
   0xd   : > { %s9360_s14 = smov (!%p365_p3, %s4825_s14), 1  ;;  %5250 = vmatpush3.bf16.msra.mxu0 %v5870_v0  ;;  %v5874_v9 = vld [vmem:[%s8989_s1 + $0x58] sm:$0xff]   ;;  %5839 = vmatprep.subr.bf16.mxu1 %v5878_v7  ;;  %v6206_v10 = vld [vmem:[%s8989_s1 + $0x28] sm:$0xff]   ;;  %v5875_v11 = vld [vmem:[%s8989_s1 + $0x50] sm:$0xff]  }
   0xe   : > { %5251 = vmatprep.subr.bf16.mxu0 %v5871_v1  ;;  %s5855_s21 = smul.u32 336, %s9360_s14  ;;  %5847 = vmatpush3.bf16.msra.mxu1 %v5878_v7  ;;  %v6215_v12 = vld [vmem:[%s8989_s1 + $0x20] sm:$0xff]   ;;  %v5876_v13 = vld [vmem:[%s8989_s1 + $0x48] sm:$0xff]   ;;  %v6225_v14 = vld [vmem:[%s8989_s1 + $0x18] sm:$0xff]  }
   0xf   : > { %5840 = vmatprep.subr.bf16.mxu1 %v5879_v8  ;;  %v5877_v18 = vld [vmem:[%s8989_s1 + $0x40] sm:$0xff]   ;;  %v6237_v19 = vld [vmem:[%s8989_s1 + $0x10] sm:$0xff]   ;;  %v6248_v25 = vld [vmem:[%s8989_s1 + $0x8] sm:$0xff]   ;;  %s5856_s11 = smul.u32 288, %s9360_s14 }
  0x10   : > { %s6187_s24 = scalar_lea.vmem %s8988_s0, %s5855_s21  ;;  %v6258_v30 = vld [vmem:[%s8989_s1] sm:$0xff]   ;;  %v5887_v37 = vld [vmem:[%s8989_s1 + $0xf8] sm:$0xff]   ;;  %v5889_v43 = vld [vmem:[%s8989_s1 + $0xf0] sm:$0xff]   ;;  %s8367_s30 = scalar_lea.vmem %s8995_s7, %s5855_s21 }
  0x11   : > { %5252 = vmatpush3.bf16.msra.mxu0 %v5871_v1  ;;  %v451_v4 = vld [vmem:[%s6187_s24 + $0x1] sm:$0xff]  ;;  %v452_v5 = vld [vmem:[%s6187_s24 + $0x9] sm:$0xff]  ;;  %v453_v20 = vld [vmem:[%s6187_s24 + $0x11] sm:$0xff]  ;;  %s8714_s17 = scalar_lea.vmem %s8998_s10, %s5856_s11 }
  0x12   : > { %5253 = vmatprep.subr.bf16.mxu0 %v5872_v2  ;;  %v487_v6 = vpack.c.bf16 %v452_v5, %v451_v4  ;;  %5848 = vmatpush3.bf16.msra.mxu1 %v5879_v8  ;;  %v397_v15 = vld [vmem:[%s6187_s24 + $0x80] sm:$0xff]  ;;  %v398_v16 = vld [vmem:[%s6187_s24 + $0x88] sm:$0xff]  ;;  %v457_v27 = vld [vmem:[%s6187_s24 + $0x31] sm:$0xff] }
  0x13   : > { %5841 = vmatprep.subr.bf16.mxu1 %v6206_v10  ;;  %v425_v17 = vpack.c.bf16 %v398_v16, %v397_v15  ;;  %v454_v21 = vld [vmem:[%s6187_s24 + $0x19] sm:$0xff]  ;;  %v455_v22 = vld [vmem:[%s6187_s24 + $0x21] sm:$0xff]  ;;  %v456_v23 = vld [vmem:[%s6187_s24 + $0x29] sm:$0xff] }
  0x14   : > { %5265 = vmatprep.mubr.bf16.mxu0 %v487_v6  ;;  %v488_v24 = vpack.c.bf16 %v454_v21, %v453_v20  ;;  %v489_v26 = vpack.c.bf16 %v456_v23, %v455_v22  ;;  %v458_v28 = vld [vmem:[%s6187_s24 + $0x39] sm:$0xff]  ;;  %v459_v29 = vld [vmem:[%s6187_s24 + $0x41] sm:$0xff]  ;;  %v460_v31 = vld [vmem:[%s6187_s24 + $0x49] sm:$0xff] }
  0x15   : > { %5254 = vmatpush3.bf16.msra.mxu0 %v5872_v2  ;;  %5333 = vmatprep.mubr.bf16.mxu1 %v425_v17  ;;  %v399_v32 = vld [vmem:[%s6187_s24 + $0x90] sm:$0xff]  ;;  %v400_v33 = vld [vmem:[%s6187_s24 + $0x98] sm:$0xff]  ;;  %v401_v34 = vld [vmem:[%s6187_s24 + $0xa0] sm:$0xff]  ;;  %v490_v36 = vpack.c.bf16 %v458_v28, %v457_v27  ;;  %v491_v38 = vpack.c.bf16 %v460_v31, %v459_v29 }
  0x16   : > { %5255 = vmatprep.subr.bf16.mxu0 %v5873_v3  ;;  %5849 = vmatpush3.bf16.msra.mxu1 %v6206_v10  ;;  %v402_v35 = vld [vmem:[%s6187_s24 + $0xa8] sm:$0xff]  ;;  %v426_v39 = vpack.c.bf16 %v400_v33, %v399_v32  ;;  %v461_v40 = vld [vmem:[%s6187_s24 + $0x51] sm:$0xff]  ;;  %v462_v41 = vld [vmem:[%s6187_s24 + $0x59] sm:$0xff] }
  0x17   : > { %5842 = vmatprep.subr.bf16.mxu1 %v6215_v12  ;;  %v427_v42 = vpack.c.bf16 %v402_v35, %v401_v34  ;;  %v463_v44 = vld [vmem:[%s6187_s24 + $0x61] sm:$0xff]  ;;  %v464_v45 = vld [vmem:[%s6187_s24 + $0x69] sm:$0xff]  ;;  %v404_v47 = vld [vmem:[%s6187_s24 + $0xb8] sm:$0xff]  ;;  %v492_v49 = vpack.c.bf16 %v462_v41, %v461_v40 }
  0x18   : > { %v403_v46 = vld [vmem:[%s6187_s24 + $0xb0] sm:$0xff]  ;;  %v405_v48 = vld [vmem:[%s6187_s24 + $0xc0] sm:$0xff]  ;;  %v406_v50 = vld [vmem:[%s6187_s24 + $0xc8] sm:$0xff]  ;;  %v493_v52 = vpack.c.bf16 %v464_v45, %v463_v44 }
  0x19   : > { %5256 = vmatpush3.bf16.msra.mxu0 %v5873_v3  ;;  %v5891_v51 = vld [vmem:[%s8989_s1 + $0xe8] sm:$0xff]   ;;  %v428_v53 = vpack.c.bf16 %v404_v47, %v403_v46  ;;  %v465_v54 = vld [vmem:[%s6187_s24 + $0x71] sm:$0xff]  ;;  %v466_v55 = vld [vmem:[%s6187_s24 + $0x79] sm:$0xff]  ;;  %v429_v56 = vpack.c.bf16 %v406_v50, %v405_v48 }
  0x1a   : > { %5257 = vmatprep.subr.bf16.mxu0 %v5874_v9  ;;  %5850 = vmatpush3.bf16.msra.mxu1 %v6215_v12  ;;  %v467_v57 = vld [vmem:[%s6187_s24 + $0x81] sm:$0xff]  ;;  %v468_v59 = vld [vmem:[%s6187_s24 + $0x89] sm:$0xff]  ;;  %v408_v61 = vld [vmem:[%s6187_s24 + $0xd8] sm:$0xff]  ;;  %v494_v0 = vpack.c.bf16 %v466_v55, %v465_v54 }
  0x1b   : > { %5843 = vmatprep.subr.bf16.mxu1 %v6225_v14  ;;  %v5893_v58 = vld [vmem:[%s8989_s1 + $0xe0] sm:$0xff]   ;;  %v407_v60 = vld [vmem:[%s6187_s24 + $0xd0] sm:$0xff]  ;;  %v410_v63 = vld [vmem:[%s6187_s24 + $0xe8] sm:$0xff]  ;;  %v495_v2 = vpack.c.bf16 %v468_v59, %v467_v57 }
  0x1c   : > { %v409_v62 = vld [vmem:[%s6187_s24 + $0xe0] sm:$0xff]  ;;  %v5895_v1 = vld [vmem:[%s8989_s1 + $0xd8] sm:$0xff]   ;;  %v430_v3 = vpack.c.bf16 %v408_v61, %v407_v60  ;;  %v5897_v6 = vld [vmem:[%s8989_s1 + $0xd0] sm:$0xff]  }
  0x1d   : > { %5258 = vmatpush3.bf16.msra.mxu0 %v5874_v9  ;;  %v431_v4 = vpack.c.bf16 %v410_v63, %v409_v62  ;;  %v469_v5 = vld [vmem:[%s6187_s24 + $0x91] sm:$0xff]  ;;  %v472_v9 = vld [vmem:[%s6187_s24 + $0xa9] sm:$0xff]  ;;  %v474_v21 = vld [vmem:[%s6187_s24 + $0xb9] sm:$0xff] }
  0x1e   : > { %5259 = vmatprep.subr.bf16.mxu0 %v5875_v11  ;;  %5851 = vmatpush3.bf16.msra.mxu1 %v6225_v14  ;;  %v414_v15 = vld [vmem:[%s6187_s24 + $0x108] sm:$0xff]  ;;  %v473_v20 = vld [vmem:[%s6187_s24 + $0xb1] sm:$0xff]  ;;  %v5901_v22 = vld [vmem:[%s8989_s1 + $0xc0] sm:$0xff]  }
  0x1f   : > { %5844 = vmatprep.subr.bf16.mxu1 %v6237_v19  ;;  %v5899_v16 = vld [vmem:[%s8989_s1 + $0xc8] sm:$0xff]   ;;  %v973_v27 = vld [vmem:[%s6187_s24 + $0x12] sm:$0xff]  ;;  %v974_v28 = vld [vmem:[%s6187_s24 + $0x1a] sm:$0xff]  ;;  %v498_v29 = vpack.c.bf16 %v474_v21, %v473_v20 }
  0x20   : > { %v475_v23 = vld [vmem:[%s6187_s24 + $0xc1] sm:$0xff]  ;;  %v477_v33 = vld [vmem:[%s6187_s24 + $0xd1] sm:$0xff]  ;;  %v6346_v34 = vpack.c.bf16 %v974_v28, %v973_v27  ;;  %v478_v35 = vld [vmem:[%s6187_s24 + $0xd9] sm:$0xff] }
  0x21   : > { %5260 = vmatpush3.bf16.msra.mxu0 %v5875_v11  ;;  %v411_v11 = vld [vmem:[%s6187_s24 + $0xf0] sm:$0xff]  ;;  %v500_v41 = vpack.c.bf16 %v478_v35, %v477_v33  ;;  %v482_v47 = vld [vmem:[%s6187_s24 + $0xf9] sm:$0xff]  ;;  %v5916_v21 = vld [vmem:[%s8989_s1 + $0x148] sm:$0xff]  }
  0x22   : > { %5261 = vmatprep.subr.bf16.mxu0 %v5876_v13  ;;  %5852 = vmatpush3.bf16.msra.mxu1 %v6237_v19  ;;  %v977_v40 = vld [vmem:[%s6187_s24 + $0x32] sm:$0xff]  ;;  %v484_v50 = vld [vmem:[%s6187_s24 + $0x109] sm:$0xff]  ;;  %v982_v54 = vld [vmem:[%s6187_s24 + $0x5a] sm:$0xff] }
  0x23   : > { %5845 = vmatprep.subr.bf16.mxu1 %v6248_v25  ;;  %v481_v45 = vld [vmem:[%s6187_s24 + $0xf1] sm:$0xff]  ;;  %v486_v60 = vld [vmem:[%s6187_s24 + $0x119] sm:$0xff] }
  0x24   : > { %v5909_v48 = vld [vmem:[%s8989_s1 + $0x170] sm:$0xff]   ;;  %v502_v55 = vpack.c.bf16 %v482_v47, %v481_v45  ;;  %v381_v62 = vld [vmem:[%s6187_s24] sm:$0xff]  ;;  %v394_v47 = vld [vmem:[%s6187_s24 + $0x68] sm:$0xff] }
  0x25   : > { %5262 = vmatpush3.bf16.msra.mxu0 %v5876_v13  ;;  %v413_v13 = vld [vmem:[%s6187_s24 + $0x100] sm:$0xff]  ;;  %v485_v59 = vld [vmem:[%s6187_s24 + $0x111] sm:$0xff] }
  0x26   : > { %5263 = vmatprep.subr.bf16.mxu0 %v5877_v18  ;;  %5853 = vmatpush3.bf16.msra.mxu1 %v6248_v25  ;;  %v5912_v63 = vld [vmem:[%s8989_s1 + $0x160] sm:$0xff]   ;;  %v1321_v33 = vld [vmem:[%s6187_s24 + $0xaa] sm:$0xff] }
  0x27   : > { %5846 = vmatprep.subr.bf16.mxu1 %v6258_v30  ;;  %v990_v20 = vld [vmem:[%s6187_s24 + $0x9a] sm:$0xff] }
  0x28   : > { %v5917_v28 = vld [vmem:[%s8989_s1 + $0x140] sm:$0xff]  }
  0x29   : > { %5264 = vmatpush3.bf16.msra.mxu0 %v5877_v18  ;;  %v393_v45 = vld [vmem:[%s6187_s24 + $0x60] sm:$0xff] }
  0x2a   : > { %5301 = vmatprep.subr.bf16.mxu0 %v5878_v7  ;;  %5854 = vmatpush3.bf16.msra.mxu1 %v6258_v30 }
  0x2b   : > { %5405 = vmatprep.subr.bf16.mxu1 %v5887_v37 }
  0x2c   : > { %5266 = vmatmul.mubr.bf16.vlgmr.msra.gmra.mxu0 %v488_v24  ;;  %v476_v24 = vld [vmem:[%s6187_s24 + $0xc9] sm:$0xff] }
  0x2d   : > { %5302 = vmatpush3.bf16.msra.mxu0 %v5878_v7  ;;  %5269 = vmatprep.mubr.bf16.mxu0 %v489_v26  ;;  %v470_v7 = vld [vmem:[%s6187_s24 + $0x99] sm:$0xff]  ;;  %v499_v31 = vpack.c.bf16 %v476_v24, %v475_v23  ;;  %v5888_v23 = vld [vmem:[%s8989_s1 + $0xb0] sm:$0xff]  }
  0x2e   : > { %5303 = vmatprep.subr.bf16.mxu0 %v5879_v8  ;;  %5334 = vmatmul.mubr.bf16.vlgmr.msra.gmra.mxu1 %v426_v39  ;;  %v416_v26 = vld [vmem:[%s6187_s24 + $0x118] sm:$0xff]  ;;  %v1305_v39 = vld [vmem:[%s6187_s24 + $0x2a] sm:$0xff] }
  0x2f   : > { %5337 = vmatprep.mubr.bf16.mxu1 %v427_v42  ;;  %5406 = vmatpush3.bf16.msra.mxu1 %v5887_v37  ;;  %v480_v37 = vld [vmem:[%s6187_s24 + $0xe9] sm:$0xff]  ;;  %v978_v42 = vld [vmem:[%s6187_s24 + $0x3a] sm:$0xff] }
  0x30   : > { %5407 = vmatprep.subr.bf16.mxu1 %v5889_v43  ;;  %v6359_v46 = vpack.c.bf16 %v978_v42, %v977_v40  ;;  %v391_v40 = vld [vmem:[%s6187_s24 + $0x50] sm:$0xff] }
  0x31   : > { %5304 = vmatpush3.bf16.msra.mxu0 %v5879_v8  ;;  %v471_v8 = vld [vmem:[%s6187_s24 + $0xa1] sm:$0xff] }
  0x32   : > { %5305 = vmatprep.subr.bf16.mxu0 %v6206_v10  ;;  %v497_v17 = vpack.c.bf16 %v472_v9, %v471_v8  ;;  %v383_v9 = vld [vmem:[%s6187_s24 + $0x10] sm:$0xff] }
  0x33   : > { %5408 = vmatpush3.bf16.msra.mxu1 %v5889_v43 }
  0x34   : > { %5270 = vmatmul.mubr.bf16.gmra.mxu0 %v490_v36  ;;  %5409 = vmatprep.subr.bf16.mxu1 %v5891_v51  ;;  %v479_v36 = vld [vmem:[%s6187_s24 + $0xe1] sm:$0xff] }
  0x35   : > { %5273 = vmatprep.mubr.bf16.mxu0 %v491_v38  ;;  %5306 = vmatpush3.bf16.msra.mxu0 %v6206_v10  ;;  %v6320_v10 = vld [vmem:[%s8989_s1 + $0xb8] sm:$0xff]   ;;  %v1304_v38 = vld [vmem:[%s6187_s24 + $0x22] sm:$0xff]  ;;  %v501_v43 = vpack.c.bf16 %v480_v37, %v479_v36 }
  0x36   : > { %5307 = vmatprep.subr.bf16.mxu0 %v6215_v12  ;;  %5338 = vmatmul.mubr.bf16.gmra.mxu1 %v428_v53  ;;  %v6356_v44 = vpack.c.bf16 %v1305_v39, %v1304_v38  ;;  %v981_v53 = vld [vmem:[%s6187_s24 + $0x52] sm:$0xff]  ;;  %v994_v37 = vld [vmem:[%s6187_s24 + $0xba] sm:$0xff] }
  0x37   : > { %5341 = vmatprep.mubr.bf16.mxu1 %v429_v56  ;;  %5410 = vmatpush3.bf16.msra.mxu1 %v5891_v51  ;;  %v1308_v51 = vld [vmem:[%s6187_s24 + $0x42] sm:$0xff]  ;;  %v6380_v61 = vpack.c.bf16 %v982_v54, %v981_v53  ;;  %v993_v36 = vld [vmem:[%s6187_s24 + $0xb2] sm:$0xff]  ;;  %v423_v53 = vpack.c.bf16 %v394_v47, %v393_v45 }
  0x38   : > { %5411 = vmatprep.subr.bf16.mxu1 %v5893_v58  ;;  %v5910_v56 = vld [vmem:[%s8989_s1 + $0x168] sm:$0xff]   ;;  %v5892_v38 = vld [vmem:[%s8989_s1 + $0xa0] sm:$0xff]   ;;  %v6447_v42 = vpack.c.bf16 %v994_v37, %v993_v36  ;;  %v5896_v54 = vld [vmem:[%s8989_s1 + $0x90] sm:$0xff]  }
  0x39   : > { %5308 = vmatpush3.bf16.msra.mxu0 %v6215_v12  ;;  %v412_v12 = vld [vmem:[%s6187_s24 + $0xf8] sm:$0xff]  ;;  %v5925_v36 = vld [vmem:[%s8989_s1 + $0x1f0] sm:$0xff]   ;;  %v5911_v37 = vld [vmem:[%s8989_s1 + $0x108] sm:$0xff]  }
  0x3a   : > { %5309 = vmatprep.subr.bf16.mxu0 %v6225_v14  ;;  %v432_v18 = vpack.c.bf16 %v412_v12, %v411_v11  ;;  %v384_v11 = vld [vmem:[%s6187_s24 + $0x18] sm:$0xff]  ;;  %v5928_v47 = vld [vmem:[%s8989_s1 + $0x1e0] sm:$0xff]  }
  0x3b   : > { %5412 = vmatpush3.bf16.msra.mxu1 %v5893_v58 }
  0x3c   : > { %5274 = vmatmul.mubr.bf16.gmra.mxu0 %v492_v49  ;;  %5413 = vmatprep.subr.bf16.mxu1 %v5895_v1  ;;  %v483_v49 = vld [vmem:[%s6187_s24 + $0x101] sm:$0xff] }
  0x3d   : > { %5277 = vmatprep.mubr.bf16.mxu0 %v493_v52  ;;  %5310 = vmatpush3.bf16.msra.mxu0 %v6225_v14  ;;  %v496_v14 = vpack.c.bf16 %v470_v7, %v469_v5  ;;  %v1309_v52 = vld [vmem:[%s6187_s24 + $0x4a] sm:$0xff]  ;;  %v503_v57 = vpack.c.bf16 %v484_v50, %v483_v49  ;;  %v5913_v5 = vld [vmem:[%s8989_s1 + $0x158] sm:$0xff]  }
  0x3e   : > { %5311 = vmatprep.subr.bf16.mxu0 %v6237_v19  ;;  %5342 = vmatmul.mubr.bf16.gmra.mxu1 %v430_v3  ;;  %v6376_v58 = vpack.c.bf16 %v1309_v52, %v1308_v51  ;;  %v985_v3 = vld [vmem:[%s6187_s24 + $0x72] sm:$0xff]  ;;  %v1325_v49 = vld [vmem:[%s6187_s24 + $0xca] sm:$0xff]  ;;  %v998_v52 = vld [vmem:[%s6187_s24 + $0xda] sm:$0xff] }
  0x3f   : > { %5345 = vmatprep.mubr.bf16.mxu1 %v431_v4  ;;  %5414 = vmatpush3.bf16.msra.mxu1 %v5895_v1  ;;  %v1312_v1 = vld [vmem:[%s6187_s24 + $0x62] sm:$0xff]  ;;  %v986_v4 = vld [vmem:[%s6187_s24 + $0x7a] sm:$0xff]  ;;  %v997_v51 = vld [vmem:[%s6187_s24 + $0xd2] sm:$0xff] }
  0x40   : > { %5415 = vmatprep.subr.bf16.mxu1 %v5897_v6  ;;  %v6400_v12 = vpack.c.bf16 %v986_v4, %v985_v3  ;;  %v1001_v4 = vld [vmem:[%s6187_s24 + $0xf2] sm:$0xff] }
  0x41   : > { %5312 = vmatpush3.bf16.msra.mxu0 %v6237_v19  ;;  %v433_v19 = vpack.c.bf16 %v414_v15, %v413_v13  ;;  %v5914_v13 = vld [vmem:[%s8989_s1 + $0x150] sm:$0xff]   ;;  %v386_v15 = vld [vmem:[%s6187_s24 + $0x28] sm:$0xff] }
  0x42   : > { %5313 = vmatprep.subr.bf16.mxu0 %v6248_v25 }
  0x43   : > { %5416 = vmatpush3.bf16.msra.mxu1 %v5897_v6  ;;  %v504_v6 = vpack.c.bf16 %v486_v60, %v485_v59  ;;  %v6467_v59 = vpack.c.bf16 %v998_v52, %v997_v51  ;;  %v6472_v60 = vld [vmem:[%s8989_s1 + $0x1f8] sm:$0xff]  }
  0x44   : > { %5278 = vmatmul.mubr.bf16.gmra.mxu0 %v494_v0  ;;  %5417 = vmatprep.subr.bf16.mxu1 %v5899_v16  ;;  %v382_v0 = vld [vmem:[%s6187_s24 + $0x8] sm:$0xff]  ;;  %v1977_v51 = vld [vmem:[%s6187_s24 + $0x7c] sm:$0xff] }
  0x45   : > { %5281 = vmatprep.mubr.bf16.mxu0 %v495_v2  ;;  %5314 = vmatpush3.bf16.msra.mxu0 %v6248_v25  ;;  %v415_v25 = vld [vmem:[%s6187_s24 + $0x110] sm:$0xff]  ;;  %v417_v7 = vpack.c.bf16 %v382_v0, %v381_v62  ;;  %v5898_v62 = vld [vmem:[%s8989_s1 + $0x88] sm:$0xff]  }
  0x46   : > { %5315 = vmatprep.subr.bf16.mxu0 %v6258_v30  ;;  %5346 = vmatmul.mubr.bf16.gmra.mxu1 %v432_v18  ;;  %v434_v32 = vpack.c.bf16 %v416_v26, %v415_v25  ;;  %v1313_v2 = vld [vmem:[%s6187_s24 + $0x6a] sm:$0xff]  ;;  %v989_v18 = vld [vmem:[%s6187_s24 + $0x92] sm:$0xff] }
  0x47   : > { %5349 = vmatprep.mubr.bf16.mxu1 %v433_v19  ;;  %5418 = vmatpush3.bf16.msra.mxu1 %v5899_v16  ;;  %v6396_v8 = vpack.c.bf16 %v1313_v2, %v1312_v1  ;;  %v1316_v16 = vld [vmem:[%s6187_s24 + $0x82] sm:$0xff]  ;;  %v418_v19 = vpack.c.bf16 %v384_v11, %v383_v9  ;;  %v387_v25 = vld [vmem:[%s6187_s24 + $0x30] sm:$0xff]  ;;  %v388_v26 = vld [vmem:[%s6187_s24 + $0x38] sm:$0xff]  ;;  %v6423_v27 = vpack.c.bf16 %v990_v20, %v989_v18 }
  0x48   : > { %5419 = vmatprep.subr.bf16.mxu1 %v5901_v22  ;;  %v420_v35 = vpack.c.bf16 %v388_v26, %v387_v25  ;;  %v972_v0 = vld [vmem:[%s6187_s24 + $0xa] sm:$0xff]  ;;  %v1328_v1 = vld [vmem:[%s6187_s24 + $0xe2] sm:$0xff]  ;;  %v1964_v25 = vld [vmem:[%s6187_s24 + $0x14] sm:$0xff] }
  0x49   : > { %5316 = vmatpush3.bf16.msra.mxu0 %v6258_v30  ;;  %v5907_v30 = vld [vmem:[%s8989_s1 + $0x178] sm:$0xff]   ;;  %v1329_v2 = vld [vmem:[%s6187_s24 + $0xea] sm:$0xff] }
  0x4a   : > { %5353 = vmatprep.subr.bf16.mxu0 %v6320_v10  ;;  %v6489_v9 = vpack.c.bf16 %v1329_v2, %v1328_v1  ;;  %v5903_v18 = vld [vmem:[%s8989_s1 + $0x130] sm:$0xff]   ;;  %v1965_v26 = vld [vmem:[%s6187_s24 + $0x1c] sm:$0xff]  ;;  %v1982_v1 = vld [vmem:[%s6187_s24 + $0xa4] sm:$0xff] }
  0x4b   : > { %5420 = vmatpush3.bf16.msra.mxu1 %v5901_v22  ;;  %v1983_v2 = vld [vmem:[%s6187_s24 + $0xac] sm:$0xff] }
  0x4c   : > { %5282 = vmatmul.mubr.bf16.gmra.mxu0 %v496_v14  ;;  %5509 = vmatprep.subr.bf16.mxu1 %v5907_v30  ;;  %v385_v14 = vld [vmem:[%s6187_s24 + $0x20] sm:$0xff] }
  0x4d   : > { %5285 = vmatprep.mubr.bf16.mxu0 %v497_v17  ;;  %v1317_v17 = vld [vmem:[%s6187_s24 + $0x8a] sm:$0xff]  ;;  %v419_v22 = vpack.c.bf16 %v386_v15, %v385_v14  ;;  %v1332_v14 = vld [vmem:[%s6187_s24 + $0x102] sm:$0xff] }
  0x4e   : > { %5350 = vmatmul.mubr.bf16.gmra.mxu1 %v434_v32  ;;  %v6419_v24 = vpack.c.bf16 %v1317_v17, %v1316_v16  ;;  %v1320_v32 = vld [vmem:[%s6187_s24 + $0xa2] sm:$0xff]  ;;  %v1333_v15 = vld [vmem:[%s6187_s24 + $0x10a] sm:$0xff]  ;;  %v1005_v16 = vld [vmem:[%s6187_s24 + $0x112] sm:$0xff] }
  0x4f   : > { %5421 = vmatprep.mubr.bf16.mxu1 %v6346_v34  ;;  %v6443_v39 = vpack.c.bf16 %v1321_v33, %v1320_v32  ;;  %v1006_v17 = vld [vmem:[%s6187_s24 + $0x11a] sm:$0xff] }
  0x50   : > { %v6507_v20 = vpack.c.bf16 %v1006_v17, %v1005_v16  ;;  %v1968_v32 = vld [vmem:[%s6187_s24 + $0x34] sm:$0xff]  ;;  %v1969_v33 = vld [vmem:[%s6187_s24 + $0x3c] sm:$0xff]  ;;  %v1990_v16 = vld [vmem:[%s6187_s24 + $0xe4] sm:$0xff] }
  0x51   : > { %v1991_v17 = vld [vmem:[%s6187_s24 + $0xec] sm:$0xff] }
  0x54   : > { %5286 = vmatmul.mubr.bf16.gmra.mxu0 %v498_v29  ;;  %v5890_v29 = vld [vmem:[%s8989_s1 + $0xa8] sm:$0xff]  }
  0x55   : > { %5289 = vmatprep.mubr.bf16.mxu0 %v499_v31  ;;  %v390_v31 = vld [vmem:[%s6187_s24 + $0x48] sm:$0xff] }
  0x56   : > { %5422 = vmatmul.mubr.bf16.vlgmr.msra.gmra.mxu1 %v6356_v44 }
  0x57   : > { %5425 = vmatprep.mubr.bf16.mxu1 %v6359_v46  ;;  %5510 = vmatpush3.bf16.msra.mxu1 %v5907_v30  ;;  %v389_v30 = vld [vmem:[%s6187_s24 + $0x40] sm:$0xff] }
  0x58   : > { %5511 = vmatprep.subr.bf16.mxu1 %v5909_v48 }
  0x5b   : > { %5512 = vmatpush3.bf16.msra.mxu1 %v5909_v48  ;;  %v1324_v48 = vld [vmem:[%s6187_s24 + $0xc2] sm:$0xff] }
  0x5c   : > { %5290 = vmatmul.mubr.bf16.gmra.mxu0 %v500_v41  ;;  %5513 = vmatprep.subr.bf16.mxu1 %v5910_v56  ;;  %v392_v41 = vld [vmem:[%s6187_s24 + $0x58] sm:$0xff] }
  0x5d   : > { %5293 = vmatprep.mubr.bf16.mxu0 %v501_v43  ;;  %v5894_v43 = vld [vmem:[%s8989_s1 + $0x98] sm:$0xff]   ;;  %v422_v50 = vpack.c.bf16 %v392_v41, %v391_v40  ;;  %v5915_v41 = vld [vmem:[%s8989_s1 + $0x100] sm:$0xff]  }
  0x5e   : > { %5426 = vmatmul.mubr.bf16.gmra.mxu1 %v6376_v58  ;;  %v1973_v40 = vld [vmem:[%s6187_s24 + $0x5c] sm:$0xff] }
  0x5f   : > { %5429 = vmatprep.mubr.bf16.mxu1 %v6380_v61  ;;  %5514 = vmatpush3.bf16.msra.mxu1 %v5910_v56  ;;  %v395_v56 = vld [vmem:[%s6187_s24 + $0x70] sm:$0xff] }
  0x60   : > { %5515 = vmatprep.subr.bf16.mxu1 %v5912_v63 }
  0x63   : > { %5516 = vmatpush3.bf16.msra.mxu1 %v5912_v63  ;;  %v971_v63 = vld [vmem:[%s6187_s24 + $0x2] sm:$0xff] }
  0x64   : > { %5294 = vmatmul.mubr.bf16.gmra.mxu0 %v502_v55  ;;  %5517 = vmatprep.subr.bf16.mxu1 %v5913_v5  ;;  %v6463_v55 = vpack.c.bf16 %v1325_v49, %v1324_v48  ;;  %v6572_v48 = vld [vmem:[%s8989_s1 + $0x1b8] sm:$0xff]   ;;  %v1974_v49 = vld [vmem:[%s6187_s24 + $0x64] sm:$0xff] }
  0x65   : > { %5297 = vmatprep.mubr.bf16.mxu0 %v503_v57  ;;  %v396_v57 = vld [vmem:[%s6187_s24 + $0x78] sm:$0xff] }
  0x66   : > { %5430 = vmatmul.mubr.bf16.gmra.mxu1 %v6396_v8  ;;  %v424_v3 = vpack.c.bf16 %v396_v57, %v395_v56  ;;  %v1978_v56 = vld [vmem:[%s6187_s24 + $0x84] sm:$0xff]  ;;  %v1979_v57 = vld [vmem:[%s6187_s24 + $0x8c] sm:$0xff] }
  0x67   : > { %5433 = vmatprep.mubr.bf16.mxu1 %v6400_v12  ;;  %5518 = vmatpush3.bf16.msra.mxu1 %v5913_v5  ;;  %v1002_v5 = vld [vmem:[%s6187_s24 + $0xfa] sm:$0xff] }
  0x68   : > { %5519 = vmatprep.subr.bf16.mxu1 %v5914_v13  ;;  %v6491_v11 = vpack.c.bf16 %v1002_v5, %v1001_v4  ;;  %v6617_v4 = vpack.c.bf16 %v1983_v2, %v1982_v1  ;;  %v2630_v1 = vld [vmem:[%s6187_s24 + $0x45] sm:$0xff]  ;;  %v2631_v2 = vld [vmem:[%s6187_s24 + $0x4d] sm:$0xff] }
  0x6b   : > { %5520 = vmatpush3.bf16.msra.mxu1 %v5914_v13  ;;  %v5902_v13 = vld [vmem:[%s8989_s1 + $0x138] sm:$0xff]  }
  0x6c   : > { %5298 = vmatmul.mubr.bf16.gmra.mxu0 %v504_v6  ;;  %5521 = vmatprep.subr.bf16.mxu1 %v5916_v21  ;;  %v1007_v6 = vpack.c.bf16 %v972_v0, %v971_v63  ;;  %v6602_v63 = vpack.c.bf16 %v1979_v57, %v1978_v56  ;;  %v5933_v0 = vld [vmem:[%s8989_s1 + $0x1c0] sm:$0xff]   ;;  %v1645_v56 = vld [vmem:[%s6187_s24 + $0x73] sm:$0xff] }
  0x6d   : > { %5317 = vmatprep.mubr.bf16.mxu0 %v417_v7  ;;  %v5900_v7 = vld [vmem:[%s8989_s1 + $0x80] sm:$0xff]  }
  0x6e   : > { %5434 = vmatmul.mubr.bf16.gmra.mxu1 %v6419_v24  ;;  %v1646_v57 = vld [vmem:[%s6187_s24 + $0x7b] sm:$0xff] }
  0x6f   : > { %5437 = vmatprep.mubr.bf16.mxu1 %v6423_v27  ;;  %5522 = vmatpush3.bf16.msra.mxu1 %v5916_v21  ;;  %v5904_v21 = vld [vmem:[%s8989_s1 + $0x128] sm:$0xff]  }
  0x70   : > { %5523 = vmatprep.subr.bf16.mxu1 %v5917_v28 }
  0x73   : > { %5524 = vmatpush3.bf16.msra.mxu1 %v5917_v28  ;;  %v2000_v28 = vpack.c.bf16 %v1965_v26, %v1964_v25  ;;  %v1636_v25 = vld [vmem:[%s6187_s24 + $0x2b] sm:$0xff]  ;;  %v1637_v26 = vld [vmem:[%s6187_s24 + $0x33] sm:$0xff] }
  0x74   : > { %5318 = vmatmul.mubr.bf16.vlgmr.msra.gmra.mxu0 %v418_v19  ;;  %5613 = vmatprep.subr.bf16.mxu1 %v6472_v60  ;;  %v6505_v19 = vpack.c.bf16 %v1333_v15, %v1332_v14 }
  0x75   : > { %5354 = vmatpush3.bf16.msra.mxu0 %v6320_v10  ;;  %5321 = vmatprep.mubr.bf16.mxu0 %v419_v22  ;;  %v421_v10 = vpack.c.bf16 %v390_v31, %v389_v30  ;;  %v1336_v22 = vld [vmem:[%s6187_s24 + $0x122] sm:$0xff]  ;;  %v1967_v31 = vld [vmem:[%s6187_s24 + $0x2c] sm:$0xff] }
  0x76   : > { %5355 = vmatprep.subr.bf16.mxu0 %v5888_v23  ;;  %5438 = vmatmul.mubr.bf16.gmra.mxu1 %v6443_v39  ;;  %v1966_v30 = vld [vmem:[%s6187_s24 + $0x24] sm:$0xff] }
  0x77   : > { %5441 = vmatprep.mubr.bf16.mxu1 %v6447_v42 }
  0x79   : > { %5356 = vmatpush3.bf16.msra.mxu0 %v5888_v23  ;;  %v1337_v23 = vld [vmem:[%s6187_s24 + $0x12a] sm:$0xff] }
  0x7a   : > { %5357 = vmatprep.subr.bf16.mxu0 %v5890_v29 }
  0x7c   : > { %5322 = vmatmul.mubr.bf16.gmra.mxu0 %v420_v35  ;;  %v6537_v35 = vpack.c.bf16 %v1969_v33, %v1968_v32  ;;  %v5919_v32 = vld [vmem:[%s8989_s1 + $0x1b0] sm:$0xff]  }
  0x7d   : > { %5358 = vmatpush3.bf16.msra.mxu0 %v5890_v29  ;;  %5325 = vmatprep.mubr.bf16.mxu0 %v421_v10  ;;  %v5906_v29 = vld [vmem:[%s8989_s1 + $0x118] sm:$0xff]   ;;  %v1970_v10 = vld [vmem:[%s6187_s24 + $0x44] sm:$0xff] }
  0x7e   : > { %5359 = vmatprep.subr.bf16.mxu0 %v5892_v38  ;;  %5442 = vmatmul.mubr.bf16.gmra.mxu1 %v6463_v55 }
  0x7f   : > { %5445 = vmatprep.mubr.bf16.mxu1 %v6467_v59 }
  0x81   : > { %5360 = vmatpush3.bf16.msra.mxu0 %v5892_v38  ;;  %v1971_v38 = vld [vmem:[%s6187_s24 + $0x4c] sm:$0xff] }
  0x82   : > { %5361 = vmatprep.subr.bf16.mxu0 %v5894_v43 }
  0x84   : > { %5326 = vmatmul.mubr.bf16.gmra.mxu0 %v422_v50  ;;  %v1976_v50 = vld [vmem:[%s6187_s24 + $0x74] sm:$0xff] }
  0x85   : > { %5362 = vmatpush3.bf16.msra.mxu0 %v5894_v43  ;;  %5329 = vmatprep.mubr.bf16.mxu0 %v423_v53  ;;  %v6560_v43 = vpack.c.bf16 %v1971_v38, %v1970_v10  ;;  %v6586_v53 = vpack.c.bf16 %v1977_v51, %v1976_v50  ;;  %v1641_v10 = vld [vmem:[%s6187_s24 + $0x53] sm:$0xff]  ;;  %v1642_v38 = vld [vmem:[%s6187_s24 + $0x5b] sm:$0xff] }
  0x86   : > { %5363 = vmatprep.subr.bf16.mxu0 %v5896_v54  ;;  %5446 = vmatmul.mubr.bf16.gmra.mxu1 %v6489_v9 }
  0x87   : > { %5449 = vmatprep.mubr.bf16.mxu1 %v6491_v11 }
  0x89   : > { %5364 = vmatpush3.bf16.msra.mxu0 %v5896_v54  ;;  %v5930_v54 = vld [vmem:[%s8989_s1 + $0x1d0] sm:$0xff]  }
  0x8a   : > { %5365 = vmatprep.subr.bf16.mxu0 %v5898_v62 }
  0x8c   : > { %5330 = vmatmul.mubr.bf16.gmra.mxu0 %v424_v3  ;;  %v1984_v3 = vld [vmem:[%s6187_s24 + $0xb4] sm:$0xff] }
  0x8d   : > { %5366 = vmatpush3.bf16.msra.mxu0 %v5898_v62  ;;  %5369 = vmatprep.mubr.bf16.mxu0 %v1007_v6  ;;  %v1981_v62 = vld [vmem:[%s6187_s24 + $0x9c] sm:$0xff]  ;;  %v1987_v6 = vld [vmem:[%s6187_s24 + $0xcc] sm:$0xff] }
  0x8e   : > { %5367 = vmatprep.subr.bf16.mxu0 %v5900_v7  ;;  %5450 = vmatmul.mubr.bf16.gmra.mxu1 %v6505_v19 }
  0x8f   : > { %5453 = vmatprep.mubr.bf16.mxu1 %v6507_v20 }
  0x91   : > { %5368 = vmatpush3.bf16.msra.mxu0 %v5900_v7  ;;  %v1988_v7 = vld [vmem:[%s6187_s24 + $0xd4] sm:$0xff] }
  0x92   : > { %5457 = vmatprep.subr.bf16.mxu0 %v5902_v13 }
  0x94   : > { %5370 = vmatmul.mubr.bf16.vlgmr.msra.gmra.mxu0 %v6346_v34  ;;  %v5905_v34 = vld [vmem:[%s8989_s1 + $0x120] sm:$0xff]  }
  0x95   : > { %5458 = vmatpush3.bf16.msra.mxu0 %v5902_v13  ;;  %5373 = vmatprep.mubr.bf16.mxu0 %v6356_v44  ;;  %v1355_v44 = vpack.c.bf16 %v1337_v23, %v1336_v22  ;;  %v1989_v13 = vld [vmem:[%s6187_s24 + $0xdc] sm:$0xff]  ;;  %v6643_v22 = vpack.c.bf16 %v1991_v17, %v1990_v16  ;;  %v1649_v16 = vld [vmem:[%s6187_s24 + $0x93] sm:$0xff] }
  0x96   : > { %5459 = vmatprep.subr.bf16.mxu0 %v5903_v18  ;;  %v6631_v15 = vpack.c.bf16 %v1989_v13, %v1988_v7  ;;  %v1635_v23 = vld [vmem:[%s6187_s24 + $0x23] sm:$0xff]  ;;  %v1650_v17 = vld [vmem:[%s6187_s24 + $0x9b] sm:$0xff] }
  0x97   : > { %5454 = vmatmul.mubr.bf16.gmra.mxu1 %v1355_v44  ;;  %v1994_v44 = vld [vmem:[%s6187_s24 + $0x104] sm:$0xff] }
  0x98   : > { %5525 = vmatprep.mubr.bf16.mxu1 %v2000_v28  ;;  %v1995_v28 = vld [vmem:[%s6187_s24 + $0x10c] sm:$0xff]  ;;  %v1647_v13 = vld [vmem:[%s6187_s24 + $0x83] sm:$0xff] }
  0x99   : > { %5460 = vmatpush3.bf16.msra.mxu0 %v5903_v18  ;;  %v1992_v18 = vld [vmem:[%s6187_s24 + $0xf4] sm:$0xff]  ;;  %v6661_v33 = vpack.c.bf16 %v1995_v28, %v1994_v44  ;;  %v1677_v44 = vpack.c.bf16 %v1650_v17, %v1649_v16 }
  0x9a   : > { %5461 = vmatprep.subr.bf16.mxu0 %v5904_v21  ;;  %v1658_v17 = vld [vmem:[%s6187_s24 + $0xdb] sm:$0xff] }
  0x9c   : > { %5374 = vmatmul.mubr.bf16.gmra.mxu0 %v6359_v46  ;;  %v5908_v46 = vld [vmem:[%s8989_s1 + $0x110] sm:$0xff]  }
  0x9d   : > { %5377 = vmatprep.mubr.bf16.mxu0 %v6376_v58  ;;  %5462 = vmatpush3.bf16.msra.mxu0 %v5904_v21  ;;  %v6535_v58 = vpack.c.bf16 %v1967_v31, %v1966_v30  ;;  %v1993_v21 = vld [vmem:[%s6187_s24 + $0xfc] sm:$0xff]  ;;  %v1996_v30 = vld [vmem:[%s6187_s24 + $0x114] sm:$0xff] }
  0x9e   : > { %5463 = vmatprep.subr.bf16.mxu0 %v5905_v34  ;;  %v1997_v31 = vld [vmem:[%s6187_s24 + $0x11c] sm:$0xff] }
  0x9f   : > { %5526 = vmatmul.mubr.bf16.vlgmr.msra.gmra.mxu1 %v6535_v58 }
  0xa0   : > { %5529 = vmatprep.mubr.bf16.mxu1 %v6537_v35  ;;  %5614 = vmatpush3.bf16.msra.mxu1 %v6472_v60  ;;  %v1980_v60 = vld [vmem:[%s6187_s24 + $0x94] sm:$0xff] }
  0xa1   : > { %5464 = vmatpush3.bf16.msra.mxu0 %v5905_v34  ;;  %5615 = vmatprep.subr.bf16.mxu1 %v5925_v36  ;;  %v1638_v34 = vld [vmem:[%s6187_s24 + $0x3b] sm:$0xff] }
  0xa2   : > { %5465 = vmatprep.subr.bf16.mxu0 %v5906_v29 }
  0xa4   : > { %5378 = vmatmul.mubr.bf16.gmra.mxu0 %v6380_v61  ;;  %v1972_v61 = vld [vmem:[%s6187_s24 + $0x54] sm:$0xff]  ;;  %5616 = vmatpush3.bf16.msra.mxu1 %v5925_v36  ;;  %v1639_v36 = vld [vmem:[%s6187_s24 + $0x43] sm:$0xff] }
  0xa5   : > { %5381 = vmatprep.mubr.bf16.mxu0 %v6396_v8  ;;  %5466 = vmatpush3.bf16.msra.mxu0 %v5906_v29  ;;  %v5926_v8 = vld [vmem:[%s8989_s1 + $0x1e8] sm:$0xff]   ;;  %v6562_v45 = vpack.c.bf16 %v1973_v40, %v1972_v61  ;;  %v1670_v29 = vpack.c.bf16 %v1636_v25, %v1635_v23 }
  0xa6   : > { %5467 = vmatprep.subr.bf16.mxu0 %v5908_v46  ;;  %5617 = vmatprep.subr.bf16.mxu1 %v5926_v8  ;;  %v5920_v61 = vld [vmem:[%s8989_s1 + $0x1a8] sm:$0xff]  }
  0xa7   : > { %5530 = vmatmul.mubr.bf16.gmra.mxu1 %v6560_v43  ;;  %v1998_v40 = vld [vmem:[%s6187_s24 + $0x124] sm:$0xff] }
  0xa8   : > { %5533 = vmatprep.mubr.bf16.mxu1 %v6562_v45  ;;  %5618 = vmatpush3.bf16.msra.mxu1 %v5926_v8  ;;  %v1999_v8 = vld [vmem:[%s6187_s24 + $0x12c] sm:$0xff] }
  0xa9   : > { %5468 = vmatpush3.bf16.msra.mxu0 %v5908_v46  ;;  %5619 = vmatprep.subr.bf16.mxu1 %v5928_v47  ;;  %v6663_v46 = vpack.c.bf16 %v1997_v31, %v1996_v30  ;;  %v6682_v50 = vpack.c.bf16 %v1999_v8, %v1998_v40  ;;  %v6104_v31 = vmov 0  }
  0xaa   : > { %5469 = vmatprep.subr.bf16.mxu0 %v5911_v37  ;;  %5868 = vset.pattern.permute.xlu0 %v6104_v31 }
  0xab   : > { %5869 = vset.pattern.permute.xlu1 %v6104_v31  ;;  %v2643_v31 = vld [vmem:[%s6187_s24 + $0xad] sm:$0xff] }
  0xac   : > { %5382 = vmatmul.mubr.bf16.gmra.mxu0 %v6400_v12  ;;  %v1975_v12 = vld [vmem:[%s6187_s24 + $0x6c] sm:$0xff]  ;;  %5620 = vmatpush3.bf16.msra.mxu1 %v5928_v47 }
  0xad   : > { %5385 = vmatprep.mubr.bf16.mxu0 %v6419_v24  ;;  %5470 = vmatpush3.bf16.msra.mxu0 %v5911_v37  ;;  %v5929_v24 = vld [vmem:[%s8989_s1 + $0x1d8] sm:$0xff]   ;;  %v6584_v52 = vpack.c.bf16 %v1975_v12, %v1974_v49  ;;  %v1640_v37 = vld [vmem:[%s6187_s24 + $0x4b] sm:$0xff]  ;;  %v1673_v49 = vpack.c.bf16 %v1642_v38, %v1641_v10  ;;  %v5921_v12 = vld [vmem:[%s8989_s1 + $0x1a0] sm:$0xff]  }
  0xae   : > { %5471 = vmatprep.subr.bf16.mxu0 %v5915_v41  ;;  %5621 = vmatprep.subr.bf16.mxu1 %v5929_v24  ;;  %v2626_v47 = vld [vmem:[%s6187_s24 + $0x25] sm:$0xff]  ;;  %v1653_v38 = vld [vmem:[%s6187_s24 + $0xb3] sm:$0xff] }
  0xaf   : > { %5534 = vmatmul.mubr.bf16.gmra.mxu1 %v6584_v52  ;;  %v1652_v10 = vld [vmem:[%s6187_s24 + $0xab] sm:$0xff] }
  0xb0   : > { %5537 = vmatprep.mubr.bf16.mxu1 %v6586_v53  ;;  %5622 = vmatpush3.bf16.msra.mxu1 %v5929_v24  ;;  %v1643_v24 = vld [vmem:[%s6187_s24 + $0x63] sm:$0xff] }
  0xb1   : > { %5472 = vmatpush3.bf16.msra.mxu0 %v5915_v41  ;;  %5623 = vmatprep.subr.bf16.mxu1 %v5930_v54  ;;  %v1672_v41 = vpack.c.bf16 %v1640_v37, %v1639_v36  ;;  %v1651_v37 = vld [vmem:[%s6187_s24 + $0xa3] sm:$0xff] }
  0xb2   : > { %5561 = vmatprep.subr.bf16.mxu0 %v6572_v48 }
  0xb4   : > { %5386 = vmatmul.mubr.bf16.gmra.mxu0 %v6423_v27  ;;  %v5932_v27 = vld [vmem:[%s8989_s1 + $0x1c8] sm:$0xff]   ;;  %5624 = vmatpush3.bf16.msra.mxu1 %v5930_v54 }
  0xb5   : > { %5389 = vmatprep.mubr.bf16.mxu0 %v6443_v39  ;;  %v6604_v39 = vpack.c.bf16 %v1981_v62, %v1980_v60  ;;  %5625 = vmatprep.subr.bf16.mxu1 %v5932_v27  ;;  %v1644_v54 = vld [vmem:[%s6187_s24 + $0x6b] sm:$0xff]  ;;  %v5922_v60 = vld [vmem:[%s8989_s1 + $0x198] sm:$0xff]  }
  0xb6   : > { %v2628_v62 = vld [vmem:[%s6187_s24 + $0x35] sm:$0xff] }
  0xb7   : > { %5538 = vmatmul.mubr.bf16.gmra.mxu1 %v6602_v63 }
  0xb8   : > { %5541 = vmatprep.mubr.bf16.mxu1 %v6604_v39  ;;  %5626 = vmatpush3.bf16.msra.mxu1 %v5932_v27  ;;  %v2629_v27 = vld [vmem:[%s6187_s24 + $0x3d] sm:$0xff] }
  0xb9   : > { %5627 = vmatprep.subr.bf16.mxu1 %v5933_v0 }
  0xbc   : > { %5390 = vmatmul.mubr.bf16.gmra.mxu0 %v6447_v42  ;;  %v1985_v42 = vld [vmem:[%s6187_s24 + $0xbc] sm:$0xff]  ;;  %5628 = vmatpush3.bf16.msra.mxu1 %v5933_v0  ;;  %v1674_v0 = vpack.c.bf16 %v1644_v54, %v1643_v24  ;;  %v1678_v24 = vpack.c.bf16 %v1652_v10, %v1651_v37 }
  0xbd   : > { %5393 = vmatprep.mubr.bf16.mxu0 %v6463_v55  ;;  %v6619_v5 = vpack.c.bf16 %v1985_v42, %v1984_v3  ;;  %v1986_v55 = vld [vmem:[%s6187_s24 + $0xc4] sm:$0xff]  ;;  %v1675_v3 = vpack.c.bf16 %v1646_v57, %v1645_v56  ;;  %v5924_v42 = vld [vmem:[%s8989_s1 + $0x190] sm:$0xff]  }
  0xbe   : > { %v6629_v14 = vpack.c.bf16 %v1987_v6, %v1986_v55  ;;  %v2663_v55 = vpack.c.bf16 %v2629_v27, %v2628_v62  ;;  %v2664_v6 = vpack.c.bf16 %v2631_v2, %v2630_v1  ;;  %v2638_v56 = vld [vmem:[%s6187_s24 + $0x85] sm:$0xff]  ;;  %v2639_v57 = vld [vmem:[%s6187_s24 + $0x8d] sm:$0xff]  ;;  %v3334_v1 = vld [vmem:[%s8994_s6 + $0x18] sm:$0xff] }
  0xbf   : > { %5542 = vmatmul.mubr.bf16.gmra.mxu1 %v6617_v4  ;;  %v3335_v2 = vld [vmem:[%s8994_s6 + $0x20] sm:$0xff] }
  0xc0   : > { %5545 = vmatprep.mubr.bf16.mxu1 %v6619_v5 }
  0xc4   : > { %5394 = vmatmul.mubr.bf16.gmra.mxu0 %v6467_v59  ;;  %v1633_v59 = vld [vmem:[%s6187_s24 + $0x13] sm:$0xff] }
  0xc5   : > { %5397 = vmatprep.mubr.bf16.mxu0 %v6489_v9  ;;  %v1634_v9 = vld [vmem:[%s6187_s24 + $0x1b] sm:$0xff] }
  0xc7   : > { %5546 = vmatmul.mubr.bf16.gmra.mxu1 %v6629_v14 }
  0xc8   : > { %5549 = vmatprep.mubr.bf16.mxu1 %v6631_v15 }
  0xcc   : > { %5398 = vmatmul.mubr.bf16.gmra.mxu0 %v6491_v11  ;;  %v1669_v11 = vpack.c.bf16 %v1634_v9, %v1633_v59  ;;  %v1648_v59 = vld [vmem:[%s6187_s24 + $0x8b] sm:$0xff] }
  0xcd   : > { %5401 = vmatprep.mubr.bf16.mxu0 %v6505_v19  ;;  %v6645_v19 = vpack.c.bf16 %v1993_v21, %v1992_v18  ;;  %v5927_v18 = vld [vmem:[%s8989_s1 + $0x188] sm:$0xff]   ;;  %v2632_v21 = vld [vmem:[%s6187_s24 + $0x55] sm:$0xff]  ;;  %v1676_v25 = vpack.c.bf16 %v1648_v59, %v1647_v13 }
  0xce   : > { %v1656_v13 = vld [vmem:[%s6187_s24 + $0xcb] sm:$0xff]  ;;  %v1657_v59 = vld [vmem:[%s6187_s24 + $0xd3] sm:$0xff] }
  0xcf   : > { %5550 = vmatmul.mubr.bf16.gmra.mxu1 %v6643_v22 }
  0xd0   : > { %5553 = vmatprep.mubr.bf16.mxu1 %v6645_v19 }
  0xd4   : > { %5402 = vmatmul.mubr.bf16.gmra.mxu0 %v6507_v20  ;;  %v1671_v20 = vpack.c.bf16 %v1638_v34, %v1637_v26  ;;  %v2634_v26 = vld [vmem:[%s6187_s24 + $0x65] sm:$0xff]  ;;  %v2635_v34 = vld [vmem:[%s6187_s24 + $0x6d] sm:$0xff] }
  0xd5   : > { %5473 = vmatprep.mubr.bf16.mxu0 %v1669_v11  ;;  %v2633_v11 = vld [vmem:[%s6187_s24 + $0x5d] sm:$0xff] }
  0xd6   : > { %v2665_v30 = vpack.c.bf16 %v2633_v11, %v2632_v21  ;;  %v3336_v21 = vld [vmem:[%s8994_s6 + $0x28] sm:$0xff]  ;;  %v3337_v11 = vld [vmem:[%s8994_s6 + $0x30] sm:$0xff] }
  0xd7   : > { %5554 = vmatmul.mubr.bf16.gmra.mxu1 %v6661_v33 }
  0xd8   : > { %5557 = vmatprep.mubr.bf16.mxu1 %v6663_v46 }
  0xdc   : > { %5474 = vmatmul.mubr.bf16.vlgmr.msra.gmra.mxu0 %v1670_v29  ;;  %v5931_v29 = vld [vmem:[%s8989_s1 + $0x180] sm:$0xff]  }
  0xdd   : > { %5562 = vmatpush3.bf16.msra.mxu0 %v6572_v48  ;;  %5477 = vmatprep.mubr.bf16.mxu0 %v1671_v20  ;;  %v2627_v48 = vld [vmem:[%s6187_s24 + $0x2d] sm:$0xff]  ;;  %v3331_v20 = vld [vmem:[%s8994_s6] sm:$0xff] }
  0xde   : > { %5563 = vmatprep.subr.bf16.mxu0 %v5919_v32  ;;  %v2662_v51 = vpack.c.bf16 %v2627_v48, %v2626_v47  ;;  %3369 = vperm.xlu0 %5868, %v3331_v20   ;;  %v3333_v47 = vld [vmem:[%s8994_s6 + $0x10] sm:$0xff]  ;;  %v3332_v48 = vld [vmem:[%s8994_s6 + $0x8] sm:$0xff]  ;;  %v1681_v20 = vpack.c.bf16 %v1658_v17, %v1657_v59 }
  0xdf   : > { %5558 = vmatmul.mubr.bf16.gmra.mxu1 %v6682_v50  ;;  %3379 = vperm.xlu1 %5869, %v3333_v47  }
  0xe0   : > { %5629 = vmatprep.mubr.bf16.mxu1 %v2662_v51 }
  0xe1   : > { %5564 = vmatpush3.bf16.msra.mxu0 %v5919_v32  ;;  %v2666_v32 = vpack.c.bf16 %v2635_v34, %v2634_v26  ;;  %v2641_v26 = vld [vmem:[%s6187_s24 + $0x9d] sm:$0xff] }
  0xe2   : > { %5565 = vmatprep.subr.bf16.mxu0 %v5920_v61  ;;  %3374 = vperm.xlu0 %5868, %v3332_v48  }
  0xe3   : > { %3384 = vperm.xlu1 %5869, %v3334_v1   ;;  %v3340_v1 = vld [vmem:[%s8994_s6 + $0x48] sm:$0xff] }
  0xe4   : > { %5478 = vmatmul.mubr.bf16.gmra.mxu0 %v1672_v41  ;;  %v6737_v41 = vld [vmem:[%s8989_s1 + $0x238] sm:$0xff]  }
  0xe5   : > { %5481 = vmatprep.mubr.bf16.mxu0 %v1673_v49  ;;  %5566 = vmatpush3.bf16.msra.mxu0 %v5920_v61  ;;  %v1654_v61 = vld [vmem:[%s6187_s24 + $0xbb] sm:$0xff] }
  0xe6   : > { %5567 = vmatprep.subr.bf16.mxu0 %v5921_v12  ;;  %v2636_v49 = vld [vmem:[%s6187_s24 + $0x75] sm:$0xff]  ;;  %3389 = vperm.xlu0 %5868, %v3335_v2  }
  0xe7   : > { %5630 = vmatmul.mubr.bf16.vlgmr.msra.gmra.mxu1 %v2663_v55  ;;  %3394 = vperm.xlu1 %5869, %v3336_v21   ;;  %v3341_v2 = vld [vmem:[%s8994_s6 + $0x50] sm:$0xff]  ;;  %v2646_v21 = vld [vmem:[%s6187_s24 + $0xc5] sm:$0xff] }
  0xe8   : > { %5633 = vmatprep.mubr.bf16.mxu1 %v2664_v6  ;;  %v1655_v6 = vld [vmem:[%s6187_s24 + $0xc3] sm:$0xff] }
  0xe9   : > { %5568 = vmatpush3.bf16.msra.mxu0 %v5921_v12  ;;  %v2637_v12 = vld [vmem:[%s6187_s24 + $0x7d] sm:$0xff] }
  0xea   : > { %5569 = vmatprep.subr.bf16.mxu0 %v5922_v60  ;;  %3399 = vperm.xlu0 %5868, %v3337_v11   ;;  %v2647_v11 = vld [vmem:[%s6187_s24 + $0xcd] sm:$0xff] }
  0xec   : > { %v6699_v7 = vpop.f32.mrf.mxu0  ;;  %5482 = vmatmul.mubr.bf16.gmra.mxu0 %v1674_v0  ;;  %v2667_v0 = vpack.c.bf16 %v2637_v12, %v2636_v49  ;;  %v1659_v12 = vld [vmem:[%s6187_s24 + $0xe3] sm:$0xff] }
  0xed   : > { %5485 = vmatprep.mubr.bf16.mxu0 %v1675_v3  ;;  %5570 = vmatpush3.bf16.msra.mxu0 %v5922_v60  ;;  %v1679_v60 = vpack.c.bf16 %v1654_v61, %v1653_v38  ;;  %v2668_v3 = vpack.c.bf16 %v2639_v57, %v2638_v56  ;;  %v3338_v38 = vld [vmem:[%s8994_s6 + $0x38] sm:$0xff]  ;;  %v3339_v61 = vld [vmem:[%s8994_s6 + $0x40] sm:$0xff] }
  0xee   : > { %v6703_v9 = vpop.f32.mrf.mxu0  ;;  %5571 = vmatprep.subr.bf16.mxu0 %v5924_v42  ;;  %v6732_v8 = vpop.f32.mrf.mxu1  ;;  %3404 = vperm.xlu1 %5869, %v3338_v38   ;;  %v1661_v56 = vld [vmem:[%s6187_s24 + $0xf3] sm:$0xff] }
  0xef   : > { %5634 = vmatmul.mubr.bf16.gmra.mxu1 %v2665_v30  ;;  %v2642_v30 = vld [vmem:[%s6187_s24 + $0xa5] sm:$0xff]  ;;  %3409 = vperm.xlu0 %5868, %v3339_v61  }
  0xf0   : > { %v6712_v23 = vpop.f32.mrf.mxu0  ;;  %5637 = vmatprep.mubr.bf16.mxu1 %v2666_v32  ;;  %v6749_v54 = vpop.f32.mrf.mxu1  ;;  %v2670_v47 = vpack.c.bf16 %v2643_v31, %v2642_v30  ;;  %v3342_v31 = vld [vmem:[%s8994_s6 + $0x58] sm:$0xff] }
  0xf1   : > { %5572 = vmatpush3.bf16.msra.mxu0 %v5924_v42 }
  0xf2   : > { %v6716_v28 = vpop.f32.mrf.mxu0  ;;  %5573 = vmatprep.subr.bf16.mxu0 %v5927_v18  ;;  %v6755_v27 = vpop.f32.mrf.mxu1  ;;  %3414 = vperm.xlu1 %5869, %v3340_v1   ;;  %v1666_v1 = vld [vmem:[%s6187_s24 + $0x11b] sm:$0xff] }
  0xf3   : > { %3419 = vperm.xlu0 %5868, %v3341_v2  }
  0xf4   : > { %v6724_v36 = vpop.f32.mrf.mxu0  ;;  %5486 = vmatmul.mubr.bf16.gmra.mxu0 %v1676_v25  ;;  %v6766_v55 = vpop.f32.mrf.mxu1  ;;  %v2640_v25 = vld [vmem:[%s6187_s24 + $0x95] sm:$0xff] }
  0xf5   : > { %5489 = vmatprep.mubr.bf16.mxu0 %v1677_v44  ;;  %5574 = vmatpush3.bf16.msra.mxu0 %v5927_v18  ;;  %v1680_v44 = vpack.c.bf16 %v1656_v13, %v1655_v6  ;;  %v2669_v10 = vpack.c.bf16 %v2641_v26, %v2640_v25  ;;  %v2645_v6 = vld [vmem:[%s6187_s24 + $0xbd] sm:$0xff] }
  0xf6   : > { %v6730_v40 = vpop.f32.mrf.mxu0  ;;  %5575 = vmatprep.subr.bf16.mxu0 %v5931_v29  ;;  %v6774_v18 = vpop.f32.mrf.mxu1  ;;  %3424 = vperm.xlu1 %5869, %v3342_v31  }
  0xf7   : > { %5638 = vmatmul.mubr.bf16.gmra.mxu1 %v2667_v0 }
  0xf8   : > { %v6747_v51 = vpop.f32.mrf.mxu0  ;;  %5641 = vmatprep.mubr.bf16.mxu1 %v2668_v3  ;;  %v2644_v3 = vld [vmem:[%s6187_s24 + $0xb5] sm:$0xff] }
  0xf9   : > { %5576 = vmatpush3.bf16.msra.mxu0 %v5931_v29  ;;  %v6786_v29 = vpop.f32.mrf.mxu1  ;;  %v2671_v30 = vpack.c.bf16 %v2645_v6, %v2644_v3  ;;  %v3344_v3 = vld [vmem:[%s8994_s6 + $0x68] sm:$0xff] }
  0xfa   : > { %v6753_v62 = vpop.f32.mrf.mxu0  ;;  %5665 = vmatprep.subr.bf16.mxu0 %v6737_v41  ;;  %3434 = vperm.xlu1 %5869, %v3344_v3  }
  0xfb   : > { %v6792_v37 = vpop.f32.mrf.mxu1 }
  0xfc   : > { %v6764_v42 = vpop.f32.mrf.mxu0  ;;  %5490 = vmatmul.mubr.bf16.gmra.mxu0 %v1678_v24  ;;  %v1660_v24 = vld [vmem:[%s6187_s24 + $0xeb] sm:$0xff] }
  0xfd   : > { %5493 = vmatprep.mubr.bf16.mxu0 %v1679_v60  ;;  %v6802_v49 = vpop.f32.mrf.mxu1  ;;  %v1662_v60 = vld [vmem:[%s6187_s24 + $0xfb] sm:$0xff]  ;;  %v1682_v59 = vpack.c.bf16 %v1660_v24, %v1659_v12  ;;  %v1663_v12 = vld [vmem:[%s6187_s24 + $0x103] sm:$0xff]  ;;  %v1664_v24 = vld [vmem:[%s6187_s24 + $0x10b] sm:$0xff] }
  0xfe   : > { %v6771_v16 = vpop.f32.mrf.mxu0  ;;  %v1683_v25 = vpack.c.bf16 %v1662_v60, %v1661_v56  ;;  %v1665_v56 = vld [vmem:[%s6187_s24 + $0x113] sm:$0xff] }
  0xff   : > { %v6810_v0 = vpop.f32.mrf.mxu1  ;;  %5642 = vmatmul.mubr.bf16.gmra.mxu1 %v2669_v10  ;;  %v2672_v10 = vpack.c.bf16 %v2647_v11, %v2646_v21  ;;  %v2649_v21 = vld [vmem:[%s6187_s24 + $0xdd] sm:$0xff] }
 0x100   : > { %v6784_v34 = vpop.f32.mrf.mxu0  ;;  %5645 = vmatprep.mubr.bf16.mxu1 %v2670_v47 }
 0x101   : > { %v6822_v17 = vpop.f32.mrf.mxu1 }
 0x102   : > { %v6790_v32 = vpop.f32.mrf.mxu0 }
 0x104   : > { %v6800_v48 = vpop.f32.mrf.mxu0  ;;  %5494 = vmatmul.mubr.bf16.gmra.mxu0 %v1680_v44  ;;  %v6828_v44 = vpop.f32.mrf.mxu1 }
 0x105   : > { %5497 = vmatprep.mubr.bf16.mxu0 %v1681_v20  ;;  %v3343_v20 = vld [vmem:[%s8994_s6 + $0x60] sm:$0xff] }
 0x106   : > { %v6807_v57 = vpop.f32.mrf.mxu0  ;;  %v6836_v61 = vpop.f32.mrf.mxu1  ;;  %3429 = vperm.xlu0 %5868, %v3343_v20   ;;  %v2651_v20 = vld [vmem:[%s6187_s24 + $0xed] sm:$0xff] }
 0x107   : > { %5646 = vmatmul.mubr.bf16.gmra.mxu1 %v2671_v30  ;;  %v2650_v30 = vld [vmem:[%s6187_s24 + $0xe5] sm:$0xff] }
 0x108   : > { %v6820_v13 = vpop.f32.mrf.mxu0  ;;  %v6845_v2 = vpop.f32.mrf.mxu1  ;;  %5649 = vmatprep.mubr.bf16.mxu1 %v2672_v10 }
 0x10a   : > { %v6826_v26 = vpop.f32.mrf.mxu0  ;;  %v6858_v31 = vpop.f32.mrf.mxu1 }
 0x10b   : > { %9087 = vst [vmem:[#allocation2_spill] sm:$0xff] %v6826_v26 }
 0x10c   : > { %v5283_v38 = vpop.f32.mrf.mxu0  ;;  %5498 = vmatmul.mubr.bf16.gmra.mxu0 %v1682_v59  ;;  %v2648_v59 = vld [vmem:[%s6187_s24 + $0xd5] sm:$0xff] }
 0x10d   : > { %v6839_v47 = vadd.f32 %v6732_v8, %v5283_v38  ;;  %5501 = vmatprep.mubr.bf16.mxu0 %v1683_v25  ;;  %v3345_v8 = vld [vmem:[%s8994_s6 + $0x70] sm:$0xff]  ;;  %v1684_v25 = vpack.c.bf16 %v1664_v24, %v1663_v12  ;;  %v2673_v10 = vpack.c.bf16 %v2649_v21, %v2648_v59  ;;  %v3347_v12 = vld [vmem:[%s8994_s6 + $0x80] sm:$0xff] }
 0x10e   : > { %v667_v60 = vpop.f32.mrf.mxu0  ;;  %3439 = vperm.xlu0 %5868, %v3345_v8   ;;  %v1667_v8 = vld [vmem:[%s6187_s24 + $0x123] sm:$0xff]  ;;  %v1668_v59 = vld [vmem:[%s6187_s24 + $0x12b] sm:$0xff] }
 0x10f   : > { %9088 = vst [vmem:[#allocation3_spill] sm:$0xff] %v6839_v47  ;;  %v6854_v6 = vadd.f32 %v6749_v54, %v667_v60  ;;  %v1685_v47 = vpack.c.bf16 %v1666_v1, %v1665_v56  ;;  %v6865_v54 = vpop.f32.mrf.mxu1  ;;  %v3346_v60 = vld [vmem:[%s8994_s6 + $0x78] sm:$0xff]  ;;  %5650 = vmatmul.mubr.bf16.gmra.mxu1 %v2673_v10  ;;  %v2654_v10 = vld [vmem:[%s6187_s24 + $0x105] sm:$0xff] }
 0x110   : > { %v5284_v11 = vpop.f32.mrf.mxu0  ;;  %3444 = vperm.xlu1 %5869, %v3346_v60  }
 0x111   : > { %v6863_v38 = vadd.f32 %v6755_v27, %v5284_v11  ;;  %v2674_v27 = vpack.c.bf16 %v2651_v20, %v2650_v30  ;;  %v6876_v1 = vpop.f32.mrf.mxu1  ;;  %v3349_v11 = vld [vmem:[%s8994_s6 + $0x90] sm:$0xff]  ;;  %v1686_v20 = vpack.c.bf16 %v1668_v59, %v1667_v8 }
 0x112   : > { %v670_v26 = vpop.f32.mrf.mxu0  ;;  %3449 = vperm.xlu0 %5868, %v3347_v12   ;;  %v2655_v12 = vld [vmem:[%s6187_s24 + $0x10d] sm:$0xff] }
 0x113   : > { %9089 = vst [vmem:[#allocation4_spill] sm:$0xff] %v6863_v38  ;;  %v6874_v24 = vadd.f32 %v6766_v55, %v670_v26  ;;  %v6883_v55 = vpop.f32.mrf.mxu1  ;;  %v3348_v26 = vld [vmem:[%s8994_s6 + $0x88] sm:$0xff]  ;;  %5653 = vmatprep.mubr.bf16.mxu1 %v2674_v27  ;;  %v3351_v27 = vld [vmem:[%s8994_s6 + $0xa0] sm:$0xff]  ;;  %v2676_v59 = vpack.c.bf16 %v2655_v12, %v2654_v10 }
 0x114   : > { %v5287_v56 = vpop.f32.mrf.mxu0  ;;  %5502 = vmatmul.mubr.bf16.gmra.mxu0 %v1684_v25  ;;  %v2653_v25 = vld [vmem:[%s6187_s24 + $0xfd] sm:$0xff]  ;;  %3454 = vperm.xlu1 %5869, %v3348_v26   ;;  %v2658_v10 = vld [vmem:[%s6187_s24 + $0x125] sm:$0xff] }
 0x115   : > { %9090 = vst [vmem:[#allocation5_spill] sm:$0xff] %v6874_v24  ;;  %v6879_v3 = vadd.f32 %v6774_v18, %v5287_v56  ;;  %5505 = vmatprep.mubr.bf16.mxu0 %v1685_v47  ;;  %v2652_v47 = vld [vmem:[%s6187_s24 + $0xf5] sm:$0xff]  ;;  %v6896_v60 = vpop.f32.mrf.mxu1 }
 0x116   : > { %v683_v21 = vpop.f32.mrf.mxu0  ;;  %9092 = vst [vmem:[#allocation7_spill] sm:$0xff] %v6896_v60  ;;  %3459 = vperm.xlu0 %5868, %v3349_v11   ;;  %v2675_v38 = vpack.c.bf16 %v2653_v25, %v2652_v47 }
 0x117   : > { %9091 = vst [vmem:[#allocation6_spill] sm:$0xff] %v6879_v3  ;;  %v6892_v18 = vadd.f32 %v6786_v29, %v683_v21  ;;  %v6903_v24 = vpop.f32.mrf.mxu1  ;;  %v3350_v29 = vld [vmem:[%s8994_s6 + $0x98] sm:$0xff] }
 0x118   : > { %v5288_v30 = vpop.f32.mrf.mxu0  ;;  %3464 = vperm.xlu1 %5869, %v3350_v29   ;;  %5654 = vmatmul.mubr.bf16.gmra.mxu1 %v2675_v38  ;;  %v2659_v38 = vld [vmem:[%s6187_s24 + $0x12d] sm:$0xff] }
 0x119   : > { %v6901_v56 = vadd.f32 %v6792_v37, %v5288_v30  ;;  %v6914_v21 = vpop.f32.mrf.mxu1  ;;  %5657 = vmatprep.mubr.bf16.mxu1 %v2676_v59  ;;  %v2657_v30 = vld [vmem:[%s6187_s24 + $0x11d] sm:$0xff] }
 0x11a   : > { %v686_v3 = vpop.f32.mrf.mxu0  ;;  %9094 = vst [vmem:[#allocation9_spill] sm:$0xff] %v6914_v21  ;;  %3469 = vperm.xlu0 %5868, %v3351_v27   ;;  %v5935_v27 = vld [vmem:[%s8989_s1 + $0x230] sm:$0xff]  }
 0x11b   : > { %v6912_v8 = vadd.f32 %v6802_v49, %v686_v3  ;;  %v6920_v47 = vpop.f32.mrf.mxu1  ;;  %v3352_v49 = vld [vmem:[%s8994_s6 + $0xa8] sm:$0xff]  ;;  %v3353_v3 = vld [vmem:[%s8994_s6 + $0xb0] sm:$0xff] }
 0x11c   : > { %v5291_v37 = vpop.f32.mrf.mxu0  ;;  %5506 = vmatmul.mubr.bf16.gmra.mxu0 %v1686_v20  ;;  %3474 = vperm.xlu1 %5869, %v3352_v49  }
 0x11d   : > { %9093 = vst [vmem:[#allocation8_spill] sm:$0xff] %v6912_v8  ;;  %v6917_v26 = vadd.f32 %v6810_v0, %v5291_v37  ;;  %5577 = vmatprep.mubr.bf16.mxu0 %v6535_v58  ;;  %v2656_v0 = vld [vmem:[%s6187_s24 + $0x115] sm:$0xff]  ;;  %v6933_v20 = vpop.f32.mrf.mxu1 }
 0x11e   : > { %v699_v11 = vpop.f32.mrf.mxu0  ;;  %3479 = vperm.xlu0 %5868, %v3353_v3   ;;  %v2677_v59 = vpack.c.bf16 %v2657_v30, %v2656_v0  ;;  %v3354_v37 = vld [vmem:[%s8994_s6 + $0xb8] sm:$0xff] }
 0x11f   : > { %9095 = vst [vmem:[#allocation10_spill] sm:$0xff] %v6917_v26  ;;  %v6929_v25 = vadd.f32 %v6822_v17, %v699_v11  ;;  %v6943_v17 = vpop.f32.mrf.mxu1  ;;  %v3355_v11 = vld [vmem:[%s8994_s6 + $0xc0] sm:$0xff] }
 0x120   : > { %v5292_v58 = vpop.f32.mrf.mxu0  ;;  %3484 = vperm.xlu1 %5869, %v3354_v37   ;;  %5658 = vmatmul.mubr.bf16.gmra.mxu1 %v2677_v59 }
 0x121   : > { %9096 = vst [vmem:[#allocation11_spill] sm:$0xff] %v6929_v25  ;;  %v6938_v12 = vadd.f32 %v6828_v44, %v5292_v58  ;;  %v2678_v44 = vpack.c.bf16 %v2659_v38, %v2658_v10  ;;  %v6955_v58 = vpop.f32.mrf.mxu1  ;;  %v2661_v38 = vld [vmem:[%s6187_s24 + $0x13d] sm:$0xff] }
 0x122   : > { %v702_v29 = vpop.f32.mrf.mxu0  ;;  %9099 = vst [vmem:[#allocation14_spill] sm:$0xff] %v6955_v58  ;;  %3489 = vperm.xlu0 %5868, %v3355_v11  }
 0x123   : > { %9097 = vst [vmem:[#allocation12_spill] sm:$0xff] %v6938_v12  ;;  %v6952_v49 = vadd.f32 %v6836_v61, %v702_v29  ;;  %v5936_v61 = vld [vmem:[%s8989_s1 + $0x228] sm:$0xff]   ;;  %v6965_v10 = vpop.f32.mrf.mxu1  ;;  %5661 = vmatprep.mubr.bf16.mxu1 %v2678_v44 }
 0x124   : > { %v5295_v3 = vpop.f32.mrf.mxu0  ;;  %5578 = vmatmul.mubr.bf16.vlgmr.msra.gmra.mxu0 %v6537_v35  ;;  %v3356_v35 = vld [vmem:[%s8994_s6 + $0xc8] sm:$0xff] }
 0x125   : > { %9098 = vst [vmem:[#allocation13_spill] sm:$0xff] %v6952_v49  ;;  %v6958_v0 = vadd.f32 %v6845_v2, %v5295_v3  ;;  %5666 = vmatpush3.bf16.msra.mxu0 %v6737_v41  ;;  %5581 = vmatprep.mubr.bf16.mxu0 %v6560_v43  ;;  %v3357_v2 = vld [vmem:[%s8994_s6 + $0xd0] sm:$0xff]  ;;  %v6978_v37 = vpop.f32.mrf.mxu1  ;;  %v5937_v3 = vld [vmem:[%s8989_s1 + $0x220] sm:$0xff]  }
 0x126   : > { %v715_v30 = vpop.f32.mrf.mxu0  ;;  %5667 = vmatprep.subr.bf16.mxu0 %v5935_v27  ;;  %v2660_v43 = vld [vmem:[%s6187_s24 + $0x135] sm:$0xff]  ;;  %3494 = vperm.xlu1 %5869, %v3356_v35   ;;  %v3359_v35 = vld [vmem:[%s8994_s6 + $0xe0] sm:$0xff] }
 0x127   : > { %9100 = vst [vmem:[#allocation15_spill] sm:$0xff] %v6958_v0  ;;  %v6974_v41 = vadd.f32 %v6858_v31, %v715_v30  ;;  %3499 = vperm.xlu0 %5868, %v3357_v2   ;;  %v6986_v31 = vpop.f32.mrf.mxu1  ;;  %v2679_v44 = vpack.c.bf16 %v2661_v38, %v2660_v43  ;;  %v3358_v30 = vld [vmem:[%s8994_s6 + $0xd8] sm:$0xff] }
 0x128   : > { %v5296_v29 = vpop.f32.mrf.mxu0 }
 0x129   : > { %9101 = vst [vmem:[#allocation16_spill] sm:$0xff] %v6974_v41  ;;  %v6981_v59 = vadd.f32 %v6865_v54, %v5296_v29  ;;  %5668 = vmatpush3.bf16.msra.mxu0 %v5935_v27  ;;  %v6998_v2 = vpop.f32.mrf.mxu1  ;;  %5662 = vmatmul.mubr.bf16.gmra.mxu1 %v2679_v44  ;;  %v5939_v44 = vld [vmem:[%s8989_s1 + $0x210] sm:$0xff]  }
 0x12a   : > { %v718_v11 = vpop.f32.mrf.mxu0  ;;  %5669 = vmatprep.subr.bf16.mxu0 %v5936_v61  ;;  %3504 = vperm.xlu1 %5869, %v3358_v30   ;;  %9104 = vst [vmem:[#allocation19_spill] sm:$0xff] %v6998_v2 }
 0x12b   : > { %9102 = vst [vmem:[#allocation17_spill] sm:$0xff] %v6981_v59  ;;  %v6995_v54 = vadd.f32 %v6876_v1, %v718_v11  ;;  %3509 = vperm.xlu0 %5868, %v3359_v35   ;;  %v5938_v1 = vld [vmem:[%s8989_s1 + $0x218] sm:$0xff]   ;;  %v7009_v29 = vpop.f32.mrf.mxu1 }
 0x12c   : > { %v5299_v27 = vpop.f32.mrf.mxu0  ;;  %5582 = vmatmul.mubr.bf16.gmra.mxu0 %v6562_v45  ;;  %v3360_v45 = vld [vmem:[%s8994_s6 + $0xe8] sm:$0xff] }
 0x12d   : > { %9103 = vst [vmem:[#allocation18_spill] sm:$0xff] %v6995_v54  ;;  %v7001_v43 = vadd.f32 %v6883_v55, %v5299_v27  ;;  %5585 = vmatprep.mubr.bf16.mxu0 %v6584_v52  ;;  %5670 = vmatpush3.bf16.msra.mxu0 %v5936_v61  ;;  %v3361_v55 = vld [vmem:[%s8994_s6 + $0xf0] sm:$0xff]  ;;  %v7017_v61 = vpop.f32.mrf.mxu1  ;;  %v3362_v27 = vld [vmem:[%s8994_s6 + $0xf8] sm:$0xff] }
 0x12e   : > { %v7004_v38 = vpop.f32.mrf.mxu0  ;;  %5671 = vmatprep.subr.bf16.mxu0 %v5937_v3  ;;  %3514 = vperm.xlu1 %5869, %v3360_v45   ;;  %v3363_v45 = vld [vmem:[%s8994_s6 + $0x100] sm:$0xff] }
 0x12f   : > { %9105 = vst [vmem:[#allocation20_spill] sm:$0xff] %v7001_v43  ;;  %9106 = vst [vmem:[#allocation21_spill] sm:$0xff] %v7004_v38  ;;  %3519 = vperm.xlu0 %5868, %v3361_v55   ;;  %v7027_v35 = vpop.f32.mrf.mxu1 }
 0x130   : > { %v5300_v52 = vpop.f32.mrf.mxu0 }
 0x131   : > { %v7020_v11 = vadd.f32 %v6903_v24, %v5300_v52  ;;  %5672 = vmatpush3.bf16.msra.mxu0 %v5937_v3  ;;  %v7036_v3 = vpop.f32.mrf.mxu1  ;;  %v5940_v52 = vld [vmem:[%s8989_s1 + $0x208] sm:$0xff]  }
 0x132   : > { %v7022_v30 = vpop.f32.mrf.mxu0  ;;  %5673 = vmatprep.subr.bf16.mxu0 %v5938_v1  ;;  %3524 = vperm.xlu1 %5869, %v3362_v27   ;;  %9109 = vst [vmem:[#allocation24_spill] sm:$0xff] %v7036_v3  ;;  %v3364_v27 = vld [vmem:[%s8994_s6 + $0x108] sm:$0xff]  ;;  %v5941_v3 = vld [vmem:[%s8989_s1 + $0x200] sm:$0xff]  }
 0x133   : > { %9107 = vst [vmem:[#allocation22_spill] sm:$0xff] %v7020_v11  ;;  %9108 = vst [vmem:[#allocation23_spill] sm:$0xff] %v7022_v30  ;;  %3529 = vperm.xlu0 %5868, %v3363_v45   ;;  %v7042_v2 = vpop.f32.mrf.mxu1  ;;  %v3366_v11 = vld [vmem:[%s8994_s6 + $0x118] sm:$0xff] }
 0x134   : > { %v5319_v24 = vpop.f32.mrf.mxu0  ;;  %5586 = vmatmul.mubr.bf16.gmra.mxu0 %v6586_v53  ;;  %v3365_v53 = vld [vmem:[%s8994_s6 + $0x110] sm:$0xff] }
 0x135   : > { %5589 = vmatprep.mubr.bf16.mxu0 %v6602_v63  ;;  %5674 = vmatpush3.bf16.msra.mxu0 %v5938_v1  ;;  %v7050_v63 = vpop.f32.mrf.mxu1  ;;  %v837_v26 = vadd.f32 %v5319_v24, %v6699_v7 }
 0x136   : > { %v828_v55 = vpop.f32.mrf.mxu0  ;;  %5675 = vmatprep.subr.bf16.mxu0 %v5939_v44  ;;  %3534 = vperm.xlu1 %5869, %v3364_v27  }
 0x137   : > { %3539 = vperm.xlu0 %5868, %v3365_v53   ;;  %v7055_v58 = vpop.f32.mrf.mxu1 }
 0x138   : > { %v5320_v45 = vpop.f32.mrf.mxu0 }
 0x139   : > { %5676 = vmatpush3.bf16.msra.mxu0 %v5939_v44  ;;  %v7061_v27 = vpop.f32.mrf.mxu1 }
 0x13a   : > { %v831_v1 = vpop.f32.mrf.mxu0  ;;  %5677 = vmatprep.subr.bf16.mxu0 %v5940_v52  ;;  %3544 = vperm.xlu1 %5869, %v3366_v11   ;;  %9110 = vst [vmem:[#allocation25_spill] sm:$0xff] %v7061_v27 }
 0x13b   : > { %v7064_v53 = vpop.f32.mrf.mxu1 }
 0x13c   : > { %v5323_v21 = vpop.f32.mrf.mxu0  ;;  %5590 = vmatmul.mubr.bf16.gmra.mxu0 %v6604_v39 }
 0x13d   : > { %5593 = vmatprep.mubr.bf16.mxu0 %v6617_v4  ;;  %5678 = vmatpush3.bf16.msra.mxu0 %v5940_v52  ;;  %v7066_v43 = vpop.f32.mrf.mxu1 }
 0x13e   : > { %v844_v44 = vpop.f32.mrf.mxu0  ;;  %5679 = vmatprep.subr.bf16.mxu0 %v5941_v3 }
 0x13f   : > { %v7068_v38 = vpop.f32.mrf.mxu1 }
 0x140   : > { %v5324_v30 = vpop.f32.mrf.mxu0 }
 0x141   : > { %5680 = vmatpush3.bf16.msra.mxu0 %v5941_v3  ;;  %v7073_v39 = vpop.f32.mrf.mxu1 }
 0x142   : > { %v847_v60 = vpop.f32.mrf.mxu0  ;;  %9111 = vst [vmem:[#allocation26_spill] sm:$0xff] %v7073_v39 }
 0x143   : > { %v7078_v52 = vpop.f32.mrf.mxu1 }
 0x144   : > { %v7070_v11 = vpop.f32.mrf.mxu0  ;;  %5594 = vmatmul.mubr.bf16.gmra.mxu0 %v6619_v5 }
 0x145   : > { %5597 = vmatprep.mubr.bf16.mxu0 %v6629_v14  ;;  %v7082_v54 = vpop.f32.mrf.mxu1 }
 0x146   : > { %v7076_v4 = vpop.f32.mrf.mxu0  ;;  %9112 = vst [vmem:[#allocation27_spill] sm:$0xff] %v7082_v54 }
 0x147   : > { %v7086_v59 = vpop.f32.mrf.mxu1 }
 0x148   : > { %v7080_v27 = vpop.f32.mrf.mxu0  ;;  %9113 = vst [vmem:[#allocation28_spill] sm:$0xff] %v7086_v59 }
 0x149   : > { %v7091_v5 = vpop.f32.mrf.mxu1 }
 0x14a   : > { %v7084_v3 = vpop.f32.mrf.mxu0  ;;  %9114 = vst [vmem:[#allocation29_spill] sm:$0xff] %v7091_v5 }
 0x14b   : > { %v7096_v39 = vpop.f32.mrf.mxu1 }
 0x14c   : > { %v7088_v41 = vpop.f32.mrf.mxu0  ;;  %5598 = vmatmul.mubr.bf16.gmra.mxu0 %v6631_v15  ;;  %9115 = vst [vmem:[#allocation30_spill] sm:$0xff] %v7096_v39 }
 0x14d   : > { %5601 = vmatprep.mubr.bf16.mxu0 %v6643_v22  ;;  %v7100_v49 = vpop.f32.mrf.mxu1  ;;  %v829_v22 = vadd.f32 %v828_v55, %v6703_v9 }
 0x14e   : > { %v7094_v14 = vpop.f32.mrf.mxu0  ;;  %9116 = vst [vmem:[#allocation31_spill] sm:$0xff] %v7100_v49  ;;  %v840_v49 = vadd.f32 %v5320_v45, %v6712_v23  ;;  %v853_v23 = vadd.f32 %v5323_v21, %v6724_v36  ;;  %v2958_v36 = vld [vmem:[%s6187_s24 + $0x2e] sm:$0xff] }
 0x14f   : > { %v7104_v25 = vpop.f32.mrf.mxu1 }
 0x150   : > { %v7098_v0 = vpop.f32.mrf.mxu0  ;;  %9117 = vst [vmem:[#allocation32_spill] sm:$0xff] %v7104_v25 }
 0x151   : > { %v7108_v15 = vpop.f32.mrf.mxu1 }
 0x152   : > { %v7102_v12 = vpop.f32.mrf.mxu0  ;;  %9118 = vst [vmem:[#allocation33_spill] sm:$0xff] %v7108_v15  ;;  %v9136_v15 = vld [vmem:[#allocation13_spill] sm:$0xff] }
 0x153   : > { %v7112_v8 = vpop.f32.mrf.mxu1 }
 0x154   : > { %v5371_v59 = vpop.f32.mrf.mxu0  ;;  %5602 = vmatmul.mubr.bf16.gmra.mxu0 %v6645_v19  ;;  %v832_v19 = vadd.f32 %v831_v1, %v6716_v28  ;;  %v2330_v1 = vld [vmem:[%s6187_s24 + $0x13c] sm:$0xff] }
 0x155   : > { %v1268_v5 = vadd.f32 %v5371_v59, %v837_v26  ;;  %5605 = vmatprep.mubr.bf16.mxu0 %v6661_v33  ;;  %v7118_v24 = vpop.f32.mrf.mxu1 }
 0x156   : > { %v1123_v39 = vpop.f32.mrf.mxu0 }
 0x157   : > { %v1266_v54 = vadd.f32 %v1123_v39, %v829_v22  ;;  %v7116_v25 = vadd.f32 %v6920_v47, %v1268_v5  ;;  %v7124_v59 = vpop.f32.mrf.mxu1  ;;  %v2957_v5 = vld [vmem:[%s6187_s24 + $0x26] sm:$0xff] }
 0x158   : > { %v5372_v7 = vpop.f32.mrf.mxu0 }
 0x159   : > { %v1269_v9 = vadd.f32 %v5372_v7, %v840_v49  ;;  %v7122_v33 = vadd.f32 %v6933_v20, %v1266_v54  ;;  %v7133_v28 = vpop.f32.mrf.mxu1  ;;  %v845_v49 = vadd.f32 %v844_v44, %v6730_v40  ;;  %v2329_v54 = vld [vmem:[%s6187_s24 + $0x134] sm:$0xff] }
 0x15a   : > { %v1126_v26 = vpop.f32.mrf.mxu0  ;;  %9119 = vst [vmem:[#allocation34_spill] sm:$0xff] %v7133_v28 }
 0x15b   : > { %v7127_v47 = vadd.f32 %v1126_v26, %v832_v19  ;;  %v7130_v55 = vadd.f32 %v6943_v17, %v1269_v9  ;;  %v7141_v21 = vpop.f32.mrf.mxu1  ;;  %v856_v17 = vadd.f32 %v5324_v30, %v6747_v51  ;;  %v2348_v19 = vpack.c.bf16 %v2330_v1, %v2329_v54  ;;  %v2960_v54 = vld [vmem:[%s6187_s24 + $0x3e] sm:$0xff] }
 0x15c   : > { %v5375_v45 = vpop.f32.mrf.mxu0  ;;  %5606 = vmatmul.mubr.bf16.gmra.mxu0 %v6663_v46  ;;  %v2993_v26 = vpack.c.bf16 %v2958_v36, %v2957_v5  ;;  %v2962_v5 = vld [vmem:[%s6187_s24 + $0x4e] sm:$0xff] }
 0x15d   : > { %v1272_v20 = vadd.f32 %v5375_v45, %v853_v23  ;;  %5609 = vmatprep.mubr.bf16.mxu0 %v6682_v50  ;;  %v7147_v9 = vpop.f32.mrf.mxu1  ;;  %v848_v50 = vadd.f32 %v847_v60, %v6753_v62 }
 0x15e   : > { %v1139_v39 = vpop.f32.mrf.mxu0 }
 0x15f   : > { %v1270_v22 = vadd.f32 %v1139_v39, %v845_v49  ;;  %v7145_v7 = vadd.f32 %v6965_v10, %v1272_v20  ;;  %v7153_v30 = vpop.f32.mrf.mxu1  ;;  %v869_v10 = vadd.f32 %v7070_v11, %v6764_v42  ;;  %v2959_v20 = vld [vmem:[%s6187_s24 + $0x36] sm:$0xff]  ;;  %v2961_v39 = vld [vmem:[%s6187_s24 + $0x46] sm:$0xff] }
 0x160   : > { %v5376_v46 = vpop.f32.mrf.mxu0 }
 0x161   : > { %v1273_v40 = vadd.f32 %v5376_v46, %v856_v17  ;;  %v7151_v44 = vadd.f32 %v6978_v37, %v1270_v22  ;;  %v7162_v60 = vpop.f32.mrf.mxu1  ;;  %v861_v37 = vadd.f32 %v7076_v4, %v6771_v16  ;;  %v2994_v22 = vpack.c.bf16 %v2960_v54, %v2959_v20  ;;  %v2966_v20 = vld [vmem:[%s6187_s24 + $0x6e] sm:$0xff] }
 0x162   : > { %v1142_v51 = vpop.f32.mrf.mxu0  ;;  %9120 = vst [vmem:[#allocation35_spill] sm:$0xff] %v7162_v60  ;;  %v864_v16 = vadd.f32 %v7084_v3, %v6790_v32 }
 0x163   : > { %v7157_v23 = vadd.f32 %v1142_v51, %v848_v50  ;;  %v7160_v45 = vadd.f32 %v6986_v31, %v1273_v40  ;;  %v7170_v42 = vpop.f32.mrf.mxu1  ;;  %v872_v31 = vadd.f32 %v7080_v27, %v6784_v34  ;;  %v2995_v50 = vpack.c.bf16 %v2962_v5, %v2961_v39 }
 0x164   : > { %v5379_v62 = vpop.f32.mrf.mxu0  ;;  %5610 = vmatmul.mubr.bf16.gmra.mxu0 %v2348_v19 }
 0x165   : > { %v1276_v49 = vadd.f32 %v5379_v62, %v869_v10  ;;  %5681 = vmatprep.mubr.bf16.mxu0 %v2993_v26  ;;  %v7177_v46 = vpop.f32.mrf.mxu1  ;;  %v2963_v10 = vld [vmem:[%s6187_s24 + $0x56] sm:$0xff]  ;;  %v2964_v62 = vld [vmem:[%s6187_s24 + $0x5e] sm:$0xff] }
 0x166   : > { %v1155_v1 = vpop.f32.mrf.mxu0  ;;  %v2996_v39 = vpack.c.bf16 %v2964_v62, %v2963_v10 }
 0x167   : > { %v1274_v11 = vadd.f32 %v1155_v1, %v861_v37  ;;  %v7175_v36 = vadd.f32 %v7009_v29, %v1276_v49  ;;  %v7184_v27 = vpop.f32.mrf.mxu1  ;;  %v885_v29 = vadd.f32 %v7088_v41, %v6800_v48  ;;  %v2965_v49 = vld [vmem:[%s6187_s24 + $0x66] sm:$0xff]  ;;  %v888_v41 = vadd.f32 %v7098_v0, %v6820_v13 }
 0x168   : > { %v5380_v17 = vpop.f32.mrf.mxu0  ;;  %v2997_v13 = vpack.c.bf16 %v2966_v20, %v2965_v49  ;;  %v9123_v20 = vld [vmem:[#allocation4_spill] sm:$0xff] }
 0x169   : > { %v1277_v4 = vadd.f32 %v5380_v17, %v872_v31  ;;  %v7182_v19 = vadd.f32 %v7017_v61, %v1274_v11  ;;  %v7193_v3 = vpop.f32.mrf.mxu1  ;;  %v877_v61 = vadd.f32 %v7094_v14, %v6807_v57  ;;  %v9121_v14 = vld [vmem:[#allocation2_spill] sm:$0xff] }
 0x16a   : > { %v1158_v34 = vpop.f32.mrf.mxu0  ;;  %v880_v5 = vadd.f32 %v7102_v12, %v9121_v14  ;;  %v9122_v12 = vld [vmem:[#allocation3_spill] sm:$0xff] }
 0x16b   : > { %v7188_v40 = vadd.f32 %v1158_v34, %v864_v16  ;;  %v7191_v26 = vadd.f32 %v7027_v35, %v1277_v4  ;;  %v7201_v48 = vpop.f32.mrf.mxu1  ;;  %v2967_v34 = vld [vmem:[%s6187_s24 + $0x76] sm:$0xff] }
 0x16c   : > { %v5383_v32 = vpop.f32.mrf.mxu0  ;;  %5682 = vmatmul.mubr.bf16.vlgmr.msra.gmra.mxu0 %v2994_v22 }
 0x16d   : > { %v1280_v51 = vadd.f32 %v5383_v32, %v885_v29  ;;  %5685 = vmatprep.mubr.bf16.mxu0 %v2995_v50  ;;  %v7208_v57 = vpop.f32.mrf.mxu1  ;;  %v2968_v29 = vld [vmem:[%s6187_s24 + $0x7e] sm:$0xff]  ;;  %v2969_v32 = vld [vmem:[%s6187_s24 + $0x86] sm:$0xff] }
 0x16e   : > { %v1171_v37 = vpop.f32.mrf.mxu0 }
 0x16f   : > { %v1278_v35 = vadd.f32 %v1171_v37, %v877_v61  ;;  %v7206_v54 = vadd.f32 %v7042_v2, %v1280_v51  ;;  %v7215_v17 = vpop.f32.mrf.mxu1  ;;  %v2970_v61 = vld [vmem:[%s6187_s24 + $0x8e] sm:$0xff]  ;;  %v2998_v37 = vpack.c.bf16 %v2968_v29, %v2967_v34  ;;  %v2973_v34 = vld [vmem:[%s6187_s24 + $0xa6] sm:$0xff] }
 0x170   : > { %v5384_v1 = vpop.f32.mrf.mxu0  ;;  %v2974_v29 = vld [vmem:[%s6187_s24 + $0xae] sm:$0xff] }
 0x171   : > { %v1281_v31 = vadd.f32 %v5384_v1, %v888_v41  ;;  %v7213_v11 = vadd.f32 %v7050_v63, %v1278_v35  ;;  %v7222_v4 = vpop.f32.mrf.mxu1  ;;  %v2999_v1 = vpack.c.bf16 %v2970_v61, %v2969_v32 }
 0x172   : > { %v1174_v0 = vpop.f32.mrf.mxu0 }
 0x173   : > { %v7217_v2 = vadd.f32 %v1174_v0, %v880_v5  ;;  %v7220_v22 = vadd.f32 %v7055_v58, %v1281_v31  ;;  %v7229_v51 = vpop.f32.mrf.mxu1 }
 0x174   : > { %v5387_v16 = vpop.f32.mrf.mxu0  ;;  %5686 = vmatmul.mubr.bf16.gmra.mxu0 %v2996_v39 }
 0x175   : > { %v1284_v50 = vadd.f32 %v5387_v16, %v9122_v12  ;;  %5689 = vmatprep.mubr.bf16.mxu0 %v2997_v13  ;;  %v7235_v49 = vpop.f32.mrf.mxu1  ;;  %v9125_v13 = vld [vmem:[#allocation6_spill] sm:$0xff]  ;;  %v2971_v16 = vld [vmem:[%s6187_s24 + $0x96] sm:$0xff] }
 0x176   : > { %v1187_v63 = vpop.f32.mrf.mxu0  ;;  %v2972_v12 = vld [vmem:[%s6187_s24 + $0x9e] sm:$0xff] }
 0x177   : > { %v1282_v10 = vadd.f32 %v1187_v63, %v6854_v6  ;;  %v7233_v58 = vadd.f32 %v7064_v53, %v1284_v50  ;;  %v7241_v14 = vpop.f32.mrf.mxu1  ;;  %v9124_v6 = vld [vmem:[#allocation5_spill] sm:$0xff]  ;;  %v3000_v61 = vpack.c.bf16 %v2972_v12, %v2971_v16 }
 0x178   : > { %v5388_v62 = vpop.f32.mrf.mxu0  ;;  %v2976_v16 = vld [vmem:[%s6187_s24 + $0xbe] sm:$0xff] }
 0x179   : > { %v1285_v41 = vadd.f32 %v5388_v62, %v9123_v20  ;;  %v7239_v35 = vadd.f32 %v7066_v43, %v1282_v10  ;;  %v7252_v50 = vpop.f32.mrf.mxu1  ;;  %v9126_v62 = vld [vmem:[#allocation27_spill] sm:$0xff]  ;;  %v3001_v20 = vpack.c.bf16 %v2974_v29, %v2973_v34 }
 0x17a   : > { %v1190_v39 = vpop.f32.mrf.mxu0  ;;  %v2977_v34 = vld [vmem:[%s6187_s24 + $0xc6] sm:$0xff]  ;;  %v2978_v29 = vld [vmem:[%s6187_s24 + $0xce] sm:$0xff] }
 0x17b   : > { %v7244_v5 = vadd.f32 %v1190_v39, %v9124_v6  ;;  %v7247_v53 = vadd.f32 %v7068_v38, %v1285_v41  ;;  %v7264_v41 = vpop.f32.mrf.mxu1  ;;  %v9127_v39 = vld [vmem:[#allocation8_spill] sm:$0xff] }
 0x17c   : > { %v5391_v31 = vpop.f32.mrf.mxu0  ;;  %5690 = vmatmul.mubr.bf16.gmra.mxu0 %v2998_v37 }
 0x17d   : > { %v1288_v0 = vadd.f32 %v5391_v31, %v9125_v13  ;;  %5693 = vmatprep.mubr.bf16.mxu0 %v2999_v1  ;;  %v9130_v13 = vld [vmem:[#allocation10_spill] sm:$0xff]  ;;  %v7275_v12 = vpop.f32.mrf.mxu1 }
 0x17e   : > { %v1203_v43 = vpop.f32.mrf.mxu0 }
 0x17f   : > { %v1286_v63 = vadd.f32 %v1203_v43, %v6892_v18  ;;  %v7258_v32 = vadd.f32 %v7078_v52, %v1288_v0  ;;  %v9128_v18 = vld [vmem:[#allocation28_spill] sm:$0xff]  ;;  %v7287_v60 = vpop.f32.mrf.mxu1 }
 0x180   : > { %v5392_v38 = vpop.f32.mrf.mxu0 }
 0x181   : > { %v1289_v10 = vadd.f32 %v5392_v38, %v6901_v56  ;;  %v7262_v37 = vadd.f32 %v9126_v62, %v1286_v63  ;;  %v2975_v56 = vld [vmem:[%s6187_s24 + $0xb6] sm:$0xff]  ;;  %v9131_v63 = vld [vmem:[#allocation11_spill] sm:$0xff]  ;;  %v9132_v62 = vld [vmem:[#allocation30_spill] sm:$0xff] }
 0x182   : > { %v1206_v1 = vpop.f32.mrf.mxu0 }
 0x183   : > { %v7267_v6 = vadd.f32 %v1206_v1, %v9127_v39  ;;  %v7270_v31 = vadd.f32 %v9128_v18, %v1289_v10  ;;  %v3002_v39 = vpack.c.bf16 %v2976_v16, %v2975_v56  ;;  %v9140_v56 = vld [vmem:[#allocation15_spill] sm:$0xff] }
 0x184   : > { %v5395_v52 = vpop.f32.mrf.mxu0  ;;  %5694 = vmatmul.mubr.bf16.gmra.mxu0 %v3000_v61  ;;  %v9133_v61 = vld [vmem:[#allocation12_spill] sm:$0xff] }
 0x185   : > { %9129 = vst [vmem:[#allocation2_spill] sm:$0xff] %v7270_v31  ;;  %v1292_v0 = vadd.f32 %v5395_v52, %v9130_v13  ;;  %5697 = vmatprep.mubr.bf16.mxu0 %v3001_v20  ;;  %v9134_v20 = vld [vmem:[#allocation31_spill] sm:$0xff]  ;;  %v3003_v13 = vpack.c.bf16 %v2978_v29, %v2977_v34 }
 0x186   : > { %v1219_v43 = vpop.f32.mrf.mxu0  ;;  %v2981_v34 = vld [vmem:[%s6187_s24 + $0xe6] sm:$0xff]  ;;  %v2982_v29 = vld [vmem:[%s6187_s24 + $0xee] sm:$0xff] }
 0x187   : > { %v1290_v38 = vadd.f32 %v1219_v43, %v9131_v63  ;;  %v7281_v1 = vadd.f32 %v9132_v62, %v1292_v0  ;;  %v9138_v43 = vld [vmem:[#allocation32_spill] sm:$0xff] }
 0x188   : > { %v5396_v10 = vpop.f32.mrf.mxu0  ;;  %v2979_v62 = vld [vmem:[%s6187_s24 + $0xd6] sm:$0xff] }
 0x189   : > { %v1293_v18 = vadd.f32 %v5396_v10, %v9133_v61  ;;  %v7285_v52 = vadd.f32 %v9134_v20, %v1290_v38  ;;  %v2980_v10 = vld [vmem:[%s6187_s24 + $0xde] sm:$0xff]  ;;  %v7298_v61 = vpop.f32.mrf.mxu1  ;;  %v9141_v20 = vld [vmem:[#allocation16_spill] sm:$0xff] }
 0x18a   : > { %v1222_v28 = vpop.f32.mrf.mxu0 }
 0x18b   : > { %9135 = vst [vmem:[#allocation3_spill] sm:$0xff] %v7285_v52  ;;  %v7290_v31 = vadd.f32 %v1222_v28, %v9136_v15  ;;  %v7293_v63 = vadd.f32 %v9138_v43, %v1293_v18  ;;  %v3004_v18 = vpack.c.bf16 %v2980_v10, %v2979_v62  ;;  %v9148_v62 = vld [vmem:[#allocation21_spill] sm:$0xff]  ;;  %v9149_v10 = vld [vmem:[#allocation7_spill] sm:$0xff] }
 0x18c   : > { %v5399_v0 = vpop.f32.mrf.mxu0  ;;  %5698 = vmatmul.mubr.bf16.gmra.mxu0 %v3002_v39  ;;  %v9143_v39 = vld [vmem:[#allocation17_spill] sm:$0xff] }
 0x18d   : > { %9137 = vst [vmem:[#allocation4_spill] sm:$0xff] %v7290_v31  ;;  %9139 = vst [vmem:[#allocation5_spill] sm:$0xff] %v7293_v63  ;;  %v1296_v16 = vadd.f32 %v5399_v0, %v9140_v56  ;;  %5701 = vmatprep.mubr.bf16.mxu0 %v3003_v13  ;;  %v3005_v0 = vpack.c.bf16 %v2982_v29, %v2981_v34  ;;  %v7310_v56 = vpop.f32.mrf.mxu1  ;;  %v9145_v31 = vld [vmem:[#allocation18_spill] sm:$0xff] }
 0x18e   : > { %v1235_v38 = vpop.f32.mrf.mxu0 }
 0x18f   : > { %v1294_v52 = vadd.f32 %v1235_v38, %v9141_v20  ;;  %v7304_v15 = vadd.f32 %v7112_v8, %v1296_v16  ;;  %v957_v20 = vadd.f32 %v9149_v10, %v9148_v62  ;;  %v7323_v34 = vpop.f32.mrf.mxu1  ;;  %v9152_v62 = vld [vmem:[#allocation9_spill] sm:$0xff] }
 0x190   : > { %v5400_v28 = vpop.f32.mrf.mxu0 }
 0x191   : > { %9142 = vst [vmem:[#allocation6_spill] sm:$0xff] %v7304_v15  ;;  %v1297_v43 = vadd.f32 %v5400_v28, %v9143_v39  ;;  %v7308_v13 = vadd.f32 %v7118_v24, %v1294_v52  ;;  %v9150_v28 = vld [vmem:[#allocation20_spill] sm:$0xff]  ;;  %v2984_v52 = vld [vmem:[%s6187_s24 + $0xfe] sm:$0xff] }
 0x192   : > { %v1238_v63 = vpop.f32.mrf.mxu0  ;;  %v2983_v24 = vld [vmem:[%s6187_s24 + $0xf6] sm:$0xff]  ;;  %v2986_v15 = vld [vmem:[%s6187_s24 + $0x10e] sm:$0xff] }
 0x193   : > { %9144 = vst [vmem:[#allocation27_spill] sm:$0xff] %v7308_v13  ;;  %v7313_v38 = vadd.f32 %v1238_v63, %v9145_v31  ;;  %v7316_v8 = vadd.f32 %v7124_v59, %v1297_v43  ;;  %v2985_v13 = vld [vmem:[%s6187_s24 + $0x106] sm:$0xff] }
 0x194   : > { %v5403_v16 = vpop.f32.mrf.mxu0  ;;  %5702 = vmatmul.mubr.bf16.gmra.mxu0 %v3004_v18  ;;  %v3006_v18 = vpack.c.bf16 %v2984_v52, %v2983_v24  ;;  %v9151_v43 = vld [vmem:[#allocation23_spill] sm:$0xff]  ;;  %v2987_v52 = vld [vmem:[%s6187_s24 + $0x116] sm:$0xff] }
 0x195   : > { %9146 = vst [vmem:[#allocation8_spill] sm:$0xff] %v7313_v38  ;;  %9147 = vst [vmem:[#allocation28_spill] sm:$0xff] %v7316_v8  ;;  %v1300_v39 = vadd.f32 %v5403_v16, %v9150_v28  ;;  %5705 = vmatprep.mubr.bf16.mxu0 %v3005_v0  ;;  %v960_v10 = vadd.f32 %v9152_v62, %v9151_v43  ;;  %v9153_v16 = vld [vmem:[#allocation22_spill] sm:$0xff]  ;;  %v3007_v8 = vpack.c.bf16 %v2986_v15, %v2985_v13  ;;  %v7336_v38 = vpop.f32.mrf.mxu1  ;;  %v2990_v15 = vld [vmem:[%s6187_s24 + $0x12e] sm:$0xff] }
 0x196   : > { %v1251_v29 = vpop.f32.mrf.mxu0 }
 0x197   : > { %v1298_v31 = vadd.f32 %v1251_v29, %v957_v20  ;;  %v7328_v59 = vadd.f32 %v7141_v21, %v1300_v39  ;;  %v7346_v43 = vpop.f32.mrf.mxu1 }
 0x198   : > { %v5404_v63 = vpop.f32.mrf.mxu0 }
 0x199   : > { %v1301_v0 = vadd.f32 %v5404_v63, %v9153_v16  ;;  %v7334_v28 = vadd.f32 %v7147_v9, %v1298_v31  ;;  %v2988_v63 = vld [vmem:[%s6187_s24 + $0x11e] sm:$0xff]  ;;  %v2989_v31 = vld [vmem:[%s6187_s24 + $0x126] sm:$0xff] }
 0x19a   : > { %v1254_v20 = vpop.f32.mrf.mxu0 }
 0x19b   : > { %v7338_v29 = vadd.f32 %v1254_v20, %v960_v10  ;;  %v7341_v21 = vadd.f32 %v7153_v30, %v1301_v0  ;;  %v3008_v10 = vpack.c.bf16 %v2988_v63, %v2987_v52  ;;  %v3009_v0 = vpack.c.bf16 %v2990_v15, %v2989_v31  ;;  %v7360_v20 = vpop.f32.mrf.mxu1 }
 0x19c   : > { %v5475_v39 = vpop.f32.mrf.mxu0  ;;  %5706 = vmatmul.mubr.bf16.gmra.mxu0 %v3006_v18  ;;  %v9154_v18 = vld [vmem:[#allocation14_spill] sm:$0xff] }
 0x19d   : > { %v1930_v24 = vadd.f32 %v5475_v39, %v7116_v25  ;;  %5709 = vmatprep.mubr.bf16.mxu0 %v3007_v8  ;;  %v1598_v25 = vadd.f32 %v9154_v18, %v7127_v47  ;;  %v2991_v47 = vld [vmem:[%s6187_s24 + $0x136] sm:$0xff] }
 0x19e   : > { %v1785_v9 = vpop.f32.mrf.mxu0 }
 0x19f   : > { %v1928_v13 = vadd.f32 %v1785_v9, %v7122_v33  ;;  %v7352_v62 = vadd.f32 %v7170_v42, %v1930_v24 }
 0x1a0   : > { %v5476_v30 = vpop.f32.mrf.mxu0 }
 0x1a1   : > { %v1931_v8 = vadd.f32 %v5476_v30, %v7130_v55  ;;  %v7358_v16 = vadd.f32 %v7177_v46, %v1928_v13  ;;  %v2992_v55 = vld [vmem:[%s6187_s24 + $0x13e] sm:$0xff]  ;;  %v7371_v46 = vpop.f32.mrf.mxu1  ;;  %v9155_v30 = vld [vmem:[#allocation19_spill] sm:$0xff] }
 0x1a2   : > { %v1788_v39 = vpop.f32.mrf.mxu0  ;;  %v3010_v13 = vpack.c.bf16 %v2992_v55, %v2991_v47 }
 0x1a3   : > { %v1929_v33 = vadd.f32 %v1788_v39, %v1598_v25  ;;  %v7363_v42 = vadd.f32 %v7184_v27, %v1931_v8  ;;  %v7383_v18 = vpop.f32.mrf.mxu1 }
 0x1a4   : > { %v5479_v24 = vpop.f32.mrf.mxu0  ;;  %5710 = vmatmul.mubr.bf16.gmra.mxu0 %v3008_v10  ;;  %v1602_v10 = vadd.f32 %v9155_v30, %v7157_v23 }
 0x1a5   : > { %v1934_v52 = vadd.f32 %v5479_v24, %v7145_v7  ;;  %v7367_v63 = vadd.f32 %v7193_v3, %v1929_v33  ;;  %5713 = vmatprep.mubr.bf16.mxu0 %v3009_v0  ;;  %v2199_v23 = vpop.f32.mrf.mxu1 }
 0x1a6   : > { %v1801_v9 = vpop.f32.mrf.mxu0 }
 0x1a7   : > { %v1932_v31 = vadd.f32 %v1801_v9, %v7151_v44  ;;  %v7375_v15 = vadd.f32 %v7201_v48, %v1934_v52  ;;  %v9156_v52 = vld [vmem:[#allocation24_spill] sm:$0xff] }
 0x1a8   : > { %v5480_v27 = vpop.f32.mrf.mxu0  ;;  %v1606_v47 = vadd.f32 %v9156_v52, %v7188_v40 }
 0x1a9   : > { %v1935_v7 = vadd.f32 %v5480_v27, %v7160_v45  ;;  %v7381_v3 = vadd.f32 %v7208_v57, %v1932_v31 }
 0x1aa   : > { %v1804_v25 = vpop.f32.mrf.mxu0 }
 0x1ab   : > { %v1933_v8 = vadd.f32 %v1804_v25, %v1602_v10  ;;  %v7386_v0 = vadd.f32 %v7215_v17, %v1935_v7  ;;  %v9157_v10 = vld [vmem:[#allocation25_spill] sm:$0xff] }
 0x1ac   : > { %v5483_v44 = vpop.f32.mrf.mxu0  ;;  %5714 = vmatmul.mubr.bf16.gmra.mxu0 %v3010_v13  ;;  %v1610_v7 = vadd.f32 %v9157_v10, %v7217_v2 }
 0x1ad   : > { %v1938_v48 = vadd.f32 %v5483_v44, %v7175_v36  ;;  %v7390_v39 = vadd.f32 %v7222_v4, %v1933_v8  ;;  %v5551_v36 = vpop.f32.mrf.mxu1 }
 0x1ae   : > { %v1817_v33 = vpop.f32.mrf.mxu0 }
 0x1af   : > { %v1936_v45 = vadd.f32 %v1817_v33, %v7182_v19  ;;  %v7394_v57 = vadd.f32 %v7229_v51, %v1938_v48  ;;  %v2212_v13 = vpop.f32.mrf.mxu1 }
 0x1b0   : > { %v5484_v24 = vpop.f32.mrf.mxu0 }
 0x1b1   : > { %v1939_v17 = vadd.f32 %v5484_v24, %v7191_v26  ;;  %v7400_v55 = vadd.f32 %v7235_v49, %v1936_v45  ;;  %v9158_v24 = vld [vmem:[#allocation26_spill] sm:$0xff] }
 0x1b2   : > { %v1820_v9 = vpop.f32.mrf.mxu0  ;;  %v1614_v52 = vadd.f32 %v9158_v24, %v7244_v5 }
 0x1b3   : > { %v1937_v4 = vadd.f32 %v1820_v9, %v1606_v47  ;;  %v7403_v31 = vadd.f32 %v7241_v14, %v1939_v17 }
 0x1b4   : > { %v5487_v27 = vpop.f32.mrf.mxu0 }
 0x1b5   : > { %v1942_v19 = vadd.f32 %v5487_v27, %v7206_v54  ;;  %v7407_v51 = vadd.f32 %v7252_v50, %v1937_v4  ;;  %v5552_v54 = vpop.f32.mrf.mxu1 }
 0x1b6   : > { %v1833_v30 = vpop.f32.mrf.mxu0 }
 0x1b7   : > { %v1940_v40 = vadd.f32 %v1833_v30, %v7213_v11  ;;  %v7411_v26 = vadd.f32 %v7264_v41, %v1942_v19  ;;  %v2215_v33 = vpop.f32.mrf.mxu1  ;;  %v9159_v30 = vld [vmem:[#allocation29_spill] sm:$0xff] }
 0x1b8   : > { %v5488_v49 = vpop.f32.mrf.mxu0 }
 0x1b9   : > { %v1943_v14 = vadd.f32 %v5488_v49, %v7220_v22  ;;  %v7417_v25 = vadd.f32 %v7275_v12, %v1940_v40  ;;  %v1618_v40 = vadd.f32 %v9159_v30, %v7267_v6  ;;  %v9160_v49 = vld [vmem:[#allocation2_spill] sm:$0xff] }
 0x1ba   : > { %v1836_v8 = vpop.f32.mrf.mxu0 }
 0x1bb   : > { %v1941_v50 = vadd.f32 %v1836_v8, %v1610_v7  ;;  %v7420_v44 = vadd.f32 %v7287_v60, %v1943_v14  ;;  %v9009_v8 = vmov 0.0  }
 0x1bc   : > { %v5491_v48 = vpop.f32.mrf.mxu0  ;;  %5717 = vmatprep.subr.mxu1 %v9009_v8  ;;  %5749 = vmatprep.mubr.msk.f32.mxu1 %vm6106_vm0, %v9009_v8 }
 0x1bd   : > { %v1946_v11 = vadd.f32 %v5491_v48, %v7233_v58  ;;  %v7424_v41 = vadd.f32 %v7298_v61, %v1941_v50  ;;  %v5555_v58 = vpop.f32.mrf.mxu1 }
 0x1be   : > { %v1849_v45 = vpop.f32.mrf.mxu0 }
 0x1bf   : > { %v1944_v2 = vadd.f32 %v1849_v45, %v7239_v35  ;;  %v7428_v22 = vadd.f32 %v7310_v56, %v1946_v11  ;;  %v2228_v27 = vpop.f32.mrf.mxu1 }
 0x1c0   : > { %v5492_v12 = vpop.f32.mrf.mxu0 }
 0x1c1   : > { %v1947_v60 = vadd.f32 %v5492_v12, %v7247_v53  ;;  %v7434_v47 = vadd.f32 %v7323_v34, %v1944_v2  ;;  %v7473_v2 = vld [vmem:[%s8991_s3 + $0x70] sm:$0xff] }
 0x1c2   : > { %v1852_v17 = vpop.f32.mrf.mxu0  ;;  %9163 = vst [vmem:[#allocation11_spill] sm:$0xff] %v7473_v2 }
 0x1c3   : > { %v1945_v61 = vadd.f32 %v1852_v17, %v1614_v52  ;;  %v7437_v9 = vadd.f32 %v7336_v38, %v1947_v60  ;;  %v9166_v52 = vld [vmem:[#allocation5_spill] sm:$0xff] }
 0x1c4   : > { %v5495_v4 = vpop.f32.mrf.mxu0 }
 0x1c5   : > { %v1950_v35 = vadd.f32 %v5495_v4, %v7258_v32  ;;  %v7441_v56 = vadd.f32 %v7346_v43, %v1945_v61  ;;  %v5556_v32 = vpop.f32.mrf.mxu1 }
 0x1c6   : > { %v1865_v19 = vpop.f32.mrf.mxu0 }
 0x1c7   : > { %v1948_v5 = vadd.f32 %v1865_v19, %v7262_v37  ;;  %v7445_v53 = vadd.f32 %v7360_v20, %v1950_v35  ;;  %v7459_v37 = vld [vmem:[%s8991_s3 + $0x78] sm:$0xff]  ;;  %v7487_v19 = vld [vmem:[%s8991_s3 + $0x68] sm:$0xff] }
 0x1c8   : > { %v5496_v34 = vpop.f32.mrf.mxu0  ;;  %9161 = vst [vmem:[#allocation10_spill] sm:$0xff] %v7459_v37  ;;  %5718 = vmatpush3.msra.mxu1 %v7459_v37  ;;  %9167 = vst [vmem:[#allocation30_spill] sm:$0xff] %v7487_v19 }
 0x1c9   : > { %v1951_v38 = vadd.f32 %v5496_v34, %v9160_v49  ;;  %v7451_v10 = vadd.f32 %v7371_v46, %v1948_v5  ;;  %v2231_v46 = vpop.f32.mrf.mxu1  ;;  %5719 = vmatprep.subr.mxu1 %v9009_v8  ;;  %v9168_v34 = vld [vmem:[#allocation6_spill] sm:$0xff] }
 0x1ca   : > { %v1868_v7 = vpop.f32.mrf.mxu0  ;;  %5720 = vmatpush3.msra.mxu1 %v7473_v2 }
 0x1cb   : > { %v1949_v43 = vadd.f32 %v1868_v7, %v1618_v40  ;;  %v7454_v14 = vadd.f32 %v7383_v18, %v1951_v38  ;;  %v9162_v18 = vld [vmem:[#allocation3_spill] sm:$0xff]  ;;  %v5559_v61 = vpop.f32.mrf.mxu1  ;;  %5721 = vmatprep.subr.mxu1 %v9009_v8 }
 0x1cc   : > { %v5499_v20 = vpop.f32.mrf.mxu0  ;;  %5722 = vmatpush3.msra.mxu1 %v7487_v19  ;;  %v9169_v38 = vld [vmem:[#allocation27_spill] sm:$0xff] }
 0x1cd   : > { %v1954_v6 = vadd.f32 %v5499_v20, %v7281_v1  ;;  %v7463_v50 = vadd.f32 %v2199_v23, %v1949_v43  ;;  %v9164_v1 = vld [vmem:[#allocation4_spill] sm:$0xff]  ;;  %v9165_v23 = vld [vmem:[#allocation33_spill] sm:$0xff]  ;;  %5723 = vmatprep.subr.mxu1 %v9009_v8 }
 0x1ce   : > { %v1881_v48 = vpop.f32.mrf.mxu0  ;;  %v1622_v24 = vadd.f32 %v9165_v23, %v9164_v1  ;;  %v9170_v20 = vld [vmem:[#allocation8_spill] sm:$0xff] }
 0x1cf   : > { %v1952_v11 = vadd.f32 %v1881_v48, %v9162_v18  ;;  %v7468_v45 = vadd.f32 %v5551_v36, %v1954_v6  ;;  %v9171_v6 = vld [vmem:[#allocation34_spill] sm:$0xff]  ;;  %v9172_v18 = vld [vmem:[#allocation28_spill] sm:$0xff] }
 0x1d0   : > { %v5500_v12 = vpop.f32.mrf.mxu0  ;;  %v1626_v48 = vadd.f32 %v9171_v6, %v9170_v20  ;;  %v7536_v20 = vld [vmem:[%s8991_s3 + $0x50] sm:$0xff] }
 0x1d1   : > { %v1955_v60 = vadd.f32 %v5500_v12, %v9166_v52  ;;  %v7479_v17 = vadd.f32 %v2212_v13, %v1952_v11  ;;  %v2244_v13 = vpop.f32.mrf.mxu1  ;;  %v7507_v52 = vld [vmem:[%s8991_s3 + $0x60] sm:$0xff]  ;;  %9176 = vst [vmem:[#allocation13_spill] sm:$0xff] %v7536_v20 }
 0x1d2   : > { %v1884_v36 = vpop.f32.mrf.mxu0  ;;  %9173 = vst [vmem:[#allocation12_spill] sm:$0xff] %v7507_v52  ;;  %5724 = vmatpush3.msra.mxu1 %v7507_v52 }
 0x1d3   : > { %v1953_v4 = vadd.f32 %v1884_v36, %v1622_v24  ;;  %v7482_v35 = vadd.f32 %v5552_v54, %v1955_v60  ;;  %v5560_v1 = vpop.f32.mrf.mxu1  ;;  %5725 = vmatprep.subr.mxu1 %v9009_v8 }
 0x1d4   : > { %v5503_v5 = vpop.f32.mrf.mxu0 }
 0x1d5   : > { %v1958_v30 = vadd.f32 %v5503_v5, %v9168_v34  ;;  %v7491_v40 = vadd.f32 %v2215_v33, %v1953_v4  ;;  %v2247_v4 = vpop.f32.mrf.mxu1  ;;  %v7520_v34 = vld [vmem:[%s8991_s3 + $0x58] sm:$0xff] }
 0x1d6   : > { %v1897_v49 = vpop.f32.mrf.mxu0  ;;  %9174 = vst [vmem:[#allocation31_spill] sm:$0xff] %v7520_v34  ;;  %5726 = vmatpush3.msra.mxu1 %v7520_v34 }
 0x1d7   : > { %v1956_v7 = vadd.f32 %v1897_v49, %v9169_v38  ;;  %v7495_v54 = vadd.f32 %v5555_v58, %v1958_v30  ;;  %5727 = vmatprep.subr.mxu1 %v9009_v8 }
 0x1d8   : > { %v5504_v43 = vpop.f32.mrf.mxu0  ;;  %5728 = vmatpush3.msra.mxu1 %v7536_v20  ;;  %v7712_v20 = vpop.permute.xlu1 %3379 }
 0x1d9   : > { %v1959_v11 = vadd.f32 %v5504_v43, %v9172_v18  ;;  %v7500_v12 = vadd.f32 %v2228_v27, %v1956_v7  ;;  %v7528_v7 = vpop.f32.mrf.mxu1  ;;  %5729 = vmatprep.subr.mxu1 %v9009_v8  ;;  %9190 = vst [vmem:[#allocation24_spill] sm:$0xff] %v7712_v20 }
 0x1da   : > { %v1900_v23 = vpop.f32.mrf.mxu0 }
 0x1db   : > { %v1957_v33 = vadd.f32 %v1900_v23, %v1626_v48  ;;  %v7502_v24 = vadd.f32 %v5556_v32, %v1959_v11  ;;  %v7553_v11 = vld [vmem:[%s8991_s3 + $0x48] sm:$0xff] }
 0x1dc   : > { %v5507_v58 = vpop.f32.mrf.mxu0  ;;  %9177 = vst [vmem:[#allocation32_spill] sm:$0xff] %v7553_v11  ;;  %5730 = vmatpush3.msra.mxu1 %v7553_v11 }
 0x1dd   : > { %v1962_v60 = vadd.f32 %v5507_v58, %v7328_v59  ;;  %v7511_v36 = vadd.f32 %v2231_v46, %v1957_v33  ;;  %v9175_v59 = vld [vmem:[#allocation35_spill] sm:$0xff]  ;;  %5731 = vmatprep.subr.mxu1 %v9009_v8 }
 0x1de   : > { %v1913_v27 = vpop.f32.mrf.mxu0  ;;  %v1630_v46 = vadd.f32 %v9175_v59, %v7338_v29 }
 0x1df   : > { %v1960_v5 = vadd.f32 %v1913_v27, %v7334_v28  ;;  %v7515_v32 = vadd.f32 %v5559_v61, %v1962_v60 }
 0x1e0   : > { %v5508_v30 = vpop.f32.mrf.mxu0 }
 0x1e1   : > { %v1963_v49 = vadd.f32 %v5508_v30, %v7341_v21  ;;  %v7526_v38 = vadd.f32 %v2244_v13, %v1960_v5  ;;  %v7544_v13 = vpop.f32.mrf.mxu1 }
 0x1e2   : > { %v1916_v28 = vpop.f32.mrf.mxu0 }
 0x1e3   : > { %v1961_v61 = vadd.f32 %v1916_v28, %v1630_v46  ;;  %v7531_v43 = vadd.f32 %v5560_v1, %v1963_v49 }
 0x1e4   : > { %v5579_v6 = vpop.f32.mrf.mxu0 }
 0x1e5   : > { %v7539_v29 = vadd.f32 %v2247_v4, %v1961_v61  ;;  %v7542_v21 = vadd.f32 %v5579_v6, %v7352_v62  ;;  %v7559_v62 = vpop.f32.mrf.mxu1 }
 0x1e6   : > { %v2447_v48 = vpop.f32.mrf.mxu0 }
 0x1e7   : > { %v7548_v18 = vadd.f32 %v2447_v48, %v7358_v16  ;;  %v7568_v16 = vld [vmem:[%s8991_s3 + $0x40] sm:$0xff] }
 0x1e8   : > { %v5580_v1 = vpop.f32.mrf.mxu0  ;;  %9178 = vst [vmem:[#allocation15_spill] sm:$0xff] %v7568_v16  ;;  %5732 = vmatpush3.msra.mxu1 %v7568_v16 }
 0x1e9   : > { %v7557_v23 = vadd.f32 %v5580_v1, %v7363_v42  ;;  %v7574_v42 = vpop.f32.mrf.mxu1  ;;  %5733 = vmatprep.subr.mxu1 %v9009_v8 }
 0x1ea   : > { %v2450_v33 = vpop.f32.mrf.mxu0 }
 0x1eb   : > { %v7563_v58 = vadd.f32 %v2450_v33, %v7367_v63  ;;  %v7583_v63 = vld [vmem:[%s8991_s3 + $0x38] sm:$0xff]  ;;  %v7586_v59 = vpop.f32.mrf.mxu1 }
 0x1ec   : > { %v5583_v60 = vpop.f32.mrf.mxu0  ;;  %9179 = vst [vmem:[#allocation16_spill] sm:$0xff] %v7583_v63  ;;  %5734 = vmatpush3.msra.mxu1 %v7583_v63 }
 0x1ed   : > { %v7572_v4 = vadd.f32 %v5583_v60, %v7375_v15  ;;  %5735 = vmatprep.subr.mxu1 %v9009_v8  ;;  %v7601_v61 = vpop.f32.mrf.mxu1 }
 0x1ee   : > { %v2463_v27 = vpop.f32.mrf.mxu0 }
 0x1ef   : > { %v7578_v5 = vadd.f32 %v2463_v27, %v7381_v3  ;;  %v7598_v3 = vld [vmem:[%s8991_s3 + $0x30] sm:$0xff]  ;;  %v7616_v33 = vpop.f32.mrf.mxu1 }
 0x1f0   : > { %v5584_v30 = vpop.f32.mrf.mxu0  ;;  %9180 = vst [vmem:[#allocation17_spill] sm:$0xff] %v7598_v3  ;;  %5736 = vmatpush3.msra.mxu1 %v7598_v3 }
 0x1f1   : > { %v7589_v15 = vadd.f32 %v5584_v30, %v7386_v0  ;;  %5737 = vmatprep.subr.mxu1 %v9009_v8  ;;  %v7625_v30 = vpop.f32.mrf.mxu1 }
 0x1f2   : > { %v2466_v46 = vpop.f32.mrf.mxu0 }
 0x1f3   : > { %v7593_v49 = vadd.f32 %v2466_v46, %v7390_v39  ;;  %v7613_v39 = vld [vmem:[%s8991_s3 + $0x28] sm:$0xff]  ;;  %v7633_v3 = vpop.f32.mrf.mxu1 }
 0x1f4   : > { %v5587_v28 = vpop.f32.mrf.mxu0  ;;  %9181 = vst [vmem:[#allocation18_spill] sm:$0xff] %v7613_v39  ;;  %5738 = vmatpush3.msra.mxu1 %v7613_v39 }
 0x1f5   : > { %v7604_v6 = vadd.f32 %v5587_v28, %v7394_v57  ;;  %5739 = vmatprep.subr.mxu1 %v9009_v8 }
 0x1f6   : > { %v2479_v0 = vpop.f32.mrf.mxu0 }
 0x1f7   : > { %v7608_v48 = vadd.f32 %v2479_v0, %v7400_v55 }
 0x1f8   : > { %v5588_v1 = vpop.f32.mrf.mxu0 }
 0x1f9   : > { %v7619_v60 = vadd.f32 %v5588_v1, %v7403_v31 }
 0x1fa   : > { %v2482_v57 = vpop.f32.mrf.mxu0 }
 0x1fb   : > { %v7623_v27 = vadd.f32 %v2482_v57, %v7407_v51  ;;  %v7641_v51 = vld [vmem:[%s8991_s3 + $0x20] sm:$0xff] }
 0x1fc   : > { %v5591_v55 = vpop.f32.mrf.mxu0  ;;  %9182 = vst [vmem:[#allocation21_spill] sm:$0xff] %v7641_v51  ;;  %5740 = vmatpush3.msra.mxu1 %v7641_v51 }
 0x1fd   : > { %v7628_v46 = vadd.f32 %v5591_v55, %v7411_v26  ;;  %5741 = vmatprep.subr.mxu1 %v9009_v8 }
 0x1fe   : > { %v2495_v28 = vpop.f32.mrf.mxu0 }
 0x1ff   : > { %v7631_v0 = vadd.f32 %v2495_v28, %v7417_v25  ;;  %v7651_v25 = vld [vmem:[%s8991_s3 + $0x18] sm:$0xff] }
 0x200   : > { %v5592_v39 = vpop.f32.mrf.mxu0  ;;  %9183 = vst [vmem:[#allocation7_spill] sm:$0xff] %v7651_v25  ;;  %5742 = vmatpush3.msra.mxu1 %v7651_v25 }
 0x201   : > { %v7636_v31 = vadd.f32 %v5592_v39, %v7420_v44  ;;  %v7654_v39 = vpop.f32.mrf.mxu1  ;;  %5743 = vmatprep.subr.mxu1 %v9009_v8 }
 0x202   : > { %v2498_v1 = vpop.f32.mrf.mxu0 }
 0x203   : > { %v7645_v26 = vadd.f32 %v2498_v1, %v7424_v41  ;;  %v7663_v41 = vld [vmem:[%s8991_s3 + $0x10] sm:$0xff] }
 0x204   : > { %v5595_v44 = vpop.f32.mrf.mxu0  ;;  %9184 = vst [vmem:[#allocation20_spill] sm:$0xff] %v7663_v41  ;;  %5744 = vmatpush3.msra.mxu1 %v7663_v41 }
 0x205   : > { %v7657_v57 = vadd.f32 %v5595_v44, %v7428_v22  ;;  %5745 = vmatprep.subr.mxu1 %v9009_v8  ;;  %v7673_v22 = vld [vmem:[%s8991_s3 + $0x8] sm:$0xff]  ;;  %v7676_v44 = vpop.f32.mrf.mxu1 }
 0x206   : > { %v2511_v55 = vpop.f32.mrf.mxu0  ;;  %9185 = vst [vmem:[#allocation23_spill] sm:$0xff] %v7673_v22  ;;  %5746 = vmatpush3.msra.mxu1 %v7673_v22 }
 0x207   : > { %v7667_v28 = vadd.f32 %v2511_v55, %v7434_v47  ;;  %5747 = vmatprep.subr.mxu1 %v9009_v8  ;;  %v7685_v47 = vld [vmem:[%s8991_s3] sm:$0xff] }
 0x208   : > { %v5596_v1 = vpop.f32.mrf.mxu0  ;;  %9186 = vst [vmem:[#allocation9_spill] sm:$0xff] %v7685_v47  ;;  %5748 = vmatpush3.msra.mxu1 %v7685_v47 }
 0x209   : > { %v7679_v25 = vadd.f32 %v5596_v1, %v7437_v9  ;;  %5752 = vmatprep.subr.mxu1 %v9009_v8  ;;  %v7694_v1 = vpop.f32.mrf.mxu1 }
 0x20a   : > { %v2514_v55 = vpop.f32.mrf.mxu0 }
 0x20b   : > { %v7691_v22 = vadd.f32 %v2514_v55, %v7441_v56  ;;  %v7702_v16 = vpop.f32.mrf.mxu1  ;;  %v7707_v56 = vpop.permute.xlu0 %3369 }
 0x20c   : > { %v5599_v9 = vpop.f32.mrf.mxu0  ;;  %9188 = vst [vmem:[#allocation14_spill] sm:$0xff] %v7707_v56 }
 0x20d   : > { %v7697_v41 = vadd.f32 %v5599_v9, %v7445_v53  ;;  %v7714_v9 = vpop.f32.mrf.mxu1 }
 0x20e   : > { %v2527_v51 = vpop.f32.mrf.mxu0 }
 0x20f   : > { %v7700_v63 = vadd.f32 %v2527_v51, %v7451_v10  ;;  %v7724_v52 = vpop.f32.mrf.mxu1 }
 0x210   : > { %v5600_v47 = vpop.f32.mrf.mxu0 }
 0x211   : > { %v7705_v11 = vadd.f32 %v5600_v47, %v7454_v14  ;;  %v7722_v14 = vpop.permute.xlu0 %3374 }
 0x212   : > { %v2530_v55 = vpop.f32.mrf.mxu0  ;;  %9193 = vst [vmem:[#allocation29_spill] sm:$0xff] %v7722_v14 }
 0x213   : > { %9187 = vst [vmem:[#allocation22_spill] sm:$0xff] %v7705_v11  ;;  %v7710_v8 = vadd.f32 %v2530_v55, %v7463_v50  ;;  %v7729_v55 = vpop.permute.xlu1 %3384 }
 0x214   : > { %v5603_v53 = vpop.f32.mrf.mxu0  ;;  %9195 = vst [vmem:[#allocation3_spill] sm:$0xff] %v7729_v55 }
 0x215   : > { %9189 = vst [vmem:[#allocation19_spill] sm:$0xff] %v7710_v8  ;;  %v7717_v10 = vadd.f32 %v5603_v53, %v7468_v45  ;;  %v7734_v53 = vpop.f32.mrf.mxu1 }
 0x216   : > { %v2543_v51 = vpop.f32.mrf.mxu0 }
 0x217   : > { %9191 = vst [vmem:[#allocation25_spill] sm:$0xff] %v7717_v10  ;;  %v7720_v34 = vadd.f32 %v2543_v51, %v7479_v17  ;;  %v7739_v51 = vpop.permute.xlu0 %3389 }
 0x218   : > { %v5604_v47 = vpop.f32.mrf.mxu0  ;;  %9198 = vst [vmem:[#allocation5_spill] sm:$0xff] %v7739_v51 }
 0x219   : > { %9192 = vst [vmem:[#allocation26_spill] sm:$0xff] %v7720_v34  ;;  %v7727_v50 = vadd.f32 %v5604_v47, %v7482_v35  ;;  %v7744_v35 = vpop.permute.xlu1 %3394 }
 0x21a   : > { %v2546_v19 = vpop.f32.mrf.mxu0  ;;  %9200 = vst [vmem:[#allocation27_spill] sm:$0xff] %v7744_v35 }
 0x21b   : > { %9194 = vst [vmem:[#allocation2_spill] sm:$0xff] %v7727_v50  ;;  %v7732_v2 = vadd.f32 %v2546_v19, %v7491_v40  ;;  %v7746_v50 = vpop.f32.mrf.mxu1 }
 0x21c   : > { %v5607_v45 = vpop.f32.mrf.mxu0 }
 0x21d   : > { %9196 = vst [vmem:[#allocation4_spill] sm:$0xff] %v7732_v2  ;;  %v7737_v17 = vadd.f32 %v5607_v45, %v7495_v54  ;;  %v7754_v54 = vpop.permute.xlu0 %3399 }
 0x21e   : > { %v2559_v37 = vpop.f32.mrf.mxu0 }
 0x21f   : > { %9197 = vst [vmem:[#allocation33_spill] sm:$0xff] %v7737_v17  ;;  %v7742_v10 = vadd.f32 %v2559_v37, %v7500_v12  ;;  %v7756_v17 = vpop.f32.mrf.mxu1  ;;  %v7761_v12 = vpop.permute.xlu1 %3404 }
 0x220   : > { %v5608_v47 = vpop.f32.mrf.mxu0 }
 0x221   : > { %9199 = vst [vmem:[#allocation6_spill] sm:$0xff] %v7742_v10  ;;  %v7749_v19 = vadd.f32 %v5608_v47, %v7502_v24  ;;  %v7766_v47 = vpop.f32.mrf.mxu1 }
 0x222   : > { %v2562_v40 = vpop.f32.mrf.mxu0 }
 0x223   : > { %9201 = vst [vmem:[#allocation8_spill] sm:$0xff] %v7749_v19  ;;  %v7752_v2 = vadd.f32 %v2562_v40, %v7511_v36  ;;  %v7771_v40 = vpop.permute.xlu0 %3409 }
 0x224   : > { %v5611_v45 = vpop.f32.mrf.mxu0  ;;  %9206 = vst [vmem:[#allocation37_spill] sm:$0xff] %v7771_v40 }
 0x225   : > { %9202 = vst [vmem:[#allocation34_spill] sm:$0xff] %v7752_v2  ;;  %v7759_v37 = vadd.f32 %v5611_v45, %v7515_v32  ;;  %v7776_v32 = vpop.permute.xlu1 %3414 }
 0x226   : > { %v2575_v10 = vpop.f32.mrf.mxu0  ;;  %9208 = vst [vmem:[#allocation39_spill] sm:$0xff] %v7776_v32 }
 0x227   : > { %9203 = vst [vmem:[#allocation28_spill] sm:$0xff] %v7759_v37  ;;  %v7764_v34 = vadd.f32 %v2575_v10, %v7526_v38  ;;  %v2921_v37 = vadd.f32 %v7544_v13, %v7548_v18  ;;  %v7780_v38 = vpop.f32.mrf.mxu1  ;;  %v7797_v18 = vld [vmem:[%s8990_s2] ss:$0 sm:$0xff] }
 0x228   : > { %v5612_v24 = vpop.f32.mrf.mxu0 }
 0x229   : > { %9204 = vst [vmem:[#allocation35_spill] sm:$0xff] %v7764_v34  ;;  %v7769_v36 = vadd.f32 %v5612_v24, %v7531_v43  ;;  %v2923_v34 = vadd.f32 %v7528_v7, %v7542_v21  ;;  %v7784_v24 = vpop.permute.xlu0 %3419  ;;  %v7792_v13 = vpop.permute.xlu1 %3424 }
 0x22a   : > { %v2578_v2 = vpop.f32.mrf.mxu0  ;;  %9209 = vst [vmem:[#allocation40_spill] sm:$0xff] %v7792_v13 }
 0x22b   : > { %9205 = vst [vmem:[#allocation36_spill] sm:$0xff] %v7769_v36  ;;  %v7774_v19 = vadd.f32 %v2578_v2, %v7539_v29  ;;  %v2924_v2 = vadd.f32 %v7559_v62, %v7557_v23  ;;  %v2922_v29 = vadd.f32 %v7574_v42, %v7563_v58  ;;  %v2925_v62 = vadd.f32 %v7601_v61, %v7578_v5 }
 0x22c   : > { %v5683_v45 = vpop.f32.mrf.mxu0  ;;  %v2928_v61 = vadd.f32 %v7616_v33, %v7589_v15 }
 0x22d   : > { %9207 = vst [vmem:[#allocation38_spill] sm:$0xff] %v7774_v19  ;;  %v7790_v19 = vpop.f32.mrf.mxu1  ;;  %v3254_v8 = vadd.f32 %v5683_v45, %v2923_v34  ;;  %v2927_v45 = vadd.f32 %v7586_v59, %v7572_v4  ;;  %v7814_v11 = vpop.permute.xlu0 %3429 }
 0x22e   : > { %v3109_v10 = vpop.f32.mrf.mxu0  ;;  %9212 = vst [vmem:[#allocation43_spill] sm:$0xff] %v7814_v11  ;;  %v7827_v4 = vpop.permute.xlu1 %3434 }
 0x22f   : > { %v3252_v43 = vadd.f32 %v3109_v10, %v2921_v37  ;;  %v7804_v58 = vpop.f32.mrf.mxu1  ;;  %v7807_v34 = vadd.f32 %v7797_v18, %v3254_v8  ;;  %9213 = vst [vmem:[#allocation44_spill] sm:$0xff] %v7827_v4 }
 0x230   : > { %v5684_v36 = vpop.f32.mrf.mxu0 }
 0x231   : > { %v7800_v21 = vadd.f32 %v7797_v18, %v3252_v43  ;;  %v3255_v37 = vadd.f32 %v5684_v36, %v2924_v2 }
 0x232   : > { %v3112_v7 = vpop.f32.mrf.mxu0 }
 0x233   : > { %9210 = vst [vmem:[#allocation41_spill] sm:$0xff] %v7800_v21  ;;  %v3253_v10 = vadd.f32 %v3112_v7, %v2922_v29  ;;  %v3547_v36 = vmul.f32 %v7707_v56, %v7800_v21  ;;  %v7819_v2 = vadd.f32 %v7797_v18, %v3255_v37  ;;  %v2926_v29 = vadd.f32 %v7625_v30, %v7593_v49  ;;  %v7829_v7 = vpop.f32.mrf.mxu1 }
 0x234   : > { %v5687_v23 = vpop.f32.mrf.mxu0  ;;  %9214 = vst [vmem:[#allocation45_spill] sm:$0xff] %v7829_v7  ;;  %v2929_v30 = vadd.f32 %v7654_v39, %v7608_v48 }
 0x235   : > { %v7810_v42 = vadd.f32 %v7797_v18, %v3253_v10  ;;  %v3549_v10 = vmul.f32 %v7712_v20, %v7807_v34  ;;  %v3258_v56 = vadd.f32 %v5687_v23, %v2927_v45  ;;  %v3550_v15 = vmul.f32 %v7729_v55, %v7819_v2  ;;  %v7842_v7 = vpop.f32.mrf.mxu1 }
 0x236   : > { %v3125_v43 = vpop.f32.mrf.mxu0 }
 0x237   : > { %9211 = vst [vmem:[#allocation42_spill] sm:$0xff] %v7810_v42  ;;  %v3548_v5 = vmul.f32 %v7722_v14, %v7810_v42  ;;  %v3256_v8 = vadd.f32 %v3125_v43, %v2925_v62  ;;  %v7840_v14 = vpop.permute.xlu0 %3439  ;;  %v7845_v23 = vadd.f32 %v7797_v18, %v3258_v56 }
 0x238   : > { %v5688_v59 = vpop.f32.mrf.mxu0  ;;  %9215 = vst [vmem:[#allocation46_spill] sm:$0xff] %v7840_v14 }
 0x239   : > { %v3583_v37 = vadd.f32 %v3548_v5, %v3547_v36  ;;  %v7834_v21 = vadd.f32 %v7797_v18, %v3256_v8  ;;  %v3259_v43 = vadd.f32 %v5688_v59, %v2928_v61  ;;  %v2931_v8 = vadd.f32 %v7633_v3, %v7604_v6  ;;  %v7854_v61 = vpop.permute.xlu1 %3444 }
 0x23a   : > { %v3128_v62 = vpop.f32.mrf.mxu0  ;;  %9216 = vst [vmem:[#allocation47_spill] sm:$0xff] %v7854_v61  ;;  %v3553_v3 = vmul.f32 %v7754_v54, %v7845_v23 }
 0x23b   : > { %v3584_v33 = vadd.f32 %v3583_v37, %v3549_v10  ;;  %v3257_v49 = vadd.f32 %v3128_v62, %v2926_v29  ;;  %v3551_v45 = vmul.f32 %v7739_v51, %v7834_v21  ;;  %v7857_v29 = vadd.f32 %v7797_v18, %v3259_v43 }
 0x23c   : > { %v5691_v42 = vpop.f32.mrf.mxu0  ;;  %v2932_v10 = vadd.f32 %v7676_v44, %v7619_v60  ;;  %v2930_v37 = vadd.f32 %v7694_v1, %v7623_v27  ;;  %v2933_v1 = vadd.f32 %v7714_v9, %v7631_v0 }
 0x23d   : > { %v3585_v36 = vadd.f32 %v3584_v33, %v3550_v15  ;;  %v7850_v5 = vadd.f32 %v7797_v18, %v3257_v49  ;;  %v7865_v15 = vpop.f32.mrf.mxu1  ;;  %v3262_v33 = vadd.f32 %v5691_v42, %v2931_v8  ;;  %v7872_v49 = vpop.permute.xlu0 %3449  ;;  %v3554_v60 = vmul.f32 %v7761_v12, %v7857_v29 }
 0x23e   : > { %v3141_v48 = vpop.f32.mrf.mxu0  ;;  %9217 = vst [vmem:[#allocation48_spill] sm:$0xff] %v7872_v49 }
 0x23f   : > { %v3586_v39 = vadd.f32 %v3585_v36, %v3551_v45  ;;  %v3552_v56 = vmul.f32 %v7744_v35, %v7850_v5  ;;  %v3260_v59 = vadd.f32 %v3141_v48, %v2929_v30  ;;  %v7878_v36 = vpop.permute.xlu1 %3454  ;;  %v7883_v42 = vadd.f32 %v7797_v18, %v3262_v33 }
 0x240   : > { %v5692_v62 = vpop.f32.mrf.mxu0  ;;  %9218 = vst [vmem:[#allocation49_spill] sm:$0xff] %v7878_v36  ;;  %v2934_v33 = vadd.f32 %v7734_v53, %v7645_v26 }
 0x241   : > { %v3587_v6 = vadd.f32 %v3586_v39, %v3552_v56  ;;  %v7870_v43 = vadd.f32 %v7797_v18, %v3260_v59  ;;  %v3263_v45 = vadd.f32 %v5692_v62, %v2932_v10  ;;  %v7880_v39 = vpop.f32.mrf.mxu1  ;;  %v2935_v10 = vadd.f32 %v7702_v16, %v7628_v46 }
 0x242   : > { %v3144_v30 = vpop.f32.mrf.mxu0  ;;  %v3557_v16 = vmul.f32 %v7784_v24, %v7883_v42 }
 0x243   : > { %v3588_v44 = vadd.f32 %v3587_v6, %v3553_v3  ;;  %v3261_v27 = vadd.f32 %v3144_v30, %v2930_v37  ;;  %v3555_v8 = vmul.f32 %v7771_v40, %v7870_v43  ;;  %v7893_v9 = vadd.f32 %v7797_v18, %v3263_v45  ;;  %v7901_v30 = vpop.permute.xlu0 %3459 }
 0x244   : > { %v5695_v48 = vpop.f32.mrf.mxu0  ;;  %v2936_v6 = vadd.f32 %v7724_v52, %v7636_v31  ;;  %9219 = vst [vmem:[#allocation50_spill] sm:$0xff] %v7901_v30 }
 0x245   : > { %v3589_v56 = vadd.f32 %v3588_v44, %v3554_v60  ;;  %v7888_v59 = vadd.f32 %v7797_v18, %v3261_v27  ;;  %v7903_v44 = vpop.f32.mrf.mxu1  ;;  %v3266_v45 = vadd.f32 %v5695_v48, %v2935_v10  ;;  %v3558_v52 = vmul.f32 %v7792_v13, %v7893_v9 }
 0x246   : > { %v3157_v37 = vpop.f32.mrf.mxu0 }
 0x247   : > { %v3590_v0 = vadd.f32 %v3589_v56, %v3555_v8  ;;  %v3556_v62 = vmul.f32 %v7776_v32, %v7888_v59  ;;  %v3264_v3 = vadd.f32 %v3157_v37, %v2933_v1  ;;  %v7910_v1 = vpop.permute.xlu1 %3464  ;;  %v2937_v56 = vadd.f32 %v7756_v17, %v7667_v28  ;;  %v7916_v32 = vpop.f32.mrf.mxu1 }
 0x248   : > { %v5696_v60 = vpop.f32.mrf.mxu0  ;;  %9220 = vst [vmem:[#allocation51_spill] sm:$0xff] %v7910_v1  ;;  %v7919_v48 = vadd.f32 %v7797_v18, %v3266_v45  ;;  %v2938_v45 = vadd.f32 %v7780_v38, %v7691_v22  ;;  %v2941_v38 = vadd.f32 %v7804_v58, %v7700_v63 }
 0x249   : > { %v3591_v46 = vadd.f32 %v3590_v0, %v3556_v62  ;;  %v7908_v27 = vadd.f32 %v7797_v18, %v3264_v3  ;;  %v3267_v26 = vadd.f32 %v5696_v60, %v2936_v6  ;;  %v2939_v3 = vadd.f32 %v7746_v50, %v7657_v57  ;;  %v7928_v6 = vpop.permute.xlu0 %3469  ;;  %v7941_v50 = vpop.f32.mrf.mxu1 }
 0x24a   : > { %v3160_v8 = vpop.f32.mrf.mxu0  ;;  %9221 = vst [vmem:[#allocation52_spill] sm:$0xff] %v7928_v6 }
 0x24b   : > { %v3592_v31 = vadd.f32 %v3591_v46, %v3557_v16  ;;  %v3265_v53 = vadd.f32 %v3160_v8, %v2934_v33  ;;  %v3559_v10 = vmul.f32 %v7814_v11, %v7908_v27  ;;  %v7931_v17 = vadd.f32 %v7797_v18, %v3267_v26  ;;  %v7939_v8 = vpop.permute.xlu1 %3474 }
 0x24c   : > { %v5699_v37 = vpop.f32.mrf.mxu0  ;;  %v2940_v46 = vadd.f32 %v7766_v47, %v7679_v25  ;;  %9222 = vst [vmem:[#allocation53_spill] sm:$0xff] %v7939_v8 }
 0x24d   : > { %v3593_v0 = vadd.f32 %v3592_v31, %v3558_v52  ;;  %v7924_v62 = vadd.f32 %v7797_v18, %v3265_v53  ;;  %v3561_v52 = vmul.f32 %v7840_v14, %v7919_v48  ;;  %v3270_v26 = vadd.f32 %v5699_v37, %v2939_v3 }
 0x24e   : > { %v3173_v33 = vpop.f32.mrf.mxu0  ;;  %v3562_v25 = vmul.f32 %v7854_v61, %v7931_v17 }
 0x24f   : > { %v3594_v28 = vadd.f32 %v3593_v0, %v3559_v10  ;;  %v3560_v60 = vmul.f32 %v7827_v4, %v7924_v62  ;;  %v3268_v16 = vadd.f32 %v3173_v33, %v2937_v56  ;;  %v7952_v0 = vpop.permute.xlu0 %3479  ;;  %v2890_v4 = vpop.f32.mrf.mxu1 }
 0x250   : > { %v5700_v57 = vpop.f32.mrf.mxu0  ;;  %9223 = vst [vmem:[#allocation54_spill] sm:$0xff] %v7952_v0 }
 0x251   : > { %v3595_v31 = vadd.f32 %v3594_v28, %v3560_v60  ;;  %v7946_v53 = vadd.f32 %v7797_v18, %v3268_v16  ;;  %v3271_v10 = vadd.f32 %v5700_v57, %v2940_v46  ;;  %v7955_v28 = vadd.f32 %v7797_v18, %v3270_v26  ;;  %v7964_v46 = vpop.permute.xlu1 %3484  ;;  %v9226_v26 = vld [vmem:[#allocation45_spill] sm:$0xff] }
 0x252   : > { %v3176_v56 = vpop.f32.mrf.mxu0  ;;  %v2943_v16 = vadd.f32 %v7790_v19, %v7697_v41  ;;  %9224 = vst [vmem:[#allocation55_spill] sm:$0xff] %v7964_v46 }
 0x253   : > { %v3596_v47 = vadd.f32 %v3595_v31, %v3561_v52  ;;  %v3269_v22 = vadd.f32 %v3176_v56, %v2938_v45  ;;  %v3563_v37 = vmul.f32 %v7872_v49, %v7946_v53  ;;  %v7967_v45 = vadd.f32 %v7797_v18, %v3271_v10  ;;  %v9225_v31 = vld [vmem:[#allocation22_spill] sm:$0xff]  ;;  %v5660_v49 = vpop.f32.mrf.mxu1 }
 0x254   : > { %v5703_v33 = vpop.f32.mrf.mxu0  ;;  %v2944_v56 = vadd.f32 %v9226_v26, %v9225_v31  ;;  %v3565_v41 = vmul.f32 %v7901_v30, %v7955_v28 }
 0x255   : > { %v3597_v3 = vadd.f32 %v3596_v47, %v3562_v25  ;;  %v7960_v60 = vadd.f32 %v7797_v18, %v3269_v22  ;;  %v9227_v25 = vld [vmem:[#allocation19_spill] sm:$0xff]  ;;  %v7986_v61 = vpop.permute.xlu1 %3494 }
 0x256   : > { %v3189_v63 = vpop.f32.mrf.mxu0  ;;  %v2942_v47 = vadd.f32 %v7842_v7, %v9227_v25  ;;  %v9230_v7 = vld [vmem:[#allocation26_spill] sm:$0xff]  ;;  %9231 = vst [vmem:[#allocation19_spill] sm:$0xff] %v7986_v61 }
 0x257   : > { %v3598_v58 = vadd.f32 %v3597_v3, %v3563_v37  ;;  %v3564_v57 = vmul.f32 %v7878_v36, %v7960_v60  ;;  %v3272_v52 = vadd.f32 %v3189_v63, %v2941_v38  ;;  %v3274_v37 = vadd.f32 %v5703_v33, %v2943_v16  ;;  %v7980_v3 = vpop.permute.xlu0 %3489 }
 0x258   : > { %v5704_v22 = vpop.f32.mrf.mxu0  ;;  %9229 = vst [vmem:[#allocation45_spill] sm:$0xff] %v7980_v3  ;;  %v3566_v38 = vmul.f32 %v7910_v1, %v7967_v45  ;;  %v2945_v25 = vadd.f32 %v7880_v39, %v9230_v7 }
 0x259   : > { %v3599_v19 = vadd.f32 %v3598_v58, %v3564_v57  ;;  %v7978_v10 = vadd.f32 %v7797_v18, %v3272_v52  ;;  %v3275_v31 = vadd.f32 %v5704_v22, %v2944_v56  ;;  %v2893_v58 = vpop.f32.mrf.mxu1  ;;  %v7989_v33 = vadd.f32 %v7797_v18, %v3274_v37  ;;  %v9234_v37 = vld [vmem:[#allocation2_spill] sm:$0xff] }
 0x25a   : > { %v3192_v36 = vpop.f32.mrf.mxu0  ;;  %v2948_v7 = vadd.f32 %v7903_v44, %v9234_v37  ;;  %v9238_v37 = vld [vmem:[#allocation6_spill] sm:$0xff] }
 0x25b   : > { %9228 = vst [vmem:[#allocation22_spill] sm:$0xff] %v7978_v10  ;;  %v3600_v63 = vadd.f32 %v3599_v19, %v3565_v41  ;;  %v3273_v26 = vadd.f32 %v3192_v36, %v2942_v47  ;;  %v3567_v16 = vmul.f32 %v7928_v6, %v7978_v10  ;;  %v9233_v41 = vld [vmem:[#allocation25_spill] sm:$0xff]  ;;  %v7999_v39 = vadd.f32 %v7797_v18, %v3275_v31  ;;  %v9235_v6 = vld [vmem:[#allocation4_spill] sm:$0xff]  ;;  %v5663_v1 = vpop.f32.mrf.mxu1 }
 0x25c   : > { %v5707_v30 = vpop.f32.mrf.mxu0  ;;  %v2947_v36 = vadd.f32 %v7865_v15, %v9233_v41  ;;  %v3569_v15 = vmul.f32 %v7952_v0, %v7989_v33  ;;  %v8014_v41 = vpop.permute.xlu1 %3504 }
 0x25d   : > { %v3601_v57 = vadd.f32 %v3600_v63, %v3566_v38  ;;  %v7994_v52 = vadd.f32 %v7797_v18, %v3273_v26  ;;  %v2946_v38 = vadd.f32 %v7916_v32, %v9235_v6  ;;  %v8007_v63 = vpop.permute.xlu0 %3499  ;;  %9237 = vst [vmem:[#allocation2_spill] sm:$0xff] %v8014_v41  ;;  %v3570_v44 = vmul.f32 %v7964_v46, %v7999_v39  ;;  %v2906_v10 = vpop.f32.mrf.mxu1 }
 0x25e   : > { %v3205_v56 = vpop.f32.mrf.mxu0  ;;  %9236 = vst [vmem:[#allocation25_spill] sm:$0xff] %v8007_v63  ;;  %v3278_v31 = vadd.f32 %v5707_v30, %v2947_v36 }
 0x25f   : > { %9232 = vst [vmem:[#allocation26_spill] sm:$0xff] %v7994_v52  ;;  %v3602_v47 = vadd.f32 %v3601_v57, %v3567_v16  ;;  %v3568_v22 = vmul.f32 %v7939_v8, %v7994_v52  ;;  %v3276_v19 = vadd.f32 %v3205_v56, %v2945_v25  ;;  %v2949_v8 = vadd.f32 %v2890_v4, %v9238_v37 }
 0x260   : > { %v5708_v26 = vpop.f32.mrf.mxu0  ;;  %v8020_v0 = vadd.f32 %v7797_v18, %v3278_v31  ;;  %v9242_v31 = vld [vmem:[#allocation8_spill] sm:$0xff] }
 0x261   : > { %v3603_v16 = vadd.f32 %v3602_v47, %v3568_v22  ;;  %v8012_v57 = vadd.f32 %v7797_v18, %v3276_v19  ;;  %v3279_v32 = vadd.f32 %v5708_v26, %v2948_v7  ;;  %v9240_v22 = vld [vmem:[#allocation33_spill] sm:$0xff] }
 0x262   : > { %v3208_v25 = vpop.f32.mrf.mxu0  ;;  %v2951_v19 = vadd.f32 %v7941_v50, %v9240_v22  ;;  %v3573_v50 = vmul.f32 %v8007_v63, %v8020_v0 }
 0x263   : > { %v3604_v56 = vadd.f32 %v3603_v16, %v3569_v15  ;;  %v3277_v6 = vadd.f32 %v3208_v25, %v2946_v38  ;;  %v3571_v30 = vmul.f32 %v7980_v3, %v8012_v57  ;;  %v8029_v15 = vpop.permute.xlu0 %3509  ;;  %v8032_v4 = vadd.f32 %v7797_v18, %v3279_v32  ;;  %v5664_v3 = vpop.f32.mrf.mxu1 }
 0x264   : > { %v5711_v52 = vpop.f32.mrf.mxu0  ;;  %9241 = vst [vmem:[#allocation6_spill] sm:$0xff] %v8029_v15  ;;  %v2952_v25 = vadd.f32 %v5660_v49, %v9242_v31 }
 0x265   : > { %v3605_v36 = vadd.f32 %v3604_v56, %v3570_v44  ;;  %v8025_v47 = vadd.f32 %v7797_v18, %v3277_v6  ;;  %v9243_v44 = vld [vmem:[#allocation34_spill] sm:$0xff]  ;;  %v8038_v6 = vpop.permute.xlu1 %3514 }
 0x266   : > { %v3221_v7 = vpop.f32.mrf.mxu0  ;;  %v2950_v56 = vadd.f32 %v2893_v58, %v9243_v44  ;;  %9244 = vst [vmem:[#allocation33_spill] sm:$0xff] %v8038_v6  ;;  %v9245_v58 = vld [vmem:[#allocation35_spill] sm:$0xff] }
 0x267   : > { %9239 = vst [vmem:[#allocation4_spill] sm:$0xff] %v8025_v47  ;;  %v3606_v38 = vadd.f32 %v3605_v36, %v3571_v30  ;;  %v3572_v26 = vmul.f32 %v7986_v61, %v8025_v47  ;;  %v3280_v16 = vadd.f32 %v3221_v7, %v2949_v8  ;;  %v3282_v30 = vadd.f32 %v5711_v52, %v2951_v19  ;;  %v8048_v61 = vpop.permute.xlu0 %3519  ;;  %v2909_v47 = vpop.f32.mrf.mxu1 }
 0x268   : > { %v5712_v37 = vpop.f32.mrf.mxu0  ;;  %v3574_v8 = vmul.f32 %v8014_v41, %v8032_v4  ;;  %v2953_v44 = vadd.f32 %v2906_v10, %v9245_v58  ;;  %9246 = vst [vmem:[#allocation8_spill] sm:$0xff] %v8048_v61  ;;  %v9250_v58 = vld [vmem:[#allocation38_spill] sm:$0xff] }
 0x269   : > { %v3607_v22 = vadd.f32 %v3606_v38, %v3572_v26  ;;  %v8043_v32 = vadd.f32 %v7797_v18, %v3280_v16  ;;  %v3283_v49 = vadd.f32 %v5712_v37, %v2952_v25  ;;  %v8051_v63 = vadd.f32 %v7797_v18, %v3282_v30  ;;  %v9247_v26 = vld [vmem:[#allocation28_spill] sm:$0xff]  ;;  %v8059_v25 = vpop.permute.xlu1 %3524 }
 0x26a   : > { %v3224_v36 = vpop.f32.mrf.mxu0  ;;  %v2955_v16 = vadd.f32 %v5663_v1, %v9247_v26  ;;  %9248 = vst [vmem:[#allocation34_spill] sm:$0xff] %v8059_v25  ;;  %v9249_v30 = vld [vmem:[#allocation36_spill] sm:$0xff] }
 0x26b   : > { %v3608_v7 = vadd.f32 %v3607_v22, %v3573_v50  ;;  %v3281_v31 = vadd.f32 %v3224_v36, %v2950_v56  ;;  %v3575_v52 = vmul.f32 %v8029_v15, %v8043_v32  ;;  %v8062_v37 = vadd.f32 %v7797_v18, %v3283_v49 }
 0x26c   : > { %v5715_v46 = vpop.f32.mrf.mxu0  ;;  %v2956_v36 = vadd.f32 %v5664_v3, %v9249_v30 }
 0x26d   : > { %v3609_v19 = vadd.f32 %v3608_v7, %v3574_v8  ;;  %v8056_v38 = vadd.f32 %v7797_v18, %v3281_v31  ;;  %v2954_v8 = vadd.f32 %v2909_v47, %v9250_v58  ;;  %v3577_v31 = vmul.f32 %v8048_v61, %v8051_v63  ;;  %v8077_v30 = vpop.permute.xlu1 %3534 }
 0x26e   : > { %v3237_v56 = vpop.f32.mrf.mxu0  ;;  %v3286_v26 = vadd.f32 %v5715_v46, %v2955_v16  ;;  %9252 = vst [vmem:[#allocation28_spill] sm:$0xff] %v8077_v30 }
 0x26f   : > { %v3610_v10 = vadd.f32 %v3609_v19, %v3575_v52  ;;  %v3576_v50 = vmul.f32 %v8038_v6, %v8056_v38  ;;  %v3284_v22 = vadd.f32 %v3237_v56, %v2953_v44  ;;  %v8073_v52 = vpop.permute.xlu0 %3529  ;;  %v3578_v19 = vmul.f32 %v8059_v25, %v8062_v37 }
 0x270   : > { %v5716_v7 = vpop.f32.mrf.mxu0  ;;  %9251 = vst [vmem:[#allocation35_spill] sm:$0xff] %v8073_v52  ;;  %v8080_v47 = vadd.f32 %v7797_v18, %v3286_v26 }
 0x271   : > { %v3611_v1 = vadd.f32 %v3610_v10, %v3576_v50  ;;  %v8071_v15 = vadd.f32 %v7797_v18, %v3284_v22  ;;  %v3287_v56 = vadd.f32 %v5716_v7, %v2956_v36 }
 0x272   : > { %v3240_v49 = vpop.f32.mrf.mxu0 }
 0x273   : > { %v3612_v44 = vadd.f32 %v3611_v1, %v3577_v31  ;;  %v3285_v3 = vadd.f32 %v3240_v49, %v2954_v8  ;;  %v3579_v46 = vmul.f32 %v8073_v52, %v8071_v15  ;;  %v8088_v22 = vadd.f32 %v7797_v18, %v3287_v56  ;;  %v8092_v58 = vpop.permute.xlu0 %3539  ;;  %v8096_v31 = vpop.permute.xlu1 %3544 }
 0x274   : > { %9253 = vst [vmem:[#allocation36_spill] sm:$0xff] %v8092_v58  ;;  %v3581_v8 = vmul.f32 %v8092_v58, %v8080_v47  ;;  %9254 = vst [vmem:[#allocation38_spill] sm:$0xff] %v8096_v31 }
 0x275   : > { %v3613_v16 = vadd.f32 %v3612_v44, %v3578_v19  ;;  %v8085_v10 = vadd.f32 %v7797_v18, %v3285_v3  ;;  %v3582_v1 = vmul.f32 %v8096_v31, %v8088_v22 }
 0x277   : > { %v3614_v50 = vadd.f32 %v3613_v16, %v3579_v46  ;;  %v3580_v36 = vmul.f32 %v8077_v30, %v8085_v10  ;;  %v9255_v16 = vld [vmem:[#allocation10_spill] sm:$0xff]  ;;  %v9256_v30 = vmov 0.0  }
 0x279   : > { %v3615_v7 = vadd.f32 %v3614_v50, %v3580_v36  ;;  %v9257_v50 = vld [vmem:[#allocation11_spill] sm:$0xff]  ;;  %v9258_v36 = vld [vmem:[#allocation30_spill] sm:$0xff] }
 0x27b   : > { %v3616_v26 = vadd.f32 %v3615_v7, %v3581_v8  ;;  %v9259_v8 = vld [vmem:[#allocation12_spill] sm:$0xff]  ;;  %v9260_v7 = vld [vmem:[#allocation31_spill] sm:$0xff] }
 0x27d   : > { %v3617_v49 = vadd.f32 %v3616_v26, %v3582_v1  ;;  %v9261_v1 = vld [vmem:[#allocation13_spill] sm:$0xff]  ;;  %v9262_v26 = vld [vmem:[#allocation32_spill] sm:$0xff] }
 0x27f   : > { %v3618_v19 = vrot.slane %v3617_v49, 4 }
 0x281   : > { %v3619_v44 = vadd.f32 %v3618_v19, %v3617_v49  ;;  %v9263_v49 = vld [vmem:[#allocation15_spill] sm:$0xff]  ;;  %v9264_v19 = vld [vmem:[#allocation16_spill] sm:$0xff] }
 0x283   : > { %v3620_v18 = vrot.slane %v3619_v44, 2 }
 0x285   : > { %v3621_v56 = vadd.f32 %v3620_v18, %v3619_v44  ;;  %v9265_v44 = vld [vmem:[#allocation17_spill] sm:$0xff]  ;;  %v9266_v18 = vld [vmem:[#allocation18_spill] sm:$0xff] }
 0x287   : > { %v3622_v3 = vrot.slane %v3621_v56, 1 }
 0x289   : > { %v3623_v46 = vadd.f32 %v3622_v3, %v3621_v56  ;;  %v9267_v56 = vld [vmem:[#allocation21_spill] sm:$0xff]  ;;  %v9268_v3 = vld [vmem:[#allocation7_spill] sm:$0xff] }
 0x28b   : > { %5750 = vmatmul.mubr.f32.vlgmr.msra.gmra.mxu1 %v3623_v46  ;;  %v9269_v46 = vld [vmem:[#allocation20_spill] sm:$0xff] }
 0x28c   : > { %5753 = vmatpush3.msra.mxu1 %v9255_v16  ;;  %5784 = vmatprep.mubr.msk.f32.mxu1 %vm6106_vm0, %v9256_v30  ;;  %v9270_v16 = vld [vmem:[#allocation23_spill] sm:$0xff] }
 0x28d   : > { %5754 = vmatprep.subr.mxu1 %v9256_v30 }
 0x28e   : > { %5755 = vmatpush3.msra.mxu1 %v9257_v50  ;;  %v9271_v50 = vld [vmem:[#allocation9_spill] sm:$0xff] }
 0x28f   : > { %5756 = vmatprep.subr.mxu1 %v9256_v30 }
 0x290   : > { %5757 = vmatpush3.msra.mxu1 %v9258_v36  ;;  %v8136_v36 = vld [vmem:[%s8996_s8 + $0x38] sm:$0xff]  }
 0x291   : > { %5758 = vmatprep.subr.mxu1 %v9256_v30 }
 0x292   : > { %5759 = vmatpush3.msra.mxu1 %v9259_v8 }
 0x293   : > { %5760 = vmatprep.subr.mxu1 %v9256_v30 }
 0x294   : > { %5761 = vmatpush3.msra.mxu1 %v9260_v7  ;;  %v3710_v7 = vlaneseq }
 0x295   : > { %5762 = vmatprep.subr.mxu1 %v9256_v30 }
 0x296   : > { %5763 = vmatpush3.msra.mxu1 %v9261_v1 }
 0x297   : > { %5764 = vmatprep.subr.mxu1 %v9256_v30 }
 0x298   : > { %5765 = vmatpush3.msra.mxu1 %v9262_v26  ;;  %v8139_v26 = vshrl.u32 %v3710_v7, 7 }
 0x299   : > { %5766 = vmatprep.subr.mxu1 %v9256_v30 }
 0x29a   : > { %5767 = vmatpush3.msra.mxu1 %v9263_v49  ;;  %v9058_v49 = vsub.s32 0, %v8139_v26 }
 0x29b   : > { %5768 = vmatprep.subr.mxu1 %v9256_v30 }
 0x29c   : > { %5769 = vmatpush3.msra.mxu1 %v9264_v19 }
 0x29d   : > { %5770 = vmatprep.subr.mxu1 %v9256_v30 }
 0x29e   : > { %5771 = vmatpush3.msra.mxu1 %v9265_v44 }
 0x29f   : > { %5772 = vmatprep.subr.mxu1 %v9256_v30 }
 0x2a0   : > { %5773 = vmatpush3.msra.mxu1 %v9266_v18  ;;  %v9273_v18 = vld [vmem:[#allocation42_spill] sm:$0xff] }
 0x2a1   : > { %5774 = vmatprep.subr.mxu1 %v9256_v30 }
 0x2a2   : > { %5775 = vmatpush3.msra.mxu1 %v9267_v56 }
 0x2a3   : > { %5776 = vmatprep.subr.mxu1 %v9256_v30 }
 0x2a4   : > { %5777 = vmatpush3.msra.mxu1 %v9268_v3 }
 0x2a5   : > { %5778 = vmatprep.subr.mxu1 %v9256_v30 }
 0x2a6   : > { %5779 = vmatpush3.msra.mxu1 %v9269_v46  ;;  %v9275_v46 = vld [vmem:[#allocation14_spill] sm:$0xff] }
 0x2a7   : > { %5780 = vmatprep.subr.mxu1 %v9256_v30 }
 0x2a8   : > { %5781 = vmatpush3.msra.mxu1 %v9270_v16 }
 0x2a9   : > { %5782 = vmatprep.subr.mxu1 %v9256_v30  ;;  %v9272_v30 = vld [vmem:[#allocation41_spill] sm:$0xff] }
 0x2aa   : > { %5783 = vmatpush3.msra.mxu1 %v9271_v50  ;;  %v9276_v50 = vld [vmem:[#allocation29_spill] sm:$0xff] }
 0x2ab   : > { %5787 = vmatprep.subr.bf16.mxu1 %v8136_v36 }
 0x34b   : > { %v3706_v8 = vpop.f32.mrf.mxu1 }
 0x34c   : > { %v8144_v19 = vrot.slane %v3706_v8, %v9058_v49 }
 0x34d   : > { %v5751_v1 = vpop.f32.mrf.mxu1 }
 0x34e   : > { %v8148_v44 = vsub.f32 %v9272_v30, %v8144_v19  ;;  %v8152_v56 = vsub.f32 %v9273_v18, %v8144_v19  ;;  %v8156_v3 = vsub.f32 %v7807_v34, %v8144_v19  ;;  %v8164_v8 = vsub.f32 %v7819_v2, %v8144_v19 }
 0x34f   : > { %v8168_v1 = vsub.f32 %v7834_v21, %v8144_v19  ;;  %v8174_v49 = vsub.f32 %v7850_v5, %v8144_v19  ;;  %v8180_v2 = vsub.f32 %v7845_v23, %v8144_v19 }
 0x350   : > { %9274 = vst [vmem:[#allocation10_spill] sm:$0xff] %v8152_v56  ;;  %v3750_v16 = vmul.f32 %v8148_v44, %v9275_v46  ;;  %v3751_v7 = vmul.f32 %v8152_v56, %v9276_v50  ;;  %9277 = vst [vmem:[#allocation11_spill] sm:$0xff] %v8164_v8  ;;  %v3752_v30 = vmul.f32 %v8156_v3, %v7712_v20 }
 0x351   : > { %v3753_v50 = vmul.f32 %v8164_v8, %v7729_v55  ;;  %v3754_v21 = vmul.f32 %v8168_v1, %v7739_v51  ;;  %v3755_v5 = vmul.f32 %v8174_v49, %v7744_v35  ;;  %v8192_v55 = vsub.f32 %v7870_v43, %v8144_v19 }
 0x352   : > { %v3786_v18 = vmul.f32 %v3750_v16, %v3750_v16  ;;  %v3787_v34 = vmul.f32 %v3751_v7, %v3751_v7  ;;  %v3788_v46 = vmul.f32 %v3752_v30, %v3752_v30  ;;  %v8186_v16 = vsub.f32 %v7857_v29, %v8144_v19 }
 0x353   : > { %v3789_v7 = vmul.f32 %v3753_v50, %v3753_v50  ;;  %v3756_v23 = vmul.f32 %v8180_v2, %v7754_v54  ;;  %v3790_v8 = vmul.f32 %v3754_v21, %v3754_v21  ;;  %v8198_v30 = vsub.f32 %v7888_v59, %v8144_v19  ;;  %v9278_v59 = vld [vmem:[#allocation39_spill] sm:$0xff] }
 0x354   : > { %v3822_v56 = vadd.f32 %v3787_v34, %v3786_v18  ;;  %v3757_v29 = vmul.f32 %v8186_v16, %v7761_v12  ;;  %v3791_v18 = vmul.f32 %v3755_v5, %v3755_v5  ;;  %v3758_v43 = vmul.f32 %v8192_v55, %v7771_v40 }
 0x355   : > { %v3759_v21 = vmul.f32 %v8198_v30, %v9278_v59 }
 0x356   : > { %v3823_v20 = vadd.f32 %v3822_v56, %v3788_v46  ;;  %v8204_v56 = vsub.f32 %v7883_v42, %v8144_v19  ;;  %v3792_v46 = vmul.f32 %v3756_v23, %v3756_v23  ;;  %v8222_v23 = vsub.f32 %v7924_v62, %v8144_v19  ;;  %v9279_v62 = vld [vmem:[#allocation44_spill] sm:$0xff] }
 0x358   : > { %v3824_v51 = vadd.f32 %v3823_v20, %v3789_v7  ;;  %v8210_v20 = vsub.f32 %v7893_v9, %v8144_v19  ;;  %v3793_v7 = vmul.f32 %v3757_v29, %v3757_v29  ;;  %v3760_v42 = vmul.f32 %v8204_v56, %v7784_v24 }
 0x359   : > { %v8228_v29 = vsub.f32 %v7919_v48, %v8144_v19 }
 0x35a   : > { %v3825_v34 = vadd.f32 %v3824_v51, %v3790_v8  ;;  %v8216_v51 = vsub.f32 %v7908_v27, %v8144_v19  ;;  %v3794_v8 = vmul.f32 %v3758_v43, %v3758_v43  ;;  %v3761_v9 = vmul.f32 %v8210_v20, %v7792_v13 }
 0x35b   : > { %v3763_v43 = vmul.f32 %v8222_v23, %v9279_v62  ;;  %v3764_v48 = vmul.f32 %v8228_v29, %v7840_v14 }
 0x35c   : > { %v3826_v50 = vadd.f32 %v3825_v34, %v3791_v18  ;;  %v3795_v18 = vmul.f32 %v3759_v21, %v3759_v21  ;;  %v3762_v27 = vmul.f32 %v8216_v51, %v7814_v11  ;;  %v8240_v21 = vsub.f32 %v7946_v53, %v8144_v19  ;;  %v9281_v53 = vld [vmem:[#allocation48_spill] sm:$0xff] }
 0x35e   : > { %v3827_v35 = vadd.f32 %v3826_v50, %v3792_v46  ;;  %v3796_v46 = vmul.f32 %v3760_v42, %v3760_v42  ;;  %v8246_v42 = vsub.f32 %v7960_v60, %v8144_v19  ;;  %v9282_v60 = vld [vmem:[#allocation49_spill] sm:$0xff] }
 0x360   : > { %v3828_v5 = vadd.f32 %v3827_v35, %v3793_v7  ;;  %v8234_v35 = vsub.f32 %v7931_v17, %v8144_v19  ;;  %v3797_v7 = vmul.f32 %v3761_v9, %v3761_v9  ;;  %v9280_v17 = vld [vmem:[#allocation47_spill] sm:$0xff]  ;;  %v8252_v9 = vsub.f32 %v7955_v28, %v8144_v19  ;;  %v9284_v28 = vld [vmem:[#allocation50_spill] sm:$0xff] }
 0x362   : > { %v3829_v34 = vadd.f32 %v3828_v5, %v3794_v8  ;;  %v3798_v8 = vmul.f32 %v3762_v27, %v3762_v27  ;;  %v3767_v27 = vmul.f32 %v8246_v42, %v9282_v60 }
 0x364   : > { %v3830_v50 = vadd.f32 %v3829_v34, %v3795_v18  ;;  %v3765_v18 = vmul.f32 %v8234_v35, %v9280_v17  ;;  %v3799_v34 = vmul.f32 %v3763_v43, %v3763_v43  ;;  %v9283_v43 = vld [vmem:[#allocation22_spill] sm:$0xff]  ;;  %v3803_v13 = vmul.f32 %v3767_v27, %v3767_v27 }
 0x366   : > { %v3831_v59 = vadd.f32 %v3830_v50, %v3796_v46  ;;  %v3766_v46 = vmul.f32 %v8240_v21, %v9281_v53  ;;  %v3800_v50 = vmul.f32 %v3764_v48, %v3764_v48 }
 0x368   : > { %v3832_v5 = vadd.f32 %v3831_v59, %v3797_v7  ;;  %v8258_v59 = vsub.f32 %v7967_v45, %v8144_v19  ;;  %v3801_v7 = vmul.f32 %v3765_v18, %v3765_v18  ;;  %v3802_v14 = vmul.f32 %v3766_v46, %v3766_v46  ;;  %v9286_v45 = vld [vmem:[#allocation51_spill] sm:$0xff]  ;;  %v9287_v18 = vld [vmem:[#allocation52_spill] sm:$0xff]  ;;  %v9288_v46 = vld [vmem:[#allocation53_spill] sm:$0xff] }
 0x36a   : > { %v3833_v62 = vadd.f32 %v3832_v5, %v3798_v8  ;;  %v8264_v8 = vsub.f32 %v9283_v43, %v8144_v19  ;;  %v3768_v5 = vmul.f32 %v8252_v9, %v9284_v28 }
 0x36c   : > { %v3834_v11 = vadd.f32 %v3833_v62, %v3799_v34  ;;  %v9285_v62 = vld [vmem:[#allocation26_spill] sm:$0xff]  ;;  %v3769_v34 = vmul.f32 %v8258_v59, %v9286_v45  ;;  %v3804_v43 = vmul.f32 %v3768_v5, %v3768_v5 }
 0x36d   : > { %v8270_v48 = vsub.f32 %v9285_v62, %v8144_v19 }
 0x36e   : > { %v3835_v17 = vadd.f32 %v3834_v11, %v3800_v50  ;;  %v8276_v11 = vsub.f32 %v7989_v33, %v8144_v19  ;;  %v3770_v50 = vmul.f32 %v8264_v8, %v9287_v18  ;;  %v3805_v62 = vmul.f32 %v3769_v34, %v3769_v34  ;;  %v9289_v33 = vld [vmem:[#allocation54_spill] sm:$0xff] }
 0x370   : > { %v3836_v53 = vadd.f32 %v3835_v17, %v3801_v7  ;;  %v8282_v17 = vsub.f32 %v7999_v39, %v8144_v19  ;;  %v3771_v7 = vmul.f32 %v8270_v48, %v9288_v46  ;;  %v3806_v27 = vmul.f32 %v3770_v50, %v3770_v50  ;;  %v9291_v39 = vld [vmem:[#allocation55_spill] sm:$0xff] }
 0x371   : > { %v9293_v50 = vld [vmem:[#allocation19_spill] sm:$0xff] }
 0x372   : > { %v3837_v60 = vadd.f32 %v3836_v53, %v3802_v14  ;;  %v8288_v14 = vsub.f32 %v8012_v57, %v8144_v19  ;;  %v3772_v53 = vmul.f32 %v8276_v11, %v9289_v33  ;;  %v3773_v5 = vmul.f32 %v8282_v17, %v9291_v39  ;;  %v9292_v57 = vld [vmem:[#allocation45_spill] sm:$0xff] }
 0x373   : > { %v3807_v40 = vmul.f32 %v3771_v7, %v3771_v7 }
 0x374   : > { %v3838_v28 = vadd.f32 %v3837_v60, %v3803_v13  ;;  %v9290_v13 = vld [vmem:[#allocation4_spill] sm:$0xff]  ;;  %v3774_v34 = vmul.f32 %v8288_v14, %v9292_v57 }
 0x375   : > { %v8294_v60 = vsub.f32 %v9290_v13, %v8144_v19  ;;  %v3809_v13 = vmul.f32 %v3773_v5, %v3773_v5 }
 0x376   : > { %v3839_v45 = vadd.f32 %v3838_v28, %v3804_v43  ;;  %v8300_v28 = vsub.f32 %v8020_v0, %v8144_v19  ;;  %v3808_v43 = vmul.f32 %v3772_v53, %v3772_v53  ;;  %v9294_v0 = vld [vmem:[#allocation25_spill] sm:$0xff] }
 0x378   : > { %v3840_v18 = vadd.f32 %v3839_v45, %v3805_v62  ;;  %v8306_v45 = vsub.f32 %v8032_v4, %v8144_v19  ;;  %v3775_v62 = vmul.f32 %v8294_v60, %v9293_v50  ;;  %v3776_v7 = vmul.f32 %v8300_v28, %v9294_v0 }
 0x37a   : > { %v3841_v46 = vadd.f32 %v3840_v18, %v3806_v27  ;;  %v8312_v18 = vsub.f32 %v8043_v32, %v8144_v19  ;;  %v3810_v27 = vmul.f32 %v3774_v34, %v3774_v34  ;;  %v3777_v4 = vmul.f32 %v8306_v45, %v8014_v41  ;;  %v9295_v32 = vld [vmem:[#allocation6_spill] sm:$0xff] }
 0x37c   : > { %v3842_v33 = vadd.f32 %v3841_v46, %v3807_v40  ;;  %v8318_v40 = vsub.f32 %v8056_v38, %v8144_v19  ;;  %v3811_v46 = vmul.f32 %v3775_v62, %v3775_v62  ;;  %v3778_v5 = vmul.f32 %v8312_v18, %v9295_v32 }
 0x37d   : > { %v3813_v34 = vmul.f32 %v3777_v4, %v3777_v4 }
 0x37e   : > { %v3843_v39 = vadd.f32 %v3842_v33, %v3808_v43  ;;  %v8324_v33 = vsub.f32 %v8051_v63, %v8144_v19  ;;  %v3812_v43 = vmul.f32 %v3776_v7, %v3776_v7  ;;  %v3779_v38 = vmul.f32 %v8318_v40, %v8038_v6 }
 0x37f   : > { %v3814_v62 = vmul.f32 %v3778_v5, %v3778_v5  ;;  %v8342_v7 = vsub.f32 %v8085_v10, %v8144_v19  ;;  %v8354_v5 = vsub.f32 %v8088_v22, %v8144_v19  ;;  %v9298_v10 = vld [vmem:[#allocation28_spill] sm:$0xff] }
 0x380   : > { %v3844_v57 = vadd.f32 %v3843_v39, %v3809_v13  ;;  %v8330_v39 = vsub.f32 %v8062_v37, %v8144_v19  ;;  %v3780_v63 = vmul.f32 %v8324_v33, %v8048_v61 }
 0x381   : > { %9296 = vst [vmem:[#allocation30_spill] sm:$0xff] %v8342_v7  ;;  %9297 = vst [vmem:[#allocation12_spill] sm:$0xff] %v8354_v5 }
 0x382   : > { %v3845_v53 = vadd.f32 %v3844_v57, %v3810_v27  ;;  %v8336_v57 = vsub.f32 %v8071_v15, %v8144_v19  ;;  %v3781_v37 = vmul.f32 %v8330_v39, %v8059_v25  ;;  %v3816_v4 = vmul.f32 %v3780_v63, %v3780_v63 }
 0x384   : > { %v3846_v50 = vadd.f32 %v3845_v53, %v3811_v46  ;;  %v3815_v46 = vmul.f32 %v3779_v38, %v3779_v38  ;;  %v3782_v15 = vmul.f32 %v8336_v57, %v8073_v52  ;;  %v3785_v52 = vmul.f32 %v8354_v5, %v8096_v31 }
 0x386   : > { %v3847_v13 = vadd.f32 %v3846_v50, %v3812_v43  ;;  %v8348_v50 = vsub.f32 %v8080_v47, %v8144_v19  ;;  %v3818_v47 = vmul.f32 %v3782_v15, %v3782_v15  ;;  %v3821_v22 = vmul.f32 %v3785_v52, %v3785_v52  ;;  %v5945_v52 = vld [vmem:[%s8996_s8 + $0x20] sm:$0xff]  }
 0x388   : > { %v3848_v27 = vadd.f32 %v3847_v13, %v3813_v34  ;;  %v3783_v34 = vmul.f32 %v8342_v7, %v9298_v10  ;;  %v3817_v13 = vmul.f32 %v3781_v37, %v3781_v37 }
 0x38a   : > { %v3849_v53 = vadd.f32 %v3848_v27, %v3814_v62  ;;  %v3784_v62 = vmul.f32 %v8348_v50, %v8092_v58  ;;  %v3819_v63 = vmul.f32 %v3783_v34, %v3783_v34 }
 0x38c   : > { %v3850_v43 = vadd.f32 %v3849_v53, %v3815_v46  ;;  %v3820_v53 = vmul.f32 %v3784_v62, %v3784_v62  ;;  %v5949_v62 = vld [vmem:[%s8996_s8] sm:$0xff]  }
 0x38e   : > { %v3851_v38 = vadd.f32 %v3850_v43, %v3816_v4  ;;  %v4312_v4 = vld [vmem:[%s8367_s30 + $0x13] sm:$0xff]  ;;  %v4313_v43 = vld [vmem:[%s8367_s30 + $0x1b] sm:$0xff] }
 0x390   : > { %v3852_v27 = vadd.f32 %v3851_v38, %v3817_v13  ;;  %v4348_v13 = vpack.c.bf16 %v4313_v43, %v4312_v4  ;;  %v4321_v4 = vld [vmem:[%s8367_s30 + $0x5b] sm:$0xff] }
 0x392   : > { %v3853_v46 = vadd.f32 %v3852_v27, %v3818_v47  ;;  %v4314_v47 = vld [vmem:[%s8367_s30 + $0x23] sm:$0xff]  ;;  %v4315_v27 = vld [vmem:[%s8367_s30 + $0x2b] sm:$0xff] }
 0x394   : > { %v3854_v6 = vadd.f32 %v3853_v46, %v3819_v63  ;;  %v4316_v63 = vld [vmem:[%s8367_s30 + $0x33] sm:$0xff]  ;;  %v4317_v46 = vld [vmem:[%s8367_s30 + $0x3b] sm:$0xff] }
 0x396   : > { %v3855_v19 = vadd.f32 %v3854_v6, %v3820_v53  ;;  %v5943_v6 = vld [vmem:[%s8996_s8 + $0x30] sm:$0xff]   ;;  %v4349_v53 = vpack.c.bf16 %v4315_v27, %v4314_v47  ;;  %v4329_v47 = vld [vmem:[%s8367_s30 + $0x9b] sm:$0xff] }
 0x398   : > { %v3856_v25 = vadd.f32 %v3855_v19, %v3821_v22  ;;  %v4350_v22 = vpack.c.bf16 %v4317_v46, %v4316_v63  ;;  %v4318_v19 = vld [vmem:[%s8367_s30 + $0x43] sm:$0xff] }
 0x399   : > { %v4330_v46 = vld [vmem:[%s8367_s30 + $0xa3] sm:$0xff] }
 0x39a   : > { %v3857_v32 = vrot.slane %v3856_v25, 4 }
 0x39c   : > { %v3858_v10 = vadd.f32 %v3857_v32, %v3856_v25  ;;  %v5944_v25 = vld [vmem:[%s8996_s8 + $0x28] sm:$0xff]   ;;  %v5947_v32 = vld [vmem:[%s8996_s8 + $0x10] sm:$0xff]  }
 0x39e   : > { %v3859_v37 = vrot.slane %v3858_v10, 2 }
 0x3a0   : > { %v3860_v15 = vadd.f32 %v3859_v37, %v3858_v10  ;;  %v5948_v10 = vld [vmem:[%s8996_s8 + $0x8] sm:$0xff]  }
 0x3a1   : > { %v4319_v37 = vld [vmem:[%s8367_s30 + $0x4b] sm:$0xff] }
 0x3a2   : > { %v3861_v34 = vrot.slane %v3860_v15, 1  ;;  %v4351_v43 = vpack.c.bf16 %v4319_v37, %v4318_v19  ;;  %v4333_v19 = vld [vmem:[%s8367_s30 + $0xbb] sm:$0xff] }
 0x3a4   : > { %v3862_v38 = vadd.f32 %v3861_v34, %v3860_v15  ;;  %v4320_v15 = vld [vmem:[%s8367_s30 + $0x53] sm:$0xff] }
 0x3a5   : > { %v4352_v34 = vpack.c.bf16 %v4321_v4, %v4320_v15  ;;  %v4334_v4 = vld [vmem:[%s8367_s30 + $0xc3] sm:$0xff] }
 0x3a6   : > { %5785 = vmatmul.mubr.f32.vlgmr.msra.gmra.mxu1 %v3862_v38  ;;  %v4323_v38 = vld [vmem:[%s8367_s30 + $0x6b] sm:$0xff] }
 0x3a7   : > { %5788 = vmatpush3.bf16.msra.mxu1 %v8136_v36  ;;  %5803 = vmatprep.mubr.bf16.mxu1 %v4348_v13  ;;  %v5946_v36 = vld [vmem:[%s8996_s8 + $0x18] sm:$0xff]   ;;  %v4322_v13 = vld [vmem:[%s8367_s30 + $0x63] sm:$0xff] }
 0x3a8   : > { %5789 = vmatprep.subr.bf16.mxu1 %v5943_v6 }
 0x3ab   : > { %5790 = vmatpush3.bf16.msra.mxu1 %v5943_v6  ;;  %v4324_v6 = vld [vmem:[%s8367_s30 + $0x73] sm:$0xff] }
 0x3ac   : > { %5791 = vmatprep.subr.bf16.mxu1 %v5944_v25 }
 0x3af   : > { %5792 = vmatpush3.bf16.msra.mxu1 %v5944_v25  ;;  %v4325_v25 = vld [vmem:[%s8367_s30 + $0x7b] sm:$0xff] }
 0x3b0   : > { %5793 = vmatprep.subr.bf16.mxu1 %v5945_v52 }
 0x3b3   : > { %5794 = vmatpush3.bf16.msra.mxu1 %v5945_v52  ;;  %v4353_v52 = vpack.c.bf16 %v4323_v38, %v4322_v13  ;;  %v4337_v13 = vld [vmem:[%s8367_s30 + $0xdb] sm:$0xff] }
 0x3b4   : > { %5795 = vmatprep.subr.bf16.mxu1 %v5946_v36 }
 0x3b7   : > { %5796 = vmatpush3.bf16.msra.mxu1 %v5946_v36  ;;  %v4354_v36 = vpack.c.bf16 %v4325_v25, %v4324_v6  ;;  %v4338_v25 = vld [vmem:[%s8367_s30 + $0xe3] sm:$0xff] }
 0x3b8   : > { %5797 = vmatprep.subr.bf16.mxu1 %v5947_v32 }
 0x3bb   : > { %5798 = vmatpush3.bf16.msra.mxu1 %v5947_v32  ;;  %v4326_v32 = vld [vmem:[%s8367_s30 + $0x83] sm:$0xff] }
 0x3bc   : > { %5799 = vmatprep.subr.bf16.mxu1 %v5948_v10 }
 0x3bf   : > { %5800 = vmatpush3.bf16.msra.mxu1 %v5948_v10  ;;  %v4327_v10 = vld [vmem:[%s8367_s30 + $0x8b] sm:$0xff] }
 0x3c0   : > { %5801 = vmatprep.subr.bf16.mxu1 %v5949_v62  ;;  %v4355_v27 = vpack.c.bf16 %v4327_v10, %v4326_v32  ;;  %v4341_v32 = vld [vmem:[%s8367_s30 + $0xfb] sm:$0xff] }
 0x3c3   : > { %5802 = vmatpush3.bf16.msra.mxu1 %v5949_v62  ;;  %v4328_v62 = vld [vmem:[%s8367_s30 + $0x93] sm:$0xff] }
 0x3c4   : > { %v4356_v63 = vpack.c.bf16 %v4329_v47, %v4328_v62  ;;  %v4342_v47 = vld [vmem:[%s8367_s30 + $0x103] sm:$0xff] }
 0x3c6   : > { %5804 = vmatmul.mubr.bf16.vlgmr.msra.gmra.mxu1 %v4349_v53  ;;  %v4331_v53 = vld [vmem:[%s8367_s30 + $0xab] sm:$0xff] }
 0x3c7   : > { %5807 = vmatprep.mubr.bf16.mxu1 %v4350_v22  ;;  %v4332_v22 = vld [vmem:[%s8367_s30 + $0xb3] sm:$0xff]  ;;  %v4357_v37 = vpack.c.bf16 %v4331_v53, %v4330_v46  ;;  %v4345_v46 = vld [vmem:[%s8367_s30 + $0x11b] sm:$0xff] }
 0x3c8   : > { %v4358_v15 = vpack.c.bf16 %v4333_v19, %v4332_v22  ;;  %v4346_v19 = vld [vmem:[%s8367_s30 + $0x123] sm:$0xff] }
 0x3ce   : > { %5808 = vmatmul.mubr.bf16.gmra.mxu1 %v4351_v43  ;;  %v4335_v43 = vld [vmem:[%s8367_s30 + $0xcb] sm:$0xff] }
 0x3cf   : > { %5811 = vmatprep.mubr.bf16.mxu1 %v4352_v34  ;;  %v4336_v34 = vld [vmem:[%s8367_s30 + $0xd3] sm:$0xff]  ;;  %v4359_v38 = vpack.c.bf16 %v4335_v43, %v4334_v4 }
 0x3d0   : > { %v4360_v6 = vpack.c.bf16 %v4337_v13, %v4336_v34 }
 0x3d6   : > { %5812 = vmatmul.mubr.bf16.gmra.mxu1 %v4353_v52  ;;  %v4339_v52 = vld [vmem:[%s8367_s30 + $0xeb] sm:$0xff] }
 0x3d7   : > { %5815 = vmatprep.mubr.bf16.mxu1 %v4354_v36  ;;  %v4340_v36 = vld [vmem:[%s8367_s30 + $0xf3] sm:$0xff]  ;;  %v4361_v10 = vpack.c.bf16 %v4339_v52, %v4338_v25  ;;  %v8434_v25 = vld [vmem:[%s8992_s4] ss:$0 sm:$0xff] }
 0x3d8   : > { %v4362_v62 = vpack.c.bf16 %v4341_v32, %v4340_v36  ;;  %v9300_v32 = vld [vmem:[#allocation11_spill] sm:$0xff] }
 0x3de   : > { %5816 = vmatmul.mubr.bf16.gmra.mxu1 %v4355_v27  ;;  %v4343_v27 = vld [vmem:[%s8367_s30 + $0x10b] sm:$0xff] }
 0x3df   : > { %5819 = vmatprep.mubr.bf16.mxu1 %v4356_v63  ;;  %v4344_v63 = vld [vmem:[%s8367_s30 + $0x113] sm:$0xff]  ;;  %v4363_v53 = vpack.c.bf16 %v4343_v27, %v4342_v47 }
 0x3e0   : > { %v4364_v22 = vpack.c.bf16 %v4345_v46, %v4344_v63 }
 0x3e6   : > { %5820 = vmatmul.mubr.bf16.gmra.mxu1 %v4357_v37  ;;  %v4347_v37 = vld [vmem:[%s8367_s30 + $0x12b] sm:$0xff] }
 0x3e7   : > { %5823 = vmatprep.mubr.bf16.mxu1 %v4358_v15  ;;  %v4365_v15 = vpack.c.bf16 %v4347_v37, %v4346_v19 }
 0x3ee   : > { %5824 = vmatmul.mubr.bf16.gmra.mxu1 %v4359_v38  ;;  %v9299_v38 = vsub.s32 0, %v8139_v26  ;;  %v8447_v26 = vld [vmem:[%s8993_s5] ss:$0 sm:$0xff] }
 0x3ef   : > { %5827 = vmatprep.mubr.bf16.mxu1 %v4360_v6 }
 0x3f6   : > { %5828 = vmatmul.mubr.bf16.gmra.mxu1 %v4361_v10 }
 0x3f7   : > { %5831 = vmatprep.mubr.bf16.mxu1 %v4362_v62  ;;  %v9301_v62 = vld [vmem:[#allocation10_spill] sm:$0xff] }
 0x3fe   : > { %5832 = vmatmul.mubr.bf16.gmra.mxu1 %v4363_v53 }
 0x3ff   : > { %5835 = vmatprep.mubr.bf16.mxu1 %v4364_v22 }
 0x406   : > { %5836 = vmatmul.mubr.bf16.gmra.mxu1 %v4365_v15 }
 0x466   : > { %v3929_v4 = vpop.f32.mrf.mxu1 }
 0x467   : > { %v3930_v43 = vadd.f32 1e-05, %v3929_v4 }
 0x468   : > { %v5786_v34 = vpop.f32.mrf.mxu1 }
 0x469   : > { %5950 = vrsqrt.f32 %v3930_v43 }
 0x476   : > { %v5951_v13 = vpop.eup %5950 }
 0x477   : > { %v8429_v6 = vrot.slane %v5951_v13, %v9299_v38 }
 0x479   : > { %v3940_v52 = vmul.f32 %v8429_v6, %v8156_v3  ;;  %v3938_v36 = vmul.f32 %v8429_v6, %v8148_v44  ;;  %v3941_v10 = vmul.f32 %v8429_v6, %v9300_v32  ;;  %v3939_v47 = vmul.f32 %v8429_v6, %v9301_v62 }
 0x47a   : > { %v3944_v27 = vmul.f32 %v8429_v6, %v8180_v2  ;;  %v3942_v3 = vmul.f32 %v8429_v6, %v8168_v1  ;;  %v3945_v44 = vmul.f32 %v8429_v6, %v8186_v16  ;;  %v3943_v63 = vmul.f32 %v8429_v6, %v8174_v49 }
 0x47b   : > { %v3983_v46 = vmul.f32 %v8434_v25, %v3940_v52  ;;  %v3981_v53 = vmul.f32 %v8434_v25, %v3938_v36  ;;  %v3984_v22 = vmul.f32 %v8434_v25, %v3941_v10  ;;  %v3982_v19 = vmul.f32 %v8434_v25, %v3939_v47 }
 0x47c   : > { %v3987_v37 = vmul.f32 %v8434_v25, %v3944_v27  ;;  %v3985_v2 = vmul.f32 %v8434_v25, %v3942_v3  ;;  %v3988_v1 = vmul.f32 %v8434_v25, %v3945_v44  ;;  %v3986_v15 = vmul.f32 %v8434_v25, %v3943_v63 }
 0x47d   : > { %v8466_v16 = vadd.f32 %v8447_v26, %v3983_v46  ;;  %v8469_v49 = vadd.f32 %v8447_v26, %v3981_v53  ;;  %v8472_v4 = vadd.f32 %v8447_v26, %v3984_v22  ;;  %v8475_v43 = vadd.f32 %v8447_v26, %v3982_v19 }
 0x47e   : > { %v8478_v34 = vadd.f32 %v8447_v26, %v3987_v37  ;;  %v8481_v13 = vadd.f32 %v8447_v26, %v3985_v2  ;;  %v8484_v38 = vadd.f32 %v8447_v26, %v3988_v1  ;;  %v8487_v52 = vadd.f32 %v8447_v26, %v3986_v15 }
 0x47f   : > { %v4910_v36 = vmul.f32 -1.442695, %v8466_v16  ;;  %v4908_v32 = vmul.f32 -1.442695, %v8469_v49  ;;  %v4911_v10 = vmul.f32 -1.442695, %v8472_v4  ;;  %v3948_v62 = vmul.f32 %v8429_v6, %v8204_v56 }
 0x480   : > { %v4909_v47 = vmul.f32 -1.442695, %v8475_v43  ;;  %v4914_v27 = vmul.f32 -1.442695, %v8478_v34  ;;  %v4912_v3 = vmul.f32 -1.442695, %v8481_v13  ;;  %v3946_v44 = vmul.f32 %v8429_v6, %v8192_v55 }
 0x481   : > { %5952 = vpow2.f32 %v4910_v36  ;;  %v4915_v63 = vmul.f32 -1.442695, %v8484_v38  ;;  %v4913_v46 = vmul.f32 -1.442695, %v8487_v52  ;;  %v3991_v53 = vmul.f32 %v8434_v25, %v3948_v62 }
 0x482   : > { %5954 = vpow2.f32 %v4908_v32  ;;  %v3989_v22 = vmul.f32 %v8434_v25, %v3946_v44  ;;  %v3949_v56 = vmul.f32 %v8429_v6, %v8210_v20  ;;  %v3947_v19 = vmul.f32 %v8429_v6, %v8198_v30 }
 0x483   : > { %5956 = vpow2.f32 %v4911_v10  ;;  %v8508_v37 = vadd.f32 %v8447_v26, %v3991_v53  ;;  %v3952_v55 = vmul.f32 %v8429_v6, %v8228_v29  ;;  %v3950_v2 = vmul.f32 %v8429_v6, %v8216_v51 }
 0x484   : > { %5958 = vpow2.f32 %v4909_v47  ;;  %v8515_v1 = vadd.f32 %v8447_v26, %v3989_v22  ;;  %v3992_v15 = vmul.f32 %v8434_v25, %v3949_v56  ;;  %v3990_v20 = vmul.f32 %v8434_v25, %v3947_v19 }
 0x485   : > { %5960 = vpow2.f32 %v4914_v27  ;;  %v4918_v30 = vmul.f32 -1.442695, %v8508_v37  ;;  %v3995_v36 = vmul.f32 %v8434_v25, %v3952_v55  ;;  %v3993_v32 = vmul.f32 %v8434_v25, %v3950_v2 }
 0x486   : > { %v8522_v10 = vpop.f32.mrf.mxu1  ;;  %5962 = vpow2.f32 %v4912_v3  ;;  %v4916_v51 = vmul.f32 -1.442695, %v8515_v1  ;;  %v8526_v29 = vadd.f32 %v8447_v26, %v3992_v15  ;;  %v8529_v62 = vadd.f32 %v8447_v26, %v3990_v20 }
 0x487   : > { %5964 = vpow2.f32 %v4915_v63  ;;  %v8532_v47 = vadd.f32 %v8447_v26, %v3995_v36  ;;  %v8535_v27 = vadd.f32 %v8447_v26, %v3993_v32  ;;  %v3953_v44 = vmul.f32 %v8429_v6, %v8234_v35 }
 0x488   : > { %v8539_v53 = vpop.f32.mrf.mxu1  ;;  %5966 = vpow2.f32 %v4913_v46  ;;  %v4919_v3 = vmul.f32 -1.442695, %v8526_v29  ;;  %v4917_v22 = vmul.f32 -1.442695, %v8529_v62  ;;  %v3951_v56 = vmul.f32 %v8429_v6, %v8222_v23 }
 0x489   : > { %5968 = vpow2.f32 %v4918_v30  ;;  %v4922_v63 = vmul.f32 -1.442695, %v8532_v47  ;;  %v4920_v19 = vmul.f32 -1.442695, %v8535_v27  ;;  %v3996_v55 = vmul.f32 %v8434_v25, %v3953_v44 }
 0x48a   : > { %v8548_v2 = vpop.f32.mrf.mxu1  ;;  %5970 = vpow2.f32 %v4916_v51  ;;  %v3994_v35 = vmul.f32 %v8434_v25, %v3951_v56  ;;  %v3956_v46 = vmul.f32 %v8429_v6, %v8252_v9  ;;  %v3954_v15 = vmul.f32 %v8429_v6, %v8240_v21 }
 0x48b   : > { %5972 = vpow2.f32 %v4919_v3  ;;  %v8556_v23 = vadd.f32 %v8447_v26, %v3996_v55  ;;  %v3957_v20 = vmul.f32 %v8429_v6, %v8258_v59  ;;  %v3955_v30 = vmul.f32 %v8429_v6, %v8246_v42 }
 0x48c   : > { %v8562_v36 = vpop.f32.mrf.mxu1  ;;  %5974 = vpow2.f32 %v4917_v22  ;;  %v8565_v32 = vadd.f32 %v8447_v26, %v3994_v35  ;;  %v3999_v9 = vmul.f32 %v8434_v25, %v3956_v46  ;;  %v3997_v21 = vmul.f32 %v8434_v25, %v3954_v15 }
 0x48d   : > { %5976 = vpow2.f32 %v4922_v63  ;;  %v4923_v51 = vmul.f32 -1.442695, %v8556_v23  ;;  %v4000_v44 = vmul.f32 %v8434_v25, %v3957_v20  ;;  %v3998_v59 = vmul.f32 %v8434_v25, %v3955_v30 }
 0x48e   : > { %v5953_v3 = vpop.eup %5952  ;;  %v8572_v56 = vpop.f32.mrf.mxu1  ;;  %5978 = vpow2.f32 %v4920_v19  ;;  %v4921_v42 = vmul.f32 -1.442695, %v8565_v32  ;;  %v8576_v22 = vadd.f32 %v8447_v26, %v3999_v9  ;;  %v8579_v55 = vadd.f32 %v8447_v26, %v3997_v21 }
 0x48f   : > { %v5955_v35 = vpop.eup %5954  ;;  %v4170_v63 = vadd.f32 1.0, %v5953_v3  ;;  %5980 = vpow2.f32 %v4923_v51  ;;  %v8582_v46 = vadd.f32 %v8447_v26, %v4000_v44  ;;  %v8585_v15 = vadd.f32 %v8447_v26, %v3998_v59 }
 0x490   : > { %9302 = vst [vmem:[#allocation31_spill] sm:$0xff] %v8576_v22  ;;  %9303 = vst [vmem:[#allocation13_spill] sm:$0xff] %v8579_v55  ;;  %v5957_v20 = vpop.eup %5956  ;;  %v4168_v30 = vadd.f32 1.0, %v5955_v35  ;;  %v8587_v19 = vpop.f32.mrf.mxu1  ;;  %5982 = vpow2.f32 %v4921_v42  ;;  %v8590_v9 = vmul.f32 -1.442695, %v8576_v22  ;;  %v3960_v42 = vmul.f32 %v8429_v6, %v8276_v11 }
 0x491   : > { %9304 = vst [vmem:[#allocation32_spill] sm:$0xff] %v8582_v46  ;;  %9305 = vst [vmem:[#allocation15_spill] sm:$0xff] %v8585_v15  ;;  %v8593_v21 = vmul.f32 -1.442695, %v8579_v55  ;;  %v5959_v31 = vpop.eup %5958  ;;  %5984 = vrcp.f32 %v4170_v63  ;;  %v4171_v51 = vadd.f32 1.0, %v5957_v20  ;;  %v3958_v61 = vmul.f32 %v8429_v6, %v8264_v8 }
 0x492   : > { %v8596_v44 = vmul.f32 -1.442695, %v8582_v46  ;;  %v8599_v59 = vmul.f32 -1.442695, %v8585_v15  ;;  %v5961_v3 = vpop.eup %5960  ;;  %5986 = vrcp.f32 %v4168_v30  ;;  %v4169_v35 = vadd.f32 1.0, %v5959_v31  ;;  %v8601_v58 = vpop.f32.mrf.mxu1 }
 0x493   : > { %v5963_v41 = vpop.eup %5962  ;;  %5988 = vrcp.f32 %v4171_v51  ;;  %v4174_v63 = vadd.f32 1.0, %v5961_v3  ;;  %v3961_v20 = vmul.f32 %v8429_v6, %v8282_v17  ;;  %v3959_v0 = vmul.f32 %v8429_v6, %v8270_v48 }
 0x494   : > { %v5965_v15 = vpop.eup %5964  ;;  %5990 = vrcp.f32 %v4169_v35  ;;  %v4172_v31 = vadd.f32 1.0, %v5963_v41  ;;  %v8611_v30 = vpop.f32.mrf.mxu1  ;;  %v4003_v46 = vmul.f32 %v8434_v25, %v3960_v42  ;;  %v4001_v11 = vmul.f32 %v8434_v25, %v3958_v61 }
 0x495   : > { %v5967_v55 = vpop.eup %5966  ;;  %5992 = vrcp.f32 %v4174_v63  ;;  %v4175_v8 = vadd.f32 1.0, %v5965_v15  ;;  %v4004_v51 = vmul.f32 %v8434_v25, %v3961_v20  ;;  %v4002_v3 = vmul.f32 %v8434_v25, %v3959_v0 }
 0x496   : > { %v5969_v17 = vpop.eup %5968  ;;  %5994 = vrcp.f32 %v4172_v31  ;;  %v4173_v22 = vadd.f32 1.0, %v5967_v55  ;;  %v8617_v48 = vpop.f32.mrf.mxu1  ;;  %v8620_v41 = vadd.f32 %v8447_v26, %v4003_v46  ;;  %v8623_v35 = vadd.f32 %v8447_v26, %v4001_v11 }
 0x497   : > { %v5971_v42 = vpop.eup %5970  ;;  %5996 = vrcp.f32 %v4175_v8  ;;  %v4178_v61 = vadd.f32 1.0, %v5969_v17  ;;  %v8626_v15 = vadd.f32 %v8447_v26, %v4004_v51  ;;  %v8629_v63 = vadd.f32 %v8447_v26, %v4002_v3 }
 0x498   : > { %9306 = vst [vmem:[#allocation16_spill] sm:$0xff] %v8620_v41  ;;  %9307 = vst [vmem:[#allocation17_spill] sm:$0xff] %v8623_v35  ;;  %v5973_v0 = vpop.eup %5972  ;;  %5998 = vrcp.f32 %v4173_v22  ;;  %v4176_v55 = vadd.f32 1.0, %v5971_v42  ;;  %v8631_v20 = vpop.f32.mrf.mxu1  ;;  %v8634_v46 = vmul.f32 -1.442695, %v8620_v41  ;;  %v3964_v41 = vmul.f32 %v8429_v6, %v8300_v28 }
 0x499   : > { %9308 = vst [vmem:[#allocation18_spill] sm:$0xff] %v8626_v15  ;;  %9309 = vst [vmem:[#allocation21_spill] sm:$0xff] %v8629_v63  ;;  %v8637_v31 = vmul.f32 -1.442695, %v8623_v35  ;;  %v5975_v11 = vpop.eup %5974  ;;  %6000 = vrcp.f32 %v4178_v61  ;;  %v4179_v8 = vadd.f32 1.0, %v5973_v0  ;;  %v3962_v35 = vmul.f32 %v8429_v6, %v8288_v14 }
 0x49a   : > { %v8640_v51 = vmul.f32 -1.442695, %v8626_v15  ;;  %v8643_v3 = vmul.f32 -1.442695, %v8629_v63  ;;  %v5977_v17 = vpop.eup %5976  ;;  %6002 = vrcp.f32 %v4176_v55  ;;  %v8645_v22 = vpop.f32.mrf.mxu1  ;;  %v4177_v42 = vadd.f32 1.0, %v5975_v11 }
 0x49b   : > { %v5979_v7 = vpop.eup %5978  ;;  %6004 = vrcp.f32 %v4179_v8  ;;  %v4182_v61 = vadd.f32 1.0, %v5977_v17  ;;  %v3965_v0 = vmul.f32 %v8429_v6, %v8306_v45  ;;  %v3963_v63 = vmul.f32 %v8429_v6, %v8294_v60 }
 0x49c   : > { %9310 = vst [vmem:[#allocation7_spill] sm:$0xff] %v8640_v51  ;;  %9311 = vst [vmem:[#allocation20_spill] sm:$0xff] %v8643_v3  ;;  %v5981_v15 = vpop.eup %5980  ;;  %6006 = vrcp.f32 %v4177_v42  ;;  %v8655_v55 = vpop.f32.mrf.mxu1  ;;  %v4180_v11 = vadd.f32 1.0, %v5979_v7  ;;  %v4007_v28 = vmul.f32 %v8434_v25, %v3964_v41  ;;  %v4005_v5 = vmul.f32 %v8434_v25, %v3962_v35 }
 0x49d   : > { %v5983_v14 = vpop.eup %5982  ;;  %6008 = vrcp.f32 %v4182_v61  ;;  %v4183_v8 = vadd.f32 1.0, %v5981_v15  ;;  %v4008_v17 = vmul.f32 %v8434_v25, %v3965_v0  ;;  %v4006_v45 = vmul.f32 %v8434_v25, %v3963_v63  ;;  %v8680_v0 = vld [vmem:[%s8997_s9] ss:$0 sm:$0xff] }
 0x49e   : > { %v5985_v3 = vpop.eup %5984  ;;  %v8661_v51 = vpop.f32.mrf.mxu1  ;;  %6010 = vrcp.f32 %v4180_v11  ;;  %v4181_v60 = vadd.f32 1.0, %v5983_v14  ;;  %v8664_v42 = vadd.f32 %v8447_v26, %v4007_v28  ;;  %v8667_v7 = vadd.f32 %v8447_v26, %v4005_v5 }
 0x49f   : > { %v5987_v41 = vpop.eup %5986  ;;  %v4278_v35 = vmul.f32 %v5985_v3, %v8466_v16  ;;  %6012 = vrcp.f32 %v4183_v8  ;;  %v8672_v15 = vadd.f32 %v8447_v26, %v4008_v17  ;;  %v8675_v63 = vadd.f32 %v8447_v26, %v4006_v45 }
 0x4a0   : > { %9312 = vst [vmem:[#allocation23_spill] sm:$0xff] %v8667_v7  ;;  %v5989_v61 = vpop.eup %5988  ;;  %v4276_v5 = vmul.f32 %v5987_v41, %v8469_v49  ;;  %v8683_v11 = vpop.f32.mrf.mxu1  ;;  %6014 = vrcp.f32 %v4181_v60  ;;  %v8686_v16 = vmul.f32 -1.442695, %v8664_v42  ;;  %v8689_v3 = vmul.f32 -1.442695, %v8667_v7 }
 0x4a1   : > { %v5991_v28 = vpop.eup %5990  ;;  %v4609_v14 = vadd.f32 %v8522_v10, %v4278_v35  ;;  %v4279_v8 = vmul.f32 %v5989_v61, %v8472_v4  ;;  %6016 = vpow2.f32 %v8590_v9  ;;  %v8695_v17 = vmul.f32 -1.442695, %v8672_v15 }
 0x4a2   : > { %v5993_v49 = vpop.eup %5992  ;;  %v4607_v45 = vadd.f32 %v8539_v53, %v4276_v5  ;;  %v4277_v60 = vmul.f32 %v5991_v28, %v8475_v43  ;;  %v8699_v41 = vpop.f32.mrf.mxu1  ;;  %6018 = vpow2.f32 %v8593_v21  ;;  %v8703_v7 = vmul.f32 -1.442695, %v8675_v63 }
 0x4a3   : > { %v5995_v10 = vpop.eup %5994  ;;  %v4652_v4 = vadd.f32 %v8680_v0, %v4609_v14  ;;  %v4610_v9 = vadd.f32 %v8548_v2, %v4279_v8  ;;  %v4282_v35 = vmul.f32 %v5993_v49, %v8478_v34  ;;  %6020 = vpow2.f32 %v8596_v44  ;;  %v9313_v2 = vld [vmem:[#allocation24_spill] sm:$0xff] }
 0x4a4   : > { %v5997_v61 = vpop.eup %5996  ;;  %v4650_v43 = vadd.f32 %v8680_v0, %v4607_v45  ;;  %v4608_v53 = vadd.f32 %v8562_v36, %v4277_v60  ;;  %v4280_v21 = vmul.f32 %v5995_v10, %v8481_v13  ;;  %v8719_v5 = vpop.f32.mrf.mxu1  ;;  %6022 = vpow2.f32 %v8599_v59  ;;  %v9314_v45 = vld [vmem:[#allocation14_spill] sm:$0xff] }
 0x4a5   : > { %v5999_v34 = vpop.eup %5998  ;;  %v4688_v44 = vmul.f32 %v4652_v4, %v9313_v2  ;;  %v4653_v28 = vadd.f32 %v8680_v0, %v4610_v9  ;;  %v4613_v14 = vadd.f32 %v8572_v56, %v4282_v35  ;;  %v4283_v8 = vmul.f32 %v5997_v61, %v8484_v38  ;;  %v9315_v9 = vld [vmem:[#allocation3_spill] sm:$0xff] }
 0x4a6   : > { %v6001_v49 = vpop.eup %6000  ;;  %v4686_v36 = vmul.f32 %v4650_v43, %v9314_v45  ;;  %v4651_v60 = vadd.f32 %v8680_v0, %v4608_v53  ;;  %v4611_v13 = vadd.f32 %v8587_v19, %v4280_v21  ;;  %v4281_v10 = vmul.f32 %v5999_v34, %v8487_v52  ;;  %v8730_v59 = vpop.f32.mrf.mxu1  ;;  %v9316_v43 = vld [vmem:[#allocation29_spill] sm:$0xff] }
 0x4a7   : > { %v6003_v4 = vpop.eup %6002  ;;  %4724 = vst [vmem:[%s8714_s17 + $0x10] sm:$0xff] %v4688_v44  ;;  %v4689_v2 = vmul.f32 %v4653_v28, %v9315_v9  ;;  %v4656_v56 = vadd.f32 %v8680_v0, %v4613_v14  ;;  %v4614_v38 = vadd.f32 %v8601_v58, %v4283_v8  ;;  %v4286_v35 = vmul.f32 %v6001_v49, %v8508_v37  ;;  %v9317_v49 = vld [vmem:[#allocation5_spill] sm:$0xff]  ;;  %v9318_v9 = vld [vmem:[#allocation27_spill] sm:$0xff] }
 0x4a8   : > { %v6005_v61 = vpop.eup %6004  ;;  %4722 = vst [vmem:[%s8714_s17] sm:$0xff] %v4686_v36  ;;  %v4687_v19 = vmul.f32 %v4651_v60, %v9316_v43  ;;  %v4654_v52 = vadd.f32 %v8680_v0, %v4611_v13  ;;  %v4612_v53 = vadd.f32 %v8611_v30, %v4281_v10  ;;  %v4284_v21 = vmul.f32 %v6003_v4, %v8515_v1  ;;  %v8742_v34 = vpop.f32.mrf.mxu1 }
 0x4a9   : > { %v6007_v44 = vpop.eup %6006  ;;  %4725 = vst [vmem:[%s8714_s17 + $0x18] sm:$0xff] %v4689_v2  ;;  %v4692_v58 = vmul.f32 %v4656_v56, %v7754_v54  ;;  %v4657_v28 = vadd.f32 %v8680_v0, %v4614_v38  ;;  %v4617_v37 = vadd.f32 %v8617_v48, %v4286_v35  ;;  %v4287_v14 = vmul.f32 %v6005_v61, %v8526_v29 }
 0x4aa   : > { %v6009_v8 = vpop.eup %6008  ;;  %4723 = vst [vmem:[%s8714_s17 + $0x8] sm:$0xff] %v4687_v19  ;;  %v4690_v30 = vmul.f32 %v4654_v52, %v9317_v49  ;;  %v4655_v1 = vadd.f32 %v8680_v0, %v4612_v53  ;;  %v4615_v45 = vadd.f32 %v8631_v20, %v4284_v21  ;;  %v4285_v36 = vmul.f32 %v6007_v44, %v8529_v62  ;;  %v8754_v60 = vpop.f32.mrf.mxu1  ;;  %v9319_v19 = vld [vmem:[#allocation37_spill] sm:$0xff]  ;;  %v9320_v44 = vld [vmem:[#allocation40_spill] sm:$0xff] }
 0x4ab   : > { %v6011_v54 = vpop.eup %6010  ;;  %4728 = vst [vmem:[%s8714_s17 + $0x30] sm:$0xff] %v4692_v58  ;;  %v4693_v48 = vmul.f32 %v4657_v28, %v7761_v12  ;;  %v4660_v13 = vadd.f32 %v8680_v0, %v4617_v37  ;;  %v4618_v29 = vadd.f32 %v8645_v22, %v4287_v14  ;;  %v4290_v10 = vmul.f32 %v6009_v8, %v8532_v47  ;;  %v9321_v14 = vld [vmem:[#allocation39_spill] sm:$0xff] }
 0x4ac   : > { %v6013_v4 = vpop.eup %6012  ;;  %4726 = vst [vmem:[%s8714_s17 + $0x20] sm:$0xff] %v4690_v30  ;;  %v4691_v20 = vmul.f32 %v4655_v1, %v9318_v9  ;;  %v4658_v62 = vadd.f32 %v8680_v0, %v4615_v45  ;;  %v4616_v2 = vadd.f32 %v8655_v55, %v4285_v36  ;;  %v4288_v56 = vmul.f32 %v6011_v54, %v8535_v27  ;;  %v8766_v38 = vpop.f32.mrf.mxu1  ;;  %v9322_v45 = vld [vmem:[#allocation46_spill] sm:$0xff] }
 0x4ad   : > { %v6015_v12 = vpop.eup %6014  ;;  %4729 = vst [vmem:[%s8714_s17 + $0x38] sm:$0xff] %v4693_v48  ;;  %v4696_v22 = vmul.f32 %v4660_v13, %v7784_v24  ;;  %v4661_v35 = vadd.f32 %v8680_v0, %v4618_v29  ;;  %v4621_v47 = vadd.f32 %v8661_v51, %v4290_v10  ;;  %v4291_v61 = vmul.f32 %v6013_v4, %v8556_v23  ;;  %v9323_v48 = vld [vmem:[#allocation43_spill] sm:$0xff] }
 0x4ae   : > { %v6017_v43 = vpop.eup %6016  ;;  %4727 = vst [vmem:[%s8714_s17 + $0x28] sm:$0xff] %v4691_v20  ;;  %v4694_v55 = vmul.f32 %v4658_v62, %v9319_v19  ;;  %v4659_v27 = vadd.f32 %v8680_v0, %v4616_v2  ;;  %v4619_v52 = vadd.f32 %v8683_v11, %v4288_v56  ;;  %v4289_v53 = vmul.f32 %v6015_v12, %v8565_v32  ;;  %v8778_v21 = vpop.f32.mrf.mxu1  ;;  %v9324_v4 = vld [vmem:[#allocation47_spill] sm:$0xff]  ;;  %v9325_v2 = vld [vmem:[#allocation44_spill] sm:$0xff] }
 0x4af   : > { %v6019_v24 = vpop.eup %6018  ;;  %4732 = vst [vmem:[%s8714_s17 + $0x50] sm:$0xff] %v4696_v22  ;;  %v4697_v51 = vmul.f32 %v4661_v35, %v9320_v44  ;;  %v4664_v58 = vadd.f32 %v8680_v0, %v4621_v47  ;;  %v4622_v23 = vadd.f32 %v8699_v41, %v4291_v61  ;;  %v4186_v28 = vadd.f32 1.0, %v6017_v43 }
 0x4b0   : > { %v6021_v37 = vpop.eup %6020  ;;  %4730 = vst [vmem:[%s8714_s17 + $0x40] sm:$0xff] %v4694_v55  ;;  %v4695_v8 = vmul.f32 %v4659_v27, %v9321_v14  ;;  %v4662_v11 = vadd.f32 %v8680_v0, %v4619_v52  ;;  %v4620_v32 = vadd.f32 %v8719_v5, %v4289_v53  ;;  %v4184_v49 = vadd.f32 1.0, %v6019_v24  ;;  %v8788_v30 = vpop.f32.mrf.mxu1 }
 0x4b1   : > { %v6023_v1 = vpop.eup %6022  ;;  %4733 = vst [vmem:[%s8714_s17 + $0x58] sm:$0xff] %v4697_v51  ;;  %v4700_v36 = vmul.f32 %v4664_v58, %v9322_v45  ;;  %v4665_v41 = vadd.f32 %v8680_v0, %v4622_v23  ;;  %6024 = vrcp.f32 %v4186_v28  ;;  %v4187_v54 = vadd.f32 1.0, %v6021_v37  ;;  %v9328_v28 = vld [vmem:[#allocation12_spill] sm:$0xff]  ;;  %v9329_v37 = vld [vmem:[#allocation30_spill] sm:$0xff] }
 0x4b2   : > { %4731 = vst [vmem:[%s8714_s17 + $0x48] sm:$0xff] %v4695_v8  ;;  %v4698_v13 = vmul.f32 %v4662_v11, %v9323_v48  ;;  %v4663_v29 = vadd.f32 %v8680_v0, %v4620_v32  ;;  %6026 = vrcp.f32 %v4184_v49  ;;  %v4185_v5 = vadd.f32 1.0, %v6023_v1  ;;  %v8796_v10 = vpop.f32.mrf.mxu1  ;;  %v9331_v48 = vld [vmem:[#allocation13_spill] sm:$0xff] }
 0x4b3   : > { %4736 = vst [vmem:[%s8714_s17 + $0x70] sm:$0xff] %v4700_v36  ;;  %v4701_v9 = vmul.f32 %v4665_v41, %v9324_v4  ;;  %6028 = vrcp.f32 %v4187_v54  ;;  %v3968_v20 = vmul.f32 %v8429_v6, %v8324_v33  ;;  %v3966_v62 = vmul.f32 %v8429_v6, %v8312_v18  ;;  %v9330_v36 = vld [vmem:[#allocation31_spill] sm:$0xff] }
 0x4b4   : > { %4734 = vst [vmem:[%s8714_s17 + $0x60] sm:$0xff] %v4698_v13  ;;  %v4699_v56 = vmul.f32 %v4663_v29, %v9325_v2  ;;  %6030 = vrcp.f32 %v4185_v5  ;;  %v8806_v12 = vpop.f32.mrf.mxu1  ;;  %v3969_v22 = vmul.f32 %v8429_v6, %v8330_v39  ;;  %v3967_v35 = vmul.f32 %v8429_v6, %v8318_v40  ;;  %v9332_v5 = vld [vmem:[#allocation32_spill] sm:$0xff] }
 0x4b5   : > { %4737 = vst [vmem:[%s8714_s17 + $0x78] sm:$0xff] %v4701_v9  ;;  %6032 = vpow2.f32 %v8634_v46  ;;  %v4011_v33 = vmul.f32 %v8434_v25, %v3968_v20  ;;  %v4009_v47 = vmul.f32 %v8434_v25, %v3966_v62  ;;  %v3972_v18 = vmul.f32 %v8429_v6, %v8348_v50  ;;  %v9326_v46 = vld [vmem:[#allocation7_spill] sm:$0xff] }
 0x4b6   : > { %4735 = vst [vmem:[%s8714_s17 + $0x68] sm:$0xff] %v4699_v56  ;;  %6034 = vpow2.f32 %v8637_v31  ;;  %v8820_v61 = vpop.f32.mrf.mxu1  ;;  %v4012_v39 = vmul.f32 %v8434_v25, %v3969_v22  ;;  %v4010_v43 = vmul.f32 %v8434_v25, %v3967_v35  ;;  %v3970_v40 = vmul.f32 %v8429_v6, %v8336_v57  ;;  %v9327_v31 = vld [vmem:[#allocation20_spill] sm:$0xff]  ;;  %v9333_v56 = vld [vmem:[#allocation15_spill] sm:$0xff] }
 0x4b7   : > { %6036 = vpow2.f32 %v9326_v46  ;;  %v8828_v19 = vadd.f32 %v8447_v26, %v4011_v33  ;;  %v8831_v55 = vadd.f32 %v8447_v26, %v4009_v47  ;;  %v4015_v50 = vmul.f32 %v8434_v25, %v3972_v18  ;;  %v9334_v46 = vld [vmem:[#allocation50_spill] sm:$0xff] }
 0x4b8   : > { %6038 = vpow2.f32 %v9327_v31  ;;  %v8836_v27 = vadd.f32 %v8447_v26, %v4012_v39  ;;  %v8839_v52 = vadd.f32 %v8447_v26, %v4010_v43  ;;  %v4013_v57 = vmul.f32 %v8434_v25, %v3970_v40  ;;  %v8843_v53 = vpop.f32.mrf.mxu1 }
 0x4b9   : > { %6040 = vpow2.f32 %v8686_v16  ;;  %v4938_v24 = vmul.f32 -1.442695, %v8828_v19  ;;  %v8847_v44 = vadd.f32 %v8447_v26, %v4015_v50  ;;  %v4936_v51 = vmul.f32 -1.442695, %v8831_v55 }
 0x4ba   : > { %6042 = vpow2.f32 %v8689_v3  ;;  %v8852_v58 = vadd.f32 %v8447_v26, %v4013_v57  ;;  %v4939_v23 = vmul.f32 -1.442695, %v8836_v27  ;;  %v3973_v16 = vmul.f32 %v8429_v6, %v9328_v28  ;;  %v8862_v3 = vpop.f32.mrf.mxu1 }
 0x4bb   : > { %6044 = vpow2.f32 %v8695_v17  ;;  %v3971_v14 = vmul.f32 %v8429_v6, %v9329_v37  ;;  %v4937_v8 = vmul.f32 -1.442695, %v8839_v52  ;;  %v4942_v11 = vmul.f32 -1.442695, %v8847_v44  ;;  %v9336_v37 = vld [vmem:[#allocation51_spill] sm:$0xff] }
 0x4bc   : > { %6046 = vpow2.f32 %v8703_v7  ;;  %v4016_v32 = vmul.f32 %v8434_v25, %v3973_v16  ;;  %v4940_v1 = vmul.f32 -1.442695, %v8852_v58  ;;  %v8878_v9 = vpop.f32.mrf.mxu1 }
 0x4bd   : > { %6048 = vpow2.f32 %v4938_v24  ;;  %v4014_v17 = vmul.f32 %v8434_v25, %v3971_v14 }
 0x4be   : > { %v6025_v49 = vpop.eup %6024  ;;  %6050 = vpow2.f32 %v4936_v51  ;;  %v8870_v7 = vadd.f32 %v8447_v26, %v4016_v32  ;;  %v8890_v24 = vpop.f32.mrf.mxu1  ;;  %v9335_v51 = vld [vmem:[#allocation48_spill] sm:$0xff]  ;;  %v9337_v32 = vld [vmem:[#allocation49_spill] sm:$0xff] }
 0x4bf   : > { %v6027_v45 = vpop.eup %6026  ;;  %v4294_v6 = vmul.f32 %v6025_v49, %v9330_v36  ;;  %6052 = vpow2.f32 %v4939_v23  ;;  %v8873_v41 = vadd.f32 %v8447_v26, %v4014_v17 }
 0x4c0   : > { %v6029_v54 = vpop.eup %6028  ;;  %v4292_v13 = vmul.f32 %v6027_v45, %v9331_v48  ;;  %6054 = vpow2.f32 %v4937_v8  ;;  %v4943_v20 = vmul.f32 -1.442695, %v8870_v7  ;;  %v8899_v36 = vpop.f32.mrf.mxu1 }
 0x4c1   : > { %v6031_v29 = vpop.eup %6030  ;;  %v4625_v25 = vadd.f32 %v8730_v59, %v4294_v6  ;;  %v4295_v4 = vmul.f32 %v6029_v54, %v9332_v5  ;;  %6056 = vpow2.f32 %v4942_v11  ;;  %v4941_v22 = vmul.f32 -1.442695, %v8873_v41 }
 0x4c2   : > { %v6033_v62 = vpop.eup %6032  ;;  %v4623_v2 = vadd.f32 %v8742_v34, %v4292_v13  ;;  %v4293_v26 = vmul.f32 %v6031_v29, %v9333_v56  ;;  %6058 = vpow2.f32 %v4940_v1 }
 0x4c3   : > { %v6035_v35 = vpop.eup %6034  ;;  %v4668_v33 = vadd.f32 %v8680_v0, %v4625_v25  ;;  %v4626_v59 = vadd.f32 %v8754_v60, %v4295_v4  ;;  %v4190_v47 = vadd.f32 1.0, %v6033_v62  ;;  %6060 = vpow2.f32 %v4943_v20  ;;  %v8902_v20 = vpop.f32.mrf.mxu1 }
 0x4c4   : > { %v6037_v18 = vpop.eup %6036  ;;  %v4666_v39 = vadd.f32 %v8680_v0, %v4623_v2  ;;  %v4624_v43 = vadd.f32 %v8766_v38, %v4293_v26  ;;  %v4188_v40 = vadd.f32 1.0, %v6035_v35  ;;  %6062 = vpow2.f32 %v4941_v22 }
 0x4c5   : > { %v6039_v34 = vpop.eup %6038  ;;  %v4704_v50 = vmul.f32 %v4668_v33, %v9334_v46  ;;  %v4669_v31 = vadd.f32 %v8680_v0, %v4626_v59  ;;  %6064 = vrcp.f32 %v4190_v47  ;;  %v4191_v57 = vadd.f32 1.0, %v6037_v18  ;;  %v8904_v59 = vpop.f32.mrf.mxu1 }
 0x4c6   : > { %v6041_v60 = vpop.eup %6040  ;;  %v4702_v23 = vmul.f32 %v4666_v39, %v9335_v51  ;;  %v4667_v28 = vadd.f32 %v8680_v0, %v4624_v43  ;;  %6066 = vrcp.f32 %v4188_v40  ;;  %v4189_v38 = vadd.f32 1.0, %v6039_v34  ;;  %v9338_v40 = vld [vmem:[#allocation16_spill] sm:$0xff]  ;;  %v9340_v51 = vld [vmem:[#allocation18_spill] sm:$0xff] }
 0x4c7   : > { %v6043_v16 = vpop.eup %6042  ;;  %4740 = vst [vmem:[%s8714_s17 + $0x90] sm:$0xff] %v4704_v50  ;;  %v4705_v14 = vmul.f32 %v4669_v31, %v9336_v37  ;;  %6068 = vrcp.f32 %v4191_v57  ;;  %v4194_v8 = vadd.f32 1.0, %v6041_v60  ;;  %v9339_v50 = vld [vmem:[#allocation17_spill] sm:$0xff] }
 0x4c8   : > { %v6045_v11 = vpop.eup %6044  ;;  %4738 = vst [vmem:[%s8714_s17 + $0x80] sm:$0xff] %v4702_v23  ;;  %v4703_v17 = vmul.f32 %v4667_v28, %v9337_v32  ;;  %6070 = vrcp.f32 %v4189_v38  ;;  %v4192_v49 = vadd.f32 1.0, %v6043_v16  ;;  %v8910_v28 = vpop.f32.mrf.mxu1  ;;  %v9341_v37 = vld [vmem:[#allocation21_spill] sm:$0xff] }
 0x4c9   : > { %v6047_v1 = vpop.eup %6046  ;;  %4741 = vst [vmem:[%s8714_s17 + $0x98] sm:$0xff] %v4705_v14  ;;  %6072 = vrcp.f32 %v4194_v8  ;;  %v4195_v45 = vadd.f32 1.0, %v6045_v11 }
 0x4ca   : > { %v6049_v6 = vpop.eup %6048  ;;  %4739 = vst [vmem:[%s8714_s17 + $0x88] sm:$0xff] %v4703_v17  ;;  %6074 = vrcp.f32 %v4192_v49  ;;  %v4193_v54 = vadd.f32 1.0, %v6047_v1 }
 0x4cb   : > { %v6051_v48 = vpop.eup %6050  ;;  %6076 = vrcp.f32 %v4195_v45  ;;  %v4198_v13 = vadd.f32 1.0, %v6049_v6  ;;  %v9342_v45 = vld [vmem:[#allocation23_spill] sm:$0xff] }
 0x4cc   : > { %v6053_v29 = vpop.eup %6052  ;;  %6078 = vrcp.f32 %v4193_v54  ;;  %v4196_v25 = vadd.f32 1.0, %v6051_v48  ;;  %v9343_v48 = vld [vmem:[#allocation54_spill] sm:$0xff] }
 0x4cd   : > { %v6055_v5 = vpop.eup %6054  ;;  %6080 = vrcp.f32 %v4198_v13  ;;  %v4199_v4 = vadd.f32 1.0, %v6053_v29 }
 0x4ce   : > { %v6057_v62 = vpop.eup %6056  ;;  %6082 = vrcp.f32 %v4196_v25  ;;  %v4197_v2 = vadd.f32 1.0, %v6055_v5  ;;  %v4592_v25 = vpop.f32.mrf.mxu1  ;;  %v9344_v5 = vld [vmem:[#allocation52_spill] sm:$0xff] }
 0x4cf   : > { %v6059_v56 = vpop.eup %6058  ;;  %6084 = vrcp.f32 %v4199_v4  ;;  %v4202_v26 = vadd.f32 1.0, %v6057_v62 }
 0x4d0   : > { %v6061_v22 = vpop.eup %6060  ;;  %6086 = vrcp.f32 %v4197_v2  ;;  %v4200_v35 = vadd.f32 1.0, %v6059_v56 }
 0x4d1   : > { %v6063_v33 = vpop.eup %6062  ;;  %6088 = vrcp.f32 %v4202_v26  ;;  %v4203_v47 = vadd.f32 1.0, %v6061_v22  ;;  %v9345_v26 = vld [vmem:[#allocation55_spill] sm:$0xff] }
 0x4d2   : > { %v6065_v18 = vpop.eup %6064  ;;  %6090 = vrcp.f32 %v4200_v35  ;;  %v4201_v39 = vadd.f32 1.0, %v6063_v33 }
 0x4d3   : > { %v6067_v43 = vpop.eup %6066  ;;  %v4298_v34 = vmul.f32 %v6065_v18, %v9338_v40  ;;  %6092 = vrcp.f32 %v4203_v47  ;;  %v9346_v47 = vld [vmem:[#allocation53_spill] sm:$0xff] }
 0x4d4   : > { %v6069_v46 = vpop.eup %6068  ;;  %v4296_v31 = vmul.f32 %v6067_v43, %v9339_v50  ;;  %6094 = vrcp.f32 %v4201_v39  ;;  %v9347_v40 = vld [vmem:[#allocation25_spill] sm:$0xff]  ;;  %v5838_v50 = vpop.f32.mrf.mxu1 }
 0x4d5   : > { %v6071_v57 = vpop.eup %6070  ;;  %v4629_v60 = vadd.f32 %v8778_v21, %v4298_v34  ;;  %v4299_v23 = vmul.f32 %v6069_v46, %v9340_v51 }
 0x4d6   : > { %v6073_v38 = vpop.eup %6072  ;;  %v4627_v16 = vadd.f32 %v8788_v30, %v4296_v31  ;;  %v4297_v14 = vmul.f32 %v6071_v57, %v9341_v37  ;;  %v9348_v57 = vld [vmem:[#allocation45_spill] sm:$0xff] }
 0x4d7   : > { %v6075_v8 = vpop.eup %6074  ;;  %v4672_v11 = vadd.f32 %v8680_v0, %v4629_v60  ;;  %v4630_v32 = vadd.f32 %v8796_v10, %v4299_v23  ;;  %v4302_v17 = vmul.f32 %v6073_v38, %v8664_v42  ;;  %v9349_v38 = vld [vmem:[#allocation2_spill] sm:$0xff] }
 0x4d8   : > { %v6077_v49 = vpop.eup %6076  ;;  %v4670_v21 = vadd.f32 %v8680_v0, %v4627_v16  ;;  %v4628_v1 = vadd.f32 %v8806_v12, %v4297_v14  ;;  %v4300_v6 = vmul.f32 %v6075_v8, %v9342_v45  ;;  %v9350_v8 = vld [vmem:[#allocation19_spill] sm:$0xff]  ;;  %v4595_v45 = vpop.f32.mrf.mxu1 }
 0x4d9   : > { %v6079_v54 = vpop.eup %6078  ;;  %v4708_v30 = vmul.f32 %v4672_v11, %v9343_v48  ;;  %v4673_v13 = vadd.f32 %v8680_v0, %v4630_v32  ;;  %v4633_v29 = vadd.f32 %v8820_v61, %v4302_v17  ;;  %v4303_v10 = vmul.f32 %v6077_v49, %v8672_v15  ;;  %v9351_v49 = vld [vmem:[#allocation8_spill] sm:$0xff] }
 0x4da   : > { %v6081_v42 = vpop.eup %6080  ;;  %v4706_v4 = vmul.f32 %v4670_v21, %v9344_v5  ;;  %v4671_v62 = vadd.f32 %v8680_v0, %v4628_v1  ;;  %v4631_v12 = vadd.f32 %v8843_v53, %v4300_v6  ;;  %v4301_v2 = vmul.f32 %v6079_v54, %v8675_v63  ;;  %v9352_v6 = vld [vmem:[#allocation6_spill] sm:$0xff] }
 0x4db   : > { %v6083_v56 = vpop.eup %6082  ;;  %4744 = vst [vmem:[%s8714_s17 + $0xb0] sm:$0xff] %v4708_v30  ;;  %v4709_v22 = vmul.f32 %v4673_v13, %v9345_v26  ;;  %v4676_v35 = vadd.f32 %v8680_v0, %v4633_v29  ;;  %v4634_v61 = vadd.f32 %v8862_v3, %v4303_v10  ;;  %v4306_v15 = vmul.f32 %v6081_v42, %v8828_v19  ;;  %v9353_v30 = vld [vmem:[#allocation34_spill] sm:$0xff] }
 0x4dc   : > { %v6085_v33 = vpop.eup %6084  ;;  %4742 = vst [vmem:[%s8714_s17 + $0xa0] sm:$0xff] %v4706_v4  ;;  %v4707_v18 = vmul.f32 %v4671_v62, %v9346_v47  ;;  %v4674_v39 = vadd.f32 %v8680_v0, %v4631_v12  ;;  %v4632_v53 = vadd.f32 %v8878_v9, %v4301_v2  ;;  %v4304_v63 = vmul.f32 %v6083_v56, %v8831_v55  ;;  %v9356_v62 = vld [vmem:[#allocation35_spill] sm:$0xff]  ;;  %v9357_v56 = vld [vmem:[#allocation38_spill] sm:$0xff] }
 0x4dd   : > { %v6087_v43 = vpop.eup %6086  ;;  %4745 = vst [vmem:[%s8714_s17 + $0xb8] sm:$0xff] %v4709_v22  ;;  %v4712_v34 = vmul.f32 %v4676_v35, %v9347_v40  ;;  %v4677_v3 = vadd.f32 %v8680_v0, %v4634_v61  ;;  %v4637_v46 = vadd.f32 %v8890_v24, %v4306_v15  ;;  %v4307_v19 = vmul.f32 %v6085_v33, %v8836_v27  ;;  %v9358_v22 = vld [vmem:[#allocation28_spill] sm:$0xff] }
 0x4de   : > { %v6089_v31 = vpop.eup %6088  ;;  %4743 = vst [vmem:[%s8714_s17 + $0xa8] sm:$0xff] %v4707_v18  ;;  %v4710_v60 = vmul.f32 %v4674_v39, %v9348_v57  ;;  %v4675_v9 = vadd.f32 %v8680_v0, %v4632_v53  ;;  %v4635_v55 = vadd.f32 %v8899_v36, %v4304_v63  ;;  %v4305_v51 = vmul.f32 %v6087_v43, %v8839_v52 }
 0x4df   : > { %v6091_v23 = vpop.eup %6090  ;;  %4748 = vst [vmem:[%s8714_s17 + $0xd0] sm:$0xff] %v4712_v34  ;;  %v4713_v16 = vmul.f32 %v4677_v3, %v9349_v38  ;;  %v4680_v24 = vadd.f32 %v8680_v0, %v4637_v46  ;;  %v4638_v27 = vadd.f32 %v8902_v20, %v4307_v19  ;;  %v4310_v37 = vmul.f32 %v6089_v31, %v8847_v44 }
 0x4e0   : > { %v6093_v14 = vpop.eup %6092  ;;  %4746 = vst [vmem:[%s8714_s17 + $0xc0] sm:$0xff] %v4710_v60  ;;  %v4711_v11 = vmul.f32 %v4675_v9, %v9350_v8  ;;  %v4678_v36 = vadd.f32 %v8680_v0, %v4635_v55  ;;  %v4636_v52 = vadd.f32 %v8904_v59, %v4305_v51  ;;  %v4308_v32 = vmul.f32 %v6091_v23, %v8852_v58 }
 0x4e1   : > { %v6095_v17 = vpop.eup %6094  ;;  %4749 = vst [vmem:[%s8714_s17 + $0xd8] sm:$0xff] %v4713_v16  ;;  %v4716_v21 = vmul.f32 %v4680_v24, %v9351_v49  ;;  %v4681_v20 = vadd.f32 %v8680_v0, %v4638_v27  ;;  %v4641_v44 = vadd.f32 %v8910_v28, %v4310_v37  ;;  %v4311_v1 = vmul.f32 %v6093_v14, %v8870_v7  ;;  %v9354_v7 = vld [vmem:[#allocation33_spill] sm:$0xff] }
 0x4e2   : > { %4747 = vst [vmem:[%s8714_s17 + $0xc8] sm:$0xff] %v4711_v11  ;;  %v4714_v54 = vmul.f32 %v4678_v36, %v9352_v6  ;;  %v4679_v59 = vadd.f32 %v8680_v0, %v4636_v52  ;;  %v4639_v58 = vadd.f32 %v4592_v25, %v4308_v32  ;;  %v4309_v48 = vmul.f32 %v6095_v17, %v8873_v41  ;;  %v9355_v25 = vld [vmem:[#allocation36_spill] sm:$0xff] }
 0x4e3   : > { %4752 = vst [vmem:[%s8714_s17 + $0xf0] sm:$0xff] %v4716_v21  ;;  %v4717_v13 = vmul.f32 %v4681_v20, %v9353_v30  ;;  %v4684_v28 = vadd.f32 %v8680_v0, %v4641_v44  ;;  %v4642_v29 = vadd.f32 %v5838_v50, %v4311_v1 }
 0x4e4   : > { %4750 = vst [vmem:[%s8714_s17 + $0xe0] sm:$0xff] %v4714_v54  ;;  %v4715_v10 = vmul.f32 %v4679_v59, %v9354_v7  ;;  %v4682_v42 = vadd.f32 %v8680_v0, %v4639_v58  ;;  %v4640_v5 = vadd.f32 %v4595_v45, %v4309_v48 }
 0x4e5   : > { %4753 = vst [vmem:[%s8714_s17 + $0xf8] sm:$0xff] %v4717_v13  ;;  %v4720_v4 = vmul.f32 %v4684_v28, %v9355_v25  ;;  %v4685_v41 = vadd.f32 %v8680_v0, %v4642_v29 }
 0x4e6   : > { %4751 = vst [vmem:[%s8714_s17 + $0xe8] sm:$0xff] %v4715_v10  ;;  %v4718_v12 = vmul.f32 %v4682_v42, %v9356_v62  ;;  %v4683_v2 = vadd.f32 %v8680_v0, %v4640_v5 }
 0x4e7   : > { %4756 = vst [vmem:[%s8714_s17 + $0x110] sm:$0xff] %v4720_v4  ;;  %v4721_v26 = vmul.f32 %v4685_v41, %v9357_v56 }
 0x4e8   : > { %4754 = vst [vmem:[%s8714_s17 + $0x100] sm:$0xff] %v4718_v12  ;;  %v4719_v35 = vmul.f32 %v4683_v2, %v9358_v22 }
 0x4e9   : > { %4757 = vst [vmem:[%s8714_s17 + $0x118] sm:$0xff] %v4721_v26 }
 0x4ea   : > { %4755 = vst [vmem:[%s8714_s17 + $0x108] sm:$0xff] %v4719_v35 }
 0x4eb PF: > { %s20_s13 = sadd.s32 1, %s6102_s13  }
 0x4ec   : > { %p17_p4 = scmp.ge.s32.totalorder %s20_s13, 4  }
 0x4ee   :  { %19 = sbr.rel (!%p17_p4) target bundleno = 1 (0x1), region = 93 }

</bundles_post_ra>
